<compile_context>
chip_gen: v7x
topology: tpu7x:2x2x1
jax: 0.10.0
libtpu: 0.0.40
codegen_flags: <defaults>
</compile_context>

<pallas_src>
import jax
import jax.numpy as jnp
from jax.experimental import pallas as pl
from jax.experimental.pallas import tpu as pltpu

# ----------------------------- model dimensions -----------------------------
NUM_SPRITES = 32          # len(SPRITE_DESC) is external; pick a deterministic size
NUM_CHARS = 9
NUM_INPUTS = 14
EMB_DIM = 5
HID = 32                  # hidden size of both LSTMs
NUM_LAYERS = 3
INFO_IN = 5 + 5 + EMB_DIM + EMB_DIM + EMB_DIM          # 25
INFO_IN_PAD = 32                                       # padded to sublane multiple
CTRL_EXTRA = 4 + EMB_DIM + EMB_DIM                     # 14
CTRL_EXTRA_PAD = 16                                    # padded to sublane multiple
CTRL_IN = HID + CTRL_EXTRA                             # 46
FC_IN = HID + HID                                      # 64
LANES = 128                                            # 4*HID == one full vreg row
NEG_BIG = -1e30                                        # "-inf" bias for padded logit lanes


# --------------------------------- kernel -----------------------------------
def mknet_kernel(
    # time-major, batch/feature-padded inputs
    i_info_ref, ctrl_extra_ref,
    h0i_ref, c0i_ref, h0c_ref, c0c_ref,
    # lstm_info (gate order i,f,o,g)
    wxi0_ref, whi0_ref, bi0_ref,
    wi1_ref, bi1_ref, wi2_ref, bi2_ref,
    # lstm_controls (layer-0 extra-feature x-weight separate; [info|h] rows fused)
    wxc0e_ref, bc0_ref, wc0f_ref,
    wc1_ref, bc1_ref, wc2_ref, bc2_ref,
    # fc head (fw1 kept stacked 64x32; fw3/fb3 lane-padded to 128)
    fw1_ref, fb1_ref, fw2_ref, fb2_ref, fw3_ref, fb3_ref,
    # outputs
    p_ref, state_out_ref,
    # scratch (VMEM staging to bound vreg live ranges)
    xpi_ref, xpc_ref, iout_ref,
):
    H = HID
    Bp = h0i_ref.shape[1]
    T = i_info_ref.shape[0] // Bp

    def dot(a, b):
        return jnp.dot(a, b, preferred_element_type=jnp.float32)

    def lstm_gates(z, c):
        # gate order (i, f, o, g): one sigmoid over the full 4H vreg, one tanh slice
        s = jax.nn.sigmoid(z)
        g = jnp.tanh(z[:, 3 * H:4 * H])
        c_new = s[:, H:2 * H] * c + s[:, 0:H] * g
        h_new = s[:, 2 * H:3 * H] * jnp.tanh(c_new)
        return h_new, c_new

    # ---- hoisted, time-invariant input projections (layer-0 biases folded in),
    #      staged in VMEM scratch so they don't pin vregs across the unroll ----
    xpi_ref[...] = dot(i_info_ref[...], wxi0_ref[...]) + bi0_ref[...]       # (T*Bp, 4H)
    xpc_ref[...] = dot(ctrl_extra_ref[...], wxc0e_ref[...]) + bc0_ref[...]  # (T*Bp, 4H)

    # ---- weights/biases read once; biases pre-broadcast (no per-iter broadcast) ----
    whi0 = whi0_ref[...]
    wi1 = wi1_ref[...]
    wi2 = wi2_ref[...]
    wc0f = wc0f_ref[...]
    wc1 = wc1_ref[...]
    wc2 = wc2_ref[...]
    fw1 = fw1_ref[...]
    fw2 = fw2_ref[...]
    fw3 = fw3_ref[...]
    bi1 = jnp.broadcast_to(bi1_ref[...], (Bp, 4 * H))
    bi2 = jnp.broadcast_to(bi2_ref[...], (Bp, 4 * H))
    bc1 = jnp.broadcast_to(bc1_ref[...], (Bp, 4 * H))
    bc2 = jnp.broadcast_to(bc2_ref[...], (Bp, 4 * H))
    fb1 = jnp.broadcast_to(fb1_ref[...], (Bp, fw1_ref.shape[1]))
    fb2 = jnp.broadcast_to(fb2_ref[...], (Bp, fw2_ref.shape[1]))
    fb3 = jnp.broadcast_to(fb3_ref[...], (Bp, LANES))

    hi = [h0i_ref[l] for l in range(NUM_LAYERS)]
    ci = [c0i_ref[l] for l in range(NUM_LAYERS)]
    hc = [h0c_ref[l] for l in range(NUM_LAYERS)]
    cc = [c0c_ref[l] for l in range(NUM_LAYERS)]

    # ---- lstm_info: all T steps (independent of the controls / fc chain) ----
    for t in range(T):  # static unroll: T is small and known at trace time
        row = slice(t * Bp, (t + 1) * Bp)
        z = xpi_ref[row, :] + dot(hi[0], whi0)
        hi[0], ci[0] = lstm_gates(z, ci[0])
        # fused x/h push: (Bp,64)@(64,128)
        z = dot(jnp.concatenate([hi[0], hi[1]], axis=-1), wi1) + bi1
        hi[1], ci[1] = lstm_gates(z, ci[1])
        z = dot(jnp.concatenate([hi[1], hi[2]], axis=-1), wi2) + bi2
        hi[2], ci[2] = lstm_gates(z, ci[2])
        iout_ref[row, :] = hi[2]          # staged in VMEM for the second chain

    # ---- lstm_controls + fc head: all T steps ----
    for t in range(T):
        row = slice(t * Bp, (t + 1) * Bp)
        info_out = iout_ref[row, :]
        z = xpc_ref[row, :] + dot(jnp.concatenate([info_out, hc[0]], axis=-1), wc0f)
        hc[0], cc[0] = lstm_gates(z, cc[0])
        z = dot(jnp.concatenate([hc[0], hc[1]], axis=-1), wc1) + bc1
        hc[1], cc[1] = lstm_gates(z, cc[1])
        z = dot(jnp.concatenate([hc[1], hc[2]], axis=-1), wc2) + bc2
        hc[2], cc[2] = lstm_gates(z, cc[2])
        ctrl_out = hc[2]

        # fc head: Linear/ReLU/Linear/ReLU/Linear/Softmax (lane-dense, 128-wide)
        y = jnp.maximum(dot(jnp.concatenate([info_out, ctrl_out], axis=-1), fw1) + fb1, 0.0)
        y = jnp.maximum(dot(y, fw2) + fb2, 0.0)
        logits = dot(y, fw3) + fb3        # padded lanes get ~ -1e30 bias (f32 safe)
        m = jnp.max(logits, axis=-1, keepdims=True)
        e = jnp.exp(logits - m)           # exp of padded lanes underflows to 0
        # exact normalization (approx reciprocal broke the sum-to-1 guarantee)
        p_ref[row, :] = e / jnp.sum(e, axis=-1, keepdims=True)

    # ---- pack final LSTM states into one lane-dense (NUM_LAYERS*Bp, 128) slab ----
    for l in range(NUM_LAYERS):
        row = slice(l * Bp, (l + 1) * Bp)
        state_out_ref[row, :] = jnp.concatenate([hi[l], ci[l], hc[l], cc[l]], axis=-1)


# ------------------------------ parameter init -------------------------------
def init_params(key):
    """Canonical PyTorch-layout parameters (combined LSTM weights, i,f,g,o gate order)."""
    ks = iter(jax.random.split(key, 64))
    p = {}
    p["emb_actions"] = jax.random.normal(next(ks), (NUM_SPRITES, EMB_DIM), jnp.float32)
    p["emb_chars"] = jax.random.normal(next(ks), (NUM_CHARS, EMB_DIM), jnp.float32)
    p["emb_inputs"] = jax.random.normal(next(ks), (NUM_INPUTS, EMB_DIM), jnp.float32)

    k_lstm = 1.0 / jnp.sqrt(jnp.float32(HID))

    def lstm_layer(key, in_size):
        k1, k2, k3, k4 = jax.random.split(key, 4)
        w_ih = jax.random.uniform(k1, (4 * HID, in_size), jnp.float32, -k_lstm, k_lstm)
        w_hh = jax.random.uniform(k2, (4 * HID, HID), jnp.float32, -k_lstm, k_lstm)
        b_ih = jax.random.uniform(k3, (4 * HID,), jnp.float32, -k_lstm, k_lstm)
        b_hh = jax.random.uniform(k4, (4 * HID,), jnp.float32, -k_lstm, k_lstm)
        w = jnp.concatenate([w_ih.T, w_hh.T], axis=0)        # (in+H, 4H)
        b = (b_ih + b_hh).reshape(1, 4 * HID)
        return w, b

    for l, in_size in enumerate([INFO_IN, HID, HID]):
        p[f"wi{l}"], p[f"bi{l}"] = lstm_layer(next(ks), in_size)
    for l, in_size in enumerate([CTRL_IN, HID, HID]):
        p[f"wc{l}"], p[f"bc{l}"] = lstm_layer(next(ks), in_size)

    def linear(key, in_f, out_f):
        k1, k2 = jax.random.split(key)
        bound = 1.0 / jnp.sqrt(jnp.float32(in_f))
        w = jax.random.uniform(k1, (in_f, out_f), jnp.float32, -bound, bound)
        b = jax.random.uniform(k2, (1, out_f), jnp.float32, -bound, bound)
        return w, b

    p["fw1"], p["fb1"] = linear(next(ks), FC_IN, 32)
    p["fw2"], p["fb2"] = linear(next(ks), 32, 32)
    p["fw3"], p["fb3"] = linear(next(ks), 32, NUM_INPUTS)
    return p


def pack_params(p):
    """Repack canonical params into the kernel layout (math-preserving).

    Called ONCE at model load -- not inside the jitted forward -- so the gate
    reorder / splits / padding never show up as per-call XLA glue.
    """
    def reorder(x):
        # last dim is 4H in PyTorch gate order (i, f, g, o) -> kernel order (i, f, o, g)
        i, f, g, o = jnp.split(x, 4, axis=-1)
        return jnp.concatenate([i, f, o, g], axis=-1)

    k = {"emb_actions": p["emb_actions"],
         "emb_chars": p["emb_chars"],
         "emb_inputs": p["emb_inputs"]}

    # lstm_info: layer 0 split into x / h (x rows zero-padded 25->32); layers 1/2
    # kept STACKED (in+H, 4H) so the kernel does one fused push per cell.
    w0 = reorder(p["wi0"]); b0 = reorder(p["bi0"])
    k["wxi0"] = jnp.pad(w0[:INFO_IN], ((0, INFO_IN_PAD - INFO_IN), (0, 0)))
    k["whi0"] = w0[INFO_IN:]
    k["bi0"] = b0
    k["wi1"], k["bi1"] = reorder(p["wi1"]), reorder(p["bi1"])
    k["wi2"], k["bi2"] = reorder(p["wi2"]), reorder(p["bi2"])

    # lstm_controls: layer-0 rows are [info_out(32) | extra(14) | h(32)].
    # extra rows go to the hoisted projection (zero-padded 14->16); the
    # info_out and h rows are fused into one (64, 4H) per-step weight.
    w0 = reorder(p["wc0"]); b0 = reorder(p["bc0"])
    wxc0i = w0[:HID]
    wxc0e = w0[HID:HID + CTRL_EXTRA]
    whc0 = w0[HID + CTRL_EXTRA:]
    k["wxc0e"] = jnp.pad(wxc0e, ((0, CTRL_EXTRA_PAD - CTRL_EXTRA), (0, 0)))
    k["bc0"] = b0
    k["wc0f"] = jnp.concatenate([wxc0i, whc0], axis=0)
    k["wc1"], k["bc1"] = reorder(p["wc1"]), reorder(p["bc1"])
    k["wc2"], k["bc2"] = reorder(p["wc2"]), reorder(p["bc2"])

    # fc head: fw1 kept stacked (64,32) -> one push on [info_out | ctrl_out];
    # fw3/fb3 lane-padded to 128 (zero weights, very-negative bias) so the
    # 128-lane softmax matches the 14-action softmax after slicing.
    k["fw1"], k["fb1"] = p["fw1"], p["fb1"]
    k["fw2"], k["fb2"] = p["fw2"], p["fb2"]
    k["fw3"] = jnp.pad(p["fw3"], ((0, 0), (0, LANES - NUM_INPUTS)))
    k["fb3"] = jnp.pad(p["fb3"], ((0, 0), (0, LANES - NUM_INPUTS)),
                       constant_values=NEG_BIG)
    return k


# --------------------------------- wrapper -----------------------------------
@jax.jit
def mknet_forward(packed, state, prev_info_state, prev_ctrl_state):
    """Equivalent of MKNet.forward(state, prev_lstm_info_state, prev_lstm_controls_state).

    `packed` is the output of pack_params() (computed once at model load).
    """
    B, T, _ = state.shape
    Bp = ((B + 7) // 8) * 8          # pad batch to a full sublane multiple
    pad_b = Bp - B
    h0i, c0i = prev_info_state
    h0c, c0c = prev_ctrl_state

    # ---- glue: embedding gathers + static feature concat (index columns 14..18) ----
    player_sprite = state[:, :, 14].astype(jnp.int32)
    prev_input = state[:, :, 15].astype(jnp.int32)
    player_char = state[:, :, 16].astype(jnp.int32)
    enemy_sprite = state[:, :, 17].astype(jnp.int32)
    enemy_char = state[:, :, 18].astype(jnp.int32)

    i_info = jnp.concatenate(
        [state[:, :, :10],
         jnp.take(packed["emb_actions"], player_sprite, axis=0),
         jnp.take(packed["emb_actions"], enemy_sprite, axis=0),
         jnp.take(packed["emb_chars"], enemy_char, axis=0)],
        axis=-1).astype(jnp.float32)                         # (B, T, 25)
    ctrl_extra = jnp.concatenate(
        [state[:, :, 10:14],
         jnp.take(packed["emb_inputs"], prev_input, axis=0),
         jnp.take(packed["emb_chars"], player_char, axis=0)],
        axis=-1).astype(jnp.float32)                         # (B, T, 14)

    # batch-pad, feature-pad and go time-major: each per-step slab is aligned
    def to_time_major(x, feat_pad):
        x = jnp.pad(x, ((0, pad_b), (0, 0), (0, feat_pad)))
        return jnp.transpose(x, (1, 0, 2)).reshape(T * Bp, x.shape[-1])

    def pad_state(s):
        return jnp.pad(s, ((0, 0), (0, pad_b), (0, 0)))

    inputs = (
        to_time_major(i_info, INFO_IN_PAD - INFO_IN),
        to_time_major(ctrl_extra, CTRL_EXTRA_PAD - CTRL_EXTRA),
        pad_state(h0i), pad_state(c0i), pad_state(h0c), pad_state(c0c),
        packed["wxi0"], packed["whi0"], packed["bi0"],
        packed["wi1"], packed["bi1"], packed["wi2"], packed["bi2"],
        packed["wxc0e"], packed["bc0"], packed["wc0f"],
        packed["wc1"], packed["bc1"], packed["wc2"], packed["bc2"],
        packed["fw1"], packed["fb1"], packed["fw2"], packed["fb2"],
        packed["fw3"], packed["fb3"],
    )

    vmem = pl.BlockSpec(memory_space=pltpu.MemorySpace.VMEM)
    out_shape = (
        jax.ShapeDtypeStruct((T * Bp, LANES), jnp.float32),            # lane-dense probs
        jax.ShapeDtypeStruct((NUM_LAYERS * Bp, 4 * HID), jnp.float32), # [h_i|c_i|h_c|c_c]
    )
    scratch = [
        pltpu.VMEM((T * Bp, 4 * HID), jnp.float32),   # hoisted info projection
        pltpu.VMEM((T * Bp, 4 * HID), jnp.float32),   # hoisted controls projection
        pltpu.VMEM((T * Bp, HID), jnp.float32),       # staged info_out per step
    ]

    p_pad, state_pack = pl.pallas_call(
        mknet_kernel,
        out_shape=out_shape,
        in_specs=[vmem] * len(inputs),
        out_specs=tuple([vmem] * len(out_shape)),
        scratch_shapes=scratch,
    )(*inputs)

    p_actions = p_pad.reshape(T, Bp, LANES).transpose(1, 0, 2)[:B, :, :NUM_INPUTS]
    sp = state_pack.reshape(NUM_LAYERS, Bp, 4 * HID)[:, :B, :]
    h_info = sp[:, :, 0 * HID:1 * HID]
    c_info = sp[:, :, 1 * HID:2 * HID]
    h_ctrl = sp[:, :, 2 * HID:3 * HID]
    c_ctrl = sp[:, :, 3 * HID:4 * HID]
    return p_actions, (h_info, c_info), (h_ctrl, c_ctrl)


# ---------------------------- pure-JAX reference ------------------------------
def mknet_reference(params, state, prev_info_state, prev_ctrl_state):
    B, T, _ = state.shape
    player_sprite = state[:, :, 14].astype(jnp.int32)
    prev_input = state[:, :, 15].astype(jnp.int32)
    player_char = state[:, :, 16].astype(jnp.int32)
    enemy_sprite = state[:, :, 17].astype(jnp.int32)
    enemy_char = state[:, :, 18].astype(jnp.int32)

    i_info = jnp.concatenate(
        [state[:, :, :10],
         jnp.take(params["emb_actions"], player_sprite, axis=0),
         jnp.take(params["emb_actions"], enemy_sprite, axis=0),
         jnp.take(params["emb_chars"], enemy_char, axis=0)], axis=-1)
    ctrl_extra = jnp.concatenate(
        [state[:, :, 10:14],
         jnp.take(params["emb_inputs"], prev_input, axis=0),
         jnp.take(params["emb_chars"], player_char, axis=0)], axis=-1)

    def cell(x, h, c, w, b):
        z = jnp.concatenate([x, h], axis=-1) @ w + b
        i_g = jax.nn.sigmoid(z[:, 0 * HID:1 * HID])
        f_g = jax.nn.sigmoid(z[:, 1 * HID:2 * HID])
        g_g = jnp.tanh(z[:, 2 * HID:3 * HID])
        o_g = jax.nn.sigmoid(z[:, 3 * HID:4 * HID])
        c_new = f_g * c + i_g * g_g
        return o_g * jnp.tanh(c_new), c_new

    hi = [prev_info_state[0][l] for l in range(NUM_LAYERS)]
    ci = [prev_info_state[1][l] for l in range(NUM_LAYERS)]
    hc = [prev_ctrl_state[0][l] for l in range(NUM_LAYERS)]
    cc = [prev_ctrl_state[1][l] for l in range(NUM_LAYERS)]
    ps = []
    for t in range(T):
        x = i_info[:, t, :]
        for l in range(NUM_LAYERS):
            hi[l], ci[l] = cell(x, hi[l], ci[l], params[f"wi{l}"], params[f"bi{l}"])
            x = hi[l]
        info_out = x
        x = jnp.concatenate([info_out, ctrl_extra[:, t, :]], axis=-1)
        for l in range(NUM_LAYERS):
            hc[l], cc[l] = cell(x, hc[l], cc[l], params[f"wc{l}"], params[f"bc{l}"])
            x = hc[l]
        y = jnp.concatenate([info_out, x], axis=-1)
        y = jnp.maximum(y @ params["fw1"] + params["fb1"], 0.0)
        y = jnp.maximum(y @ params["fw2"] + params["fb2"], 0.0)
        ps.append(jax.nn.softmax(y @ params["fw3"] + params["fb3"], axis=-1))
    p = jnp.stack(ps, axis=1)
    return p, (jnp.stack(hi), jnp.stack(ci)), (jnp.stack(hc), jnp.stack(cc))


# ----------------------------------- main ------------------------------------
if __name__ == "__main__":
    B, T = 2, 8
    key = jax.random.PRNGKey(0)
    k_par, k_flt, k_sp1, k_in, k_ch1, k_sp2, k_ch2, k_h = jax.random.split(key, 8)

    params = init_params(k_par)
    packed = pack_params(params)      # done once at model load (not per call)

    # Build a game-state tensor: 10 floats, 4 toggle flags, 5 integer class ids.
    floats = jax.random.uniform(k_flt, (B, T, 10), jnp.float32)
    toggles = jax.random.bernoulli(k_h, 0.5, (B, T, 4)).astype(jnp.float32)
    player_sprite = jax.random.randint(k_sp1, (B, T, 1), 0, NUM_SPRITES)
    prev_input = jax.random.randint(k_in, (B, T, 1), 0, NUM_INPUTS)
    player_char = jax.random.randint(k_ch1, (B, T, 1), 0, NUM_CHARS)
    enemy_sprite = jax.random.randint(k_sp2, (B, T, 1), 0, NUM_SPRITES)
    enemy_char = jax.random.randint(k_ch2, (B, T, 1), 0, NUM_CHARS)
    state = jnp.concatenate(
        [floats, toggles,
         player_sprite.astype(jnp.float32), prev_input.astype(jnp.float32),
         player_char.astype(jnp.float32), enemy_sprite.astype(jnp.float32),
         enemy_char.astype(jnp.float32)],
        axis=-1)                                             # (B, T, 19)

    zeros_state = jnp.zeros((NUM_LAYERS, B, HID), jnp.float32)
    prev_info_state = (zeros_state, zeros_state)
    prev_ctrl_state = (zeros_state, zeros_state)

    p_actions, info_state, ctrl_state = mknet_forward(
        packed, state, prev_info_state, prev_ctrl_state)
    jax.block_until_ready(p_actions)
    jax.block_until_ready(info_state)
    jax.block_until_ready(ctrl_state)

    # Sanity check against a pure-JAX reference of the same math.
    p_ref, info_ref, ctrl_ref = mknet_reference(
        params, state, prev_info_state, prev_ctrl_state)
    assert p_actions.shape == (B, T, NUM_INPUTS)
    assert jnp.allclose(p_actions, p_ref, atol=1e-3, rtol=1e-3)
    assert jnp.allclose(info_state[0], info_ref[0], atol=1e-3, rtol=1e-3)
    assert jnp.allclose(info_state[1], info_ref[1], atol=1e-3, rtol=1e-3)
    assert jnp.allclose(ctrl_state[0], ctrl_ref[0], atol=1e-3, rtol=1e-3)
    assert jnp.allclose(ctrl_state[1], ctrl_ref[1], atol=1e-3, rtol=1e-3)
    # exact softmax normalization -> probabilities sum to 1
    assert jnp.allclose(jnp.sum(p_actions, axis=-1), 1.0, atol=1e-3)

    print("KERNEL_OK")
</pallas_src>

<mosaic_0001>
module attributes {stable_mosaic.version = 11 : i64} {
  func.func @mknet_kernel(%arg0: memref<64x32xf32, #tpu.memory_space<vmem>>, %arg1: memref<64x16xf32, #tpu.memory_space<vmem>>, %arg2: memref<3x8x32xf32, #tpu.memory_space<vmem>>, %arg3: memref<3x8x32xf32, #tpu.memory_space<vmem>>, %arg4: memref<3x8x32xf32, #tpu.memory_space<vmem>>, %arg5: memref<3x8x32xf32, #tpu.memory_space<vmem>>, %arg6: memref<32x128xf32, #tpu.memory_space<vmem>>, %arg7: memref<32x128xf32, #tpu.memory_space<vmem>>, %arg8: memref<1x128xf32, #tpu.memory_space<vmem>>, %arg9: memref<64x128xf32, #tpu.memory_space<vmem>>, %arg10: memref<1x128xf32, #tpu.memory_space<vmem>>, %arg11: memref<64x128xf32, #tpu.memory_space<vmem>>, %arg12: memref<1x128xf32, #tpu.memory_space<vmem>>, %arg13: memref<16x128xf32, #tpu.memory_space<vmem>>, %arg14: memref<1x128xf32, #tpu.memory_space<vmem>>, %arg15: memref<64x128xf32, #tpu.memory_space<vmem>>, %arg16: memref<64x128xf32, #tpu.memory_space<vmem>>, %arg17: memref<1x128xf32, #tpu.memory_space<vmem>>, %arg18: memref<64x128xf32, #tpu.memory_space<vmem>>, %arg19: memref<1x128xf32, #tpu.memory_space<vmem>>, %arg20: memref<64x32xf32, #tpu.memory_space<vmem>>, %arg21: memref<1x32xf32, #tpu.memory_space<vmem>>, %arg22: memref<32x32xf32, #tpu.memory_space<vmem>>, %arg23: memref<1x32xf32, #tpu.memory_space<vmem>>, %arg24: memref<32x128xf32, #tpu.memory_space<vmem>>, %arg25: memref<1x128xf32, #tpu.memory_space<vmem>>, %arg26: memref<64x128xf32, #tpu.memory_space<vmem>>, %arg27: memref<24x128xf32, #tpu.memory_space<vmem>>, %arg28: memref<64x128xf32, #tpu.memory_space<vmem>>, %arg29: memref<64x128xf32, #tpu.memory_space<vmem>>, %arg30: memref<64x32xf32, #tpu.memory_space<vmem>>) attributes {dimension_semantics = [], scalar_prefetch = 0 : i64, scratch_operands = 3 : i64, tpu.core_type = #tpu.core_type<tc>} {
    %c0 = arith.constant 0 : index
    %c0_0 = arith.constant 0 : index
    %0 = vector.load %arg0[%c0, %c0_0] : memref<64x32xf32, #tpu.memory_space<vmem>>, vector<64x32xf32>
    %c0_1 = arith.constant 0 : index
    %c0_2 = arith.constant 0 : index
    %1 = vector.load %arg6[%c0_1, %c0_2] : memref<32x128xf32, #tpu.memory_space<vmem>>, vector<32x128xf32>
    %cst = arith.constant dense<0.000000e+00> : vector<64x128xf32>
    %2 = tpu.matmul %0, %1, %cst {dimension_numbers = #tpu.dot_dimension_numbers<[1], [0], [0], [1], [0, 0, 1, 1], [], []>} : vector<64x32xf32>, vector<32x128xf32>, vector<64x128xf32> -> vector<64x128xf32>
    %c0_3 = arith.constant 0 : index
    %c0_4 = arith.constant 0 : index
    %3 = vector.load %arg8[%c0_3, %c0_4] : memref<1x128xf32, #tpu.memory_space<vmem>>, vector<1x128xf32>
    %4 = vector.broadcast %3 : vector<1x128xf32> to vector<64x128xf32>
    %5 = arith.addf %2, %4 : vector<64x128xf32>
    %c0_5 = arith.constant 0 : index
    %c0_6 = arith.constant 0 : index
    %6 = vector.load %arg28[%c0_5, %c0_6] : memref<64x128xf32, #tpu.memory_space<vmem>>, vector<64x128xf32>
    tpu.vector_store %arg28[%c0_5, %c0_6], %5 {strides = array<i32>} : memref<64x128xf32, #tpu.memory_space<vmem>>, vector<64x128xf32>,
    %c0_7 = arith.constant 0 : index
    %c0_8 = arith.constant 0 : index
    %7 = vector.load %arg1[%c0_7, %c0_8] : memref<64x16xf32, #tpu.memory_space<vmem>>, vector<64x16xf32>
    %c0_9 = arith.constant 0 : index
    %c0_10 = arith.constant 0 : index
    %8 = vector.load %arg13[%c0_9, %c0_10] : memref<16x128xf32, #tpu.memory_space<vmem>>, vector<16x128xf32>
    %cst_11 = arith.constant dense<0.000000e+00> : vector<64x128xf32>
    %9 = tpu.matmul %7, %8, %cst_11 {dimension_numbers = #tpu.dot_dimension_numbers<[1], [0], [0], [1], [0, 0, 1, 1], [], []>} : vector<64x16xf32>, vector<16x128xf32>, vector<64x128xf32> -> vector<64x128xf32>
    %c0_12 = arith.constant 0 : index
    %c0_13 = arith.constant 0 : index
    %10 = vector.load %arg14[%c0_12, %c0_13] : memref<1x128xf32, #tpu.memory_space<vmem>>, vector<1x128xf32>
    %11 = vector.broadcast %10 : vector<1x128xf32> to vector<64x128xf32>
    %12 = arith.addf %9, %11 : vector<64x128xf32>
    %c0_14 = arith.constant 0 : index
    %c0_15 = arith.constant 0 : index
    %13 = vector.load %arg29[%c0_14, %c0_15] : memref<64x128xf32, #tpu.memory_space<vmem>>, vector<64x128xf32>
    tpu.vector_store %arg29[%c0_14, %c0_15], %12 {strides = array<i32>} : memref<64x128xf32, #tpu.memory_space<vmem>>, vector<64x128xf32>,
    %c0_16 = arith.constant 0 : index
    %c0_17 = arith.constant 0 : index
    %14 = vector.load %arg7[%c0_16, %c0_17] : memref<32x128xf32, #tpu.memory_space<vmem>>, vector<32x128xf32>
    %c0_18 = arith.constant 0 : index
    %c0_19 = arith.constant 0 : index
    %15 = vector.load %arg9[%c0_18, %c0_19] : memref<64x128xf32, #tpu.memory_space<vmem>>, vector<64x128xf32>
    %c0_20 = arith.constant 0 : index
    %c0_21 = arith.constant 0 : index
    %16 = vector.load %arg11[%c0_20, %c0_21] : memref<64x128xf32, #tpu.memory_space<vmem>>, vector<64x128xf32>
    %c0_22 = arith.constant 0 : index
    %c0_23 = arith.constant 0 : index
    %17 = vector.load %arg15[%c0_22, %c0_23] : memref<64x128xf32, #tpu.memory_space<vmem>>, vector<64x128xf32>
    %c0_24 = arith.constant 0 : index
    %c0_25 = arith.constant 0 : index
    %18 = vector.load %arg16[%c0_24, %c0_25] : memref<64x128xf32, #tpu.memory_space<vmem>>, vector<64x128xf32>
    %c0_26 = arith.constant 0 : index
    %c0_27 = arith.constant 0 : index
    %19 = vector.load %arg18[%c0_26, %c0_27] : memref<64x128xf32, #tpu.memory_space<vmem>>, vector<64x128xf32>
    %c0_28 = arith.constant 0 : index
    %c0_29 = arith.constant 0 : index
    %20 = vector.load %arg20[%c0_28, %c0_29] : memref<64x32xf32, #tpu.memory_space<vmem>>, vector<64x32xf32>
    %c0_30 = arith.constant 0 : index
    %c0_31 = arith.constant 0 : index
    %21 = vector.load %arg22[%c0_30, %c0_31] : memref<32x32xf32, #tpu.memory_space<vmem>>, vector<32x32xf32>
    %c0_32 = arith.constant 0 : index
    %c0_33 = arith.constant 0 : index
    %22 = vector.load %arg24[%c0_32, %c0_33] : memref<32x128xf32, #tpu.memory_space<vmem>>, vector<32x128xf32>
    %c0_34 = arith.constant 0 : index
    %c0_35 = arith.constant 0 : index
    %23 = vector.load %arg10[%c0_34, %c0_35] : memref<1x128xf32, #tpu.memory_space<vmem>>, vector<1x128xf32>
    %24 = vector.shape_cast %23 : vector<1x128xf32> to vector<1x128xf32>
    %25 = vector.broadcast %24 : vector<1x128xf32> to vector<8x128xf32>
    %c0_36 = arith.constant 0 : index
    %c0_37 = arith.constant 0 : index
    %26 = vector.load %arg12[%c0_36, %c0_37] : memref<1x128xf32, #tpu.memory_space<vmem>>, vector<1x128xf32>
    %27 = vector.shape_cast %26 : vector<1x128xf32> to vector<1x128xf32>
    %28 = vector.broadcast %27 : vector<1x128xf32> to vector<8x128xf32>
    %c0_38 = arith.constant 0 : index
    %c0_39 = arith.constant 0 : index
    %29 = vector.load %arg17[%c0_38, %c0_39] : memref<1x128xf32, #tpu.memory_space<vmem>>, vector<1x128xf32>
    %30 = vector.shape_cast %29 : vector<1x128xf32> to vector<1x128xf32>
    %31 = vector.broadcast %30 : vector<1x128xf32> to vector<8x128xf32>
    %c0_40 = arith.constant 0 : index
    %c0_41 = arith.constant 0 : index
    %32 = vector.load %arg19[%c0_40, %c0_41] : memref<1x128xf32, #tpu.memory_space<vmem>>, vector<1x128xf32>
    %33 = vector.shape_cast %32 : vector<1x128xf32> to vector<1x128xf32>
    %34 = vector.broadcast %33 : vector<1x128xf32> to vector<8x128xf32>
    %c0_42 = arith.constant 0 : index
    %c0_43 = arith.constant 0 : index
    %35 = vector.load %arg21[%c0_42, %c0_43] : memref<1x32xf32, #tpu.memory_space<vmem>>, vector<1x32xf32>
    %36 = vector.shape_cast %35 : vector<1x32xf32> to vector<1x32xf32>
    %37 = vector.broadcast %36 : vector<1x32xf32> to vector<8x32xf32>
    %c0_44 = arith.constant 0 : index
    %c0_45 = arith.constant 0 : index
    %38 = vector.load %arg23[%c0_44, %c0_45] : memref<1x32xf32, #tpu.memory_space<vmem>>, vector<1x32xf32>
    %39 = vector.shape_cast %38 : vector<1x32xf32> to vector<1x32xf32>
    %40 = vector.broadcast %39 : vector<1x32xf32> to vector<8x32xf32>
    %c0_46 = arith.constant 0 : index
    %c0_47 = arith.constant 0 : index
    %41 = vector.load %arg25[%c0_46, %c0_47] : memref<1x128xf32, #tpu.memory_space<vmem>>, vector<1x128xf32>
    %42 = vector.shape_cast %41 : vector<1x128xf32> to vector<1x128xf32>
    %43 = vector.broadcast %42 : vector<1x128xf32> to vector<8x128xf32>
    %c0_48 = arith.constant 0 : index
    %c0_49 = arith.constant 0 : index
    %c0_50 = arith.constant 0 : index
    %44 = vector.load %arg2[%c0_48, %c0_49, %c0_50] : memref<3x8x32xf32, #tpu.memory_space<vmem>>, vector<1x8x32xf32>
    %45 = vector.shape_cast %44 : vector<1x8x32xf32> to vector<8x32xf32>
    %c1 = arith.constant 1 : index
    %c0_51 = arith.constant 0 : index
    %c0_52 = arith.constant 0 : index
    %46 = vector.load %arg2[%c1, %c0_51, %c0_52] : memref<3x8x32xf32, #tpu.memory_space<vmem>>, vector<1x8x32xf32>
    %47 = vector.shape_cast %46 : vector<1x8x32xf32> to vector<8x32xf32>
    %c2 = arith.constant 2 : index
    %c0_53 = arith.constant 0 : index
    %c0_54 = arith.constant 0 : index
    %48 = vector.load %arg2[%c2, %c0_53, %c0_54] : memref<3x8x32xf32, #tpu.memory_space<vmem>>, vector<1x8x32xf32>
    %49 = vector.shape_cast %48 : vector<1x8x32xf32> to vector<8x32xf32>
    %c0_55 = arith.constant 0 : index
    %c0_56 = arith.constant 0 : index
    %c0_57 = arith.constant 0 : index
    %50 = vector.load %arg3[%c0_55, %c0_56, %c0_57] : memref<3x8x32xf32, #tpu.memory_space<vmem>>, vector<1x8x32xf32>
    %51 = vector.shape_cast %50 : vector<1x8x32xf32> to vector<8x32xf32>
    %c1_58 = arith.constant 1 : index
    %c0_59 = arith.constant 0 : index
    %c0_60 = arith.constant 0 : index
    %52 = vector.load %arg3[%c1_58, %c0_59, %c0_60] : memref<3x8x32xf32, #tpu.memory_space<vmem>>, vector<1x8x32xf32>
    %53 = vector.shape_cast %52 : vector<1x8x32xf32> to vector<8x32xf32>
    %c2_61 = arith.constant 2 : index
    %c0_62 = arith.constant 0 : index
    %c0_63 = arith.constant 0 : index
    %54 = vector.load %arg3[%c2_61, %c0_62, %c0_63] : memref<3x8x32xf32, #tpu.memory_space<vmem>>, vector<1x8x32xf32>
    %55 = vector.shape_cast %54 : vector<1x8x32xf32> to vector<8x32xf32>
    %c0_64 = arith.constant 0 : index
    %c0_65 = arith.constant 0 : index
    %c0_66 = arith.constant 0 : index
    %56 = vector.load %arg4[%c0_64, %c0_65, %c0_66] : memref<3x8x32xf32, #tpu.memory_space<vmem>>, vector<1x8x32xf32>
    %57 = vector.shape_cast %56 : vector<1x8x32xf32> to vector<8x32xf32>
    %c1_67 = arith.constant 1 : index
    %c0_68 = arith.constant 0 : index
    %c0_69 = arith.constant 0 : index
    %58 = vector.load %arg4[%c1_67, %c0_68, %c0_69] : memref<3x8x32xf32, #tpu.memory_space<vmem>>, vector<1x8x32xf32>
    %59 = vector.shape_cast %58 : vector<1x8x32xf32> to vector<8x32xf32>
    %c2_70 = arith.constant 2 : index
    %c0_71 = arith.constant 0 : index
    %c0_72 = arith.constant 0 : index
    %60 = vector.load %arg4[%c2_70, %c0_71, %c0_72] : memref<3x8x32xf32, #tpu.memory_space<vmem>>, vector<1x8x32xf32>
    %61 = vector.shape_cast %60 : vector<1x8x32xf32> to vector<8x32xf32>
    %c0_73 = arith.constant 0 : index
    %c0_74 = arith.constant 0 : index
    %c0_75 = arith.constant 0 : index
    %62 = vector.load %arg5[%c0_73, %c0_74, %c0_75] : memref<3x8x32xf32, #tpu.memory_space<vmem>>, vector<1x8x32xf32>
    %63 = vector.shape_cast %62 : vector<1x8x32xf32> to vector<8x32xf32>
    %c1_76 = arith.constant 1 : index
    %c0_77 = arith.constant 0 : index
    %c0_78 = arith.constant 0 : index
    %64 = vector.load %arg5[%c1_76, %c0_77, %c0_78] : memref<3x8x32xf32, #tpu.memory_space<vmem>>, vector<1x8x32xf32>
    %65 = vector.shape_cast %64 : vector<1x8x32xf32> to vector<8x32xf32>
    %c2_79 = arith.constant 2 : index
    %c0_80 = arith.constant 0 : index
    %c0_81 = arith.constant 0 : index
    %66 = vector.load %arg5[%c2_79, %c0_80, %c0_81] : memref<3x8x32xf32, #tpu.memory_space<vmem>>, vector<1x8x32xf32>
    %67 = vector.shape_cast %66 : vector<1x8x32xf32> to vector<8x32xf32>
    %c0_82 = arith.constant 0 : index
    %c0_83 = arith.constant 0 : index
    %68 = vector.load %arg28[%c0_82, %c0_83] : memref<64x128xf32, #tpu.memory_space<vmem>>, vector<8x128xf32>
    %cst_84 = arith.constant dense<0.000000e+00> : vector<8x128xf32>
    %69 = tpu.matmul %45, %14, %cst_84 {dimension_numbers = #tpu.dot_dimension_numbers<[1], [0], [0], [1], [0, 0, 1, 1], [], []>} : vector<8x32xf32>, vector<32x128xf32>, vector<8x128xf32> -> vector<8x128xf32>
    %70 = arith.addf %68, %69 : vector<8x128xf32>
    %71 = arith.negf %70 : vector<8x128xf32>
    %72 = math.exp %71 : vector<8x128xf32>
    %cst_85 = arith.constant 1.000000e+00 : f32
    %73 = vector.broadcast %cst_85 : f32 to vector<8x128xf32>
    %74 = arith.addf %73, %72 : vector<8x128xf32>
    %75 = arith.divf %73, %74 : vector<8x128xf32>
    %76 = vector.extract_strided_slice %70 {offsets = [0, 96], sizes = [8, 32], strides = [1, 1]} : vector<8x128xf32> to vector<8x32xf32>
    %77 = math.tanh %76 : vector<8x32xf32>
    %78 = vector.extract_strided_slice %75 {offsets = [0, 32], sizes = [8, 32], strides = [1, 1]} : vector<8x128xf32> to vector<8x32xf32>
    %79 = arith.mulf %78, %51 : vector<8x32xf32>
    %80 = vector.extract_strided_slice %75 {offsets = [0, 0], sizes = [8, 32], strides = [1, 1]} : vector<8x128xf32> to vector<8x32xf32>
    %81 = arith.mulf %80, %77 : vector<8x32xf32>
    %82 = arith.addf %79, %81 : vector<8x32xf32>
    %83 = vector.extract_strided_slice %75 {offsets = [0, 64], sizes = [8, 32], strides = [1, 1]} : vector<8x128xf32> to vector<8x32xf32>
    %84 = math.tanh %82 : vector<8x32xf32>
    %85 = arith.mulf %83, %84 : vector<8x32xf32>
    %86 = tpu.concatenate %85, %47 in 1 : vector<8x32xf32>, vector<8x32xf32> -> vector<8x64xf32>
    %cst_86 = arith.constant dense<0.000000e+00> : vector<8x128xf32>
    %87 = tpu.matmul %86, %15, %cst_86 {dimension_numbers = #tpu.dot_dimension_numbers<[1], [0], [0], [1], [0, 0, 1, 1], [], []>} : vector<8x64xf32>, vector<64x128xf32>, vector<8x128xf32> -> vector<8x128xf32>
    %88 = arith.addf %87, %25 : vector<8x128xf32>
    %89 = arith.negf %88 : vector<8x128xf32>
    %90 = math.exp %89 : vector<8x128xf32>
    %cst_87 = arith.constant 1.000000e+00 : f32
    %91 = vector.broadcast %cst_87 : f32 to vector<8x128xf32>
    %92 = arith.addf %91, %90 : vector<8x128xf32>
    %93 = arith.divf %91, %92 : vector<8x128xf32>
    %94 = vector.extract_strided_slice %88 {offsets = [0, 96], sizes = [8, 32], strides = [1, 1]} : vector<8x128xf32> to vector<8x32xf32>
    %95 = math.tanh %94 : vector<8x32xf32>
    %96 = vector.extract_strided_slice %93 {offsets = [0, 32], sizes = [8, 32], strides = [1, 1]} : vector<8x128xf32> to vector<8x32xf32>
    %97 = arith.mulf %96, %53 : vector<8x32xf32>
    %98 = vector.extract_strided_slice %93 {offsets = [0, 0], sizes = [8, 32], strides = [1, 1]} : vector<8x128xf32> to vector<8x32xf32>
    %99 = arith.mulf %98, %95 : vector<8x32xf32>
    %100 = arith.addf %97, %99 : vector<8x32xf32>
    %101 = vector.extract_strided_slice %93 {offsets = [0, 64], sizes = [8, 32], strides = [1, 1]} : vector<8x128xf32> to vector<8x32xf32>
    %102 = math.tanh %100 : vector<8x32xf32>
    %103 = arith.mulf %101, %102 : vector<8x32xf32>
    %104 = tpu.concatenate %103, %49 in 1 : vector<8x32xf32>, vector<8x32xf32> -> vector<8x64xf32>
    %cst_88 = arith.constant dense<0.000000e+00> : vector<8x128xf32>
    %105 = tpu.matmul %104, %16, %cst_88 {dimension_numbers = #tpu.dot_dimension_numbers<[1], [0], [0], [1], [0, 0, 1, 1], [], []>} : vector<8x64xf32>, vector<64x128xf32>, vector<8x128xf32> -> vector<8x128xf32>
    %106 = arith.addf %105, %28 : vector<8x128xf32>
    %107 = arith.negf %106 : vector<8x128xf32>
    %108 = math.exp %107 : vector<8x128xf32>
    %cst_89 = arith.constant 1.000000e+00 : f32
    %109 = vector.broadcast %cst_89 : f32 to vector<8x128xf32>
    %110 = arith.addf %109, %108 : vector<8x128xf32>
    %111 = arith.divf %109, %110 : vector<8x128xf32>
    %112 = vector.extract_strided_slice %106 {offsets = [0, 96], sizes = [8, 32], strides = [1, 1]} : vector<8x128xf32> to vector<8x32xf32>
    %113 = math.tanh %112 : vector<8x32xf32>
    %114 = vector.extract_strided_slice %111 {offsets = [0, 32], sizes = [8, 32], strides = [1, 1]} : vector<8x128xf32> to vector<8x32xf32>
    %115 = arith.mulf %114, %55 : vector<8x32xf32>
    %116 = vector.extract_strided_slice %111 {offsets = [0, 0], sizes = [8, 32], strides = [1, 1]} : vector<8x128xf32> to vector<8x32xf32>
    %117 = arith.mulf %116, %113 : vector<8x32xf32>
    %118 = arith.addf %115, %117 : vector<8x32xf32>
    %119 = vector.extract_strided_slice %111 {offsets = [0, 64], sizes = [8, 32], strides = [1, 1]} : vector<8x128xf32> to vector<8x32xf32>
    %120 = math.tanh %118 : vector<8x32xf32>
    %121 = arith.mulf %119, %120 : vector<8x32xf32>
    %c0_90 = arith.constant 0 : index
    %c0_91 = arith.constant 0 : index
    %122 = vector.load %arg30[%c0_90, %c0_91] : memref<64x32xf32, #tpu.memory_space<vmem>>, vector<8x32xf32>
    tpu.vector_store %arg30[%c0_90, %c0_91], %121 {strides = array<i32>} : memref<64x32xf32, #tpu.memory_space<vmem>>, vector<8x32xf32>,
    %c8 = arith.constant 8 : index
    %c0_92 = arith.constant 0 : index
    %123 = vector.load %arg28[%c8, %c0_92] : memref<64x128xf32, #tpu.memory_space<vmem>>, vector<8x128xf32>
    %cst_93 = arith.constant dense<0.000000e+00> : vector<8x128xf32>
    %124 = tpu.matmul %85, %14, %cst_93 {dimension_numbers = #tpu.dot_dimension_numbers<[1], [0], [0], [1], [0, 0, 1, 1], [], []>} : vector<8x32xf32>, vector<32x128xf32>, vector<8x128xf32> -> vector<8x128xf32>
    %125 = arith.addf %123, %124 : vector<8x128xf32>
    %126 = arith.negf %125 : vector<8x128xf32>
    %127 = math.exp %126 : vector<8x128xf32>
    %cst_94 = arith.constant 1.000000e+00 : f32
    %128 = vector.broadcast %cst_94 : f32 to vector<8x128xf32>
    %129 = arith.addf %128, %127 : vector<8x128xf32>
    %130 = arith.divf %128, %129 : vector<8x128xf32>
    %131 = vector.extract_strided_slice %125 {offsets = [0, 96], sizes = [8, 32], strides = [1, 1]} : vector<8x128xf32> to vector<8x32xf32>
    %132 = math.tanh %131 : vector<8x32xf32>
    %133 = vector.extract_strided_slice %130 {offsets = [0, 32], sizes = [8, 32], strides = [1, 1]} : vector<8x128xf32> to vector<8x32xf32>
    %134 = arith.mulf %133, %82 : vector<8x32xf32>
    %135 = vector.extract_strided_slice %130 {offsets = [0, 0], sizes = [8, 32], strides = [1, 1]} : vector<8x128xf32> to vector<8x32xf32>
    %136 = arith.mulf %135, %132 : vector<8x32xf32>
    %137 = arith.addf %134, %136 : vector<8x32xf32>
    %138 = vector.extract_strided_slice %130 {offsets = [0, 64], sizes = [8, 32], strides = [1, 1]} : vector<8x128xf32> to vector<8x32xf32>
    %139 = math.tanh %137 : vector<8x32xf32>
    %140 = arith.mulf %138, %139 : vector<8x32xf32>
    %141 = tpu.concatenate %140, %103 in 1 : vector<8x32xf32>, vector<8x32xf32> -> vector<8x64xf32>
    %cst_95 = arith.constant dense<0.000000e+00> : vector<8x128xf32>
    %142 = tpu.matmul %141, %15, %cst_95 {dimension_numbers = #tpu.dot_dimension_numbers<[1], [0], [0], [1], [0, 0, 1, 1], [], []>} : vector<8x64xf32>, vector<64x128xf32>, vector<8x128xf32> -> vector<8x128xf32>
    %143 = arith.addf %142, %25 : vector<8x128xf32>
    %144 = arith.negf %143 : vector<8x128xf32>
    %145 = math.exp %144 : vector<8x128xf32>
    %cst_96 = arith.constant 1.000000e+00 : f32
    %146 = vector.broadcast %cst_96 : f32 to vector<8x128xf32>
    %147 = arith.addf %146, %145 : vector<8x128xf32>
    %148 = arith.divf %146, %147 : vector<8x128xf32>
    %149 = vector.extract_strided_slice %143 {offsets = [0, 96], sizes = [8, 32], strides = [1, 1]} : vector<8x128xf32> to vector<8x32xf32>
    %150 = math.tanh %149 : vector<8x32xf32>
    %151 = vector.extract_strided_slice %148 {offsets = [0, 32], sizes = [8, 32], strides = [1, 1]} : vector<8x128xf32> to vector<8x32xf32>
    %152 = arith.mulf %151, %100 : vector<8x32xf32>
    %153 = vector.extract_strided_slice %148 {offsets = [0, 0], sizes = [8, 32], strides = [1, 1]} : vector<8x128xf32> to vector<8x32xf32>
    %154 = arith.mulf %153, %150 : vector<8x32xf32>
    %155 = arith.addf %152, %154 : vector<8x32xf32>
    %156 = vector.extract_strided_slice %148 {offsets = [0, 64], sizes = [8, 32], strides = [1, 1]} : vector<8x128xf32> to vector<8x32xf32>
    %157 = math.tanh %155 : vector<8x32xf32>
    %158 = arith.mulf %156, %157 : vector<8x32xf32>
    %159 = tpu.concatenate %158, %121 in 1 : vector<8x32xf32>, vector<8x32xf32> -> vector<8x64xf32>
    %cst_97 = arith.constant dense<0.000000e+00> : vector<8x128xf32>
    %160 = tpu.matmul %159, %16, %cst_97 {dimension_numbers = #tpu.dot_dimension_numbers<[1], [0], [0], [1], [0, 0, 1, 1], [], []>} : vector<8x64xf32>, vector<64x128xf32>, vector<8x128xf32> -> vector<8x128xf32>
    %161 = arith.addf %160, %28 : vector<8x128xf32>
    %162 = arith.negf %161 : vector<8x128xf32>
    %163 = math.exp %162 : vector<8x128xf32>
    %cst_98 = arith.constant 1.000000e+00 : f32
    %164 = vector.broadcast %cst_98 : f32 to vector<8x128xf32>
    %165 = arith.addf %164, %163 : vector<8x128xf32>
    %166 = arith.divf %164, %165 : vector<8x128xf32>
    %167 = vector.extract_strided_slice %161 {offsets = [0, 96], sizes = [8, 32], strides = [1, 1]} : vector<8x128xf32> to vector<8x32xf32>
    %168 = math.tanh %167 : vector<8x32xf32>
    %169 = vector.extract_strided_slice %166 {offsets = [0, 32], sizes = [8, 32], strides = [1, 1]} : vector<8x128xf32> to vector<8x32xf32>
    %170 = arith.mulf %169, %118 : vector<8x32xf32>
    %171 = vector.extract_strided_slice %166 {offsets = [0, 0], sizes = [8, 32], strides = [1, 1]} : vector<8x128xf32> to vector<8x32xf32>
    %172 = arith.mulf %171, %168 : vector<8x32xf32>
    %173 = arith.addf %170, %172 : vector<8x32xf32>
    %174 = vector.extract_strided_slice %166 {offsets = [0, 64], sizes = [8, 32], strides = [1, 1]} : vector<8x128xf32> to vector<8x32xf32>
    %175 = math.tanh %173 : vector<8x32xf32>
    %176 = arith.mulf %174, %175 : vector<8x32xf32>
    %c8_99 = arith.constant 8 : index
    %c0_100 = arith.constant 0 : index
    %177 = vector.load %arg30[%c8_99, %c0_100] : memref<64x32xf32, #tpu.memory_space<vmem>>, vector<8x32xf32>
    tpu.vector_store %arg30[%c8_99, %c0_100], %176 {strides = array<i32>} : memref<64x32xf32, #tpu.memory_space<vmem>>, vector<8x32xf32>,
    %c16 = arith.constant 16 : index
    %c0_101 = arith.constant 0 : index
    %178 = vector.load %arg28[%c16, %c0_101] : memref<64x128xf32, #tpu.memory_space<vmem>>, vector<8x128xf32>
    %cst_102 = arith.constant dense<0.000000e+00> : vector<8x128xf32>
    %179 = tpu.matmul %140, %14, %cst_102 {dimension_numbers = #tpu.dot_dimension_numbers<[1], [0], [0], [1], [0, 0, 1, 1], [], []>} : vector<8x32xf32>, vector<32x128xf32>, vector<8x128xf32> -> vector<8x128xf32>
    %180 = arith.addf %178, %179 : vector<8x128xf32>
    %181 = arith.negf %180 : vector<8x128xf32>
    %182 = math.exp %181 : vector<8x128xf32>
    %cst_103 = arith.constant 1.000000e+00 : f32
    %183 = vector.broadcast %cst_103 : f32 to vector<8x128xf32>
    %184 = arith.addf %183, %182 : vector<8x128xf32>
    %185 = arith.divf %183, %184 : vector<8x128xf32>
    %186 = vector.extract_strided_slice %180 {offsets = [0, 96], sizes = [8, 32], strides = [1, 1]} : vector<8x128xf32> to vector<8x32xf32>
    %187 = math.tanh %186 : vector<8x32xf32>
    %188 = vector.extract_strided_slice %185 {offsets = [0, 32], sizes = [8, 32], strides = [1, 1]} : vector<8x128xf32> to vector<8x32xf32>
    %189 = arith.mulf %188, %137 : vector<8x32xf32>
    %190 = vector.extract_strided_slice %185 {offsets = [0, 0], sizes = [8, 32], strides = [1, 1]} : vector<8x128xf32> to vector<8x32xf32>
    %191 = arith.mulf %190, %187 : vector<8x32xf32>
    %192 = arith.addf %189, %191 : vector<8x32xf32>
    %193 = vector.extract_strided_slice %185 {offsets = [0, 64], sizes = [8, 32], strides = [1, 1]} : vector<8x128xf32> to vector<8x32xf32>
    %194 = math.tanh %192 : vector<8x32xf32>
    %195 = arith.mulf %193, %194 : vector<8x32xf32>
    %196 = tpu.concatenate %195, %158 in 1 : vector<8x32xf32>, vector<8x32xf32> -> vector<8x64xf32>
    %cst_104 = arith.constant dense<0.000000e+00> : vector<8x128xf32>
    %197 = tpu.matmul %196, %15, %cst_104 {dimension_numbers = #tpu.dot_dimension_numbers<[1], [0], [0], [1], [0, 0, 1, 1], [], []>} : vector<8x64xf32>, vector<64x128xf32>, vector<8x128xf32> -> vector<8x128xf32>
    %198 = arith.addf %197, %25 : vector<8x128xf32>
    %199 = arith.negf %198 : vector<8x128xf32>
    %200 = math.exp %199 : vector<8x128xf32>
    %cst_105 = arith.constant 1.000000e+00 : f32
    %201 = vector.broadcast %cst_105 : f32 to vector<8x128xf32>
    %202 = arith.addf %201, %200 : vector<8x128xf32>
    %203 = arith.divf %201, %202 : vector<8x128xf32>
    %204 = vector.extract_strided_slice %198 {offsets = [0, 96], sizes = [8, 32], strides = [1, 1]} : vector<8x128xf32> to vector<8x32xf32>
    %205 = math.tanh %204 : vector<8x32xf32>
    %206 = vector.extract_strided_slice %203 {offsets = [0, 32], sizes = [8, 32], strides = [1, 1]} : vector<8x128xf32> to vector<8x32xf32>
    %207 = arith.mulf %206, %155 : vector<8x32xf32>
    %208 = vector.extract_strided_slice %203 {offsets = [0, 0], sizes = [8, 32], strides = [1, 1]} : vector<8x128xf32> to vector<8x32xf32>
    %209 = arith.mulf %208, %205 : vector<8x32xf32>
    %210 = arith.addf %207, %209 : vector<8x32xf32>
    %211 = vector.extract_strided_slice %203 {offsets = [0, 64], sizes = [8, 32], strides = [1, 1]} : vector<8x128xf32> to vector<8x32xf32>
    %212 = math.tanh %210 : vector<8x32xf32>
    %213 = arith.mulf %211, %212 : vector<8x32xf32>
    %214 = tpu.concatenate %213, %176 in 1 : vector<8x32xf32>, vector<8x32xf32> -> vector<8x64xf32>
    %cst_106 = arith.constant dense<0.000000e+00> : vector<8x128xf32>
    %215 = tpu.matmul %214, %16, %cst_106 {dimension_numbers = #tpu.dot_dimension_numbers<[1], [0], [0], [1], [0, 0, 1, 1], [], []>} : vector<8x64xf32>, vector<64x128xf32>, vector<8x128xf32> -> vector<8x128xf32>
    %216 = arith.addf %215, %28 : vector<8x128xf32>
    %217 = arith.negf %216 : vector<8x128xf32>
    %218 = math.exp %217 : vector<8x128xf32>
    %cst_107 = arith.constant 1.000000e+00 : f32
    %219 = vector.broadcast %cst_107 : f32 to vector<8x128xf32>
    %220 = arith.addf %219, %218 : vector<8x128xf32>
    %221 = arith.divf %219, %220 : vector<8x128xf32>
    %222 = vector.extract_strided_slice %216 {offsets = [0, 96], sizes = [8, 32], strides = [1, 1]} : vector<8x128xf32> to vector<8x32xf32>
    %223 = math.tanh %222 : vector<8x32xf32>
    %224 = vector.extract_strided_slice %221 {offsets = [0, 32], sizes = [8, 32], strides = [1, 1]} : vector<8x128xf32> to vector<8x32xf32>
    %225 = arith.mulf %224, %173 : vector<8x32xf32>
    %226 = vector.extract_strided_slice %221 {offsets = [0, 0], sizes = [8, 32], strides = [1, 1]} : vector<8x128xf32> to vector<8x32xf32>
    %227 = arith.mulf %226, %223 : vector<8x32xf32>
    %228 = arith.addf %225, %227 : vector<8x32xf32>
    %229 = vector.extract_strided_slice %221 {offsets = [0, 64], sizes = [8, 32], strides = [1, 1]} : vector<8x128xf32> to vector<8x32xf32>
    %230 = math.tanh %228 : vector<8x32xf32>
    %231 = arith.mulf %229, %230 : vector<8x32xf32>
    %c16_108 = arith.constant 16 : index
    %c0_109 = arith.constant 0 : index
    %232 = vector.load %arg30[%c16_108, %c0_109] : memref<64x32xf32, #tpu.memory_space<vmem>>, vector<8x32xf32>
    tpu.vector_store %arg30[%c16_108, %c0_109], %231 {strides = array<i32>} : memref<64x32xf32, #tpu.memory_space<vmem>>, vector<8x32xf32>,
    %c24 = arith.constant 24 : index
    %c0_110 = arith.constant 0 : index
    %233 = vector.load %arg28[%c24, %c0_110] : memref<64x128xf32, #tpu.memory_space<vmem>>, vector<8x128xf32>
    %cst_111 = arith.constant dense<0.000000e+00> : vector<8x128xf32>
    %234 = tpu.matmul %195, %14, %cst_111 {dimension_numbers = #tpu.dot_dimension_numbers<[1], [0], [0], [1], [0, 0, 1, 1], [], []>} : vector<8x32xf32>, vector<32x128xf32>, vector<8x128xf32> -> vector<8x128xf32>
    %235 = arith.addf %233, %234 : vector<8x128xf32>
    %236 = arith.negf %235 : vector<8x128xf32>
    %237 = math.exp %236 : vector<8x128xf32>
    %cst_112 = arith.constant 1.000000e+00 : f32
    %238 = vector.broadcast %cst_112 : f32 to vector<8x128xf32>
    %239 = arith.addf %238, %237 : vector<8x128xf32>
    %240 = arith.divf %238, %239 : vector<8x128xf32>
    %241 = vector.extract_strided_slice %235 {offsets = [0, 96], sizes = [8, 32], strides = [1, 1]} : vector<8x128xf32> to vector<8x32xf32>
    %242 = math.tanh %241 : vector<8x32xf32>
    %243 = vector.extract_strided_slice %240 {offsets = [0, 32], sizes = [8, 32], strides = [1, 1]} : vector<8x128xf32> to vector<8x32xf32>
    %244 = arith.mulf %243, %192 : vector<8x32xf32>
    %245 = vector.extract_strided_slice %240 {offsets = [0, 0], sizes = [8, 32], strides = [1, 1]} : vector<8x128xf32> to vector<8x32xf32>
    %246 = arith.mulf %245, %242 : vector<8x32xf32>
    %247 = arith.addf %244, %246 : vector<8x32xf32>
    %248 = vector.extract_strided_slice %240 {offsets = [0, 64], sizes = [8, 32], strides = [1, 1]} : vector<8x128xf32> to vector<8x32xf32>
    %249 = math.tanh %247 : vector<8x32xf32>
    %250 = arith.mulf %248, %249 : vector<8x32xf32>
    %251 = tpu.concatenate %250, %213 in 1 : vector<8x32xf32>, vector<8x32xf32> -> vector<8x64xf32>
    %cst_113 = arith.constant dense<0.000000e+00> : vector<8x128xf32>
    %252 = tpu.matmul %251, %15, %cst_113 {dimension_numbers = #tpu.dot_dimension_numbers<[1], [0], [0], [1], [0, 0, 1, 1], [], []>} : vector<8x64xf32>, vector<64x128xf32>, vector<8x128xf32> -> vector<8x128xf32>
    %253 = arith.addf %252, %25 : vector<8x128xf32>
    %254 = arith.negf %253 : vector<8x128xf32>
    %255 = math.exp %254 : vector<8x128xf32>
    %cst_114 = arith.constant 1.000000e+00 : f32
    %256 = vector.broadcast %cst_114 : f32 to vector<8x128xf32>
    %257 = arith.addf %256, %255 : vector<8x128xf32>
    %258 = arith.divf %256, %257 : vector<8x128xf32>
    %259 = vector.extract_strided_slice %253 {offsets = [0, 96], sizes = [8, 32], strides = [1, 1]} : vector<8x128xf32> to vector<8x32xf32>
    %260 = math.tanh %259 : vector<8x32xf32>
    %261 = vector.extract_strided_slice %258 {offsets = [0, 32], sizes = [8, 32], strides = [1, 1]} : vector<8x128xf32> to vector<8x32xf32>
    %262 = arith.mulf %261, %210 : vector<8x32xf32>
    %263 = vector.extract_strided_slice %258 {offsets = [0, 0], sizes = [8, 32], strides = [1, 1]} : vector<8x128xf32> to vector<8x32xf32>
    %264 = arith.mulf %263, %260 : vector<8x32xf32>
    %265 = arith.addf %262, %264 : vector<8x32xf32>
    %266 = vector.extract_strided_slice %258 {offsets = [0, 64], sizes = [8, 32], strides = [1, 1]} : vector<8x128xf32> to vector<8x32xf32>
    %267 = math.tanh %265 : vector<8x32xf32>
    %268 = arith.mulf %266, %267 : vector<8x32xf32>
    %269 = tpu.concatenate %268, %231 in 1 : vector<8x32xf32>, vector<8x32xf32> -> vector<8x64xf32>
    %cst_115 = arith.constant dense<0.000000e+00> : vector<8x128xf32>
    %270 = tpu.matmul %269, %16, %cst_115 {dimension_numbers = #tpu.dot_dimension_numbers<[1], [0], [0], [1], [0, 0, 1, 1], [], []>} : vector<8x64xf32>, vector<64x128xf32>, vector<8x128xf32> -> vector<8x128xf32>
    %271 = arith.addf %270, %28 : vector<8x128xf32>
    %272 = arith.negf %271 : vector<8x128xf32>
    %273 = math.exp %272 : vector<8x128xf32>
    %cst_116 = arith.constant 1.000000e+00 : f32
    %274 = vector.broadcast %cst_116 : f32 to vector<8x128xf32>
    %275 = arith.addf %274, %273 : vector<8x128xf32>
    %276 = arith.divf %274, %275 : vector<8x128xf32>
    %277 = vector.extract_strided_slice %271 {offsets = [0, 96], sizes = [8, 32], strides = [1, 1]} : vector<8x128xf32> to vector<8x32xf32>
    %278 = math.tanh %277 : vector<8x32xf32>
    %279 = vector.extract_strided_slice %276 {offsets = [0, 32], sizes = [8, 32], strides = [1, 1]} : vector<8x128xf32> to vector<8x32xf32>
    %280 = arith.mulf %279, %228 : vector<8x32xf32>
    %281 = vector.extract_strided_slice %276 {offsets = [0, 0], sizes = [8, 32], strides = [1, 1]} : vector<8x128xf32> to vector<8x32xf32>
    %282 = arith.mulf %281, %278 : vector<8x32xf32>
    %283 = arith.addf %280, %282 : vector<8x32xf32>
    %284 = vector.extract_strided_slice %276 {offsets = [0, 64], sizes = [8, 32], strides = [1, 1]} : vector<8x128xf32> to vector<8x32xf32>
    %285 = math.tanh %283 : vector<8x32xf32>
    %286 = arith.mulf %284, %285 : vector<8x32xf32>
    %c24_117 = arith.constant 24 : index
    %c0_118 = arith.constant 0 : index
    %287 = vector.load %arg30[%c24_117, %c0_118] : memref<64x32xf32, #tpu.memory_space<vmem>>, vector<8x32xf32>
    tpu.vector_store %arg30[%c24_117, %c0_118], %286 {strides = array<i32>} : memref<64x32xf32, #tpu.memory_space<vmem>>, vector<8x32xf32>,
    %c32 = arith.constant 32 : index
    %c0_119 = arith.constant 0 : index
    %288 = vector.load %arg28[%c32, %c0_119] : memref<64x128xf32, #tpu.memory_space<vmem>>, vector<8x128xf32>
    %cst_120 = arith.constant dense<0.000000e+00> : vector<8x128xf32>
    %289 = tpu.matmul %250, %14, %cst_120 {dimension_numbers = #tpu.dot_dimension_numbers<[1], [0], [0], [1], [0, 0, 1, 1], [], []>} : vector<8x32xf32>, vector<32x128xf32>, vector<8x128xf32> -> vector<8x128xf32>
    %290 = arith.addf %288, %289 : vector<8x128xf32>
    %291 = arith.negf %290 : vector<8x128xf32>
    %292 = math.exp %291 : vector<8x128xf32>
    %cst_121 = arith.constant 1.000000e+00 : f32
    %293 = vector.broadcast %cst_121 : f32 to vector<8x128xf32>
    %294 = arith.addf %293, %292 : vector<8x128xf32>
    %295 = arith.divf %293, %294 : vector<8x128xf32>
    %296 = vector.extract_strided_slice %290 {offsets = [0, 96], sizes = [8, 32], strides = [1, 1]} : vector<8x128xf32> to vector<8x32xf32>
    %297 = math.tanh %296 : vector<8x32xf32>
    %298 = vector.extract_strided_slice %295 {offsets = [0, 32], sizes = [8, 32], strides = [1, 1]} : vector<8x128xf32> to vector<8x32xf32>
    %299 = arith.mulf %298, %247 : vector<8x32xf32>
    %300 = vector.extract_strided_slice %295 {offsets = [0, 0], sizes = [8, 32], strides = [1, 1]} : vector<8x128xf32> to vector<8x32xf32>
    %301 = arith.mulf %300, %297 : vector<8x32xf32>
    %302 = arith.addf %299, %301 : vector<8x32xf32>
    %303 = vector.extract_strided_slice %295 {offsets = [0, 64], sizes = [8, 32], strides = [1, 1]} : vector<8x128xf32> to vector<8x32xf32>
    %304 = math.tanh %302 : vector<8x32xf32>
    %305 = arith.mulf %303, %304 : vector<8x32xf32>
    %306 = tpu.concatenate %305, %268 in 1 : vector<8x32xf32>, vector<8x32xf32> -> vector<8x64xf32>
    %cst_122 = arith.constant dense<0.000000e+00> : vector<8x128xf32>
    %307 = tpu.matmul %306, %15, %cst_122 {dimension_numbers = #tpu.dot_dimension_numbers<[1], [0], [0], [1], [0, 0, 1, 1], [], []>} : vector<8x64xf32>, vector<64x128xf32>, vector<8x128xf32> -> vector<8x128xf32>
    %308 = arith.addf %307, %25 : vector<8x128xf32>
    %309 = arith.negf %308 : vector<8x128xf32>
    %310 = math.exp %309 : vector<8x128xf32>
    %cst_123 = arith.constant 1.000000e+00 : f32
    %311 = vector.broadcast %cst_123 : f32 to vector<8x128xf32>
    %312 = arith.addf %311, %310 : vector<8x128xf32>
    %313 = arith.divf %311, %312 : vector<8x128xf32>
    %314 = vector.extract_strided_slice %308 {offsets = [0, 96], sizes = [8, 32], strides = [1, 1]} : vector<8x128xf32> to vector<8x32xf32>
    %315 = math.tanh %314 : vector<8x32xf32>
    %316 = vector.extract_strided_slice %313 {offsets = [0, 32], sizes = [8, 32], strides = [1, 1]} : vector<8x128xf32> to vector<8x32xf32>
    %317 = arith.mulf %316, %265 : vector<8x32xf32>
    %318 = vector.extract_strided_slice %313 {offsets = [0, 0], sizes = [8, 32], strides = [1, 1]} : vector<8x128xf32> to vector<8x32xf32>
    %319 = arith.mulf %318, %315 : vector<8x32xf32>
    %320 = arith.addf %317, %319 : vector<8x32xf32>
    %321 = vector.extract_strided_slice %313 {offsets = [0, 64], sizes = [8, 32], strides = [1, 1]} : vector<8x128xf32> to vector<8x32xf32>
    %322 = math.tanh %320 : vector<8x32xf32>
    %323 = arith.mulf %321, %322 : vector<8x32xf32>
    %324 = tpu.concatenate %323, %286 in 1 : vector<8x32xf32>, vector<8x32xf32> -> vector<8x64xf32>
    %cst_124 = arith.constant dense<0.000000e+00> : vector<8x128xf32>
    %325 = tpu.matmul %324, %16, %cst_124 {dimension_numbers = #tpu.dot_dimension_numbers<[1], [0], [0], [1], [0, 0, 1, 1], [], []>} : vector<8x64xf32>, vector<64x128xf32>, vector<8x128xf32> -> vector<8x128xf32>
    %326 = arith.addf %325, %28 : vector<8x128xf32>
    %327 = arith.negf %326 : vector<8x128xf32>
    %328 = math.exp %327 : vector<8x128xf32>
    %cst_125 = arith.constant 1.000000e+00 : f32
    %329 = vector.broadcast %cst_125 : f32 to vector<8x128xf32>
    %330 = arith.addf %329, %328 : vector<8x128xf32>
    %331 = arith.divf %329, %330 : vector<8x128xf32>
    %332 = vector.extract_strided_slice %326 {offsets = [0, 96], sizes = [8, 32], strides = [1, 1]} : vector<8x128xf32> to vector<8x32xf32>
    %333 = math.tanh %332 : vector<8x32xf32>
    %334 = vector.extract_strided_slice %331 {offsets = [0, 32], sizes = [8, 32], strides = [1, 1]} : vector<8x128xf32> to vector<8x32xf32>
    %335 = arith.mulf %334, %283 : vector<8x32xf32>
    %336 = vector.extract_strided_slice %331 {offsets = [0, 0], sizes = [8, 32], strides = [1, 1]} : vector<8x128xf32> to vector<8x32xf32>
    %337 = arith.mulf %336, %333 : vector<8x32xf32>
    %338 = arith.addf %335, %337 : vector<8x32xf32>
    %339 = vector.extract_strided_slice %331 {offsets = [0, 64], sizes = [8, 32], strides = [1, 1]} : vector<8x128xf32> to vector<8x32xf32>
    %340 = math.tanh %338 : vector<8x32xf32>
    %341 = arith.mulf %339, %340 : vector<8x32xf32>
    %c32_126 = arith.constant 32 : index
    %c0_127 = arith.constant 0 : index
    %342 = vector.load %arg30[%c32_126, %c0_127] : memref<64x32xf32, #tpu.memory_space<vmem>>, vector<8x32xf32>
    tpu.vector_store %arg30[%c32_126, %c0_127], %341 {strides = array<i32>} : memref<64x32xf32, #tpu.memory_space<vmem>>, vector<8x32xf32>,
    %c40 = arith.constant 40 : index
    %c0_128 = arith.constant 0 : index
    %343 = vector.load %arg28[%c40, %c0_128] : memref<64x128xf32, #tpu.memory_space<vmem>>, vector<8x128xf32>
    %cst_129 = arith.constant dense<0.000000e+00> : vector<8x128xf32>
    %344 = tpu.matmul %305, %14, %cst_129 {dimension_numbers = #tpu.dot_dimension_numbers<[1], [0], [0], [1], [0, 0, 1, 1], [], []>} : vector<8x32xf32>, vector<32x128xf32>, vector<8x128xf32> -> vector<8x128xf32>
    %345 = arith.addf %343, %344 : vector<8x128xf32>
    %346 = arith.negf %345 : vector<8x128xf32>
    %347 = math.exp %346 : vector<8x128xf32>
    %cst_130 = arith.constant 1.000000e+00 : f32
    %348 = vector.broadcast %cst_130 : f32 to vector<8x128xf32>
    %349 = arith.addf %348, %347 : vector<8x128xf32>
    %350 = arith.divf %348, %349 : vector<8x128xf32>
    %351 = vector.extract_strided_slice %345 {offsets = [0, 96], sizes = [8, 32], strides = [1, 1]} : vector<8x128xf32> to vector<8x32xf32>
    %352 = math.tanh %351 : vector<8x32xf32>
    %353 = vector.extract_strided_slice %350 {offsets = [0, 32], sizes = [8, 32], strides = [1, 1]} : vector<8x128xf32> to vector<8x32xf32>
    %354 = arith.mulf %353, %302 : vector<8x32xf32>
    %355 = vector.extract_strided_slice %350 {offsets = [0, 0], sizes = [8, 32], strides = [1, 1]} : vector<8x128xf32> to vector<8x32xf32>
    %356 = arith.mulf %355, %352 : vector<8x32xf32>
    %357 = arith.addf %354, %356 : vector<8x32xf32>
    %358 = vector.extract_strided_slice %350 {offsets = [0, 64], sizes = [8, 32], strides = [1, 1]} : vector<8x128xf32> to vector<8x32xf32>
    %359 = math.tanh %357 : vector<8x32xf32>
    %360 = arith.mulf %358, %359 : vector<8x32xf32>
    %361 = tpu.concatenate %360, %323 in 1 : vector<8x32xf32>, vector<8x32xf32> -> vector<8x64xf32>
    %cst_131 = arith.constant dense<0.000000e+00> : vector<8x128xf32>
    %362 = tpu.matmul %361, %15, %cst_131 {dimension_numbers = #tpu.dot_dimension_numbers<[1], [0], [0], [1], [0, 0, 1, 1], [], []>} : vector<8x64xf32>, vector<64x128xf32>, vector<8x128xf32> -> vector<8x128xf32>
    %363 = arith.addf %362, %25 : vector<8x128xf32>
    %364 = arith.negf %363 : vector<8x128xf32>
    %365 = math.exp %364 : vector<8x128xf32>
    %cst_132 = arith.constant 1.000000e+00 : f32
    %366 = vector.broadcast %cst_132 : f32 to vector<8x128xf32>
    %367 = arith.addf %366, %365 : vector<8x128xf32>
    %368 = arith.divf %366, %367 : vector<8x128xf32>
    %369 = vector.extract_strided_slice %363 {offsets = [0, 96], sizes = [8, 32], strides = [1, 1]} : vector<8x128xf32> to vector<8x32xf32>
    %370 = math.tanh %369 : vector<8x32xf32>
    %371 = vector.extract_strided_slice %368 {offsets = [0, 32], sizes = [8, 32], strides = [1, 1]} : vector<8x128xf32> to vector<8x32xf32>
    %372 = arith.mulf %371, %320 : vector<8x32xf32>
    %373 = vector.extract_strided_slice %368 {offsets = [0, 0], sizes = [8, 32], strides = [1, 1]} : vector<8x128xf32> to vector<8x32xf32>
    %374 = arith.mulf %373, %370 : vector<8x32xf32>
    %375 = arith.addf %372, %374 : vector<8x32xf32>
    %376 = vector.extract_strided_slice %368 {offsets = [0, 64], sizes = [8, 32], strides = [1, 1]} : vector<8x128xf32> to vector<8x32xf32>
    %377 = math.tanh %375 : vector<8x32xf32>
    %378 = arith.mulf %376, %377 : vector<8x32xf32>
    %379 = tpu.concatenate %378, %341 in 1 : vector<8x32xf32>, vector<8x32xf32> -> vector<8x64xf32>
    %cst_133 = arith.constant dense<0.000000e+00> : vector<8x128xf32>
    %380 = tpu.matmul %379, %16, %cst_133 {dimension_numbers = #tpu.dot_dimension_numbers<[1], [0], [0], [1], [0, 0, 1, 1], [], []>} : vector<8x64xf32>, vector<64x128xf32>, vector<8x128xf32> -> vector<8x128xf32>
    %381 = arith.addf %380, %28 : vector<8x128xf32>
    %382 = arith.negf %381 : vector<8x128xf32>
    %383 = math.exp %382 : vector<8x128xf32>
    %cst_134 = arith.constant 1.000000e+00 : f32
    %384 = vector.broadcast %cst_134 : f32 to vector<8x128xf32>
    %385 = arith.addf %384, %383 : vector<8x128xf32>
    %386 = arith.divf %384, %385 : vector<8x128xf32>
    %387 = vector.extract_strided_slice %381 {offsets = [0, 96], sizes = [8, 32], strides = [1, 1]} : vector<8x128xf32> to vector<8x32xf32>
    %388 = math.tanh %387 : vector<8x32xf32>
    %389 = vector.extract_strided_slice %386 {offsets = [0, 32], sizes = [8, 32], strides = [1, 1]} : vector<8x128xf32> to vector<8x32xf32>
    %390 = arith.mulf %389, %338 : vector<8x32xf32>
    %391 = vector.extract_strided_slice %386 {offsets = [0, 0], sizes = [8, 32], strides = [1, 1]} : vector<8x128xf32> to vector<8x32xf32>
    %392 = arith.mulf %391, %388 : vector<8x32xf32>
    %393 = arith.addf %390, %392 : vector<8x32xf32>
    %394 = vector.extract_strided_slice %386 {offsets = [0, 64], sizes = [8, 32], strides = [1, 1]} : vector<8x128xf32> to vector<8x32xf32>
    %395 = math.tanh %393 : vector<8x32xf32>
    %396 = arith.mulf %394, %395 : vector<8x32xf32>
    %c40_135 = arith.constant 40 : index
    %c0_136 = arith.constant 0 : index
    %397 = vector.load %arg30[%c40_135, %c0_136] : memref<64x32xf32, #tpu.memory_space<vmem>>, vector<8x32xf32>
    tpu.vector_store %arg30[%c40_135, %c0_136], %396 {strides = array<i32>} : memref<64x32xf32, #tpu.memory_space<vmem>>, vector<8x32xf32>,
    %c48 = arith.constant 48 : index
    %c0_137 = arith.constant 0 : index
    %398 = vector.load %arg28[%c48, %c0_137] : memref<64x128xf32, #tpu.memory_space<vmem>>, vector<8x128xf32>
    %cst_138 = arith.constant dense<0.000000e+00> : vector<8x128xf32>
    %399 = tpu.matmul %360, %14, %cst_138 {dimension_numbers = #tpu.dot_dimension_numbers<[1], [0], [0], [1], [0, 0, 1, 1], [], []>} : vector<8x32xf32>, vector<32x128xf32>, vector<8x128xf32> -> vector<8x128xf32>
    %400 = arith.addf %398, %399 : vector<8x128xf32>
    %401 = arith.negf %400 : vector<8x128xf32>
    %402 = math.exp %401 : vector<8x128xf32>
    %cst_139 = arith.constant 1.000000e+00 : f32
    %403 = vector.broadcast %cst_139 : f32 to vector<8x128xf32>
    %404 = arith.addf %403, %402 : vector<8x128xf32>
    %405 = arith.divf %403, %404 : vector<8x128xf32>
    %406 = vector.extract_strided_slice %400 {offsets = [0, 96], sizes = [8, 32], strides = [1, 1]} : vector<8x128xf32> to vector<8x32xf32>
    %407 = math.tanh %406 : vector<8x32xf32>
    %408 = vector.extract_strided_slice %405 {offsets = [0, 32], sizes = [8, 32], strides = [1, 1]} : vector<8x128xf32> to vector<8x32xf32>
    %409 = arith.mulf %408, %357 : vector<8x32xf32>
    %410 = vector.extract_strided_slice %405 {offsets = [0, 0], sizes = [8, 32], strides = [1, 1]} : vector<8x128xf32> to vector<8x32xf32>
    %411 = arith.mulf %410, %407 : vector<8x32xf32>
    %412 = arith.addf %409, %411 : vector<8x32xf32>
    %413 = vector.extract_strided_slice %405 {offsets = [0, 64], sizes = [8, 32], strides = [1, 1]} : vector<8x128xf32> to vector<8x32xf32>
    %414 = math.tanh %412 : vector<8x32xf32>
    %415 = arith.mulf %413, %414 : vector<8x32xf32>
    %416 = tpu.concatenate %415, %378 in 1 : vector<8x32xf32>, vector<8x32xf32> -> vector<8x64xf32>
    %cst_140 = arith.constant dense<0.000000e+00> : vector<8x128xf32>
    %417 = tpu.matmul %416, %15, %cst_140 {dimension_numbers = #tpu.dot_dimension_numbers<[1], [0], [0], [1], [0, 0, 1, 1], [], []>} : vector<8x64xf32>, vector<64x128xf32>, vector<8x128xf32> -> vector<8x128xf32>
    %418 = arith.addf %417, %25 : vector<8x128xf32>
    %419 = arith.negf %418 : vector<8x128xf32>
    %420 = math.exp %419 : vector<8x128xf32>
    %cst_141 = arith.constant 1.000000e+00 : f32
    %421 = vector.broadcast %cst_141 : f32 to vector<8x128xf32>
    %422 = arith.addf %421, %420 : vector<8x128xf32>
    %423 = arith.divf %421, %422 : vector<8x128xf32>
    %424 = vector.extract_strided_slice %418 {offsets = [0, 96], sizes = [8, 32], strides = [1, 1]} : vector<8x128xf32> to vector<8x32xf32>
    %425 = math.tanh %424 : vector<8x32xf32>
    %426 = vector.extract_strided_slice %423 {offsets = [0, 32], sizes = [8, 32], strides = [1, 1]} : vector<8x128xf32> to vector<8x32xf32>
    %427 = arith.mulf %426, %375 : vector<8x32xf32>
    %428 = vector.extract_strided_slice %423 {offsets = [0, 0], sizes = [8, 32], strides = [1, 1]} : vector<8x128xf32> to vector<8x32xf32>
    %429 = arith.mulf %428, %425 : vector<8x32xf32>
    %430 = arith.addf %427, %429 : vector<8x32xf32>
    %431 = vector.extract_strided_slice %423 {offsets = [0, 64], sizes = [8, 32], strides = [1, 1]} : vector<8x128xf32> to vector<8x32xf32>
    %432 = math.tanh %430 : vector<8x32xf32>
    %433 = arith.mulf %431, %432 : vector<8x32xf32>
    %434 = tpu.concatenate %433, %396 in 1 : vector<8x32xf32>, vector<8x32xf32> -> vector<8x64xf32>
    %cst_142 = arith.constant dense<0.000000e+00> : vector<8x128xf32>
    %435 = tpu.matmul %434, %16, %cst_142 {dimension_numbers = #tpu.dot_dimension_numbers<[1], [0], [0], [1], [0, 0, 1, 1], [], []>} : vector<8x64xf32>, vector<64x128xf32>, vector<8x128xf32> -> vector<8x128xf32>
    %436 = arith.addf %435, %28 : vector<8x128xf32>
    %437 = arith.negf %436 : vector<8x128xf32>
    %438 = math.exp %437 : vector<8x128xf32>
    %cst_143 = arith.constant 1.000000e+00 : f32
    %439 = vector.broadcast %cst_143 : f32 to vector<8x128xf32>
    %440 = arith.addf %439, %438 : vector<8x128xf32>
    %441 = arith.divf %439, %440 : vector<8x128xf32>
    %442 = vector.extract_strided_slice %436 {offsets = [0, 96], sizes = [8, 32], strides = [1, 1]} : vector<8x128xf32> to vector<8x32xf32>
    %443 = math.tanh %442 : vector<8x32xf32>
    %444 = vector.extract_strided_slice %441 {offsets = [0, 32], sizes = [8, 32], strides = [1, 1]} : vector<8x128xf32> to vector<8x32xf32>
    %445 = arith.mulf %444, %393 : vector<8x32xf32>
    %446 = vector.extract_strided_slice %441 {offsets = [0, 0], sizes = [8, 32], strides = [1, 1]} : vector<8x128xf32> to vector<8x32xf32>
    %447 = arith.mulf %446, %443 : vector<8x32xf32>
    %448 = arith.addf %445, %447 : vector<8x32xf32>
    %449 = vector.extract_strided_slice %441 {offsets = [0, 64], sizes = [8, 32], strides = [1, 1]} : vector<8x128xf32> to vector<8x32xf32>
    %450 = math.tanh %448 : vector<8x32xf32>
    %451 = arith.mulf %449, %450 : vector<8x32xf32>
    %c48_144 = arith.constant 48 : index
    %c0_145 = arith.constant 0 : index
    %452 = vector.load %arg30[%c48_144, %c0_145] : memref<64x32xf32, #tpu.memory_space<vmem>>, vector<8x32xf32>
    tpu.vector_store %arg30[%c48_144, %c0_145], %451 {strides = array<i32>} : memref<64x32xf32, #tpu.memory_space<vmem>>, vector<8x32xf32>,
    %c56 = arith.constant 56 : index
    %c0_146 = arith.constant 0 : index
    %453 = vector.load %arg28[%c56, %c0_146] : memref<64x128xf32, #tpu.memory_space<vmem>>, vector<8x128xf32>
    %cst_147 = arith.constant dense<0.000000e+00> : vector<8x128xf32>
    %454 = tpu.matmul %415, %14, %cst_147 {dimension_numbers = #tpu.dot_dimension_numbers<[1], [0], [0], [1], [0, 0, 1, 1], [], []>} : vector<8x32xf32>, vector<32x128xf32>, vector<8x128xf32> -> vector<8x128xf32>
    %455 = arith.addf %453, %454 : vector<8x128xf32>
    %456 = arith.negf %455 : vector<8x128xf32>
    %457 = math.exp %456 : vector<8x128xf32>
    %cst_148 = arith.constant 1.000000e+00 : f32
    %458 = vector.broadcast %cst_148 : f32 to vector<8x128xf32>
    %459 = arith.addf %458, %457 : vector<8x128xf32>
    %460 = arith.divf %458, %459 : vector<8x128xf32>
    %461 = vector.extract_strided_slice %455 {offsets = [0, 96], sizes = [8, 32], strides = [1, 1]} : vector<8x128xf32> to vector<8x32xf32>
    %462 = math.tanh %461 : vector<8x32xf32>
    %463 = vector.extract_strided_slice %460 {offsets = [0, 32], sizes = [8, 32], strides = [1, 1]} : vector<8x128xf32> to vector<8x32xf32>
    %464 = arith.mulf %463, %412 : vector<8x32xf32>
    %465 = vector.extract_strided_slice %460 {offsets = [0, 0], sizes = [8, 32], strides = [1, 1]} : vector<8x128xf32> to vector<8x32xf32>
    %466 = arith.mulf %465, %462 : vector<8x32xf32>
    %467 = arith.addf %464, %466 : vector<8x32xf32>
    %468 = vector.extract_strided_slice %460 {offsets = [0, 64], sizes = [8, 32], strides = [1, 1]} : vector<8x128xf32> to vector<8x32xf32>
    %469 = math.tanh %467 : vector<8x32xf32>
    %470 = arith.mulf %468, %469 : vector<8x32xf32>
    %471 = tpu.concatenate %470, %433 in 1 : vector<8x32xf32>, vector<8x32xf32> -> vector<8x64xf32>
    %cst_149 = arith.constant dense<0.000000e+00> : vector<8x128xf32>
    %472 = tpu.matmul %471, %15, %cst_149 {dimension_numbers = #tpu.dot_dimension_numbers<[1], [0], [0], [1], [0, 0, 1, 1], [], []>} : vector<8x64xf32>, vector<64x128xf32>, vector<8x128xf32> -> vector<8x128xf32>
    %473 = arith.addf %472, %25 : vector<8x128xf32>
    %474 = arith.negf %473 : vector<8x128xf32>
    %475 = math.exp %474 : vector<8x128xf32>
    %cst_150 = arith.constant 1.000000e+00 : f32
    %476 = vector.broadcast %cst_150 : f32 to vector<8x128xf32>
    %477 = arith.addf %476, %475 : vector<8x128xf32>
    %478 = arith.divf %476, %477 : vector<8x128xf32>
    %479 = vector.extract_strided_slice %473 {offsets = [0, 96], sizes = [8, 32], strides = [1, 1]} : vector<8x128xf32> to vector<8x32xf32>
    %480 = math.tanh %479 : vector<8x32xf32>
    %481 = vector.extract_strided_slice %478 {offsets = [0, 32], sizes = [8, 32], strides = [1, 1]} : vector<8x128xf32> to vector<8x32xf32>
    %482 = arith.mulf %481, %430 : vector<8x32xf32>
    %483 = vector.extract_strided_slice %478 {offsets = [0, 0], sizes = [8, 32], strides = [1, 1]} : vector<8x128xf32> to vector<8x32xf32>
    %484 = arith.mulf %483, %480 : vector<8x32xf32>
    %485 = arith.addf %482, %484 : vector<8x32xf32>
    %486 = vector.extract_strided_slice %478 {offsets = [0, 64], sizes = [8, 32], strides = [1, 1]} : vector<8x128xf32> to vector<8x32xf32>
    %487 = math.tanh %485 : vector<8x32xf32>
    %488 = arith.mulf %486, %487 : vector<8x32xf32>
    %489 = tpu.concatenate %488, %451 in 1 : vector<8x32xf32>, vector<8x32xf32> -> vector<8x64xf32>
    %cst_151 = arith.constant dense<0.000000e+00> : vector<8x128xf32>
    %490 = tpu.matmul %489, %16, %cst_151 {dimension_numbers = #tpu.dot_dimension_numbers<[1], [0], [0], [1], [0, 0, 1, 1], [], []>} : vector<8x64xf32>, vector<64x128xf32>, vector<8x128xf32> -> vector<8x128xf32>
    %491 = arith.addf %490, %28 : vector<8x128xf32>
    %492 = arith.negf %491 : vector<8x128xf32>
    %493 = math.exp %492 : vector<8x128xf32>
    %cst_152 = arith.constant 1.000000e+00 : f32
    %494 = vector.broadcast %cst_152 : f32 to vector<8x128xf32>
    %495 = arith.addf %494, %493 : vector<8x128xf32>
    %496 = arith.divf %494, %495 : vector<8x128xf32>
    %497 = vector.extract_strided_slice %491 {offsets = [0, 96], sizes = [8, 32], strides = [1, 1]} : vector<8x128xf32> to vector<8x32xf32>
    %498 = math.tanh %497 : vector<8x32xf32>
    %499 = vector.extract_strided_slice %496 {offsets = [0, 32], sizes = [8, 32], strides = [1, 1]} : vector<8x128xf32> to vector<8x32xf32>
    %500 = arith.mulf %499, %448 : vector<8x32xf32>
    %501 = vector.extract_strided_slice %496 {offsets = [0, 0], sizes = [8, 32], strides = [1, 1]} : vector<8x128xf32> to vector<8x32xf32>
    %502 = arith.mulf %501, %498 : vector<8x32xf32>
    %503 = arith.addf %500, %502 : vector<8x32xf32>
    %504 = vector.extract_strided_slice %496 {offsets = [0, 64], sizes = [8, 32], strides = [1, 1]} : vector<8x128xf32> to vector<8x32xf32>
    %505 = math.tanh %503 : vector<8x32xf32>
    %506 = arith.mulf %504, %505 : vector<8x32xf32>
    %c56_153 = arith.constant 56 : index
    %c0_154 = arith.constant 0 : index
    %507 = vector.load %arg30[%c56_153, %c0_154] : memref<64x32xf32, #tpu.memory_space<vmem>>, vector<8x32xf32>
    tpu.vector_store %arg30[%c56_153, %c0_154], %506 {strides = array<i32>} : memref<64x32xf32, #tpu.memory_space<vmem>>, vector<8x32xf32>,
    %c0_155 = arith.constant 0 : index
    %c0_156 = arith.constant 0 : index
    %508 = vector.load %arg30[%c0_155, %c0_156] : memref<64x32xf32, #tpu.memory_space<vmem>>, vector<8x32xf32>
    %c0_157 = arith.constant 0 : index
    %c0_158 = arith.constant 0 : index
    %509 = vector.load %arg29[%c0_157, %c0_158] : memref<64x128xf32, #tpu.memory_space<vmem>>, vector<8x128xf32>
    %510 = tpu.concatenate %508, %57 in 1 : vector<8x32xf32>, vector<8x32xf32> -> vector<8x64xf32>
    %cst_159 = arith.constant dense<0.000000e+00> : vector<8x128xf32>
    %511 = tpu.matmul %510, %17, %cst_159 {dimension_numbers = #tpu.dot_dimension_numbers<[1], [0], [0], [1], [0, 0, 1, 1], [], []>} : vector<8x64xf32>, vector<64x128xf32>, vector<8x128xf32> -> vector<8x128xf32>
    %512 = arith.addf %509, %511 : vector<8x128xf32>
    %513 = arith.negf %512 : vector<8x128xf32>
    %514 = math.exp %513 : vector<8x128xf32>
    %cst_160 = arith.constant 1.000000e+00 : f32
    %515 = vector.broadcast %cst_160 : f32 to vector<8x128xf32>
    %516 = arith.addf %515, %514 : vector<8x128xf32>
    %517 = arith.divf %515, %516 : vector<8x128xf32>
    %518 = vector.extract_strided_slice %512 {offsets = [0, 96], sizes = [8, 32], strides = [1, 1]} : vector<8x128xf32> to vector<8x32xf32>
    %519 = math.tanh %518 : vector<8x32xf32>
    %520 = vector.extract_strided_slice %517 {offsets = [0, 32], sizes = [8, 32], strides = [1, 1]} : vector<8x128xf32> to vector<8x32xf32>
    %521 = arith.mulf %520, %63 : vector<8x32xf32>
    %522 = vector.extract_strided_slice %517 {offsets = [0, 0], sizes = [8, 32], strides = [1, 1]} : vector<8x128xf32> to vector<8x32xf32>
    %523 = arith.mulf %522, %519 : vector<8x32xf32>
    %524 = arith.addf %521, %523 : vector<8x32xf32>
    %525 = vector.extract_strided_slice %517 {offsets = [0, 64], sizes = [8, 32], strides = [1, 1]} : vector<8x128xf32> to vector<8x32xf32>
    %526 = math.tanh %524 : vector<8x32xf32>
    %527 = arith.mulf %525, %526 : vector<8x32xf32>
    %528 = tpu.concatenate %527, %59 in 1 : vector<8x32xf32>, vector<8x32xf32> -> vector<8x64xf32>
    %cst_161 = arith.constant dense<0.000000e+00> : vector<8x128xf32>
    %529 = tpu.matmul %528, %18, %cst_161 {dimension_numbers = #tpu.dot_dimension_numbers<[1], [0], [0], [1], [0, 0, 1, 1], [], []>} : vector<8x64xf32>, vector<64x128xf32>, vector<8x128xf32> -> vector<8x128xf32>
    %530 = arith.addf %529, %31 : vector<8x128xf32>
    %531 = arith.negf %530 : vector<8x128xf32>
    %532 = math.exp %531 : vector<8x128xf32>
    %cst_162 = arith.constant 1.000000e+00 : f32
    %533 = vector.broadcast %cst_162 : f32 to vector<8x128xf32>
    %534 = arith.addf %533, %532 : vector<8x128xf32>
    %535 = arith.divf %533, %534 : vector<8x128xf32>
    %536 = vector.extract_strided_slice %530 {offsets = [0, 96], sizes = [8, 32], strides = [1, 1]} : vector<8x128xf32> to vector<8x32xf32>
    %537 = math.tanh %536 : vector<8x32xf32>
    %538 = vector.extract_strided_slice %535 {offsets = [0, 32], sizes = [8, 32], strides = [1, 1]} : vector<8x128xf32> to vector<8x32xf32>
    %539 = arith.mulf %538, %65 : vector<8x32xf32>
    %540 = vector.extract_strided_slice %535 {offsets = [0, 0], sizes = [8, 32], strides = [1, 1]} : vector<8x128xf32> to vector<8x32xf32>
    %541 = arith.mulf %540, %537 : vector<8x32xf32>
    %542 = arith.addf %539, %541 : vector<8x32xf32>
    %543 = vector.extract_strided_slice %535 {offsets = [0, 64], sizes = [8, 32], strides = [1, 1]} : vector<8x128xf32> to vector<8x32xf32>
    %544 = math.tanh %542 : vector<8x32xf32>
    %545 = arith.mulf %543, %544 : vector<8x32xf32>
    %546 = tpu.concatenate %545, %61 in 1 : vector<8x32xf32>, vector<8x32xf32> -> vector<8x64xf32>
    %cst_163 = arith.constant dense<0.000000e+00> : vector<8x128xf32>
    %547 = tpu.matmul %546, %19, %cst_163 {dimension_numbers = #tpu.dot_dimension_numbers<[1], [0], [0], [1], [0, 0, 1, 1], [], []>} : vector<8x64xf32>, vector<64x128xf32>, vector<8x128xf32> -> vector<8x128xf32>
    %548 = arith.addf %547, %34 : vector<8x128xf32>
    %549 = arith.negf %548 : vector<8x128xf32>
    %550 = math.exp %549 : vector<8x128xf32>
    %cst_164 = arith.constant 1.000000e+00 : f32
    %551 = vector.broadcast %cst_164 : f32 to vector<8x128xf32>
    %552 = arith.addf %551, %550 : vector<8x128xf32>
    %553 = arith.divf %551, %552 : vector<8x128xf32>
    %554 = vector.extract_strided_slice %548 {offsets = [0, 96], sizes = [8, 32], strides = [1, 1]} : vector<8x128xf32> to vector<8x32xf32>
    %555 = math.tanh %554 : vector<8x32xf32>
    %556 = vector.extract_strided_slice %553 {offsets = [0, 32], sizes = [8, 32], strides = [1, 1]} : vector<8x128xf32> to vector<8x32xf32>
    %557 = arith.mulf %556, %67 : vector<8x32xf32>
    %558 = vector.extract_strided_slice %553 {offsets = [0, 0], sizes = [8, 32], strides = [1, 1]} : vector<8x128xf32> to vector<8x32xf32>
    %559 = arith.mulf %558, %555 : vector<8x32xf32>
    %560 = arith.addf %557, %559 : vector<8x32xf32>
    %561 = vector.extract_strided_slice %553 {offsets = [0, 64], sizes = [8, 32], strides = [1, 1]} : vector<8x128xf32> to vector<8x32xf32>
    %562 = math.tanh %560 : vector<8x32xf32>
    %563 = arith.mulf %561, %562 : vector<8x32xf32>
    %564 = tpu.concatenate %508, %563 in 1 : vector<8x32xf32>, vector<8x32xf32> -> vector<8x64xf32>
    %cst_165 = arith.constant dense<0.000000e+00> : vector<8x32xf32>
    %565 = tpu.matmul %564, %20, %cst_165 {dimension_numbers = #tpu.dot_dimension_numbers<[1], [0], [0], [1], [0, 0, 1, 1], [], []>} : vector<8x64xf32>, vector<64x32xf32>, vector<8x32xf32> -> vector<8x32xf32>
    %566 = arith.addf %565, %37 : vector<8x32xf32>
    %cst_166 = arith.constant 0.000000e+00 : f32
    %567 = vector.broadcast %cst_166 : f32 to vector<8x32xf32>
    %568 = arith.maximumf %566, %567 : vector<8x32xf32>
    %cst_167 = arith.constant dense<0.000000e+00> : vector<8x32xf32>
    %569 = tpu.matmul %568, %21, %cst_167 {dimension_numbers = #tpu.dot_dimension_numbers<[1], [0], [0], [1], [0, 0, 1, 1], [], []>} : vector<8x32xf32>, vector<32x32xf32>, vector<8x32xf32> -> vector<8x32xf32>
    %570 = arith.addf %569, %40 : vector<8x32xf32>
    %cst_168 = arith.constant 0.000000e+00 : f32
    %571 = vector.broadcast %cst_168 : f32 to vector<8x32xf32>
    %572 = arith.maximumf %570, %571 : vector<8x32xf32>
    %cst_169 = arith.constant dense<0.000000e+00> : vector<8x128xf32>
    %573 = tpu.matmul %572, %22, %cst_169 {dimension_numbers = #tpu.dot_dimension_numbers<[1], [0], [0], [1], [0, 0, 1, 1], [], []>} : vector<8x32xf32>, vector<32x128xf32>, vector<8x128xf32> -> vector<8x128xf32>
    %574 = arith.addf %573, %43 : vector<8x128xf32>
    %cst_170 = arith.constant dense<0xFF800000> : vector<8xf32>
    %575 = vector.multi_reduction <maximumf>, %574, %cst_170 [1] : vector<8x128xf32> to vector<8xf32>
    %576 = vector.shape_cast %575 : vector<8xf32> to vector<8x1xf32>
    %577 = vector.broadcast %576 : vector<8x1xf32> to vector<8x128xf32>
    %578 = arith.subf %574, %577 : vector<8x128xf32>
    %579 = math.exp %578 : vector<8x128xf32>
    %cst_171 = arith.constant dense<0.000000e+00> : vector<8xf32>
    %580 = vector.multi_reduction <add>, %579, %cst_171 [1] : vector<8x128xf32> to vector<8xf32>
    %581 = vector.shape_cast %580 : vector<8xf32> to vector<8x1xf32>
    %582 = vector.broadcast %581 : vector<8x1xf32> to vector<8x128xf32>
    %583 = arith.divf %579, %582 : vector<8x128xf32>
    %c0_172 = arith.constant 0 : index
    %c0_173 = arith.constant 0 : index
    %584 = vector.load %arg26[%c0_172, %c0_173] : memref<64x128xf32, #tpu.memory_space<vmem>>, vector<8x128xf32>
    tpu.vector_store %arg26[%c0_172, %c0_173], %583 {strides = array<i32>} : memref<64x128xf32, #tpu.memory_space<vmem>>, vector<8x128xf32>,
    %c8_174 = arith.constant 8 : index
    %c0_175 = arith.constant 0 : index
    %585 = vector.load %arg30[%c8_174, %c0_175] : memref<64x32xf32, #tpu.memory_space<vmem>>, vector<8x32xf32>
    %c8_176 = arith.constant 8 : index
    %c0_177 = arith.constant 0 : index
    %586 = vector.load %arg29[%c8_176, %c0_177] : memref<64x128xf32, #tpu.memory_space<vmem>>, vector<8x128xf32>
    %587 = tpu.concatenate %585, %527 in 1 : vector<8x32xf32>, vector<8x32xf32> -> vector<8x64xf32>
    %cst_178 = arith.constant dense<0.000000e+00> : vector<8x128xf32>
    %588 = tpu.matmul %587, %17, %cst_178 {dimension_numbers = #tpu.dot_dimension_numbers<[1], [0], [0], [1], [0, 0, 1, 1], [], []>} : vector<8x64xf32>, vector<64x128xf32>, vector<8x128xf32> -> vector<8x128xf32>
    %589 = arith.addf %586, %588 : vector<8x128xf32>
    %590 = arith.negf %589 : vector<8x128xf32>
    %591 = math.exp %590 : vector<8x128xf32>
    %cst_179 = arith.constant 1.000000e+00 : f32
    %592 = vector.broadcast %cst_179 : f32 to vector<8x128xf32>
    %593 = arith.addf %592, %591 : vector<8x128xf32>
    %594 = arith.divf %592, %593 : vector<8x128xf32>
    %595 = vector.extract_strided_slice %589 {offsets = [0, 96], sizes = [8, 32], strides = [1, 1]} : vector<8x128xf32> to vector<8x32xf32>
    %596 = math.tanh %595 : vector<8x32xf32>
    %597 = vector.extract_strided_slice %594 {offsets = [0, 32], sizes = [8, 32], strides = [1, 1]} : vector<8x128xf32> to vector<8x32xf32>
    %598 = arith.mulf %597, %524 : vector<8x32xf32>
    %599 = vector.extract_strided_slice %594 {offsets = [0, 0], sizes = [8, 32], strides = [1, 1]} : vector<8x128xf32> to vector<8x32xf32>
    %600 = arith.mulf %599, %596 : vector<8x32xf32>
    %601 = arith.addf %598, %600 : vector<8x32xf32>
    %602 = vector.extract_strided_slice %594 {offsets = [0, 64], sizes = [8, 32], strides = [1, 1]} : vector<8x128xf32> to vector<8x32xf32>
    %603 = math.tanh %601 : vector<8x32xf32>
    %604 = arith.mulf %602, %603 : vector<8x32xf32>
    %605 = tpu.concatenate %604, %545 in 1 : vector<8x32xf32>, vector<8x32xf32> -> vector<8x64xf32>
    %cst_180 = arith.constant dense<0.000000e+00> : vector<8x128xf32>
    %606 = tpu.matmul %605, %18, %cst_180 {dimension_numbers = #tpu.dot_dimension_numbers<[1], [0], [0], [1], [0, 0, 1, 1], [], []>} : vector<8x64xf32>, vector<64x128xf32>, vector<8x128xf32> -> vector<8x128xf32>
    %607 = arith.addf %606, %31 : vector<8x128xf32>
    %608 = arith.negf %607 : vector<8x128xf32>
    %609 = math.exp %608 : vector<8x128xf32>
    %cst_181 = arith.constant 1.000000e+00 : f32
    %610 = vector.broadcast %cst_181 : f32 to vector<8x128xf32>
    %611 = arith.addf %610, %609 : vector<8x128xf32>
    %612 = arith.divf %610, %611 : vector<8x128xf32>
    %613 = vector.extract_strided_slice %607 {offsets = [0, 96], sizes = [8, 32], strides = [1, 1]} : vector<8x128xf32> to vector<8x32xf32>
    %614 = math.tanh %613 : vector<8x32xf32>
    %615 = vector.extract_strided_slice %612 {offsets = [0, 32], sizes = [8, 32], strides = [1, 1]} : vector<8x128xf32> to vector<8x32xf32>
    %616 = arith.mulf %615, %542 : vector<8x32xf32>
    %617 = vector.extract_strided_slice %612 {offsets = [0, 0], sizes = [8, 32], strides = [1, 1]} : vector<8x128xf32> to vector<8x32xf32>
    %618 = arith.mulf %617, %614 : vector<8x32xf32>
    %619 = arith.addf %616, %618 : vector<8x32xf32>
    %620 = vector.extract_strided_slice %612 {offsets = [0, 64], sizes = [8, 32], strides = [1, 1]} : vector<8x128xf32> to vector<8x32xf32>
    %621 = math.tanh %619 : vector<8x32xf32>
    %622 = arith.mulf %620, %621 : vector<8x32xf32>
    %623 = tpu.concatenate %622, %563 in 1 : vector<8x32xf32>, vector<8x32xf32> -> vector<8x64xf32>
    %cst_182 = arith.constant dense<0.000000e+00> : vector<8x128xf32>
    %624 = tpu.matmul %623, %19, %cst_182 {dimension_numbers = #tpu.dot_dimension_numbers<[1], [0], [0], [1], [0, 0, 1, 1], [], []>} : vector<8x64xf32>, vector<64x128xf32>, vector<8x128xf32> -> vector<8x128xf32>
    %625 = arith.addf %624, %34 : vector<8x128xf32>
    %626 = arith.negf %625 : vector<8x128xf32>
    %627 = math.exp %626 : vector<8x128xf32>
    %cst_183 = arith.constant 1.000000e+00 : f32
    %628 = vector.broadcast %cst_183 : f32 to vector<8x128xf32>
    %629 = arith.addf %628, %627 : vector<8x128xf32>
    %630 = arith.divf %628, %629 : vector<8x128xf32>
    %631 = vector.extract_strided_slice %625 {offsets = [0, 96], sizes = [8, 32], strides = [1, 1]} : vector<8x128xf32> to vector<8x32xf32>
    %632 = math.tanh %631 : vector<8x32xf32>
    %633 = vector.extract_strided_slice %630 {offsets = [0, 32], sizes = [8, 32], strides = [1, 1]} : vector<8x128xf32> to vector<8x32xf32>
    %634 = arith.mulf %633, %560 : vector<8x32xf32>
    %635 = vector.extract_strided_slice %630 {offsets = [0, 0], sizes = [8, 32], strides = [1, 1]} : vector<8x128xf32> to vector<8x32xf32>
    %636 = arith.mulf %635, %632 : vector<8x32xf32>
    %637 = arith.addf %634, %636 : vector<8x32xf32>
    %638 = vector.extract_strided_slice %630 {offsets = [0, 64], sizes = [8, 32], strides = [1, 1]} : vector<8x128xf32> to vector<8x32xf32>
    %639 = math.tanh %637 : vector<8x32xf32>
    %640 = arith.mulf %638, %639 : vector<8x32xf32>
    %641 = tpu.concatenate %585, %640 in 1 : vector<8x32xf32>, vector<8x32xf32> -> vector<8x64xf32>
    %cst_184 = arith.constant dense<0.000000e+00> : vector<8x32xf32>
    %642 = tpu.matmul %641, %20, %cst_184 {dimension_numbers = #tpu.dot_dimension_numbers<[1], [0], [0], [1], [0, 0, 1, 1], [], []>} : vector<8x64xf32>, vector<64x32xf32>, vector<8x32xf32> -> vector<8x32xf32>
    %643 = arith.addf %642, %37 : vector<8x32xf32>
    %cst_185 = arith.constant 0.000000e+00 : f32
    %644 = vector.broadcast %cst_185 : f32 to vector<8x32xf32>
    %645 = arith.maximumf %643, %644 : vector<8x32xf32>
    %cst_186 = arith.constant dense<0.000000e+00> : vector<8x32xf32>
    %646 = tpu.matmul %645, %21, %cst_186 {dimension_numbers = #tpu.dot_dimension_numbers<[1], [0], [0], [1], [0, 0, 1, 1], [], []>} : vector<8x32xf32>, vector<32x32xf32>, vector<8x32xf32> -> vector<8x32xf32>
    %647 = arith.addf %646, %40 : vector<8x32xf32>
    %cst_187 = arith.constant 0.000000e+00 : f32
    %648 = vector.broadcast %cst_187 : f32 to vector<8x32xf32>
    %649 = arith.maximumf %647, %648 : vector<8x32xf32>
    %cst_188 = arith.constant dense<0.000000e+00> : vector<8x128xf32>
    %650 = tpu.matmul %649, %22, %cst_188 {dimension_numbers = #tpu.dot_dimension_numbers<[1], [0], [0], [1], [0, 0, 1, 1], [], []>} : vector<8x32xf32>, vector<32x128xf32>, vector<8x128xf32> -> vector<8x128xf32>
    %651 = arith.addf %650, %43 : vector<8x128xf32>
    %cst_189 = arith.constant dense<0xFF800000> : vector<8xf32>
    %652 = vector.multi_reduction <maximumf>, %651, %cst_189 [1] : vector<8x128xf32> to vector<8xf32>
    %653 = vector.shape_cast %652 : vector<8xf32> to vector<8x1xf32>
    %654 = vector.broadcast %653 : vector<8x1xf32> to vector<8x128xf32>
    %655 = arith.subf %651, %654 : vector<8x128xf32>
    %656 = math.exp %655 : vector<8x128xf32>
    %cst_190 = arith.constant dense<0.000000e+00> : vector<8xf32>
    %657 = vector.multi_reduction <add>, %656, %cst_190 [1] : vector<8x128xf32> to vector<8xf32>
    %658 = vector.shape_cast %657 : vector<8xf32> to vector<8x1xf32>
    %659 = vector.broadcast %658 : vector<8x1xf32> to vector<8x128xf32>
    %660 = arith.divf %656, %659 : vector<8x128xf32>
    %c8_191 = arith.constant 8 : index
    %c0_192 = arith.constant 0 : index
    %661 = vector.load %arg26[%c8_191, %c0_192] : memref<64x128xf32, #tpu.memory_space<vmem>>, vector<8x128xf32>
    tpu.vector_store %arg26[%c8_191, %c0_192], %660 {strides = array<i32>} : memref<64x128xf32, #tpu.memory_space<vmem>>, vector<8x128xf32>,
    %c16_193 = arith.constant 16 : index
    %c0_194 = arith.constant 0 : index
    %662 = vector.load %arg30[%c16_193, %c0_194] : memref<64x32xf32, #tpu.memory_space<vmem>>, vector<8x32xf32>
    %c16_195 = arith.constant 16 : index
    %c0_196 = arith.constant 0 : index
    %663 = vector.load %arg29[%c16_195, %c0_196] : memref<64x128xf32, #tpu.memory_space<vmem>>, vector<8x128xf32>
    %664 = tpu.concatenate %662, %604 in 1 : vector<8x32xf32>, vector<8x32xf32> -> vector<8x64xf32>
    %cst_197 = arith.constant dense<0.000000e+00> : vector<8x128xf32>
    %665 = tpu.matmul %664, %17, %cst_197 {dimension_numbers = #tpu.dot_dimension_numbers<[1], [0], [0], [1], [0, 0, 1, 1], [], []>} : vector<8x64xf32>, vector<64x128xf32>, vector<8x128xf32> -> vector<8x128xf32>
    %666 = arith.addf %663, %665 : vector<8x128xf32>
    %667 = arith.negf %666 : vector<8x128xf32>
    %668 = math.exp %667 : vector<8x128xf32>
    %cst_198 = arith.constant 1.000000e+00 : f32
    %669 = vector.broadcast %cst_198 : f32 to vector<8x128xf32>
    %670 = arith.addf %669, %668 : vector<8x128xf32>
    %671 = arith.divf %669, %670 : vector<8x128xf32>
    %672 = vector.extract_strided_slice %666 {offsets = [0, 96], sizes = [8, 32], strides = [1, 1]} : vector<8x128xf32> to vector<8x32xf32>
    %673 = math.tanh %672 : vector<8x32xf32>
    %674 = vector.extract_strided_slice %671 {offsets = [0, 32], sizes = [8, 32], strides = [1, 1]} : vector<8x128xf32> to vector<8x32xf32>
    %675 = arith.mulf %674, %601 : vector<8x32xf32>
    %676 = vector.extract_strided_slice %671 {offsets = [0, 0], sizes = [8, 32], strides = [1, 1]} : vector<8x128xf32> to vector<8x32xf32>
    %677 = arith.mulf %676, %673 : vector<8x32xf32>
    %678 = arith.addf %675, %677 : vector<8x32xf32>
    %679 = vector.extract_strided_slice %671 {offsets = [0, 64], sizes = [8, 32], strides = [1, 1]} : vector<8x128xf32> to vector<8x32xf32>
    %680 = math.tanh %678 : vector<8x32xf32>
    %681 = arith.mulf %679, %680 : vector<8x32xf32>
    %682 = tpu.concatenate %681, %622 in 1 : vector<8x32xf32>, vector<8x32xf32> -> vector<8x64xf32>
    %cst_199 = arith.constant dense<0.000000e+00> : vector<8x128xf32>
    %683 = tpu.matmul %682, %18, %cst_199 {dimension_numbers = #tpu.dot_dimension_numbers<[1], [0], [0], [1], [0, 0, 1, 1], [], []>} : vector<8x64xf32>, vector<64x128xf32>, vector<8x128xf32> -> vector<8x128xf32>
    %684 = arith.addf %683, %31 : vector<8x128xf32>
    %685 = arith.negf %684 : vector<8x128xf32>
    %686 = math.exp %685 : vector<8x128xf32>
    %cst_200 = arith.constant 1.000000e+00 : f32
    %687 = vector.broadcast %cst_200 : f32 to vector<8x128xf32>
    %688 = arith.addf %687, %686 : vector<8x128xf32>
    %689 = arith.divf %687, %688 : vector<8x128xf32>
    %690 = vector.extract_strided_slice %684 {offsets = [0, 96], sizes = [8, 32], strides = [1, 1]} : vector<8x128xf32> to vector<8x32xf32>
    %691 = math.tanh %690 : vector<8x32xf32>
    %692 = vector.extract_strided_slice %689 {offsets = [0, 32], sizes = [8, 32], strides = [1, 1]} : vector<8x128xf32> to vector<8x32xf32>
    %693 = arith.mulf %692, %619 : vector<8x32xf32>
    %694 = vector.extract_strided_slice %689 {offsets = [0, 0], sizes = [8, 32], strides = [1, 1]} : vector<8x128xf32> to vector<8x32xf32>
    %695 = arith.mulf %694, %691 : vector<8x32xf32>
    %696 = arith.addf %693, %695 : vector<8x32xf32>
    %697 = vector.extract_strided_slice %689 {offsets = [0, 64], sizes = [8, 32], strides = [1, 1]} : vector<8x128xf32> to vector<8x32xf32>
    %698 = math.tanh %696 : vector<8x32xf32>
    %699 = arith.mulf %697, %698 : vector<8x32xf32>
    %700 = tpu.concatenate %699, %640 in 1 : vector<8x32xf32>, vector<8x32xf32> -> vector<8x64xf32>
    %cst_201 = arith.constant dense<0.000000e+00> : vector<8x128xf32>
    %701 = tpu.matmul %700, %19, %cst_201 {dimension_numbers = #tpu.dot_dimension_numbers<[1], [0], [0], [1], [0, 0, 1, 1], [], []>} : vector<8x64xf32>, vector<64x128xf32>, vector<8x128xf32> -> vector<8x128xf32>
    %702 = arith.addf %701, %34 : vector<8x128xf32>
    %703 = arith.negf %702 : vector<8x128xf32>
    %704 = math.exp %703 : vector<8x128xf32>
    %cst_202 = arith.constant 1.000000e+00 : f32
    %705 = vector.broadcast %cst_202 : f32 to vector<8x128xf32>
    %706 = arith.addf %705, %704 : vector<8x128xf32>
    %707 = arith.divf %705, %706 : vector<8x128xf32>
    %708 = vector.extract_strided_slice %702 {offsets = [0, 96], sizes = [8, 32], strides = [1, 1]} : vector<8x128xf32> to vector<8x32xf32>
    %709 = math.tanh %708 : vector<8x32xf32>
    %710 = vector.extract_strided_slice %707 {offsets = [0, 32], sizes = [8, 32], strides = [1, 1]} : vector<8x128xf32> to vector<8x32xf32>
    %711 = arith.mulf %710, %637 : vector<8x32xf32>
    %712 = vector.extract_strided_slice %707 {offsets = [0, 0], sizes = [8, 32], strides = [1, 1]} : vector<8x128xf32> to vector<8x32xf32>
    %713 = arith.mulf %712, %709 : vector<8x32xf32>
    %714 = arith.addf %711, %713 : vector<8x32xf32>
    %715 = vector.extract_strided_slice %707 {offsets = [0, 64], sizes = [8, 32], strides = [1, 1]} : vector<8x128xf32> to vector<8x32xf32>
    %716 = math.tanh %714 : vector<8x32xf32>
    %717 = arith.mulf %715, %716 : vector<8x32xf32>
    %718 = tpu.concatenate %662, %717 in 1 : vector<8x32xf32>, vector<8x32xf32> -> vector<8x64xf32>
    %cst_203 = arith.constant dense<0.000000e+00> : vector<8x32xf32>
    %719 = tpu.matmul %718, %20, %cst_203 {dimension_numbers = #tpu.dot_dimension_numbers<[1], [0], [0], [1], [0, 0, 1, 1], [], []>} : vector<8x64xf32>, vector<64x32xf32>, vector<8x32xf32> -> vector<8x32xf32>
    %720 = arith.addf %719, %37 : vector<8x32xf32>
    %cst_204 = arith.constant 0.000000e+00 : f32
    %721 = vector.broadcast %cst_204 : f32 to vector<8x32xf32>
    %722 = arith.maximumf %720, %721 : vector<8x32xf32>
    %cst_205 = arith.constant dense<0.000000e+00> : vector<8x32xf32>
    %723 = tpu.matmul %722, %21, %cst_205 {dimension_numbers = #tpu.dot_dimension_numbers<[1], [0], [0], [1], [0, 0, 1, 1], [], []>} : vector<8x32xf32>, vector<32x32xf32>, vector<8x32xf32> -> vector<8x32xf32>
    %724 = arith.addf %723, %40 : vector<8x32xf32>
    %cst_206 = arith.constant 0.000000e+00 : f32
    %725 = vector.broadcast %cst_206 : f32 to vector<8x32xf32>
    %726 = arith.maximumf %724, %725 : vector<8x32xf32>
    %cst_207 = arith.constant dense<0.000000e+00> : vector<8x128xf32>
    %727 = tpu.matmul %726, %22, %cst_207 {dimension_numbers = #tpu.dot_dimension_numbers<[1], [0], [0], [1], [0, 0, 1, 1], [], []>} : vector<8x32xf32>, vector<32x128xf32>, vector<8x128xf32> -> vector<8x128xf32>
    %728 = arith.addf %727, %43 : vector<8x128xf32>
    %cst_208 = arith.constant dense<0xFF800000> : vector<8xf32>
    %729 = vector.multi_reduction <maximumf>, %728, %cst_208 [1] : vector<8x128xf32> to vector<8xf32>
    %730 = vector.shape_cast %729 : vector<8xf32> to vector<8x1xf32>
    %731 = vector.broadcast %730 : vector<8x1xf32> to vector<8x128xf32>
    %732 = arith.subf %728, %731 : vector<8x128xf32>
    %733 = math.exp %732 : vector<8x128xf32>
    %cst_209 = arith.constant dense<0.000000e+00> : vector<8xf32>
    %734 = vector.multi_reduction <add>, %733, %cst_209 [1] : vector<8x128xf32> to vector<8xf32>
    %735 = vector.shape_cast %734 : vector<8xf32> to vector<8x1xf32>
    %736 = vector.broadcast %735 : vector<8x1xf32> to vector<8x128xf32>
    %737 = arith.divf %733, %736 : vector<8x128xf32>
    %c16_210 = arith.constant 16 : index
    %c0_211 = arith.constant 0 : index
    %738 = vector.load %arg26[%c16_210, %c0_211] : memref<64x128xf32, #tpu.memory_space<vmem>>, vector<8x128xf32>
    tpu.vector_store %arg26[%c16_210, %c0_211], %737 {strides = array<i32>} : memref<64x128xf32, #tpu.memory_space<vmem>>, vector<8x128xf32>,
    %c24_212 = arith.constant 24 : index
    %c0_213 = arith.constant 0 : index
    %739 = vector.load %arg30[%c24_212, %c0_213] : memref<64x32xf32, #tpu.memory_space<vmem>>, vector<8x32xf32>
    %c24_214 = arith.constant 24 : index
    %c0_215 = arith.constant 0 : index
    %740 = vector.load %arg29[%c24_214, %c0_215] : memref<64x128xf32, #tpu.memory_space<vmem>>, vector<8x128xf32>
    %741 = tpu.concatenate %739, %681 in 1 : vector<8x32xf32>, vector<8x32xf32> -> vector<8x64xf32>
    %cst_216 = arith.constant dense<0.000000e+00> : vector<8x128xf32>
    %742 = tpu.matmul %741, %17, %cst_216 {dimension_numbers = #tpu.dot_dimension_numbers<[1], [0], [0], [1], [0, 0, 1, 1], [], []>} : vector<8x64xf32>, vector<64x128xf32>, vector<8x128xf32> -> vector<8x128xf32>
    %743 = arith.addf %740, %742 : vector<8x128xf32>
    %744 = arith.negf %743 : vector<8x128xf32>
    %745 = math.exp %744 : vector<8x128xf32>
    %cst_217 = arith.constant 1.000000e+00 : f32
    %746 = vector.broadcast %cst_217 : f32 to vector<8x128xf32>
    %747 = arith.addf %746, %745 : vector<8x128xf32>
    %748 = arith.divf %746, %747 : vector<8x128xf32>
    %749 = vector.extract_strided_slice %743 {offsets = [0, 96], sizes = [8, 32], strides = [1, 1]} : vector<8x128xf32> to vector<8x32xf32>
    %750 = math.tanh %749 : vector<8x32xf32>
    %751 = vector.extract_strided_slice %748 {offsets = [0, 32], sizes = [8, 32], strides = [1, 1]} : vector<8x128xf32> to vector<8x32xf32>
    %752 = arith.mulf %751, %678 : vector<8x32xf32>
    %753 = vector.extract_strided_slice %748 {offsets = [0, 0], sizes = [8, 32], strides = [1, 1]} : vector<8x128xf32> to vector<8x32xf32>
    %754 = arith.mulf %753, %750 : vector<8x32xf32>
    %755 = arith.addf %752, %754 : vector<8x32xf32>
    %756 = vector.extract_strided_slice %748 {offsets = [0, 64], sizes = [8, 32], strides = [1, 1]} : vector<8x128xf32> to vector<8x32xf32>
    %757 = math.tanh %755 : vector<8x32xf32>
    %758 = arith.mulf %756, %757 : vector<8x32xf32>
    %759 = tpu.concatenate %758, %699 in 1 : vector<8x32xf32>, vector<8x32xf32> -> vector<8x64xf32>
    %cst_218 = arith.constant dense<0.000000e+00> : vector<8x128xf32>
    %760 = tpu.matmul %759, %18, %cst_218 {dimension_numbers = #tpu.dot_dimension_numbers<[1], [0], [0], [1], [0, 0, 1, 1], [], []>} : vector<8x64xf32>, vector<64x128xf32>, vector<8x128xf32> -> vector<8x128xf32>
    %761 = arith.addf %760, %31 : vector<8x128xf32>
    %762 = arith.negf %761 : vector<8x128xf32>
    %763 = math.exp %762 : vector<8x128xf32>
    %cst_219 = arith.constant 1.000000e+00 : f32
    %764 = vector.broadcast %cst_219 : f32 to vector<8x128xf32>
    %765 = arith.addf %764, %763 : vector<8x128xf32>
    %766 = arith.divf %764, %765 : vector<8x128xf32>
    %767 = vector.extract_strided_slice %761 {offsets = [0, 96], sizes = [8, 32], strides = [1, 1]} : vector<8x128xf32> to vector<8x32xf32>
    %768 = math.tanh %767 : vector<8x32xf32>
    %769 = vector.extract_strided_slice %766 {offsets = [0, 32], sizes = [8, 32], strides = [1, 1]} : vector<8x128xf32> to vector<8x32xf32>
    %770 = arith.mulf %769, %696 : vector<8x32xf32>
    %771 = vector.extract_strided_slice %766 {offsets = [0, 0], sizes = [8, 32], strides = [1, 1]} : vector<8x128xf32> to vector<8x32xf32>
    %772 = arith.mulf %771, %768 : vector<8x32xf32>
    %773 = arith.addf %770, %772 : vector<8x32xf32>
    %774 = vector.extract_strided_slice %766 {offsets = [0, 64], sizes = [8, 32], strides = [1, 1]} : vector<8x128xf32> to vector<8x32xf32>
    %775 = math.tanh %773 : vector<8x32xf32>
    %776 = arith.mulf %774, %775 : vector<8x32xf32>
    %777 = tpu.concatenate %776, %717 in 1 : vector<8x32xf32>, vector<8x32xf32> -> vector<8x64xf32>
    %cst_220 = arith.constant dense<0.000000e+00> : vector<8x128xf32>
    %778 = tpu.matmul %777, %19, %cst_220 {dimension_numbers = #tpu.dot_dimension_numbers<[1], [0], [0], [1], [0, 0, 1, 1], [], []>} : vector<8x64xf32>, vector<64x128xf32>, vector<8x128xf32> -> vector<8x128xf32>
    %779 = arith.addf %778, %34 : vector<8x128xf32>
    %780 = arith.negf %779 : vector<8x128xf32>
    %781 = math.exp %780 : vector<8x128xf32>
    %cst_221 = arith.constant 1.000000e+00 : f32
    %782 = vector.broadcast %cst_221 : f32 to vector<8x128xf32>
    %783 = arith.addf %782, %781 : vector<8x128xf32>
    %784 = arith.divf %782, %783 : vector<8x128xf32>
    %785 = vector.extract_strided_slice %779 {offsets = [0, 96], sizes = [8, 32], strides = [1, 1]} : vector<8x128xf32> to vector<8x32xf32>
    %786 = math.tanh %785 : vector<8x32xf32>
    %787 = vector.extract_strided_slice %784 {offsets = [0, 32], sizes = [8, 32], strides = [1, 1]} : vector<8x128xf32> to vector<8x32xf32>
    %788 = arith.mulf %787, %714 : vector<8x32xf32>
    %789 = vector.extract_strided_slice %784 {offsets = [0, 0], sizes = [8, 32], strides = [1, 1]} : vector<8x128xf32> to vector<8x32xf32>
    %790 = arith.mulf %789, %786 : vector<8x32xf32>
    %791 = arith.addf %788, %790 : vector<8x32xf32>
    %792 = vector.extract_strided_slice %784 {offsets = [0, 64], sizes = [8, 32], strides = [1, 1]} : vector<8x128xf32> to vector<8x32xf32>
    %793 = math.tanh %791 : vector<8x32xf32>
    %794 = arith.mulf %792, %793 : vector<8x32xf32>
    %795 = tpu.concatenate %739, %794 in 1 : vector<8x32xf32>, vector<8x32xf32> -> vector<8x64xf32>
    %cst_222 = arith.constant dense<0.000000e+00> : vector<8x32xf32>
    %796 = tpu.matmul %795, %20, %cst_222 {dimension_numbers = #tpu.dot_dimension_numbers<[1], [0], [0], [1], [0, 0, 1, 1], [], []>} : vector<8x64xf32>, vector<64x32xf32>, vector<8x32xf32> -> vector<8x32xf32>
    %797 = arith.addf %796, %37 : vector<8x32xf32>
    %cst_223 = arith.constant 0.000000e+00 : f32
    %798 = vector.broadcast %cst_223 : f32 to vector<8x32xf32>
    %799 = arith.maximumf %797, %798 : vector<8x32xf32>
    %cst_224 = arith.constant dense<0.000000e+00> : vector<8x32xf32>
    %800 = tpu.matmul %799, %21, %cst_224 {dimension_numbers = #tpu.dot_dimension_numbers<[1], [0], [0], [1], [0, 0, 1, 1], [], []>} : vector<8x32xf32>, vector<32x32xf32>, vector<8x32xf32> -> vector<8x32xf32>
    %801 = arith.addf %800, %40 : vector<8x32xf32>
    %cst_225 = arith.constant 0.000000e+00 : f32
    %802 = vector.broadcast %cst_225 : f32 to vector<8x32xf32>
    %803 = arith.maximumf %801, %802 : vector<8x32xf32>
    %cst_226 = arith.constant dense<0.000000e+00> : vector<8x128xf32>
    %804 = tpu.matmul %803, %22, %cst_226 {dimension_numbers = #tpu.dot_dimension_numbers<[1], [0], [0], [1], [0, 0, 1, 1], [], []>} : vector<8x32xf32>, vector<32x128xf32>, vector<8x128xf32> -> vector<8x128xf32>
    %805 = arith.addf %804, %43 : vector<8x128xf32>
    %cst_227 = arith.constant dense<0xFF800000> : vector<8xf32>
    %806 = vector.multi_reduction <maximumf>, %805, %cst_227 [1] : vector<8x128xf32> to vector<8xf32>
    %807 = vector.shape_cast %806 : vector<8xf32> to vector<8x1xf32>
    %808 = vector.broadcast %807 : vector<8x1xf32> to vector<8x128xf32>
    %809 = arith.subf %805, %808 : vector<8x128xf32>
    %810 = math.exp %809 : vector<8x128xf32>
    %cst_228 = arith.constant dense<0.000000e+00> : vector<8xf32>
    %811 = vector.multi_reduction <add>, %810, %cst_228 [1] : vector<8x128xf32> to vector<8xf32>
    %812 = vector.shape_cast %811 : vector<8xf32> to vector<8x1xf32>
    %813 = vector.broadcast %812 : vector<8x1xf32> to vector<8x128xf32>
    %814 = arith.divf %810, %813 : vector<8x128xf32>
    %c24_229 = arith.constant 24 : index
    %c0_230 = arith.constant 0 : index
    %815 = vector.load %arg26[%c24_229, %c0_230] : memref<64x128xf32, #tpu.memory_space<vmem>>, vector<8x128xf32>
    tpu.vector_store %arg26[%c24_229, %c0_230], %814 {strides = array<i32>} : memref<64x128xf32, #tpu.memory_space<vmem>>, vector<8x128xf32>,
    %c32_231 = arith.constant 32 : index
    %c0_232 = arith.constant 0 : index
    %816 = vector.load %arg30[%c32_231, %c0_232] : memref<64x32xf32, #tpu.memory_space<vmem>>, vector<8x32xf32>
    %c32_233 = arith.constant 32 : index
    %c0_234 = arith.constant 0 : index
    %817 = vector.load %arg29[%c32_233, %c0_234] : memref<64x128xf32, #tpu.memory_space<vmem>>, vector<8x128xf32>
    %818 = tpu.concatenate %816, %758 in 1 : vector<8x32xf32>, vector<8x32xf32> -> vector<8x64xf32>
    %cst_235 = arith.constant dense<0.000000e+00> : vector<8x128xf32>
    %819 = tpu.matmul %818, %17, %cst_235 {dimension_numbers = #tpu.dot_dimension_numbers<[1], [0], [0], [1], [0, 0, 1, 1], [], []>} : vector<8x64xf32>, vector<64x128xf32>, vector<8x128xf32> -> vector<8x128xf32>
    %820 = arith.addf %817, %819 : vector<8x128xf32>
    %821 = arith.negf %820 : vector<8x128xf32>
    %822 = math.exp %821 : vector<8x128xf32>
    %cst_236 = arith.constant 1.000000e+00 : f32
    %823 = vector.broadcast %cst_236 : f32 to vector<8x128xf32>
    %824 = arith.addf %823, %822 : vector<8x128xf32>
    %825 = arith.divf %823, %824 : vector<8x128xf32>
    %826 = vector.extract_strided_slice %820 {offsets = [0, 96], sizes = [8, 32], strides = [1, 1]} : vector<8x128xf32> to vector<8x32xf32>
    %827 = math.tanh %826 : vector<8x32xf32>
    %828 = vector.extract_strided_slice %825 {offsets = [0, 32], sizes = [8, 32], strides = [1, 1]} : vector<8x128xf32> to vector<8x32xf32>
    %829 = arith.mulf %828, %755 : vector<8x32xf32>
    %830 = vector.extract_strided_slice %825 {offsets = [0, 0], sizes = [8, 32], strides = [1, 1]} : vector<8x128xf32> to vector<8x32xf32>
    %831 = arith.mulf %830, %827 : vector<8x32xf32>
    %832 = arith.addf %829, %831 : vector<8x32xf32>
    %833 = vector.extract_strided_slice %825 {offsets = [0, 64], sizes = [8, 32], strides = [1, 1]} : vector<8x128xf32> to vector<8x32xf32>
    %834 = math.tanh %832 : vector<8x32xf32>
    %835 = arith.mulf %833, %834 : vector<8x32xf32>
    %836 = tpu.concatenate %835, %776 in 1 : vector<8x32xf32>, vector<8x32xf32> -> vector<8x64xf32>
    %cst_237 = arith.constant dense<0.000000e+00> : vector<8x128xf32>
    %837 = tpu.matmul %836, %18, %cst_237 {dimension_numbers = #tpu.dot_dimension_numbers<[1], [0], [0], [1], [0, 0, 1, 1], [], []>} : vector<8x64xf32>, vector<64x128xf32>, vector<8x128xf32> -> vector<8x128xf32>
    %838 = arith.addf %837, %31 : vector<8x128xf32>
    %839 = arith.negf %838 : vector<8x128xf32>
    %840 = math.exp %839 : vector<8x128xf32>
    %cst_238 = arith.constant 1.000000e+00 : f32
    %841 = vector.broadcast %cst_238 : f32 to vector<8x128xf32>
    %842 = arith.addf %841, %840 : vector<8x128xf32>
    %843 = arith.divf %841, %842 : vector<8x128xf32>
    %844 = vector.extract_strided_slice %838 {offsets = [0, 96], sizes = [8, 32], strides = [1, 1]} : vector<8x128xf32> to vector<8x32xf32>
    %845 = math.tanh %844 : vector<8x32xf32>
    %846 = vector.extract_strided_slice %843 {offsets = [0, 32], sizes = [8, 32], strides = [1, 1]} : vector<8x128xf32> to vector<8x32xf32>
    %847 = arith.mulf %846, %773 : vector<8x32xf32>
    %848 = vector.extract_strided_slice %843 {offsets = [0, 0], sizes = [8, 32], strides = [1, 1]} : vector<8x128xf32> to vector<8x32xf32>
    %849 = arith.mulf %848, %845 : vector<8x32xf32>
    %850 = arith.addf %847, %849 : vector<8x32xf32>
    %851 = vector.extract_strided_slice %843 {offsets = [0, 64], sizes = [8, 32], strides = [1, 1]} : vector<8x128xf32> to vector<8x32xf32>
    %852 = math.tanh %850 : vector<8x32xf32>
    %853 = arith.mulf %851, %852 : vector<8x32xf32>
    %854 = tpu.concatenate %853, %794 in 1 : vector<8x32xf32>, vector<8x32xf32> -> vector<8x64xf32>
    %cst_239 = arith.constant dense<0.000000e+00> : vector<8x128xf32>
    %855 = tpu.matmul %854, %19, %cst_239 {dimension_numbers = #tpu.dot_dimension_numbers<[1], [0], [0], [1], [0, 0, 1, 1], [], []>} : vector<8x64xf32>, vector<64x128xf32>, vector<8x128xf32> -> vector<8x128xf32>
    %856 = arith.addf %855, %34 : vector<8x128xf32>
    %857 = arith.negf %856 : vector<8x128xf32>
    %858 = math.exp %857 : vector<8x128xf32>
    %cst_240 = arith.constant 1.000000e+00 : f32
    %859 = vector.broadcast %cst_240 : f32 to vector<8x128xf32>
    %860 = arith.addf %859, %858 : vector<8x128xf32>
    %861 = arith.divf %859, %860 : vector<8x128xf32>
    %862 = vector.extract_strided_slice %856 {offsets = [0, 96], sizes = [8, 32], strides = [1, 1]} : vector<8x128xf32> to vector<8x32xf32>
    %863 = math.tanh %862 : vector<8x32xf32>
    %864 = vector.extract_strided_slice %861 {offsets = [0, 32], sizes = [8, 32], strides = [1, 1]} : vector<8x128xf32> to vector<8x32xf32>
    %865 = arith.mulf %864, %791 : vector<8x32xf32>
    %866 = vector.extract_strided_slice %861 {offsets = [0, 0], sizes = [8, 32], strides = [1, 1]} : vector<8x128xf32> to vector<8x32xf32>
    %867 = arith.mulf %866, %863 : vector<8x32xf32>
    %868 = arith.addf %865, %867 : vector<8x32xf32>
    %869 = vector.extract_strided_slice %861 {offsets = [0, 64], sizes = [8, 32], strides = [1, 1]} : vector<8x128xf32> to vector<8x32xf32>
    %870 = math.tanh %868 : vector<8x32xf32>
    %871 = arith.mulf %869, %870 : vector<8x32xf32>
    %872 = tpu.concatenate %816, %871 in 1 : vector<8x32xf32>, vector<8x32xf32> -> vector<8x64xf32>
    %cst_241 = arith.constant dense<0.000000e+00> : vector<8x32xf32>
    %873 = tpu.matmul %872, %20, %cst_241 {dimension_numbers = #tpu.dot_dimension_numbers<[1], [0], [0], [1], [0, 0, 1, 1], [], []>} : vector<8x64xf32>, vector<64x32xf32>, vector<8x32xf32> -> vector<8x32xf32>
    %874 = arith.addf %873, %37 : vector<8x32xf32>
    %cst_242 = arith.constant 0.000000e+00 : f32
    %875 = vector.broadcast %cst_242 : f32 to vector<8x32xf32>
    %876 = arith.maximumf %874, %875 : vector<8x32xf32>
    %cst_243 = arith.constant dense<0.000000e+00> : vector<8x32xf32>
    %877 = tpu.matmul %876, %21, %cst_243 {dimension_numbers = #tpu.dot_dimension_numbers<[1], [0], [0], [1], [0, 0, 1, 1], [], []>} : vector<8x32xf32>, vector<32x32xf32>, vector<8x32xf32> -> vector<8x32xf32>
    %878 = arith.addf %877, %40 : vector<8x32xf32>
    %cst_244 = arith.constant 0.000000e+00 : f32
    %879 = vector.broadcast %cst_244 : f32 to vector<8x32xf32>
    %880 = arith.maximumf %878, %879 : vector<8x32xf32>
    %cst_245 = arith.constant dense<0.000000e+00> : vector<8x128xf32>
    %881 = tpu.matmul %880, %22, %cst_245 {dimension_numbers = #tpu.dot_dimension_numbers<[1], [0], [0], [1], [0, 0, 1, 1], [], []>} : vector<8x32xf32>, vector<32x128xf32>, vector<8x128xf32> -> vector<8x128xf32>
    %882 = arith.addf %881, %43 : vector<8x128xf32>
    %cst_246 = arith.constant dense<0xFF800000> : vector<8xf32>
    %883 = vector.multi_reduction <maximumf>, %882, %cst_246 [1] : vector<8x128xf32> to vector<8xf32>
    %884 = vector.shape_cast %883 : vector<8xf32> to vector<8x1xf32>
    %885 = vector.broadcast %884 : vector<8x1xf32> to vector<8x128xf32>
    %886 = arith.subf %882, %885 : vector<8x128xf32>
    %887 = math.exp %886 : vector<8x128xf32>
    %cst_247 = arith.constant dense<0.000000e+00> : vector<8xf32>
    %888 = vector.multi_reduction <add>, %887, %cst_247 [1] : vector<8x128xf32> to vector<8xf32>
    %889 = vector.shape_cast %888 : vector<8xf32> to vector<8x1xf32>
    %890 = vector.broadcast %889 : vector<8x1xf32> to vector<8x128xf32>
    %891 = arith.divf %887, %890 : vector<8x128xf32>
    %c32_248 = arith.constant 32 : index
    %c0_249 = arith.constant 0 : index
    %892 = vector.load %arg26[%c32_248, %c0_249] : memref<64x128xf32, #tpu.memory_space<vmem>>, vector<8x128xf32>
    tpu.vector_store %arg26[%c32_248, %c0_249], %891 {strides = array<i32>} : memref<64x128xf32, #tpu.memory_space<vmem>>, vector<8x128xf32>,
    %c40_250 = arith.constant 40 : index
    %c0_251 = arith.constant 0 : index
    %893 = vector.load %arg30[%c40_250, %c0_251] : memref<64x32xf32, #tpu.memory_space<vmem>>, vector<8x32xf32>
    %c40_252 = arith.constant 40 : index
    %c0_253 = arith.constant 0 : index
    %894 = vector.load %arg29[%c40_252, %c0_253] : memref<64x128xf32, #tpu.memory_space<vmem>>, vector<8x128xf32>
    %895 = tpu.concatenate %893, %835 in 1 : vector<8x32xf32>, vector<8x32xf32> -> vector<8x64xf32>
    %cst_254 = arith.constant dense<0.000000e+00> : vector<8x128xf32>
    %896 = tpu.matmul %895, %17, %cst_254 {dimension_numbers = #tpu.dot_dimension_numbers<[1], [0], [0], [1], [0, 0, 1, 1], [], []>} : vector<8x64xf32>, vector<64x128xf32>, vector<8x128xf32> -> vector<8x128xf32>
    %897 = arith.addf %894, %896 : vector<8x128xf32>
    %898 = arith.negf %897 : vector<8x128xf32>
    %899 = math.exp %898 : vector<8x128xf32>
    %cst_255 = arith.constant 1.000000e+00 : f32
    %900 = vector.broadcast %cst_255 : f32 to vector<8x128xf32>
    %901 = arith.addf %900, %899 : vector<8x128xf32>
    %902 = arith.divf %900, %901 : vector<8x128xf32>
    %903 = vector.extract_strided_slice %897 {offsets = [0, 96], sizes = [8, 32], strides = [1, 1]} : vector<8x128xf32> to vector<8x32xf32>
    %904 = math.tanh %903 : vector<8x32xf32>
    %905 = vector.extract_strided_slice %902 {offsets = [0, 32], sizes = [8, 32], strides = [1, 1]} : vector<8x128xf32> to vector<8x32xf32>
    %906 = arith.mulf %905, %832 : vector<8x32xf32>
    %907 = vector.extract_strided_slice %902 {offsets = [0, 0], sizes = [8, 32], strides = [1, 1]} : vector<8x128xf32> to vector<8x32xf32>
    %908 = arith.mulf %907, %904 : vector<8x32xf32>
    %909 = arith.addf %906, %908 : vector<8x32xf32>
    %910 = vector.extract_strided_slice %902 {offsets = [0, 64], sizes = [8, 32], strides = [1, 1]} : vector<8x128xf32> to vector<8x32xf32>
    %911 = math.tanh %909 : vector<8x32xf32>
    %912 = arith.mulf %910, %911 : vector<8x32xf32>
    %913 = tpu.concatenate %912, %853 in 1 : vector<8x32xf32>, vector<8x32xf32> -> vector<8x64xf32>
    %cst_256 = arith.constant dense<0.000000e+00> : vector<8x128xf32>
    %914 = tpu.matmul %913, %18, %cst_256 {dimension_numbers = #tpu.dot_dimension_numbers<[1], [0], [0], [1], [0, 0, 1, 1], [], []>} : vector<8x64xf32>, vector<64x128xf32>, vector<8x128xf32> -> vector<8x128xf32>
    %915 = arith.addf %914, %31 : vector<8x128xf32>
    %916 = arith.negf %915 : vector<8x128xf32>
    %917 = math.exp %916 : vector<8x128xf32>
    %cst_257 = arith.constant 1.000000e+00 : f32
    %918 = vector.broadcast %cst_257 : f32 to vector<8x128xf32>
    %919 = arith.addf %918, %917 : vector<8x128xf32>
    %920 = arith.divf %918, %919 : vector<8x128xf32>
    %921 = vector.extract_strided_slice %915 {offsets = [0, 96], sizes = [8, 32], strides = [1, 1]} : vector<8x128xf32> to vector<8x32xf32>
    %922 = math.tanh %921 : vector<8x32xf32>
    %923 = vector.extract_strided_slice %920 {offsets = [0, 32], sizes = [8, 32], strides = [1, 1]} : vector<8x128xf32> to vector<8x32xf32>
    %924 = arith.mulf %923, %850 : vector<8x32xf32>
    %925 = vector.extract_strided_slice %920 {offsets = [0, 0], sizes = [8, 32], strides = [1, 1]} : vector<8x128xf32> to vector<8x32xf32>
    %926 = arith.mulf %925, %922 : vector<8x32xf32>
    %927 = arith.addf %924, %926 : vector<8x32xf32>
    %928 = vector.extract_strided_slice %920 {offsets = [0, 64], sizes = [8, 32], strides = [1, 1]} : vector<8x128xf32> to vector<8x32xf32>
    %929 = math.tanh %927 : vector<8x32xf32>
    %930 = arith.mulf %928, %929 : vector<8x32xf32>
    %931 = tpu.concatenate %930, %871 in 1 : vector<8x32xf32>, vector<8x32xf32> -> vector<8x64xf32>
    %cst_258 = arith.constant dense<0.000000e+00> : vector<8x128xf32>
    %932 = tpu.matmul %931, %19, %cst_258 {dimension_numbers = #tpu.dot_dimension_numbers<[1], [0], [0], [1], [0, 0, 1, 1], [], []>} : vector<8x64xf32>, vector<64x128xf32>, vector<8x128xf32> -> vector<8x128xf32>
    %933 = arith.addf %932, %34 : vector<8x128xf32>
    %934 = arith.negf %933 : vector<8x128xf32>
    %935 = math.exp %934 : vector<8x128xf32>
    %cst_259 = arith.constant 1.000000e+00 : f32
    %936 = vector.broadcast %cst_259 : f32 to vector<8x128xf32>
    %937 = arith.addf %936, %935 : vector<8x128xf32>
    %938 = arith.divf %936, %937 : vector<8x128xf32>
    %939 = vector.extract_strided_slice %933 {offsets = [0, 96], sizes = [8, 32], strides = [1, 1]} : vector<8x128xf32> to vector<8x32xf32>
    %940 = math.tanh %939 : vector<8x32xf32>
    %941 = vector.extract_strided_slice %938 {offsets = [0, 32], sizes = [8, 32], strides = [1, 1]} : vector<8x128xf32> to vector<8x32xf32>
    %942 = arith.mulf %941, %868 : vector<8x32xf32>
    %943 = vector.extract_strided_slice %938 {offsets = [0, 0], sizes = [8, 32], strides = [1, 1]} : vector<8x128xf32> to vector<8x32xf32>
    %944 = arith.mulf %943, %940 : vector<8x32xf32>
    %945 = arith.addf %942, %944 : vector<8x32xf32>
    %946 = vector.extract_strided_slice %938 {offsets = [0, 64], sizes = [8, 32], strides = [1, 1]} : vector<8x128xf32> to vector<8x32xf32>
    %947 = math.tanh %945 : vector<8x32xf32>
    %948 = arith.mulf %946, %947 : vector<8x32xf32>
    %949 = tpu.concatenate %893, %948 in 1 : vector<8x32xf32>, vector<8x32xf32> -> vector<8x64xf32>
    %cst_260 = arith.constant dense<0.000000e+00> : vector<8x32xf32>
    %950 = tpu.matmul %949, %20, %cst_260 {dimension_numbers = #tpu.dot_dimension_numbers<[1], [0], [0], [1], [0, 0, 1, 1], [], []>} : vector<8x64xf32>, vector<64x32xf32>, vector<8x32xf32> -> vector<8x32xf32>
    %951 = arith.addf %950, %37 : vector<8x32xf32>
    %cst_261 = arith.constant 0.000000e+00 : f32
    %952 = vector.broadcast %cst_261 : f32 to vector<8x32xf32>
    %953 = arith.maximumf %951, %952 : vector<8x32xf32>
    %cst_262 = arith.constant dense<0.000000e+00> : vector<8x32xf32>
    %954 = tpu.matmul %953, %21, %cst_262 {dimension_numbers = #tpu.dot_dimension_numbers<[1], [0], [0], [1], [0, 0, 1, 1], [], []>} : vector<8x32xf32>, vector<32x32xf32>, vector<8x32xf32> -> vector<8x32xf32>
    %955 = arith.addf %954, %40 : vector<8x32xf32>
    %cst_263 = arith.constant 0.000000e+00 : f32
    %956 = vector.broadcast %cst_263 : f32 to vector<8x32xf32>
    %957 = arith.maximumf %955, %956 : vector<8x32xf32>
    %cst_264 = arith.constant dense<0.000000e+00> : vector<8x128xf32>
    %958 = tpu.matmul %957, %22, %cst_264 {dimension_numbers = #tpu.dot_dimension_numbers<[1], [0], [0], [1], [0, 0, 1, 1], [], []>} : vector<8x32xf32>, vector<32x128xf32>, vector<8x128xf32> -> vector<8x128xf32>
    %959 = arith.addf %958, %43 : vector<8x128xf32>
    %cst_265 = arith.constant dense<0xFF800000> : vector<8xf32>
    %960 = vector.multi_reduction <maximumf>, %959, %cst_265 [1] : vector<8x128xf32> to vector<8xf32>
    %961 = vector.shape_cast %960 : vector<8xf32> to vector<8x1xf32>
    %962 = vector.broadcast %961 : vector<8x1xf32> to vector<8x128xf32>
    %963 = arith.subf %959, %962 : vector<8x128xf32>
    %964 = math.exp %963 : vector<8x128xf32>
    %cst_266 = arith.constant dense<0.000000e+00> : vector<8xf32>
    %965 = vector.multi_reduction <add>, %964, %cst_266 [1] : vector<8x128xf32> to vector<8xf32>
    %966 = vector.shape_cast %965 : vector<8xf32> to vector<8x1xf32>
    %967 = vector.broadcast %966 : vector<8x1xf32> to vector<8x128xf32>
    %968 = arith.divf %964, %967 : vector<8x128xf32>
    %c40_267 = arith.constant 40 : index
    %c0_268 = arith.constant 0 : index
    %969 = vector.load %arg26[%c40_267, %c0_268] : memref<64x128xf32, #tpu.memory_space<vmem>>, vector<8x128xf32>
    tpu.vector_store %arg26[%c40_267, %c0_268], %968 {strides = array<i32>} : memref<64x128xf32, #tpu.memory_space<vmem>>, vector<8x128xf32>,
    %c48_269 = arith.constant 48 : index
    %c0_270 = arith.constant 0 : index
    %970 = vector.load %arg30[%c48_269, %c0_270] : memref<64x32xf32, #tpu.memory_space<vmem>>, vector<8x32xf32>
    %c48_271 = arith.constant 48 : index
    %c0_272 = arith.constant 0 : index
    %971 = vector.load %arg29[%c48_271, %c0_272] : memref<64x128xf32, #tpu.memory_space<vmem>>, vector<8x128xf32>
    %972 = tpu.concatenate %970, %912 in 1 : vector<8x32xf32>, vector<8x32xf32> -> vector<8x64xf32>
    %cst_273 = arith.constant dense<0.000000e+00> : vector<8x128xf32>
    %973 = tpu.matmul %972, %17, %cst_273 {dimension_numbers = #tpu.dot_dimension_numbers<[1], [0], [0], [1], [0, 0, 1, 1], [], []>} : vector<8x64xf32>, vector<64x128xf32>, vector<8x128xf32> -> vector<8x128xf32>
    %974 = arith.addf %971, %973 : vector<8x128xf32>
    %975 = arith.negf %974 : vector<8x128xf32>
    %976 = math.exp %975 : vector<8x128xf32>
    %cst_274 = arith.constant 1.000000e+00 : f32
    %977 = vector.broadcast %cst_274 : f32 to vector<8x128xf32>
    %978 = arith.addf %977, %976 : vector<8x128xf32>
    %979 = arith.divf %977, %978 : vector<8x128xf32>
    %980 = vector.extract_strided_slice %974 {offsets = [0, 96], sizes = [8, 32], strides = [1, 1]} : vector<8x128xf32> to vector<8x32xf32>
    %981 = math.tanh %980 : vector<8x32xf32>
    %982 = vector.extract_strided_slice %979 {offsets = [0, 32], sizes = [8, 32], strides = [1, 1]} : vector<8x128xf32> to vector<8x32xf32>
    %983 = arith.mulf %982, %909 : vector<8x32xf32>
    %984 = vector.extract_strided_slice %979 {offsets = [0, 0], sizes = [8, 32], strides = [1, 1]} : vector<8x128xf32> to vector<8x32xf32>
    %985 = arith.mulf %984, %981 : vector<8x32xf32>
    %986 = arith.addf %983, %985 : vector<8x32xf32>
    %987 = vector.extract_strided_slice %979 {offsets = [0, 64], sizes = [8, 32], strides = [1, 1]} : vector<8x128xf32> to vector<8x32xf32>
    %988 = math.tanh %986 : vector<8x32xf32>
    %989 = arith.mulf %987, %988 : vector<8x32xf32>
    %990 = tpu.concatenate %989, %930 in 1 : vector<8x32xf32>, vector<8x32xf32> -> vector<8x64xf32>
    %cst_275 = arith.constant dense<0.000000e+00> : vector<8x128xf32>
    %991 = tpu.matmul %990, %18, %cst_275 {dimension_numbers = #tpu.dot_dimension_numbers<[1], [0], [0], [1], [0, 0, 1, 1], [], []>} : vector<8x64xf32>, vector<64x128xf32>, vector<8x128xf32> -> vector<8x128xf32>
    %992 = arith.addf %991, %31 : vector<8x128xf32>
    %993 = arith.negf %992 : vector<8x128xf32>
    %994 = math.exp %993 : vector<8x128xf32>
    %cst_276 = arith.constant 1.000000e+00 : f32
    %995 = vector.broadcast %cst_276 : f32 to vector<8x128xf32>
    %996 = arith.addf %995, %994 : vector<8x128xf32>
    %997 = arith.divf %995, %996 : vector<8x128xf32>
    %998 = vector.extract_strided_slice %992 {offsets = [0, 96], sizes = [8, 32], strides = [1, 1]} : vector<8x128xf32> to vector<8x32xf32>
    %999 = math.tanh %998 : vector<8x32xf32>
    %1000 = vector.extract_strided_slice %997 {offsets = [0, 32], sizes = [8, 32], strides = [1, 1]} : vector<8x128xf32> to vector<8x32xf32>
    %1001 = arith.mulf %1000, %927 : vector<8x32xf32>
    %1002 = vector.extract_strided_slice %997 {offsets = [0, 0], sizes = [8, 32], strides = [1, 1]} : vector<8x128xf32> to vector<8x32xf32>
    %1003 = arith.mulf %1002, %999 : vector<8x32xf32>
    %1004 = arith.addf %1001, %1003 : vector<8x32xf32>
    %1005 = vector.extract_strided_slice %997 {offsets = [0, 64], sizes = [8, 32], strides = [1, 1]} : vector<8x128xf32> to vector<8x32xf32>
    %1006 = math.tanh %1004 : vector<8x32xf32>
    %1007 = arith.mulf %1005, %1006 : vector<8x32xf32>
    %1008 = tpu.concatenate %1007, %948 in 1 : vector<8x32xf32>, vector<8x32xf32> -> vector<8x64xf32>
    %cst_277 = arith.constant dense<0.000000e+00> : vector<8x128xf32>
    %1009 = tpu.matmul %1008, %19, %cst_277 {dimension_numbers = #tpu.dot_dimension_numbers<[1], [0], [0], [1], [0, 0, 1, 1], [], []>} : vector<8x64xf32>, vector<64x128xf32>, vector<8x128xf32> -> vector<8x128xf32>
    %1010 = arith.addf %1009, %34 : vector<8x128xf32>
    %1011 = arith.negf %1010 : vector<8x128xf32>
    %1012 = math.exp %1011 : vector<8x128xf32>
    %cst_278 = arith.constant 1.000000e+00 : f32
    %1013 = vector.broadcast %cst_278 : f32 to vector<8x128xf32>
    %1014 = arith.addf %1013, %1012 : vector<8x128xf32>
    %1015 = arith.divf %1013, %1014 : vector<8x128xf32>
    %1016 = vector.extract_strided_slice %1010 {offsets = [0, 96], sizes = [8, 32], strides = [1, 1]} : vector<8x128xf32> to vector<8x32xf32>
    %1017 = math.tanh %1016 : vector<8x32xf32>
    %1018 = vector.extract_strided_slice %1015 {offsets = [0, 32], sizes = [8, 32], strides = [1, 1]} : vector<8x128xf32> to vector<8x32xf32>
    %1019 = arith.mulf %1018, %945 : vector<8x32xf32>
    %1020 = vector.extract_strided_slice %1015 {offsets = [0, 0], sizes = [8, 32], strides = [1, 1]} : vector<8x128xf32> to vector<8x32xf32>
    %1021 = arith.mulf %1020, %1017 : vector<8x32xf32>
    %1022 = arith.addf %1019, %1021 : vector<8x32xf32>
    %1023 = vector.extract_strided_slice %1015 {offsets = [0, 64], sizes = [8, 32], strides = [1, 1]} : vector<8x128xf32> to vector<8x32xf32>
    %1024 = math.tanh %1022 : vector<8x32xf32>
    %1025 = arith.mulf %1023, %1024 : vector<8x32xf32>
    %1026 = tpu.concatenate %970, %1025 in 1 : vector<8x32xf32>, vector<8x32xf32> -> vector<8x64xf32>
    %cst_279 = arith.constant dense<0.000000e+00> : vector<8x32xf32>
    %1027 = tpu.matmul %1026, %20, %cst_279 {dimension_numbers = #tpu.dot_dimension_numbers<[1], [0], [0], [1], [0, 0, 1, 1], [], []>} : vector<8x64xf32>, vector<64x32xf32>, vector<8x32xf32> -> vector<8x32xf32>
    %1028 = arith.addf %1027, %37 : vector<8x32xf32>
    %cst_280 = arith.constant 0.000000e+00 : f32
    %1029 = vector.broadcast %cst_280 : f32 to vector<8x32xf32>
    %1030 = arith.maximumf %1028, %1029 : vector<8x32xf32>
    %cst_281 = arith.constant dense<0.000000e+00> : vector<8x32xf32>
    %1031 = tpu.matmul %1030, %21, %cst_281 {dimension_numbers = #tpu.dot_dimension_numbers<[1], [0], [0], [1], [0, 0, 1, 1], [], []>} : vector<8x32xf32>, vector<32x32xf32>, vector<8x32xf32> -> vector<8x32xf32>
    %1032 = arith.addf %1031, %40 : vector<8x32xf32>
    %cst_282 = arith.constant 0.000000e+00 : f32
    %1033 = vector.broadcast %cst_282 : f32 to vector<8x32xf32>
    %1034 = arith.maximumf %1032, %1033 : vector<8x32xf32>
    %cst_283 = arith.constant dense<0.000000e+00> : vector<8x128xf32>
    %1035 = tpu.matmul %1034, %22, %cst_283 {dimension_numbers = #tpu.dot_dimension_numbers<[1], [0], [0], [1], [0, 0, 1, 1], [], []>} : vector<8x32xf32>, vector<32x128xf32>, vector<8x128xf32> -> vector<8x128xf32>
    %1036 = arith.addf %1035, %43 : vector<8x128xf32>
    %cst_284 = arith.constant dense<0xFF800000> : vector<8xf32>
    %1037 = vector.multi_reduction <maximumf>, %1036, %cst_284 [1] : vector<8x128xf32> to vector<8xf32>
    %1038 = vector.shape_cast %1037 : vector<8xf32> to vector<8x1xf32>
    %1039 = vector.broadcast %1038 : vector<8x1xf32> to vector<8x128xf32>
    %1040 = arith.subf %1036, %1039 : vector<8x128xf32>
    %1041 = math.exp %1040 : vector<8x128xf32>
    %cst_285 = arith.constant dense<0.000000e+00> : vector<8xf32>
    %1042 = vector.multi_reduction <add>, %1041, %cst_285 [1] : vector<8x128xf32> to vector<8xf32>
    %1043 = vector.shape_cast %1042 : vector<8xf32> to vector<8x1xf32>
    %1044 = vector.broadcast %1043 : vector<8x1xf32> to vector<8x128xf32>
    %1045 = arith.divf %1041, %1044 : vector<8x128xf32>
    %c48_286 = arith.constant 48 : index
    %c0_287 = arith.constant 0 : index
    %1046 = vector.load %arg26[%c48_286, %c0_287] : memref<64x128xf32, #tpu.memory_space<vmem>>, vector<8x128xf32>
    tpu.vector_store %arg26[%c48_286, %c0_287], %1045 {strides = array<i32>} : memref<64x128xf32, #tpu.memory_space<vmem>>, vector<8x128xf32>,
    %c56_288 = arith.constant 56 : index
    %c0_289 = arith.constant 0 : index
    %1047 = vector.load %arg30[%c56_288, %c0_289] : memref<64x32xf32, #tpu.memory_space<vmem>>, vector<8x32xf32>
    %c56_290 = arith.constant 56 : index
    %c0_291 = arith.constant 0 : index
    %1048 = vector.load %arg29[%c56_290, %c0_291] : memref<64x128xf32, #tpu.memory_space<vmem>>, vector<8x128xf32>
    %1049 = tpu.concatenate %1047, %989 in 1 : vector<8x32xf32>, vector<8x32xf32> -> vector<8x64xf32>
    %cst_292 = arith.constant dense<0.000000e+00> : vector<8x128xf32>
    %1050 = tpu.matmul %1049, %17, %cst_292 {dimension_numbers = #tpu.dot_dimension_numbers<[1], [0], [0], [1], [0, 0, 1, 1], [], []>} : vector<8x64xf32>, vector<64x128xf32>, vector<8x128xf32> -> vector<8x128xf32>
    %1051 = arith.addf %1048, %1050 : vector<8x128xf32>
    %1052 = arith.negf %1051 : vector<8x128xf32>
    %1053 = math.exp %1052 : vector<8x128xf32>
    %cst_293 = arith.constant 1.000000e+00 : f32
    %1054 = vector.broadcast %cst_293 : f32 to vector<8x128xf32>
    %1055 = arith.addf %1054, %1053 : vector<8x128xf32>
    %1056 = arith.divf %1054, %1055 : vector<8x128xf32>
    %1057 = vector.extract_strided_slice %1051 {offsets = [0, 96], sizes = [8, 32], strides = [1, 1]} : vector<8x128xf32> to vector<8x32xf32>
    %1058 = math.tanh %1057 : vector<8x32xf32>
    %1059 = vector.extract_strided_slice %1056 {offsets = [0, 32], sizes = [8, 32], strides = [1, 1]} : vector<8x128xf32> to vector<8x32xf32>
    %1060 = arith.mulf %1059, %986 : vector<8x32xf32>
    %1061 = vector.extract_strided_slice %1056 {offsets = [0, 0], sizes = [8, 32], strides = [1, 1]} : vector<8x128xf32> to vector<8x32xf32>
    %1062 = arith.mulf %1061, %1058 : vector<8x32xf32>
    %1063 = arith.addf %1060, %1062 : vector<8x32xf32>
    %1064 = vector.extract_strided_slice %1056 {offsets = [0, 64], sizes = [8, 32], strides = [1, 1]} : vector<8x128xf32> to vector<8x32xf32>
    %1065 = math.tanh %1063 : vector<8x32xf32>
    %1066 = arith.mulf %1064, %1065 : vector<8x32xf32>
    %1067 = tpu.concatenate %1066, %1007 in 1 : vector<8x32xf32>, vector<8x32xf32> -> vector<8x64xf32>
    %cst_294 = arith.constant dense<0.000000e+00> : vector<8x128xf32>
    %1068 = tpu.matmul %1067, %18, %cst_294 {dimension_numbers = #tpu.dot_dimension_numbers<[1], [0], [0], [1], [0, 0, 1, 1], [], []>} : vector<8x64xf32>, vector<64x128xf32>, vector<8x128xf32> -> vector<8x128xf32>
    %1069 = arith.addf %1068, %31 : vector<8x128xf32>
    %1070 = arith.negf %1069 : vector<8x128xf32>
    %1071 = math.exp %1070 : vector<8x128xf32>
    %cst_295 = arith.constant 1.000000e+00 : f32
    %1072 = vector.broadcast %cst_295 : f32 to vector<8x128xf32>
    %1073 = arith.addf %1072, %1071 : vector<8x128xf32>
    %1074 = arith.divf %1072, %1073 : vector<8x128xf32>
    %1075 = vector.extract_strided_slice %1069 {offsets = [0, 96], sizes = [8, 32], strides = [1, 1]} : vector<8x128xf32> to vector<8x32xf32>
    %1076 = math.tanh %1075 : vector<8x32xf32>
    %1077 = vector.extract_strided_slice %1074 {offsets = [0, 32], sizes = [8, 32], strides = [1, 1]} : vector<8x128xf32> to vector<8x32xf32>
    %1078 = arith.mulf %1077, %1004 : vector<8x32xf32>
    %1079 = vector.extract_strided_slice %1074 {offsets = [0, 0], sizes = [8, 32], strides = [1, 1]} : vector<8x128xf32> to vector<8x32xf32>
    %1080 = arith.mulf %1079, %1076 : vector<8x32xf32>
    %1081 = arith.addf %1078, %1080 : vector<8x32xf32>
    %1082 = vector.extract_strided_slice %1074 {offsets = [0, 64], sizes = [8, 32], strides = [1, 1]} : vector<8x128xf32> to vector<8x32xf32>
    %1083 = math.tanh %1081 : vector<8x32xf32>
    %1084 = arith.mulf %1082, %1083 : vector<8x32xf32>
    %1085 = tpu.concatenate %1084, %1025 in 1 : vector<8x32xf32>, vector<8x32xf32> -> vector<8x64xf32>
    %cst_296 = arith.constant dense<0.000000e+00> : vector<8x128xf32>
    %1086 = tpu.matmul %1085, %19, %cst_296 {dimension_numbers = #tpu.dot_dimension_numbers<[1], [0], [0], [1], [0, 0, 1, 1], [], []>} : vector<8x64xf32>, vector<64x128xf32>, vector<8x128xf32> -> vector<8x128xf32>
    %1087 = arith.addf %1086, %34 : vector<8x128xf32>
    %1088 = arith.negf %1087 : vector<8x128xf32>
    %1089 = math.exp %1088 : vector<8x128xf32>
    %cst_297 = arith.constant 1.000000e+00 : f32
    %1090 = vector.broadcast %cst_297 : f32 to vector<8x128xf32>
    %1091 = arith.addf %1090, %1089 : vector<8x128xf32>
    %1092 = arith.divf %1090, %1091 : vector<8x128xf32>
    %1093 = vector.extract_strided_slice %1087 {offsets = [0, 96], sizes = [8, 32], strides = [1, 1]} : vector<8x128xf32> to vector<8x32xf32>
    %1094 = math.tanh %1093 : vector<8x32xf32>
    %1095 = vector.extract_strided_slice %1092 {offsets = [0, 32], sizes = [8, 32], strides = [1, 1]} : vector<8x128xf32> to vector<8x32xf32>
    %1096 = arith.mulf %1095, %1022 : vector<8x32xf32>
    %1097 = vector.extract_strided_slice %1092 {offsets = [0, 0], sizes = [8, 32], strides = [1, 1]} : vector<8x128xf32> to vector<8x32xf32>
    %1098 = arith.mulf %1097, %1094 : vector<8x32xf32>
    %1099 = arith.addf %1096, %1098 : vector<8x32xf32>
    %1100 = vector.extract_strided_slice %1092 {offsets = [0, 64], sizes = [8, 32], strides = [1, 1]} : vector<8x128xf32> to vector<8x32xf32>
    %1101 = math.tanh %1099 : vector<8x32xf32>
    %1102 = arith.mulf %1100, %1101 : vector<8x32xf32>
    %1103 = tpu.concatenate %1047, %1102 in 1 : vector<8x32xf32>, vector<8x32xf32> -> vector<8x64xf32>
    %cst_298 = arith.constant dense<0.000000e+00> : vector<8x32xf32>
    %1104 = tpu.matmul %1103, %20, %cst_298 {dimension_numbers = #tpu.dot_dimension_numbers<[1], [0], [0], [1], [0, 0, 1, 1], [], []>} : vector<8x64xf32>, vector<64x32xf32>, vector<8x32xf32> -> vector<8x32xf32>
    %1105 = arith.addf %1104, %37 : vector<8x32xf32>
    %cst_299 = arith.constant 0.000000e+00 : f32
    %1106 = vector.broadcast %cst_299 : f32 to vector<8x32xf32>
    %1107 = arith.maximumf %1105, %1106 : vector<8x32xf32>
    %cst_300 = arith.constant dense<0.000000e+00> : vector<8x32xf32>
    %1108 = tpu.matmul %1107, %21, %cst_300 {dimension_numbers = #tpu.dot_dimension_numbers<[1], [0], [0], [1], [0, 0, 1, 1], [], []>} : vector<8x32xf32>, vector<32x32xf32>, vector<8x32xf32> -> vector<8x32xf32>
    %1109 = arith.addf %1108, %40 : vector<8x32xf32>
    %cst_301 = arith.constant 0.000000e+00 : f32
    %1110 = vector.broadcast %cst_301 : f32 to vector<8x32xf32>
    %1111 = arith.maximumf %1109, %1110 : vector<8x32xf32>
    %cst_302 = arith.constant dense<0.000000e+00> : vector<8x128xf32>
    %1112 = tpu.matmul %1111, %22, %cst_302 {dimension_numbers = #tpu.dot_dimension_numbers<[1], [0], [0], [1], [0, 0, 1, 1], [], []>} : vector<8x32xf32>, vector<32x128xf32>, vector<8x128xf32> -> vector<8x128xf32>
    %1113 = arith.addf %1112, %43 : vector<8x128xf32>
    %cst_303 = arith.constant dense<0xFF800000> : vector<8xf32>
    %1114 = vector.multi_reduction <maximumf>, %1113, %cst_303 [1] : vector<8x128xf32> to vector<8xf32>
    %1115 = vector.shape_cast %1114 : vector<8xf32> to vector<8x1xf32>
    %1116 = vector.broadcast %1115 : vector<8x1xf32> to vector<8x128xf32>
    %1117 = arith.subf %1113, %1116 : vector<8x128xf32>
    %1118 = math.exp %1117 : vector<8x128xf32>
    %cst_304 = arith.constant dense<0.000000e+00> : vector<8xf32>
    %1119 = vector.multi_reduction <add>, %1118, %cst_304 [1] : vector<8x128xf32> to vector<8xf32>
    %1120 = vector.shape_cast %1119 : vector<8xf32> to vector<8x1xf32>
    %1121 = vector.broadcast %1120 : vector<8x1xf32> to vector<8x128xf32>
    %1122 = arith.divf %1118, %1121 : vector<8x128xf32>
    %c56_305 = arith.constant 56 : index
    %c0_306 = arith.constant 0 : index
    %1123 = vector.load %arg26[%c56_305, %c0_306] : memref<64x128xf32, #tpu.memory_space<vmem>>, vector<8x128xf32>
    tpu.vector_store %arg26[%c56_305, %c0_306], %1122 {strides = array<i32>} : memref<64x128xf32, #tpu.memory_space<vmem>>, vector<8x128xf32>,
    %1124 = tpu.concatenate %470, %467, %1066, %1063 in 1 : vector<8x32xf32>, vector<8x32xf32>, vector<8x32xf32>, vector<8x32xf32> -> vector<8x128xf32>
    %c0_307 = arith.constant 0 : index
    %c0_308 = arith.constant 0 : index
    %1125 = vector.load %arg27[%c0_307, %c0_308] : memref<24x128xf32, #tpu.memory_space<vmem>>, vector<8x128xf32>
    tpu.vector_store %arg27[%c0_307, %c0_308], %1124 {strides = array<i32>} : memref<24x128xf32, #tpu.memory_space<vmem>>, vector<8x128xf32>,
    %1126 = tpu.concatenate %488, %485, %1084, %1081 in 1 : vector<8x32xf32>, vector<8x32xf32>, vector<8x32xf32>, vector<8x32xf32> -> vector<8x128xf32>
    %c8_309 = arith.constant 8 : index
    %c0_310 = arith.constant 0 : index
    %1127 = vector.load %arg27[%c8_309, %c0_310] : memref<24x128xf32, #tpu.memory_space<vmem>>, vector<8x128xf32>
    tpu.vector_store %arg27[%c8_309, %c0_310], %1126 {strides = array<i32>} : memref<24x128xf32, #tpu.memory_space<vmem>>, vector<8x128xf32>,
    %1128 = tpu.concatenate %506, %503, %1102, %1099 in 1 : vector<8x32xf32>, vector<8x32xf32>, vector<8x32xf32>, vector<8x32xf32> -> vector<8x128xf32>
    %c16_311 = arith.constant 16 : index
    %c0_312 = arith.constant 0 : index
    %1129 = vector.load %arg27[%c16_311, %c0_312] : memref<24x128xf32, #tpu.memory_space<vmem>>, vector<8x128xf32>
    tpu.vector_store %arg27[%c16_311, %c0_312], %1128 {strides = array<i32>} : memref<24x128xf32, #tpu.memory_space<vmem>>, vector<8x128xf32>,
    return
  }
}

</mosaic_0001>

<bundles_post_ra>
// kernel: mknet_forward.1
= control target key start
LH: loop header
LB: loop body
LE: loop exit
PB: predicated region body
PF: predicated region fallthrough
CT: control target
= control target key end

     0   :  { %vm259_vm0 = vcmask 130048   ;;  %vm104_vm1 = vcmask 261120   ;;  %v10578_v14 = vmov 0.0|0.0   ;;  %vm10579_vm2 = vmmov 0   ;;  %s12692_s13 = inlined_call_operand.vmem [shape: f32[16,128], index: 13, kind: input, shape index: {}]   ;;  %s12693_s1 = inlined_call_operand.vmem [shape: f32[64,16], index: 1, kind: input, shape index: {}]   ;;  %s12694_s7 = inlined_call_operand.vmem [shape: f32[32,128], index: 7, kind: input, shape index: {}]   ;;  %s12695_s6 = inlined_call_operand.vmem [shape: f32[32,128], index: 6, kind: input, shape index: {}]   ;;  %s12696_s0 = inlined_call_operand.vmem [shape: f32[64,32], index: 0, kind: input, shape index: {}]   ;;  %s12697_s2 = inlined_call_operand.vmem [shape: f32[3,8,32], index: 2, kind: input, shape index: {}]   ;;  %s12698_s14 = inlined_call_operand.vmem [shape: f32[1,128], index: 14, kind: input, shape index: {}]   ;;  %s12699_s8 = inlined_call_operand.vmem [shape: f32[1,128], index: 8, kind: input, shape index: {}]   ;;  %s12700_s3 = inlined_call_operand.vmem [shape: f32[3,8,32], index: 3, kind: input, shape index: {}]   ;;  %s12701_s9 = inlined_call_operand.vmem [shape: f32[64,128], index: 9, kind: input, shape index: {}]   ;;  %s12702_s10 = inlined_call_operand.vmem [shape: f32[1,128], index: 10, kind: input, shape index: {}]   ;;  %s12703_s11 = inlined_call_operand.vmem [shape: f32[64,128], index: 11, kind: input, shape index: {}]   ;;  %s12704_s12 = inlined_call_operand.vmem [shape: f32[1,128], index: 12, kind: input, shape index: {}]   ;;  %s12705_s4 = inlined_call_operand.vmem [shape: f32[3,8,32], index: 4, kind: input, shape index: {}]   ;;  %s12706_s15 = inlined_call_operand.vmem [shape: f32[64,128], index: 15, kind: input, shape index: {}]   ;;  %s12707_s5 = inlined_call_operand.vmem [shape: f32[3,8,32], index: 5, kind: input, shape index: {}]   ;;  %s12708_s16 = inlined_call_operand.vmem [shape: f32[64,128], index: 16, kind: input, shape index: {}]   ;;  %s12709_s17 = inlined_call_operand.vmem [shape: f32[1,128], index: 17, kind: input, shape index: {}]   ;;  %s12710_s18 = inlined_call_operand.vmem [shape: f32[64,128], index: 18, kind: input, shape index: {}]   ;;  %s12711_s19 = inlined_call_operand.vmem [shape: f32[1,128], index: 19, kind: input, shape index: {}]   ;;  %s12712_s20 = inlined_call_operand.vmem [shape: f32[64,32], index: 20, kind: input, shape index: {}]   ;;  %s12713_s22 = inlined_call_operand.vmem [shape: f32[32,32], index: 22, kind: input, shape index: {}]   ;;  %s12714_s24 = inlined_call_operand.vmem [shape: f32[32,128], index: 24, kind: input, shape index: {}]   ;;  %s12715_s21 = inlined_call_operand.vmem [shape: f32[1,32], index: 21, kind: input, shape index: {}]   ;;  %s12716_s23 = inlined_call_operand.vmem [shape: f32[1,32], index: 23, kind: input, shape index: {}]   ;;  %s12717_s25 = inlined_call_operand.vmem [shape: f32[1,128], index: 25, kind: input, shape index: {}]   ;;  %s12718_s26 = inlined_call_operand.vmem [shape: f32[64,128], index: 26, kind: output, shape index: {0}]   ;;  %s12719_s27 = inlined_call_operand.vmem [shape: f32[24,128], index: 27, kind: output, shape index: {1}]  }
   0x1   :  { %12735 = sst [smem:[#allocation5_spill]] %s12692_s13  ;;  %v10580_v26 = vmov 0.0   ;;  %vm638_vm3 = vcmask 523264   ;;  %vm7446_vm4 = vcmask 785408  }
   0x2   :  { %12736 = sst [smem:[#allocation6_spill]] %s12693_s1 }
   0x3   :  { %12737 = sst [smem:[#allocation7_spill]] %s12694_s7  ;;  %s12748_s7 = sld [smem:[#allocation5_spill]] }
   0x4   :  { %12738 = sst [smem:[#allocation8_spill]] %s12695_s6  ;;  %s12749_s1 = sld [smem:[#allocation6_spill]] }
   0x5   :  { %12739 = sst [smem:[#allocation9_spill]] %s12696_s0  ;;  %s12750_s6 = sld [smem:[#allocation7_spill]] }
   0x6   :  { %12740 = sst [smem:[#allocation10_spill]] %s12697_s2  ;;  %s12752_s2 = sld [smem:[#allocation9_spill]] }
   0x7   :  { %12741 = sst [smem:[#allocation11_spill]] %s12698_s14  ;;  %s12753_s28 = sld [smem:[#allocation10_spill]] }
   0x8   :  { %12742 = sst [smem:[#allocation12_spill]] %s12699_s8  ;;  %s12754_s29 = sld [smem:[#allocation11_spill]] }
   0x9   :  { %12743 = sst [smem:[#allocation13_spill]] %s12700_s3  ;;  %v250_v0 = vld [vmem:[%s12748_s7] sm:$0xff]  ;;  %v251_v1 = vld [vmem:[%s12748_s7 + $0x8] sm:$0xff]  ;;  %s12751_s3 = sld [smem:[#allocation8_spill]] }
   0xa   :  { %12744 = sst [smem:[#allocation14_spill]] %s12701_s9  ;;  %v242_v2 = vld [vmem:[%s12749_s1] sm:$0xff]  ;;  %v9420_v3 = vpack.c.bf16 %v251_v1, %v250_v0  ;;  %v243_v7 = vld [vmem:[%s12749_s1 + $0x8] sm:$0xff]  ;;  %v244_v10 = vld [vmem:[%s12749_s1 + $0x10] sm:$0xff]  ;;  %s12732_s8 = smov 32  }
   0xb   :  { %12745 = sst [smem:[#allocation15_spill]] %s12702_s10  ;;  %8224 = vmatprep.mubr.msk.f32.mxu1 %vm259_vm0, %v242_v2  ;;  %v397_v4 = vld [vmem:[%s12750_s6] sm:$0xff]  ;;  %v398_v5 = vld [vmem:[%s12750_s6 + $0x8] sm:$0xff]  ;;  %v399_v16 = vld [vmem:[%s12750_s6 + $0x10] sm:$0xff]  ;;  %s12756_s7 = sld [smem:[#allocation13_spill]] }
   0xc   :  { %12746 = sst [smem:[#allocation16_spill]] %s12703_s11  ;;  %9421 = vmatprep.subr.bf16.mxu1 %v9420_v3  ;;  %v10749_v9 = vpack.c.bf16 %v398_v5, %v397_v4  ;;  %v400_v17 = vld [vmem:[%s12750_s6 + $0x18] sm:$0xff]  ;;  %v85_v18 = vld [vmem:[%s12752_s2] sm:$0xff]  ;;  %v86_v22 = vld [vmem:[%s12752_s2 + $0x8] sm:$0xff]  ;;  %s12755_s11 = sld [smem:[#allocation12_spill]] }
   0xd   :  { %12747 = sst [smem:[#allocation17_spill]] %s12719_s27  ;;  %9423 = vmatpush3.bf16.msra.mxu1 %v9420_v3  ;;  %8208 = vmatprep.mubr.msk.f32.mxu0 %vm104_vm1, %v85_v18  ;;  %v245_v19 = vld [vmem:[%s12749_s1 + $0x18] sm:$0xff]  ;;  %v10777_v20 = vpack.c.bf16 %v400_v17, %v399_v16  ;;  %v246_v21 = vld [vmem:[%s12749_s1 + $0x20] sm:$0xff]  ;;  %v247_v23 = vld [vmem:[%s12749_s1 + $0x28] sm:$0xff]  ;;  %s12757_s13 = sld [smem:[#allocation14_spill]] }
   0xe   :  { %9424 = vmatprep.subr.bf16.mxu1 %v10578_v14  ;;  %v248_v24 = vld [vmem:[%s12749_s1 + $0x30] sm:$0xff]  ;;  %v249_v25 = vld [vmem:[%s12749_s1 + $0x38] sm:$0xff]  ;;  %v506_v27 = vld [vmem:[%s12753_s28] sm:$0xff]  ;;  %s12758_s14 = smov 32  }
   0xf   :  { %v93_v6 = vld [vmem:[%s12751_s3] sm:$0xff]  ;;  %v94_v8 = vld [vmem:[%s12751_s3 + $0x8] sm:$0xff]  ;;  %v95_v12 = vld [vmem:[%s12751_s3 + $0x10] sm:$0xff] }
  0x10   :  { %v9412_v11 = vpack.c.bf16 %v94_v8, %v93_v6  ;;  %v96_v13 = vld [vmem:[%s12751_s3 + $0x18] sm:$0xff]  ;;  %8225 = vmatmul.mubr.msk.f32.vlgmr.msra.gmra.mrb[0].mxu1 %vm259_vm0, %v243_v7  ;;  %v7482_v28 = vld [vmem:[%s12754_s29] ss:$0 sm:$0xff]  ;;  %v87_v63 = vld [vmem:[%s12752_s2 + $0x10] sm:$0xff]  ;;  %s12759_s3 = sld [smem:[#allocation15_spill]] }
  0x11   :  { %v9416_v15 = vpack.c.bf16 %v96_v13, %v95_v12  ;;  %9426 = vmatpush3.bf16.msra.mxu1 %v10749_v9  ;;  %8227 = vmatprep.mubr.msk.f32.mxu1 %vm259_vm0, %v244_v10  ;;  %v511_v52 = vld [vmem:[%s12756_s7] sm:$0xff]  ;;  %v88_v0 = vld [vmem:[%s12752_s2 + $0x18] sm:$0xff]  ;;  %v90_v7 = vld [vmem:[%s12752_s2 + $0x28] sm:$0xff] }
  0x12   :  { %9413 = vmatprep.subr.bf16.mxu0 %v9412_v11  ;;  %9427 = vmatprep.subr.bf16.mxu1 %v10578_v14  ;;  %v10832_v42 = vld [vmem:[%s12755_s11] ss:$0 sm:$0xff]  ;;  %v91_v10 = vld [vmem:[%s12752_s2 + $0x30] sm:$0xff]  ;;  %v92_v13 = vld [vmem:[%s12752_s2 + $0x38] sm:$0xff] }
  0x13   :  { %9415 = vmatpush3.bf16.msra.mxu0 %v9412_v11  ;;  %v89_v1 = vld [vmem:[%s12752_s2 + $0x20] sm:$0xff]  ;;  %v402_v3 = vld [vmem:[%s12757_s13 + $0x8] sm:$0xff]  ;;  %v403_v4 = vld [vmem:[%s12757_s13 + $0x10] sm:$0xff] }
  0x14   :  { %9417 = vmatprep.subr.bf16.mxu0 %v9416_v15  ;;  %8228 = vmatmul.mubr.msk.f32.gmra.mrb[2].mxu1 %vm259_vm0, %v245_v19  ;;  %v401_v2 = vld [vmem:[%s12757_s13] sm:$0xff]  ;;  %v404_v6 = vld [vmem:[%s12757_s13 + $0x18] sm:$0xff]  ;;  %v406_v12 = vld [vmem:[%s12757_s13 + $0x28] sm:$0xff] }
  0x15   :  { %8230 = vmatprep.mubr.msk.f32.mxu1 %vm259_vm0, %v246_v21  ;;  %9429 = vmatpush3.bf16.msra.mxu1 %v10777_v20  ;;  %v10867_v5 = vpack.c.bf16 %v402_v3, %v401_v2  ;;  %v10878_v8 = vpack.c.bf16 %v404_v6, %v403_v4  ;;  %v405_v11 = vld [vmem:[%s12757_s13 + $0x20] sm:$0xff]  ;;  %v407_v16 = vld [vmem:[%s12757_s13 + $0x30] sm:$0xff]  ;;  %v408_v17 = vld [vmem:[%s12757_s13 + $0x38] sm:$0xff]  ;;  %s10582_s13 = smov 64  }
  0x16   :  { %9442 = vmatprep.subr.bf16.mxu1 %v10578_v14  ;;  %v7498_v19 = vld [vmem:[%s12753_s28 + $0x8] sm:$0xff]  ;;  %v10913_v21 = vpack.c.bf16 %v408_v17, %v407_v16 }
  0x17   :  { %9419 = vmatpush3.bf16.msra.mxu0 %v9416_v15  ;;  %v10896_v15 = vpack.c.bf16 %v406_v12, %v405_v11 }
  0x18   :  { %9430 = vmatprep.subr.bf16.mxu0 %v10578_v14  ;;  %8231 = vmatmul.mubr.msk.f32.gmra.mrb[4].mxu1 %vm259_vm0, %v247_v23 }
  0x19   :  { %8233 = vmatprep.mubr.msk.f32.mxu1 %vm259_vm0, %v248_v24 }
  0x1a   :  { %8209 = vmatmul.mubr.msk.f32.vlgmr.msra.gmra.mrb[0].mxu0 %vm104_vm1, %v86_v22 }
  0x1b   :  { %8211 = vmatprep.mubr.msk.f32.mxu0 %vm104_vm1, %v87_v63  ;;  %9432 = vmatpush3.bf16.msra.mxu0 %v10867_v5 }
  0x1c   :  { %8234 = vmatmul.mubr.msk.f32.gmra.mrb[6].mxu1 %vm259_vm0, %v249_v25  ;;  %9433 = vmatprep.subr.bf16.mxu0 %v10578_v14 }
  0x1d   :  { %8244 = vmatprep.mubr.msk.f32.mxu1 %vm10579_vm2, %v10580_v26 }
  0x1e   :  { %8212 = vmatmul.mubr.msk.f32.gmra.mrb[2].mxu0 %vm104_vm1, %v88_v0 }
  0x1f   :  { %8214 = vmatprep.mubr.msk.f32.mxu0 %vm104_vm1, %v89_v1  ;;  %9435 = vmatpush3.bf16.msra.mxu0 %v10878_v8 }
  0x20   :  { %8245 = vmatmul.mubr.msk.f32.vlgmr.msra.gmra.mrb[8].mxu1 %vm104_vm1, %v506_v27  ;;  %9436 = vmatprep.subr.bf16.mxu0 %v10578_v14 }
  0x21   :  { %8282 = vmatprep.mubr.msk.f32.mxu1 %vm10579_vm2, %v10580_v26 }
  0x22   :  { %8215 = vmatmul.mubr.msk.f32.gmra.mrb[4].mxu0 %vm104_vm1, %v90_v7 }
  0x23   :  { %8217 = vmatprep.mubr.msk.f32.mxu0 %vm104_vm1, %v91_v10  ;;  %9438 = vmatpush3.bf16.msra.mxu0 %v10896_v15 }
  0x24   :  { %9439 = vmatprep.subr.bf16.mxu0 %v10578_v14 }
  0x26   :  { %8218 = vmatmul.mubr.msk.f32.gmra.mrb[6].mxu0 %vm104_vm1, %v92_v13 }
  0x27   :  { %8263 = vmatprep.mubr.msk.f32.mxu0 %vm10579_vm2, %v10580_v26  ;;  %9441 = vmatpush3.bf16.msra.mxu0 %v10913_v21 }
  0x28   :  { %9454 = vmatprep.subr.bf16.mxu0 %v10578_v14 }
  0xe3   :  { %v8226_v29 = vpop.f32.mrb[0].mxu1 }
  0xe4   :  { %v10815_v30 = vadd.f32 %v8226_v29, %v7482_v28  ;;  %v10817_v31 = vpop.f32.mrb[1].mxu1 }
  0xe7   :  { %v8229_v32 = vpop.f32.mrb[2].mxu1 }
  0xe8   :  { %v10819_v33 = vadd.f32 %v8229_v32, %v7482_v28  ;;  %v360_v34 = vpop.f32.mrb[3].mxu1 }
  0xe9   :  { %v10821_v35 = vadd.f32 %v7482_v28, %v360_v34 }
  0xeb   :  { %v8232_v37 = vpop.f32.mrb[4].mxu1 }
  0xec   :  { %v10825_v39 = vadd.f32 %v8232_v37, %v7482_v28  ;;  %v370_v40 = vpop.f32.mrb[5].mxu1 }
  0xed   :  { %v10823_v36 = vpop.f32.mrb[0].mxu0  ;;  %v10827_v41 = vadd.f32 %v7482_v28, %v370_v40  ;;  %v10954_v40 = vld [vmem:[%s12759_s3] ss:$0 sm:$0xff] }
  0xee   :  { %v195_v38 = vpop.f32.mrb[1].mxu0 }
  0xef   :  { %v8235_v43 = vpop.f32.mrb[6].mxu1  ;;  %v196_v46 = vadd.f32 %v10832_v42, %v195_v38 }
  0xf0   :  { %v10834_v44 = vadd.f32 %v8235_v43, %v7482_v28  ;;  %v380_v45 = vpop.f32.mrb[7].mxu1 }
  0xf1   :  { %v10837_v47 = vadd.f32 %v7482_v28, %v380_v45  ;;  %v10920_v24 = vpop.f32.mrb[2].mxu0 }
  0xf2   :  { %v10922_v25 = vpop.f32.mrb[3].mxu0 }
  0xf3   :  { %v596_v48 = vpop.f32.mrb[8].mxu1 }
  0xf4   :  { %v600_v49 = vadd.f32 %v596_v48, %v196_v46  ;;  %v8246_v50 = vpop.f32.mrb[9].mxu1  ;;  %v201_v48 = vadd.f32 %v10823_v36, %v10832_v42 }
  0xf5   :  { %v10924_v27 = vpop.f32.mrb[4].mxu0 }
  0xf6   :  { %10150 = vtanh.f32 %v600_v49  ;;  %v7507_v53 = vmul.f32 -1.442695, %v600_v49  ;;  %v10926_v28 = vpop.f32.mrb[5].mxu0 }
  0xf8   :  { %10152 = vpow2.f32 %v7507_v53  ;;  %v7500_v53 = vld [vmem:[%s12756_s7 + $0x8] sm:$0xff] }
  0xf9   :  { %v10928_v29 = vpop.f32.mrb[6].mxu0 }
  0xfa   :  { %v10930_v32 = vpop.f32.mrb[7].mxu0 }
 0x100   :  { %v10151_v51 = vpop.eup %10150 }
 0x101   :  { %614 = vrot.lane.b32.xlu0 %v10151_v51, %s12732_s8 }
 0x102   :  { %v10153_v54 = vpop.eup %10152 }
 0x103   :  { %v604_v55 = vadd.f32 1.0, %v10153_v54 }
 0x105   :  { %609 = vrot.lane.b32.xlu0 %v511_v52, %s12732_s8  ;;  %10154 = vrcp.f32 %v604_v55 }
 0x10f   :  { %v10155_v56 = vpop.eup %10154 }
 0x173   :  { %v615_v57 = vpop.permute.xlu0 %614 }
 0x174   :  { %v617_v58 = vmul.f32 %v10155_v56, %v615_v57 }
 0x176   :  { %619 = vrot.lane.b32.xlu1 %v617_v58, %s12732_s8  ;;  %s12760_s8 = sld [smem:[#allocation16_spill]] }
 0x177   :  { %v610_v59 = vpop.permute.xlu0 %609 }
 0x178   :  { %v612_v60 = vmul.f32 %v10155_v56, %v610_v59 }
 0x17c   :  { %v409_v13 = vld [vmem:[%s12760_s8] sm:$0xff]  ;;  %v410_v16 = vld [vmem:[%s12760_s8 + $0x8] sm:$0xff]  ;;  %v411_v17 = vld [vmem:[%s12760_s8 + $0x10] sm:$0xff] }
 0x1e8   :  { %v620_v61 = vpop.permute.xlu1 %619 }
 0x1e9   :  { %v10845_v62 = vadd.f32 %v620_v61, %v612_v60 }
 0x1eb   :  { %10156 = vtanh.f32 %v10845_v62 }
 0x1f5   :  { %v10157_v18 = vpop.eup %10156 }
 0x1f6   :  { %625 = vrot.lane.b32.xlu1 %v10157_v18, %s12758_s14 }
 0x1fa   :  { %634 = vrot.lane.b32.xlu1 %v7498_v19, %s12758_s14  ;;  %v10983_v19 = vpack.c.bf16 %v410_v16, %v409_v13  ;;  %v7501_v13 = vld [vmem:[%s12756_s7 + $0x10] sm:$0xff] }
 0x1fc   :  { %9444 = vmatpush3.bf16.msra.mxu1 %v10983_v19 }
 0x1fd   :  { %9445 = vmatprep.subr.bf16.mxu1 %v10578_v14 }
 0x268   :  { %v626_v22 = vpop.permute.xlu1 %625 }
 0x269   :  { %v628_v23 = vmul.f32 %v10155_v56, %v626_v22 }
 0x26b   :  { %630 = vrot.lane.b32.xlu0 %v628_v23, %s10582_s13  ;;  %v413_v23 = vld [vmem:[%s12760_s8 + $0x20] sm:$0xff] }
 0x26c   :  { %v635_v34 = vpop.permute.xlu1 %634 }
 0x2dd   :  { %v631_v37 = vpop.permute.xlu0 %630 }
 0x2de   :  { %v637_v38 = vsel %vm104_vm1, %v631_v37, %v635_v34  ;;  %v414_v34 = vld [vmem:[%s12760_s8 + $0x28] sm:$0xff] }
 0x2df   :  { %8264 = vmatmul.mubr.msk.f32.vlgmr.msra.gmra.mrb[8].mxu0 %vm638_vm3, %v637_v38  ;;  %v415_v38 = vld [vmem:[%s12760_s8 + $0x30] sm:$0xff] }
 0x2e0   :  { %9456 = vmatpush3.bf16.msra.mxu0 %v10749_v9  ;;  %8293 = vmatprep.mubr.msk.f32.mxu0 %vm10579_vm2, %v10580_v26 }
 0x2e1   :  { %9457 = vmatprep.subr.bf16.mxu0 %v10578_v14 }
 0x2e4   :  { %9459 = vmatpush3.bf16.msra.mxu0 %v10777_v20 }
 0x2e5   :  { %9460 = vmatprep.subr.bf16.mxu0 %v10578_v14 }
 0x2e7   :  { %8294 = vmatmul.mubr.msk.f32.vlgmr.msra.gmra.mrb[10].mxu0 %vm104_vm1, %v631_v37  ;;  %v11000_v37 = vpack.c.bf16 %v414_v34, %v413_v23 }
 0x2e8   :  { %9462 = vmatpush3.bf16.msra.mxu0 %v10867_v5  ;;  %8312 = vmatprep.mubr.msk.f32.mxu0 %vm10579_vm2, %v10580_v26 }
 0x2e9   :  { %9463 = vmatprep.subr.bf16.mxu0 %v10578_v14 }
 0x2ec   :  { %9465 = vmatpush3.bf16.msra.mxu0 %v10878_v8 }
 0x2ed   :  { %9466 = vmatprep.subr.bf16.mxu0 %v10578_v14 }
 0x2f0   :  { %9468 = vmatpush3.bf16.msra.mxu0 %v10896_v15 }
 0x2f1   :  { %9469 = vmatprep.subr.bf16.mxu0 %v10578_v14 }
 0x2f4   :  { %9471 = vmatpush3.bf16.msra.mxu0 %v10913_v21 }
 0x2f5   :  { %9484 = vmatprep.subr.bf16.mxu0 %v10578_v14 }
 0x3b2   :  { %v708_v43 = vpop.f32.mrb[8].mxu0 }
 0x3b3   :  { %v709_v45 = vadd.f32 %v10954_v40, %v708_v43  ;;  %v8265_v46 = vpop.f32.mrb[9].mxu0  ;;  %v416_v43 = vld [vmem:[%s12760_s8 + $0x38] sm:$0xff] }
 0x3b4   :  { %v7499_v46 = vld [vmem:[%s12753_s28 + $0x10] sm:$0xff] }
 0x3b5   :  { %10158 = vtanh.f32 %v709_v45  ;;  %v7509_v55 = vmul.f32 -1.442695, %v709_v45 }
 0x3ba   :  { %v924_v49 = vpop.f32.mrb[10].mxu0 }
 0x3bb   :  { %v928_v50 = vadd.f32 %v924_v49, %v201_v48  ;;  %v8295_v51 = vpop.f32.mrb[11].mxu0  ;;  %v11014_v48 = vpack.c.bf16 %v416_v43, %v415_v38 }
 0x3bd   :  { %10160 = vtanh.f32 %v928_v50  ;;  %v7513_v56 = vmul.f32 -1.442695, %v928_v50 }
 0x3be   :  { %10162 = vpow2.f32 %v7509_v55 }
 0x3bf   :  { %v10159_v52 = vpop.eup %10158  ;;  %10164 = vpow2.f32 %v7513_v56 }
 0x3c0   :  { %725 = vrot.lane.b32.xlu0 %v10159_v52, %s12758_s14 }
 0x3c4   :  { %720 = vrot.lane.b32.xlu0 %v7500_v53, %s12758_s14 }
 0x3c7   :  { %v10161_v54 = vpop.eup %10160 }
 0x3c8   :  { %938 = vrot.lane.b32.xlu1 %v10161_v54, %s12758_s14  ;;  %v10163_v36 = vpop.eup %10162 }
 0x3c9   :  { %v715_v57 = vadd.f32 1.0, %v10163_v36  ;;  %v10165_v58 = vpop.eup %10164 }
 0x3ca   :  { %v932_v59 = vadd.f32 1.0, %v10165_v58  ;;  %v11057_v58 = vld [vmem:[%s12704_s12] ss:$0 sm:$0xff] }
 0x3cb   :  { %10166 = vrcp.f32 %v715_v57 }
 0x3cc   :  { %10168 = vrcp.f32 %v932_v59 }
 0x3d5   :  { %v10167_v60 = vpop.eup %10166 }
 0x3d6   :  { %v10169_v0 = vpop.eup %10168 }
 0x3d7   :  { %v936_v10 = vmul.f32 %v10169_v0, %v10845_v62  ;;  %v412_v62 = vld [vmem:[%s12760_s8 + $0x18] sm:$0xff]  ;;  %s10583_s8 = smov 96  }
 0x3d8   :  { %v10990_v22 = vpack.c.bf16 %v412_v62, %v411_v17 }
 0x3da   :  { %9447 = vmatpush3.bf16.msra.mxu1 %v10990_v22 }
 0x3db   :  { %9448 = vmatprep.subr.bf16.mxu1 %v10578_v14 }
 0x3de   :  { %9450 = vmatpush3.bf16.msra.mxu1 %v11000_v37 }
 0x3df   :  { %9451 = vmatprep.subr.bf16.mxu1 %v10578_v14 }
 0x3e2   :  { %9453 = vmatpush3.bf16.msra.mxu1 %v11014_v48 }
 0x3e3   :  { %9472 = vmatprep.subr.bf16.mxu1 %v10578_v14 }
 0x432   :  { %v726_v61 = vpop.permute.xlu0 %725 }
 0x433   :  { %v728_v63 = vmul.f32 %v10167_v60, %v726_v61 }
 0x435   :  { %730 = vrot.lane.b32.xlu1 %v728_v63, %s12758_s14 }
 0x436   :  { %v721_v3 = vpop.permute.xlu0 %720 }
 0x437   :  { %v723_v4 = vmul.f32 %v10167_v60, %v721_v3  ;;  %v206_v3 = vadd.f32 %v10832_v42, %v10922_v25 }
 0x43a   :  { %v939_v1 = vpop.permute.xlu1 %938 }
 0x43b   :  { %v941_v2 = vmul.f32 %v10169_v0, %v939_v1 }
 0x43d   :  { %943 = vrot.lane.b32.xlu0 %v941_v2, %s12758_s14 }
 0x4a7   :  { %v731_v6 = vpop.permute.xlu1 %730 }
 0x4a8   :  { %v10967_v7 = vadd.f32 %v731_v6, %v723_v4 }
 0x4aa   :  { %10170 = vtanh.f32 %v10967_v7 }
 0x4af   :  { %v944_v11 = vpop.permute.xlu0 %943 }
 0x4b0   :  { %v10971_v12 = vadd.f32 %v944_v11, %v936_v10 }
 0x4b2   :  { %10172 = vtanh.f32 %v10971_v12 }
 0x4b4   :  { %v10171_v18 = vpop.eup %10170 }
 0x4b5   :  { %736 = vrot.lane.b32.xlu1 %v10171_v18, %s12758_s14 }
 0x4bc   :  { %v10173_v45 = vpop.eup %10172 }
 0x4bd   :  { %949 = vrot.lane.b32.xlu0 %v10173_v45, %s12758_s14 }
 0x4c1   :  { %745 = vrot.lane.b32.xlu0 %v7499_v46, %s12758_s14 }
 0x527   :  { %v737_v49 = vpop.permute.xlu1 %736 }
 0x528   :  { %v739_v50 = vmul.f32 %v10167_v60, %v737_v49 }
 0x52a   :  { %741 = vrot.lane.b32.xlu1 %v739_v50, %s10582_s13  ;;  %957 = vrot.lane.b32.xlu0 %v739_v50, %s10583_s8 }
 0x52f   :  { %v950_v51 = vpop.permute.xlu0 %949 }
 0x530   :  { %v952_v52 = vmul.f32 %v10169_v0, %v950_v51 }
 0x532   :  { %954 = vrot.lane.b32.xlu1 %v952_v52, %s10582_s13 }
 0x533   :  { %v746_v53 = vpop.permute.xlu0 %745 }
 0x59c   :  { %v742_v54 = vpop.permute.xlu1 %741  ;;  %v958_v56 = vpop.permute.xlu0 %957 }
 0x59d   :  { %v748_v55 = vsel %vm104_vm1, %v742_v54, %v746_v53 }
 0x59e   :  { %8283 = vmatmul.mubr.msk.f32.vlgmr.msra.gmra.mrb[10].mxu1 %vm638_vm3, %v748_v55 }
 0x59f   :  { %9474 = vmatpush3.bf16.msra.mxu1 %v10983_v19  ;;  %8331 = vmatprep.mubr.msk.f32.mxu1 %vm10579_vm2, %v10580_v26 }
 0x5a0   :  { %9475 = vmatprep.subr.bf16.mxu1 %v10578_v14 }
 0x5a3   :  { %9477 = vmatpush3.bf16.msra.mxu1 %v10990_v22 }
 0x5a4   :  { %v955_v36 = vpop.permute.xlu1 %954  ;;  %9478 = vmatprep.subr.bf16.mxu1 %v10578_v14 }
 0x5a5   :  { %v960_v57 = vsel %vm104_vm1, %v955_v36, %v958_v56 }
 0x5a6   :  { %8313 = vmatmul.mubr.msk.f32.vlgmr.msra.gmra.mrb[12].mxu0 %vm638_vm3, %v960_v57 }
 0x5a7   :  { %9486 = vmatpush3.bf16.msra.mxu0 %v10749_v9  ;;  %8342 = vmatprep.mubr.msk.f32.mxu0 %vm10579_vm2, %v10580_v26 }
 0x5a8   :  { %9487 = vmatprep.subr.bf16.mxu0 %v10578_v14  ;;  %9480 = vmatpush3.bf16.msra.mxu1 %v11000_v37 }
 0x5a9   :  { %9481 = vmatprep.subr.bf16.mxu1 %v10578_v14 }
 0x5ab   :  { %9489 = vmatpush3.bf16.msra.mxu0 %v10777_v20 }
 0x5ac   :  { %9483 = vmatpush3.bf16.msra.mxu1 %v11014_v48  ;;  %9502 = vmatprep.subr.bf16.mxu0 %v10578_v14 }
 0x5ad   :  { %9490 = vmatprep.subr.bf16.mxu1 %v10578_v14 }
 0x5ae   :  { %8343 = vmatmul.mubr.msk.f32.vlgmr.msra.gmra.mrb[14].mxu0 %vm104_vm1, %v955_v36 }
 0x5af   :  { %9504 = vmatpush3.bf16.msra.mxu0 %v10983_v19  ;;  %8380 = vmatprep.mubr.msk.f32.mxu0 %vm10579_vm2, %v10580_v26 }
 0x5b0   :  { %9505 = vmatprep.subr.bf16.mxu0 %v10578_v14 }
 0x5b3   :  { %9507 = vmatpush3.bf16.msra.mxu0 %v10990_v22 }
 0x5b4   :  { %9508 = vmatprep.subr.bf16.mxu0 %v10578_v14 }
 0x5b7   :  { %9510 = vmatpush3.bf16.msra.mxu0 %v11000_v37 }
 0x5b8   :  { %9511 = vmatprep.subr.bf16.mxu0 %v10578_v14 }
 0x5bb   :  { %9513 = vmatpush3.bf16.msra.mxu0 %v11014_v48 }
 0x5bc   :  { %9520 = vmatprep.subr.bf16.mxu0 %v10578_v14 }
 0x671   :  { %v818_v59 = vpop.f32.mrb[10].mxu1 }
 0x672   :  { %v819_v60 = vadd.f32 %v11057_v58, %v818_v59  ;;  %v8284_v61 = vpop.f32.mrb[11].mxu1 }
 0x674   :  { %10174 = vtanh.f32 %v819_v60  ;;  %v7511_v17 = vmul.f32 -1.442695, %v819_v60 }
 0x679   :  { %v1030_v63 = vpop.f32.mrb[12].mxu0 }
 0x67a   :  { %v1031_v0 = vadd.f32 %v10954_v40, %v1030_v63  ;;  %v8314_v1 = vpop.f32.mrb[13].mxu0 }
 0x67c   :  { %10176 = vtanh.f32 %v1031_v0  ;;  %v7515_v18 = vmul.f32 -1.442695, %v1031_v0 }
 0x67e   :  { %v10175_v2 = vpop.eup %10174 }
 0x67f   :  { %835 = vrot.lane.b32.xlu1 %v10175_v2, %s12758_s14 }
 0x681   :  { %v1237_v4 = vpop.f32.mrb[14].mxu0 }
 0x682   :  { %v1241_v6 = vadd.f32 %v1237_v4, %v206_v3  ;;  %v8344_v10 = vpop.f32.mrb[15].mxu0 }
 0x684   :  { %10178 = vtanh.f32 %v1241_v6  ;;  %v7519_v62 = vmul.f32 -1.442695, %v1241_v6 }
 0x685   :  { %10180 = vpow2.f32 %v7511_v17 }
 0x686   :  { %v10177_v11 = vpop.eup %10176  ;;  %10182 = vpow2.f32 %v7515_v18 }
 0x687   :  { %1043 = vrot.lane.b32.xlu0 %v10177_v11, %s12758_s14  ;;  %10184 = vpow2.f32 %v7519_v62 }
 0x68b   :  { %830 = vrot.lane.b32.xlu0 %v7501_v13, %s12758_s14 }
 0x68e   :  { %v10179_v16 = vpop.eup %10178 }
 0x68f   :  { %1251 = vrot.lane.b32.xlu1 %v10179_v16, %s12758_s14  ;;  %v10181_v25 = vpop.eup %10180 }
 0x690   :  { %v825_v23 = vadd.f32 1.0, %v10181_v25  ;;  %v10183_v34 = vpop.eup %10182 }
 0x691   :  { %v1037_v38 = vadd.f32 1.0, %v10183_v34  ;;  %v10185_v43 = vpop.eup %10184 }
 0x692   :  { %10186 = vrcp.f32 %v825_v23  ;;  %v1245_v50 = vadd.f32 1.0, %v10185_v43 }
 0x693   :  { %10188 = vrcp.f32 %v1037_v38 }
 0x694   :  { %10190 = vrcp.f32 %v1245_v50 }
 0x69c   :  { %v10187_v45 = vpop.eup %10186 }
 0x69d   :  { %v10189_v51 = vpop.eup %10188 }
 0x69e   :  { %v10191_v54 = vpop.eup %10190  ;;  %v1041_v61 = vmul.f32 %v10189_v51, %v10967_v7 }
 0x69f   :  { %v1249_v2 = vmul.f32 %v10191_v54, %v10971_v12 }
 0x6f1   :  { %v836_v46 = vpop.permute.xlu1 %835 }
 0x6f2   :  { %v838_v49 = vmul.f32 %v10187_v45, %v836_v46 }
 0x6f4   :  { %840 = vrot.lane.b32.xlu1 %v838_v49, %s12758_s14 }
 0x6f9   :  { %v1044_v52 = vpop.permute.xlu0 %1043 }
 0x6fa   :  { %v1046_v53 = vmul.f32 %v10189_v51, %v1044_v52 }
 0x6fc   :  { %1048 = vrot.lane.b32.xlu0 %v1046_v53, %s12758_s14  ;;  %v211_v53 = vadd.f32 %v10920_v24, %v10832_v42 }
 0x6fd   :  { %v831_v36 = vpop.permute.xlu0 %830 }
 0x6fe   :  { %v833_v57 = vmul.f32 %v10187_v45, %v831_v36 }
 0x701   :  { %v1252_v55 = vpop.permute.xlu1 %1251 }
 0x702   :  { %v1254_v56 = vmul.f32 %v10191_v54, %v1252_v55 }
 0x704   :  { %1256 = vrot.lane.b32.xlu1 %v1254_v56, %s12758_s14 }
 0x766   :  { %v841_v59 = vpop.permute.xlu1 %840 }
 0x767   :  { %v11073_v60 = vadd.f32 %v841_v59, %v833_v57 }
 0x769   :  { %10192 = vtanh.f32 %v11073_v60 }
 0x76e   :  { %v1049_v63 = vpop.permute.xlu0 %1048 }
 0x76f   :  { %v11077_v0 = vadd.f32 %v1049_v63, %v1041_v61 }
 0x771   :  { %10194 = vtanh.f32 %v11077_v0 }
 0x773   :  { %v10193_v1 = vpop.eup %10192 }
 0x774   :  { %846 = vrot.lane.b32.xlu0 %v10193_v1, %s12758_s14 }
 0x776   :  { %v1257_v3 = vpop.permute.xlu1 %1256 }
 0x777   :  { %v11082_v4 = vadd.f32 %v1257_v3, %v1249_v2 }
 0x779   :  { %10196 = vtanh.f32 %v11082_v4 }
 0x77b   :  { %v10195_v6 = vpop.eup %10194 }
 0x77c   :  { %1054 = vrot.lane.b32.xlu1 %v10195_v6, %s12758_s14 }
 0x783   :  { %v10197_v10 = vpop.eup %10196 }
 0x784   :  { %1262 = vrot.lane.b32.xlu0 %v10197_v10, %s12758_s14 }
 0x7e6   :  { %v847_v7 = vpop.permute.xlu0 %846 }
 0x7e7   :  { %v11087_v11 = vmul.f32 %v10187_v45, %v847_v7 }
 0x7e9   :  { %1062 = vrot.lane.b32.xlu0 %v11087_v11, %s10583_s8 }
 0x7ee   :  { %v1055_v13 = vpop.permute.xlu1 %1054 }
 0x7ef   :  { %v1057_v16 = vmul.f32 %v10189_v51, %v1055_v13 }
 0x7f1   :  { %1059 = vrot.lane.b32.xlu1 %v1057_v16, %s10582_s13  ;;  %1270 = vrot.lane.b32.xlu0 %v1057_v16, %s10583_s8 }
 0x7f6   :  { %v1263_v12 = vpop.permute.xlu0 %1262 }
 0x7f7   :  { %v1265_v17 = vmul.f32 %v10191_v54, %v1263_v12 }
 0x7f9   :  { %1267 = vrot.lane.b32.xlu1 %v1265_v17, %s10582_s13 }
 0x85b   :  { %v1063_v18 = vpop.permute.xlu0 %1062 }
 0x863   :  { %v1060_v25 = vpop.permute.xlu1 %1059  ;;  %v1271_v34 = vpop.permute.xlu0 %1270 }
 0x864   :  { %v1065_v62 = vsel %vm104_vm1, %v1060_v25, %v1063_v18 }
 0x865   :  { %8332 = vmatmul.mubr.msk.f32.vlgmr.msra.gmra.mrb[12].mxu1 %vm638_vm3, %v1065_v62 }
 0x866   :  { %9492 = vmatpush3.bf16.msra.mxu1 %v10867_v5  ;;  %8361 = vmatprep.mubr.msk.f32.mxu1 %vm10579_vm2, %v10580_v26 }
 0x867   :  { %9493 = vmatprep.subr.bf16.mxu1 %v10578_v14 }
 0x86a   :  { %9495 = vmatpush3.bf16.msra.mxu1 %v10878_v8 }
 0x86b   :  { %9496 = vmatprep.subr.bf16.mxu1 %v10578_v14  ;;  %v1268_v23 = vpop.permute.xlu1 %1267 }
 0x86c   :  { %v1273_v38 = vsel %vm104_vm1, %v1268_v23, %v1271_v34 }
 0x86e   :  { %9498 = vmatpush3.bf16.msra.mxu1 %v10896_v15 }
 0x86f   :  { %9499 = vmatprep.subr.bf16.mxu1 %v10578_v14 }
 0x872   :  { %9501 = vmatpush3.bf16.msra.mxu1 %v10913_v21 }
 0x873   :  { %9514 = vmatprep.subr.bf16.mxu1 %v10578_v14 }
 0x875   :  { %8362 = vmatmul.mubr.msk.f32.vlgmr.msra.gmra.mrb[14].mxu1 %vm638_vm3, %v1273_v38 }
 0x876   :  { %9516 = vmatpush3.bf16.msra.mxu1 %v10749_v9  ;;  %8391 = vmatprep.mubr.msk.f32.mxu1 %vm10579_vm2, %v10580_v26 }
 0x877   :  { %9517 = vmatprep.subr.bf16.mxu1 %v10578_v14 }
 0x87a   :  { %9519 = vmatpush3.bf16.msra.mxu1 %v10777_v20 }
 0x87b   :  { %9532 = vmatprep.subr.bf16.mxu1 %v10578_v14 }
 0x87d   :  { %8392 = vmatmul.mubr.msk.f32.vlgmr.msra.gmra.mrb[16].mxu1 %vm104_vm1, %v1268_v23 }
 0x87e   :  { %9534 = vmatpush3.bf16.msra.mxu1 %v10983_v19  ;;  %8429 = vmatprep.mubr.msk.f32.mxu1 %vm10579_vm2, %v10580_v26 }
 0x87f   :  { %9535 = vmatprep.subr.bf16.mxu1 %v10578_v14 }
 0x882   :  { %9537 = vmatpush3.bf16.msra.mxu1 %v10990_v22 }
 0x883   :  { %9538 = vmatprep.subr.bf16.mxu1 %v10578_v14 }
 0x886   :  { %9540 = vmatpush3.bf16.msra.mxu1 %v11000_v37 }
 0x887   :  { %9541 = vmatprep.subr.bf16.mxu1 %v10578_v14 }
 0x88a   :  { %9543 = vmatpush3.bf16.msra.mxu1 %v11014_v48 }
 0x88b   :  { %9550 = vmatprep.subr.bf16.mxu1 %v10578_v14 }
 0x938   :  { %v1135_v43 = vpop.f32.mrb[12].mxu1 }
 0x939   :  { %v1136_v45 = vadd.f32 %v11057_v58, %v1135_v43  ;;  %v8333_v46 = vpop.f32.mrb[13].mxu1 }
 0x93b   :  { %10198 = vtanh.f32 %v1136_v45  ;;  %v7517_v59 = vmul.f32 -1.442695, %v1136_v45 }
 0x945   :  { %v10199_v49 = vpop.eup %10198 }
 0x946   :  { %1148 = vrot.lane.b32.xlu1 %v10199_v49, %s12758_s14 }
 0x948   :  { %v1343_v50 = vpop.f32.mrb[14].mxu1 }
 0x949   :  { %v1344_v51 = vadd.f32 %v10954_v40, %v1343_v50  ;;  %v8363_v52 = vpop.f32.mrb[15].mxu1 }
 0x94b   :  { %10200 = vtanh.f32 %v1344_v51  ;;  %v7521_v63 = vmul.f32 -1.442695, %v1344_v51 }
 0x950   :  { %v1550_v54 = vpop.f32.mrb[16].mxu1 }
 0x951   :  { %v1554_v55 = vadd.f32 %v1550_v54, %v211_v53  ;;  %v8393_v56 = vpop.f32.mrb[17].mxu1 }
 0x953   :  { %10202 = vtanh.f32 %v1554_v55  ;;  %v7525_v2 = vmul.f32 -1.442695, %v1554_v55 }
 0x954   :  { %10204 = vpow2.f32 %v7517_v59 }
 0x955   :  { %v10201_v36 = vpop.eup %10200  ;;  %10206 = vpow2.f32 %v7521_v63 }
 0x956   :  { %1356 = vrot.lane.b32.xlu0 %v10201_v36, %s12758_s14 }
 0x95d   :  { %v10203_v57 = vpop.eup %10202 }
 0x95e   :  { %1564 = vrot.lane.b32.xlu1 %v10203_v57, %s12758_s14  ;;  %v10205_v61 = vpop.eup %10204 }
 0x95f   :  { %v1142_v1 = vadd.f32 1.0, %v10205_v61  ;;  %v10207_v24 = vpop.eup %10206 }
 0x960   :  { %v1350_v7 = vadd.f32 1.0, %v10207_v24 }
 0x961   :  { %10208 = vrcp.f32 %v1142_v1 }
 0x962   :  { %10210 = vpow2.f32 %v7525_v2 }
 0x963   :  { %10212 = vrcp.f32 %v1350_v7 }
 0x96b   :  { %v10209_v3 = vpop.eup %10208 }
 0x96c   :  { %v10211_v13 = vpop.eup %10210  ;;  %v1146_v34 = vmul.f32 %v10209_v3, %v11073_v60 }
 0x96d   :  { %v1558_v16 = vadd.f32 1.0, %v10211_v13  ;;  %v10213_v12 = vpop.eup %10212 }
 0x96e   :  { %v1354_v46 = vmul.f32 %v10213_v12, %v11077_v0 }
 0x96f   :  { %10214 = vrcp.f32 %v1558_v16 }
 0x979   :  { %v10215_v25 = vpop.eup %10214 }
 0x97a   :  { %v1562_v51 = vmul.f32 %v10215_v25, %v11082_v4 }
 0x9b8   :  { %v1149_v6 = vpop.permute.xlu1 %1148 }
 0x9b9   :  { %v1151_v10 = vmul.f32 %v10209_v3, %v1149_v6 }
 0x9bb   :  { %1153 = vrot.lane.b32.xlu0 %v1151_v10, %s12758_s14 }
 0x9c8   :  { %v1357_v17 = vpop.permute.xlu0 %1356 }
 0x9c9   :  { %v1359_v18 = vmul.f32 %v10213_v12, %v1357_v17  ;;  %v216_v17 = vadd.f32 %v10832_v42, %v10926_v28 }
 0x9cb   :  { %1361 = vrot.lane.b32.xlu1 %v1359_v18, %s12758_s14 }
 0x9d0   :  { %v1565_v62 = vpop.permute.xlu1 %1564 }
 0x9d1   :  { %v1567_v23 = vmul.f32 %v10215_v25, %v1565_v62 }
 0x9d3   :  { %1569 = vrot.lane.b32.xlu0 %v1567_v23, %s12758_s14 }
 0xa2d   :  { %v1154_v38 = vpop.permute.xlu0 %1153 }
 0xa2e   :  { %v11136_v43 = vadd.f32 %v1154_v38, %v1146_v34 }
 0xa30   :  { %10216 = vtanh.f32 %v11136_v43 }
 0xa3a   :  { %v10217_v45 = vpop.eup %10216 }
 0xa3b   :  { %1159 = vrot.lane.b32.xlu1 %v10217_v45, %s12758_s14 }
 0xa3d   :  { %v1362_v49 = vpop.permute.xlu1 %1361 }
 0xa3e   :  { %v11141_v50 = vadd.f32 %v1362_v49, %v1354_v46 }
 0xa40   :  { %10218 = vtanh.f32 %v11141_v50 }
 0xa45   :  { %v1570_v52 = vpop.permute.xlu0 %1569 }
 0xa46   :  { %v11145_v53 = vadd.f32 %v1570_v52, %v1562_v51 }
 0xa48   :  { %10220 = vtanh.f32 %v11145_v53 }
 0xa4a   :  { %v10219_v60 = vpop.eup %10218 }
 0xa4b   :  { %1367 = vrot.lane.b32.xlu0 %v10219_v60, %s12758_s14 }
 0xa52   :  { %v10221_v54 = vpop.eup %10220 }
 0xa53   :  { %1575 = vrot.lane.b32.xlu1 %v10221_v54, %s12758_s14 }
 0xaad   :  { %v1160_v55 = vpop.permute.xlu1 %1159 }
 0xaae   :  { %v11150_v0 = vmul.f32 %v10209_v3, %v1160_v55 }
 0xab0   :  { %1375 = vrot.lane.b32.xlu1 %v11150_v0, %s10583_s8 }
 0xabd   :  { %v1368_v56 = vpop.permute.xlu0 %1367 }
 0xabe   :  { %v1370_v36 = vmul.f32 %v10213_v12, %v1368_v56 }
 0xac0   :  { %1372 = vrot.lane.b32.xlu0 %v1370_v36, %s10582_s13  ;;  %1583 = vrot.lane.b32.xlu1 %v1370_v36, %s10583_s8 }
 0xac5   :  { %v1576_v4 = vpop.permute.xlu1 %1575 }
 0xac6   :  { %v1578_v57 = vmul.f32 %v10215_v25, %v1576_v4 }
 0xac8   :  { %1580 = vrot.lane.b32.xlu0 %v1578_v57, %s10582_s13 }
 0xb22   :  { %v1376_v59 = vpop.permute.xlu1 %1375 }
 0xb32   :  { %v1373_v61 = vpop.permute.xlu0 %1372  ;;  %v1584_v2 = vpop.permute.xlu1 %1583 }
 0xb33   :  { %v1378_v63 = vsel %vm104_vm1, %v1373_v61, %v1376_v59 }
 0xb34   :  { %8381 = vmatmul.mubr.msk.f32.vlgmr.msra.gmra.mrb[16].mxu0 %vm638_vm3, %v1378_v63 }
 0xb35   :  { %9522 = vmatpush3.bf16.msra.mxu0 %v10867_v5  ;;  %8410 = vmatprep.mubr.msk.f32.mxu0 %vm10579_vm2, %v10580_v26 }
 0xb36   :  { %9523 = vmatprep.subr.bf16.mxu0 %v10578_v14 }
 0xb39   :  { %9525 = vmatpush3.bf16.msra.mxu0 %v10878_v8 }
 0xb3a   :  { %9526 = vmatprep.subr.bf16.mxu0 %v10578_v14  ;;  %v1581_v1 = vpop.permute.xlu0 %1580 }
 0xb3b   :  { %v1586_v24 = vsel %vm104_vm1, %v1581_v1, %v1584_v2 }
 0xb3d   :  { %9528 = vmatpush3.bf16.msra.mxu0 %v10896_v15 }
 0xb3e   :  { %9529 = vmatprep.subr.bf16.mxu0 %v10578_v14 }
 0xb41   :  { %9531 = vmatpush3.bf16.msra.mxu0 %v10913_v21 }
 0xb42   :  { %9544 = vmatprep.subr.bf16.mxu0 %v10578_v14 }
 0xb44   :  { %8411 = vmatmul.mubr.msk.f32.vlgmr.msra.gmra.mrb[18].mxu0 %vm638_vm3, %v1586_v24 }
 0xb45   :  { %9546 = vmatpush3.bf16.msra.mxu0 %v10749_v9  ;;  %8440 = vmatprep.mubr.msk.f32.mxu0 %vm10579_vm2, %v10580_v26 }
 0xb46   :  { %9547 = vmatprep.subr.bf16.mxu0 %v10578_v14 }
 0xb49   :  { %9549 = vmatpush3.bf16.msra.mxu0 %v10777_v20 }
 0xb4a   :  { %9562 = vmatprep.subr.bf16.mxu0 %v10578_v14 }
 0xb4c   :  { %8441 = vmatmul.mubr.msk.f32.vlgmr.msra.gmra.mrb[20].mxu0 %vm104_vm1, %v1581_v1 }
 0xb4d   :  { %9564 = vmatpush3.bf16.msra.mxu0 %v10983_v19  ;;  %8478 = vmatprep.mubr.msk.f32.mxu0 %vm10579_vm2, %v10580_v26 }
 0xb4e   :  { %9565 = vmatprep.subr.bf16.mxu0 %v10578_v14 }
 0xb51   :  { %9567 = vmatpush3.bf16.msra.mxu0 %v10990_v22 }
 0xb52   :  { %9568 = vmatprep.subr.bf16.mxu0 %v10578_v14 }
 0xb55   :  { %9570 = vmatpush3.bf16.msra.mxu0 %v11000_v37 }
 0xb56   :  { %9571 = vmatprep.subr.bf16.mxu0 %v10578_v14 }
 0xb59   :  { %9573 = vmatpush3.bf16.msra.mxu0 %v11014_v48 }
 0xb5a   :  { %9580 = vmatprep.subr.bf16.mxu0 %v10578_v14 }
 0xc07   :  { %v1448_v3 = vpop.f32.mrb[16].mxu0 }
 0xc08   :  { %v1449_v6 = vadd.f32 %v11057_v58, %v1448_v3  ;;  %v8382_v10 = vpop.f32.mrb[17].mxu0 }
 0xc0a   :  { %10222 = vtanh.f32 %v1449_v6  ;;  %v7523_v38 = vmul.f32 -1.442695, %v1449_v6 }
 0xc14   :  { %v10223_v7 = vpop.eup %10222 }
 0xc15   :  { %1461 = vrot.lane.b32.xlu0 %v10223_v7, %s12758_s14 }
 0xc17   :  { %v1656_v13 = vpop.f32.mrb[18].mxu0 }
 0xc18   :  { %v1657_v16 = vadd.f32 %v10954_v40, %v1656_v13  ;;  %v8412_v12 = vpop.f32.mrb[19].mxu0 }
 0xc1a   :  { %10224 = vtanh.f32 %v1657_v16  ;;  %v7527_v46 = vmul.f32 -1.442695, %v1657_v16 }
 0xc1f   :  { %v1863_v18 = vpop.f32.mrb[20].mxu0 }
 0xc20   :  { %v1867_v25 = vadd.f32 %v1863_v18, %v216_v17  ;;  %v8442_v62 = vpop.f32.mrb[21].mxu0 }
 0xc22   :  { %10226 = vtanh.f32 %v1867_v25  ;;  %v7531_v51 = vmul.f32 -1.442695, %v1867_v25 }
 0xc23   :  { %10228 = vpow2.f32 %v7523_v38 }
 0xc24   :  { %v10225_v23 = vpop.eup %10224  ;;  %10230 = vpow2.f32 %v7527_v46 }
 0xc25   :  { %1669 = vrot.lane.b32.xlu1 %v10225_v23, %s12758_s14 }
 0xc2c   :  { %v10227_v34 = vpop.eup %10226 }
 0xc2d   :  { %1877 = vrot.lane.b32.xlu0 %v10227_v34, %s12758_s14  ;;  %v10229_v45 = vpop.eup %10228 }
 0xc2e   :  { %v1455_v49 = vadd.f32 1.0, %v10229_v45  ;;  %v10231_v42 = vpop.eup %10230 }
 0xc2f   :  { %v1663_v54 = vadd.f32 1.0, %v10231_v42 }
 0xc30   :  { %10232 = vrcp.f32 %v1455_v49 }
 0xc31   :  { %10234 = vpow2.f32 %v7531_v51 }
 0xc32   :  { %10236 = vrcp.f32 %v1663_v54 }
 0xc3a   :  { %v10233_v28 = vpop.eup %10232 }
 0xc3b   :  { %v10235_v55 = vpop.eup %10234  ;;  %v1459_v1 = vmul.f32 %v10233_v28, %v11136_v43 }
 0xc3c   :  { %v1871_v56 = vadd.f32 1.0, %v10235_v55  ;;  %v10237_v36 = vpop.eup %10236 }
 0xc3d   :  { %v1667_v6 = vmul.f32 %v10237_v36, %v11141_v50 }
 0xc3e   :  { %10238 = vrcp.f32 %v1871_v56 }
 0xc48   :  { %v10239_v59 = vpop.eup %10238 }
 0xc49   :  { %v1875_v13 = vmul.f32 %v10239_v59, %v11145_v53 }
 0xc87   :  { %v1462_v52 = vpop.permute.xlu0 %1461 }
 0xc88   :  { %v1464_v60 = vmul.f32 %v10233_v28, %v1462_v52 }
 0xc8a   :  { %1466 = vrot.lane.b32.xlu1 %v1464_v60, %s12758_s14 }
 0xc97   :  { %v1670_v4 = vpop.permute.xlu1 %1669 }
 0xc98   :  { %v1672_v57 = vmul.f32 %v10237_v36, %v1670_v4 }
 0xc9a   :  { %1674 = vrot.lane.b32.xlu0 %v1672_v57, %s12758_s14 }
 0xc9f   :  { %v1878_v61 = vpop.permute.xlu0 %1877 }
 0xca0   :  { %v1880_v63 = vmul.f32 %v10239_v59, %v1878_v61 }
 0xca2   :  { %1882 = vrot.lane.b32.xlu1 %v1880_v63, %s12758_s14 }
 0xcfc   :  { %v1467_v2 = vpop.permute.xlu1 %1466 }
 0xcfd   :  { %v11199_v24 = vadd.f32 %v1467_v2, %v1459_v1 }
 0xcff   :  { %10240 = vtanh.f32 %v11199_v24 }
 0xd09   :  { %v10241_v3 = vpop.eup %10240 }
 0xd0a   :  { %1472 = vrot.lane.b32.xlu0 %v10241_v3, %s12758_s14 }
 0xd0c   :  { %v1675_v10 = vpop.permute.xlu0 %1674 }
 0xd0d   :  { %v11204_v7 = vadd.f32 %v1675_v10, %v1667_v6 }
 0xd0f   :  { %10242 = vtanh.f32 %v11204_v7 }
 0xd14   :  { %v1883_v16 = vpop.permute.xlu1 %1882 }
 0xd15   :  { %v11208_v12 = vadd.f32 %v1883_v16, %v1875_v13 }
 0xd17   :  { %10244 = vtanh.f32 %v11208_v12 }
 0xd19   :  { %v10243_v43 = vpop.eup %10242 }
 0xd1a   :  { %1680 = vrot.lane.b32.xlu1 %v10243_v43, %s12758_s14 }
 0xd21   :  { %v10245_v17 = vpop.eup %10244 }
 0xd22   :  { %1888 = vrot.lane.b32.xlu0 %v10245_v17, %s12758_s14 }
 0xd7c   :  { %v1473_v18 = vpop.permute.xlu0 %1472 }
 0xd7d   :  { %v11213_v50 = vmul.f32 %v10233_v28, %v1473_v18 }
 0xd7f   :  { %1688 = vrot.lane.b32.xlu0 %v11213_v50, %s10583_s8 }
 0xd8c   :  { %v1681_v25 = vpop.permute.xlu1 %1680 }
 0xd8d   :  { %v1683_v62 = vmul.f32 %v10237_v36, %v1681_v25  ;;  %v11257_v36 = vld [vmem:[%s12755_s11] ss:$0 sm:$0xff] }
 0xd8e   :  { %v221_v4 = vadd.f32 %v11257_v36, %v10924_v27 }
 0xd8f   :  { %1685 = vrot.lane.b32.xlu1 %v1683_v62, %s10582_s13  ;;  %1896 = vrot.lane.b32.xlu0 %v1683_v62, %s10583_s8 }
 0xd94   :  { %v1889_v53 = vpop.permute.xlu0 %1888 }
 0xd95   :  { %v1891_v23 = vmul.f32 %v10239_v59, %v1889_v53 }
 0xd97   :  { %1893 = vrot.lane.b32.xlu1 %v1891_v23, %s10582_s13 }
 0xdf1   :  { %v1689_v34 = vpop.permute.xlu0 %1688 }
 0xe01   :  { %v1686_v38 = vpop.permute.xlu1 %1685  ;;  %v1897_v49 = vpop.permute.xlu0 %1896 }
 0xe02   :  { %v1691_v45 = vsel %vm104_vm1, %v1686_v38, %v1689_v34 }
 0xe03   :  { %8430 = vmatmul.mubr.msk.f32.vlgmr.msra.gmra.mrb[18].mxu1 %vm638_vm3, %v1691_v45 }
 0xe04   :  { %9552 = vmatpush3.bf16.msra.mxu1 %v10867_v5  ;;  %8459 = vmatprep.mubr.msk.f32.mxu1 %vm10579_vm2, %v10580_v26 }
 0xe05   :  { %9553 = vmatprep.subr.bf16.mxu1 %v10578_v14 }
 0xe08   :  { %9555 = vmatpush3.bf16.msra.mxu1 %v10878_v8 }
 0xe09   :  { %9556 = vmatprep.subr.bf16.mxu1 %v10578_v14  ;;  %v1894_v46 = vpop.permute.xlu1 %1893 }
 0xe0a   :  { %v1899_v51 = vsel %vm104_vm1, %v1894_v46, %v1897_v49 }
 0xe0c   :  { %9558 = vmatpush3.bf16.msra.mxu1 %v10896_v15 }
 0xe0d   :  { %9559 = vmatprep.subr.bf16.mxu1 %v10578_v14 }
 0xe10   :  { %9561 = vmatpush3.bf16.msra.mxu1 %v10913_v21 }
 0xe11   :  { %9574 = vmatprep.subr.bf16.mxu1 %v10578_v14 }
 0xe13   :  { %8460 = vmatmul.mubr.msk.f32.vlgmr.msra.gmra.mrb[20].mxu1 %vm638_vm3, %v1899_v51 }
 0xe14   :  { %9576 = vmatpush3.bf16.msra.mxu1 %v10749_v9  ;;  %8489 = vmatprep.mubr.msk.f32.mxu1 %vm10579_vm2, %v10580_v26 }
 0xe15   :  { %9577 = vmatprep.subr.bf16.mxu1 %v10578_v14 }
 0xe18   :  { %9579 = vmatpush3.bf16.msra.mxu1 %v10777_v20 }
 0xe19   :  { %9592 = vmatprep.subr.bf16.mxu1 %v10578_v14 }
 0xe1b   :  { %8490 = vmatmul.mubr.msk.f32.vlgmr.msra.gmra.mrb[22].mxu1 %vm104_vm1, %v1894_v46 }
 0xe1c   :  { %9594 = vmatpush3.bf16.msra.mxu1 %v10983_v19  ;;  %8527 = vmatprep.mubr.msk.f32.mxu1 %vm10579_vm2, %v10580_v26 }
 0xe1d   :  { %9595 = vmatprep.subr.bf16.mxu1 %v10578_v14 }
 0xe20   :  { %9597 = vmatpush3.bf16.msra.mxu1 %v10990_v22 }
 0xe21   :  { %9598 = vmatprep.subr.bf16.mxu1 %v10578_v14 }
 0xe24   :  { %9600 = vmatpush3.bf16.msra.mxu1 %v11000_v37 }
 0xe25   :  { %9601 = vmatprep.subr.bf16.mxu1 %v10578_v14 }
 0xe28   :  { %9603 = vmatpush3.bf16.msra.mxu1 %v11014_v48 }
 0xe29   :  { %9610 = vmatprep.subr.bf16.mxu1 %v10578_v14 }
 0xed6   :  { %v1761_v42 = vpop.f32.mrb[18].mxu1 }
 0xed7   :  { %v1762_v28 = vadd.f32 %v11057_v58, %v1761_v42  ;;  %v8431_v52 = vpop.f32.mrb[19].mxu1 }
 0xed9   :  { %10246 = vtanh.f32 %v1762_v28 }
 0xee3   :  { %v10247_v60 = vpop.eup %10246 }
 0xee4   :  { %1774 = vrot.lane.b32.xlu1 %v10247_v60, %s12758_s14 }
 0xee6   :  { %v1969_v54 = vpop.f32.mrb[20].mxu1 }
 0xee7   :  { %v1970_v55 = vadd.f32 %v10954_v40, %v1969_v54  ;;  %v8461_v56 = vpop.f32.mrb[21].mxu1  ;;  %v7529_v40 = vmul.f32 -1.442695, %v1762_v28 }
 0xee9   :  { %10248 = vtanh.f32 %v1970_v55  ;;  %v7533_v3 = vmul.f32 -1.442695, %v1970_v55 }
 0xeee   :  { %v2176_v57 = vpop.f32.mrb[22].mxu1 }
 0xeef   :  { %v2180_v59 = vadd.f32 %v2176_v57, %v221_v4  ;;  %v8491_v61 = vpop.f32.mrb[23].mxu1 }
 0xef1   :  { %10250 = vtanh.f32 %v2180_v59  ;;  %v7537_v10 = vmul.f32 -1.442695, %v2180_v59 }
 0xef2   :  { %10252 = vpow2.f32 %v7529_v40 }
 0xef3   :  { %v10249_v63 = vpop.eup %10248  ;;  %10254 = vpow2.f32 %v7533_v3 }
 0xef4   :  { %1982 = vrot.lane.b32.xlu0 %v10249_v63, %s12758_s14 }
 0xefb   :  { %v10251_v1 = vpop.eup %10250 }
 0xefc   :  { %2190 = vrot.lane.b32.xlu1 %v10251_v1, %s12758_s14  ;;  %v10253_v2 = vpop.eup %10252 }
 0xefd   :  { %v1768_v6 = vadd.f32 1.0, %v10253_v2  ;;  %v10255_v27 = vpop.eup %10254 }
 0xefe   :  { %v1976_v17 = vadd.f32 1.0, %v10255_v27 }
 0xeff   :  { %10256 = vrcp.f32 %v1768_v6 }
 0xf00   :  { %10258 = vpow2.f32 %v7537_v10 }
 0xf01   :  { %10260 = vrcp.f32 %v1976_v17 }
 0xf09   :  { %v10257_v13 = vpop.eup %10256 }
 0xf0a   :  { %v10259_v18 = vpop.eup %10258  ;;  %v1772_v46 = vmul.f32 %v10257_v13, %v11199_v24 }
 0xf0b   :  { %v2184_v25 = vadd.f32 1.0, %v10259_v18  ;;  %v10261_v62 = vpop.eup %10260  ;;  %v11324_v18 = vld [vmem:[%s12759_s3] ss:$0 sm:$0xff] }
 0xf0c   :  { %v1980_v28 = vmul.f32 %v10261_v62, %v11204_v7 }
 0xf0d   :  { %10262 = vrcp.f32 %v2184_v25 }
 0xf17   :  { %v10263_v34 = vpop.eup %10262 }
 0xf18   :  { %v2188_v54 = vmul.f32 %v10263_v34, %v11208_v12 }
 0xf56   :  { %v1775_v16 = vpop.permute.xlu1 %1774 }
 0xf57   :  { %v1777_v43 = vmul.f32 %v10257_v13, %v1775_v16 }
 0xf59   :  { %1779 = vrot.lane.b32.xlu0 %v1777_v43, %s12758_s14 }
 0xf66   :  { %v1983_v53 = vpop.permute.xlu0 %1982 }
 0xf67   :  { %v1985_v23 = vmul.f32 %v10261_v62, %v1983_v53  ;;  %v226_v53 = vadd.f32 %v11257_v36, %v10930_v32 }
 0xf69   :  { %1987 = vrot.lane.b32.xlu1 %v1985_v23, %s12758_s14 }
 0xf6e   :  { %v2191_v38 = vpop.permute.xlu1 %2190 }
 0xf6f   :  { %v2193_v45 = vmul.f32 %v10263_v34, %v2191_v38 }
 0xf71   :  { %2195 = vrot.lane.b32.xlu0 %v2193_v45, %s12758_s14 }
 0xfcb   :  { %v1780_v49 = vpop.permute.xlu0 %1779 }
 0xfcc   :  { %v11267_v51 = vadd.f32 %v1780_v49, %v1772_v46 }
 0xfce   :  { %10264 = vtanh.f32 %v11267_v51 }
 0xfd8   :  { %v10265_v42 = vpop.eup %10264 }
 0xfd9   :  { %1785 = vrot.lane.b32.xlu1 %v10265_v42, %s12758_s14 }
 0xfdb   :  { %v1988_v52 = vpop.permute.xlu1 %1987 }
 0xfdc   :  { %v11272_v60 = vadd.f32 %v1988_v52, %v1980_v28 }
 0xfde   :  { %10266 = vtanh.f32 %v11272_v60 }
 0xfe3   :  { %v2196_v55 = vpop.permute.xlu0 %2195 }
 0xfe4   :  { %v11276_v56 = vadd.f32 %v2196_v55, %v2188_v54 }
 0xfe6   :  { %10268 = vtanh.f32 %v11276_v56 }
 0xfe8   :  { %v10267_v24 = vpop.eup %10266 }
 0xfe9   :  { %1993 = vrot.lane.b32.xlu0 %v10267_v24, %s12758_s14 }
 0xff0   :  { %v10269_v4 = vpop.eup %10268 }
 0xff1   :  { %2201 = vrot.lane.b32.xlu1 %v10269_v4, %s12758_s14 }
0x104b   :  { %v1786_v57 = vpop.permute.xlu1 %1785 }
0x104c   :  { %v11281_v7 = vmul.f32 %v10257_v13, %v1786_v57 }
0x104e   :  { %2001 = vrot.lane.b32.xlu1 %v11281_v7, %s10583_s8 }
0x105b   :  { %v1994_v59 = vpop.permute.xlu0 %1993 }
0x105c   :  { %v1996_v61 = vmul.f32 %v10261_v62, %v1994_v59 }
0x105e   :  { %1998 = vrot.lane.b32.xlu0 %v1996_v61, %s10582_s13  ;;  %2209 = vrot.lane.b32.xlu1 %v1996_v61, %s10583_s8 }
0x1063   :  { %v2202_v12 = vpop.permute.xlu1 %2201 }
0x1064   :  { %v2204_v63 = vmul.f32 %v10263_v34, %v2202_v12 }
0x1066   :  { %2206 = vrot.lane.b32.xlu0 %v2204_v63, %s10582_s13 }
0x10c0   :  { %v2002_v1 = vpop.permute.xlu1 %2001 }
0x10d0   :  { %v1999_v40 = vpop.permute.xlu0 %1998  ;;  %v2210_v6 = vpop.permute.xlu1 %2209 }
0x10d1   :  { %v2004_v2 = vsel %vm104_vm1, %v1999_v40, %v2002_v1 }
0x10d2   :  { %8479 = vmatmul.mubr.msk.f32.vlgmr.msra.gmra.mrb[22].mxu0 %vm638_vm3, %v2004_v2 }
0x10d3   :  { %9582 = vmatpush3.bf16.msra.mxu0 %v10867_v5  ;;  %8508 = vmatprep.mubr.msk.f32.mxu0 %vm10579_vm2, %v10580_v26 }
0x10d4   :  { %9583 = vmatprep.subr.bf16.mxu0 %v10578_v14 }
0x10d7   :  { %9585 = vmatpush3.bf16.msra.mxu0 %v10878_v8 }
0x10d8   :  { %9586 = vmatprep.subr.bf16.mxu0 %v10578_v14  ;;  %v2207_v3 = vpop.permute.xlu0 %2206 }
0x10d9   :  { %v2212_v10 = vsel %vm104_vm1, %v2207_v3, %v2210_v6 }
0x10db   :  { %9588 = vmatpush3.bf16.msra.mxu0 %v10896_v15 }
0x10dc   :  { %9589 = vmatprep.subr.bf16.mxu0 %v10578_v14 }
0x10df   :  { %9591 = vmatpush3.bf16.msra.mxu0 %v10913_v21 }
0x10e0   :  { %9604 = vmatprep.subr.bf16.mxu0 %v10578_v14 }
0x10e2   :  { %8509 = vmatmul.mubr.msk.f32.vlgmr.msra.gmra.mrb[24].mxu0 %vm638_vm3, %v2212_v10 }
0x10e3   :  { %9606 = vmatpush3.bf16.msra.mxu0 %v10749_v9  ;;  %8538 = vmatprep.mubr.msk.f32.mxu0 %vm10579_vm2, %v10580_v26 }
0x10e4   :  { %9607 = vmatprep.subr.bf16.mxu0 %v10578_v14 }
0x10e7   :  { %9609 = vmatpush3.bf16.msra.mxu0 %v10777_v20 }
0x10e8   :  { %9622 = vmatprep.subr.bf16.mxu0 %v10578_v14 }
0x10ea   :  { %8539 = vmatmul.mubr.msk.f32.vlgmr.msra.gmra.mrb[26].mxu0 %vm104_vm1, %v2207_v3 }
0x10eb   :  { %9624 = vmatpush3.bf16.msra.mxu0 %v10983_v19  ;;  %8576 = vmatprep.mubr.msk.f32.mxu0 %vm10579_vm2, %v10580_v26 }
0x10ec   :  { %9625 = vmatprep.subr.bf16.mxu0 %v10578_v14 }
0x10ef   :  { %9627 = vmatpush3.bf16.msra.mxu0 %v10990_v22 }
0x10f0   :  { %9628 = vmatprep.subr.bf16.mxu0 %v10578_v14 }
0x10f3   :  { %9630 = vmatpush3.bf16.msra.mxu0 %v11000_v37 }
0x10f4   :  { %9631 = vmatprep.subr.bf16.mxu0 %v10578_v14 }
0x10f7   :  { %9633 = vmatpush3.bf16.msra.mxu0 %v11014_v48 }
0x10f8   :  { %9640 = vmatprep.subr.bf16.mxu0 %v10578_v14 }
0x11a5   :  { %v2074_v27 = vpop.f32.mrb[22].mxu0 }
0x11a6   :  { %v2075_v13 = vadd.f32 %v11057_v58, %v2074_v27  ;;  %v8480_v16 = vpop.f32.mrb[23].mxu0 }
0x11a8   :  { %10270 = vtanh.f32 %v2075_v13  ;;  %v7535_v46 = vmul.f32 -1.442695, %v2075_v13 }
0x11b2   :  { %v10271_v43 = vpop.eup %10270 }
0x11b3   :  { %2087 = vrot.lane.b32.xlu0 %v10271_v43, %s12758_s14 }
0x11b5   :  { %v2282_v17 = vpop.f32.mrb[24].mxu0 }
0x11b6   :  { %v2283_v25 = vadd.f32 %v11324_v18, %v2282_v17  ;;  %v8510_v62 = vpop.f32.mrb[25].mxu0 }
0x11b8   :  { %10272 = vtanh.f32 %v2283_v25  ;;  %v7539_v42 = vmul.f32 -1.442695, %v2283_v25 }
0x11bd   :  { %v2489_v23 = vpop.f32.mrb[26].mxu0 }
0x11be   :  { %v2493_v58 = vadd.f32 %v2489_v23, %v226_v53  ;;  %v8540_v34 = vpop.f32.mrb[27].mxu0 }
0x11c0   :  { %10274 = vtanh.f32 %v2493_v58  ;;  %v7543_v52 = vmul.f32 -1.442695, %v2493_v58 }
0x11c1   :  { %10276 = vpow2.f32 %v7535_v46 }
0x11c2   :  { %v10273_v38 = vpop.eup %10272  ;;  %10278 = vpow2.f32 %v7539_v42 }
0x11c3   :  { %2295 = vrot.lane.b32.xlu1 %v10273_v38, %s12758_s14 }
0x11ca   :  { %v10275_v45 = vpop.eup %10274 }
0x11cb   :  { %2503 = vrot.lane.b32.xlu0 %v10275_v45, %s12758_s14  ;;  %v10277_v49 = vpop.eup %10276 }
0x11cc   :  { %v2081_v28 = vadd.f32 1.0, %v10277_v49  ;;  %v10279_v32 = vpop.eup %10278 }
0x11cd   :  { %v2289_v4 = vadd.f32 1.0, %v10279_v32 }
0x11ce   :  { %10280 = vrcp.f32 %v2081_v28 }
0x11cf   :  { %10282 = vpow2.f32 %v7543_v52 }
0x11d0   :  { %10284 = vrcp.f32 %v2289_v4 }
0x11d8   :  { %v10281_v54 = vpop.eup %10280 }
0x11d9   :  { %v10283_v57 = vpop.eup %10282  ;;  %v2085_v3 = vmul.f32 %v10281_v54, %v11267_v51 }
0x11da   :  { %v2497_v59 = vadd.f32 1.0, %v10283_v57  ;;  %v10285_v61 = vpop.eup %10284 }
0x11db   :  { %v2293_v13 = vmul.f32 %v10285_v61, %v11272_v60 }
0x11dc   :  { %10286 = vrcp.f32 %v2497_v59 }
0x11e6   :  { %v10287_v1 = vpop.eup %10286 }
0x11e7   :  { %v2501_v17 = vmul.f32 %v10287_v1, %v11276_v56 }
0x1225   :  { %v2088_v55 = vpop.permute.xlu0 %2087 }
0x1226   :  { %v2090_v24 = vmul.f32 %v10281_v54, %v2088_v55 }
0x1228   :  { %2092 = vrot.lane.b32.xlu1 %v2090_v24, %s12758_s14 }
0x1235   :  { %v2296_v12 = vpop.permute.xlu1 %2295 }
0x1236   :  { %v2298_v63 = vmul.f32 %v10285_v61, %v2296_v12 }
0x1238   :  { %2300 = vrot.lane.b32.xlu0 %v2298_v63, %s12758_s14 }
0x123d   :  { %v2504_v40 = vpop.permute.xlu0 %2503 }
0x123e   :  { %v2506_v2 = vmul.f32 %v10287_v1, %v2504_v40 }
0x1240   :  { %2508 = vrot.lane.b32.xlu1 %v2506_v2, %s12758_s14 }
0x129a   :  { %v2093_v6 = vpop.permute.xlu1 %2092 }
0x129b   :  { %v11335_v10 = vadd.f32 %v2093_v6, %v2085_v3 }
0x129d   :  { %10288 = vtanh.f32 %v11335_v10 }
0x12a7   :  { %v10289_v27 = vpop.eup %10288 }
0x12a8   :  { %2098 = vrot.lane.b32.xlu0 %v10289_v27, %s12758_s14 }
0x12aa   :  { %v2301_v16 = vpop.permute.xlu0 %2300 }
0x12ab   :  { %v11340_v43 = vadd.f32 %v2301_v16, %v2293_v13 }
0x12ad   :  { %10290 = vtanh.f32 %v11340_v43 }
0x12b2   :  { %v2509_v25 = vpop.permute.xlu1 %2508 }
0x12b3   :  { %v11344_v62 = vadd.f32 %v2509_v25, %v2501_v17 }
0x12b5   :  { %10292 = vtanh.f32 %v11344_v62 }
0x12b7   :  { %v10291_v51 = vpop.eup %10290 }
0x12b8   :  { %2306 = vrot.lane.b32.xlu1 %v10291_v51, %s12758_s14 }
0x12bf   :  { %v10293_v53 = vpop.eup %10292 }
0x12c0   :  { %2514 = vrot.lane.b32.xlu0 %v10293_v53, %s12758_s14 }
0x131a   :  { %v2099_v23 = vpop.permute.xlu0 %2098 }
0x131b   :  { %v11349_v60 = vmul.f32 %v10281_v54, %v2099_v23 }
0x131d   :  { %2314 = vrot.lane.b32.xlu0 %v11349_v60, %s10583_s8 }
0x132a   :  { %v2307_v58 = vpop.permute.xlu1 %2306 }
0x132b   :  { %v2309_v34 = vmul.f32 %v10285_v61, %v2307_v58 }
0x132d   :  { %2311 = vrot.lane.b32.xlu1 %v2309_v34, %s10582_s13  ;;  %2522 = vrot.lane.b32.xlu0 %v2309_v34, %s10583_s8 }
0x1332   :  { %v2515_v56 = vpop.permute.xlu0 %2514 }
0x1333   :  { %v2517_v38 = vmul.f32 %v10287_v1, %v2515_v56 }
0x1335   :  { %2519 = vrot.lane.b32.xlu1 %v2517_v38, %s10582_s13 }
0x138f   :  { %v2315_v45 = vpop.permute.xlu0 %2314 }
0x139f   :  { %v2312_v46 = vpop.permute.xlu1 %2311  ;;  %v2523_v28 = vpop.permute.xlu0 %2522 }
0x13a0   :  { %v2317_v49 = vsel %vm104_vm1, %v2312_v46, %v2315_v45 }
0x13a1   :  { %8528 = vmatmul.mubr.msk.f32.vlgmr.msra.gmra.mrb[24].mxu1 %vm638_vm3, %v2317_v49 }
0x13a2   :  { %9612 = vmatpush3.bf16.msra.mxu1 %v10867_v5  ;;  %8557 = vmatprep.mubr.msk.f32.mxu1 %vm10579_vm2, %v10580_v26 }
0x13a3   :  { %9613 = vmatprep.subr.bf16.mxu1 %v10578_v14 }
0x13a6   :  { %9615 = vmatpush3.bf16.msra.mxu1 %v10878_v8 }
0x13a7   :  { %9616 = vmatprep.subr.bf16.mxu1 %v10578_v14  ;;  %v2520_v42 = vpop.permute.xlu1 %2519 }
0x13a8   :  { %v2525_v52 = vsel %vm104_vm1, %v2520_v42, %v2523_v28 }
0x13aa   :  { %9618 = vmatpush3.bf16.msra.mxu1 %v10896_v15 }
0x13ab   :  { %9619 = vmatprep.subr.bf16.mxu1 %v10578_v14 }
0x13ae   :  { %9621 = vmatpush3.bf16.msra.mxu1 %v10913_v21 }
0x13af   :  { %9634 = vmatprep.subr.bf16.mxu1 %v10578_v14 }
0x13b1   :  { %8558 = vmatmul.mubr.msk.f32.vlgmr.msra.gmra.mrb[26].mxu1 %vm638_vm3, %v2525_v52 }
0x13b2   :  { %9636 = vmatpush3.bf16.msra.mxu1 %v10749_v9  ;;  %8587 = vmatprep.mubr.msk.f32.mxu1 %vm10579_vm2, %v10580_v26 }
0x13b3   :  { %9637 = vmatprep.subr.bf16.mxu1 %v10578_v14 }
0x13b6   :  { %9639 = vmatpush3.bf16.msra.mxu1 %v10777_v20  ;;  %v11390_v20 = vld [vmem:[%s12704_s12] ss:$0 sm:$0xff] }
0x13b7   :  { %9652 = vmatprep.subr.bf16.mxu1 %v10578_v14 }
0x13b9   :  { %8588 = vmatmul.mubr.msk.f32.vlgmr.msra.gmra.mrb[28].mxu1 %vm104_vm1, %v2520_v42 }
0x13ba   :  { %9654 = vmatpush3.bf16.msra.mxu1 %v10983_v19  ;;  %8625 = vmatprep.mubr.msk.f32.mxu1 %vm10579_vm2, %v10580_v26 }
0x13bb   :  { %9655 = vmatprep.subr.bf16.mxu1 %v10578_v14 }
0x13be   :  { %9657 = vmatpush3.bf16.msra.mxu1 %v10990_v22 }
0x13bf   :  { %9658 = vmatprep.subr.bf16.mxu1 %v10578_v14 }
0x13c2   :  { %9660 = vmatpush3.bf16.msra.mxu1 %v11000_v37 }
0x13c3   :  { %9661 = vmatprep.subr.bf16.mxu1 %v10578_v14 }
0x13c6   :  { %9663 = vmatpush3.bf16.msra.mxu1 %v11014_v48  ;;  %v231_v48 = vadd.f32 %v11257_v36, %v10928_v29 }
0x13c7   :  { %9676 = vmatprep.subr.bf16.mxu1 %v10578_v14 }
0x1474   :  { %v2387_v9 = vpop.f32.mrb[24].mxu1 }
0x1475   :  { %v2388_v19 = vadd.f32 %v11390_v20, %v2387_v9  ;;  %v8529_v32 = vpop.f32.mrb[25].mxu1 }
0x1477   :  { %10294 = vtanh.f32 %v2388_v19  ;;  %v7541_v12 = vmul.f32 -1.442695, %v2388_v19 }
0x1481   :  { %v10295_v22 = vpop.eup %10294 }
0x1482   :  { %2400 = vrot.lane.b32.xlu1 %v10295_v22, %s12758_s14 }
0x1484   :  { %v2595_v37 = vpop.f32.mrb[26].mxu1 }
0x1485   :  { %v2596_v54 = vadd.f32 %v11324_v18, %v2595_v37  ;;  %v8559_v55 = vpop.f32.mrb[27].mxu1 }
0x1487   :  { %10296 = vtanh.f32 %v2596_v54  ;;  %v7545_v1 = vmul.f32 -1.442695, %v2596_v54 }
0x148c   :  { %v2802_v24 = vpop.f32.mrb[28].mxu1 }
0x148d   :  { %v2806_v4 = vadd.f32 %v2802_v24, %v231_v48  ;;  %v8589_v57 = vpop.f32.mrb[29].mxu1 }
0x148f   :  { %10298 = vtanh.f32 %v2806_v4  ;;  %v7549_v2 = vmul.f32 -1.442695, %v2806_v4 }
0x1490   :  { %10300 = vpow2.f32 %v7541_v12  ;;  %v420_v12 = vld [vmem:[%s12706_s15 + $0x18] sm:$0xff] }
0x1491   :  { %v10297_v59 = vpop.eup %10296  ;;  %10302 = vpow2.f32 %v7545_v1  ;;  %v421_v1 = vld [vmem:[%s12706_s15 + $0x20] sm:$0xff] }
0x1492   :  { %2608 = vrot.lane.b32.xlu0 %v10297_v59, %s12758_s14  ;;  %v418_v59 = vld [vmem:[%s12706_s15 + $0x8] sm:$0xff] }
0x1499   :  { %v10299_v61 = vpop.eup %10298 }
0x149a   :  { %2816 = vrot.lane.b32.xlu1 %v10299_v61, %s12758_s14  ;;  %v10301_v63 = vpop.eup %10300 }
0x149b   :  { %v2394_v40 = vadd.f32 1.0, %v10301_v63  ;;  %v10303_v29 = vpop.eup %10302 }
0x149c   :  { %v2602_v27 = vadd.f32 1.0, %v10303_v29  ;;  %v423_v29 = vld [vmem:[%s12706_s15 + $0x30] sm:$0xff] }
0x149d   :  { %10304 = vrcp.f32 %v2394_v40  ;;  %v422_v40 = vld [vmem:[%s12706_s15 + $0x28] sm:$0xff] }
0x149e   :  { %10306 = vpow2.f32 %v7549_v2  ;;  %v11475_v2 = vpack.c.bf16 %v422_v40, %v421_v1 }
0x149f   :  { %10308 = vrcp.f32 %v2602_v27 }
0x14a7   :  { %v10305_v36 = vpop.eup %10304 }
0x14a8   :  { %v10307_v13 = vpop.eup %10306  ;;  %v2398_v34 = vmul.f32 %v10305_v36, %v11335_v10 }
0x14a9   :  { %v2810_v16 = vadd.f32 1.0, %v10307_v13  ;;  %v10309_v17 = vpop.eup %10308 }
0x14aa   :  { %v2606_v46 = vmul.f32 %v10309_v17, %v11340_v43 }
0x14ab   :  { %10310 = vrcp.f32 %v2810_v16 }
0x14b5   :  { %v10311_v53 = vpop.eup %10310 }
0x14b6   :  { %v2814_v28 = vmul.f32 %v10311_v53, %v11344_v62  ;;  %v516_v62 = vld [vmem:[%s12705_s4] sm:$0xff] }
0x14f4   :  { %v2401_v3 = vpop.permute.xlu1 %2400 }
0x14f5   :  { %v2403_v6 = vmul.f32 %v10305_v36, %v2401_v3 }
0x14f7   :  { %2405 = vrot.lane.b32.xlu0 %v2403_v6, %s12758_s14 }
0x1504   :  { %v2609_v25 = vpop.permute.xlu0 %2608 }
0x1505   :  { %v2611_v51 = vmul.f32 %v10309_v17, %v2609_v25 }
0x1507   :  { %2613 = vrot.lane.b32.xlu1 %v2611_v51, %s12758_s14 }
0x150c   :  { %v2817_v23 = vpop.permute.xlu1 %2816 }
0x150d   :  { %v2819_v58 = vmul.f32 %v10311_v53, %v2817_v23 }
0x150f   :  { %2821 = vrot.lane.b32.xlu0 %v2819_v58, %s12758_s14 }
0x1569   :  { %v2406_v56 = vpop.permute.xlu0 %2405 }
0x156a   :  { %v11403_v38 = vadd.f32 %v2406_v56, %v2398_v34  ;;  %v10569_v56 = vld [vmem:[%s12754_s29] ss:$0 sm:$0xff] }
0x156c   :  { %10312 = vtanh.f32 %v11403_v38 }
0x1576   :  { %v10313_v45 = vpop.eup %10312 }
0x1577   :  { %2411 = vrot.lane.b32.xlu1 %v10313_v45, %s12758_s14  ;;  %v351_v45 = vadd.f32 %v10569_v56, %v10817_v31  ;;  %v7504_v56 = vld [vmem:[%s12707_s5 + $0x8] sm:$0xff] }
0x1579   :  { %v2614_v49 = vpop.permute.xlu1 %2613 }
0x157a   :  { %v11408_v42 = vadd.f32 %v2614_v49, %v2606_v46 }
0x157c   :  { %10314 = vtanh.f32 %v11408_v42 }
0x1581   :  { %v2822_v52 = vpop.permute.xlu0 %2821 }
0x1582   :  { %v11412_v9 = vadd.f32 %v2822_v52, %v2814_v28 }
0x1584   :  { %10316 = vtanh.f32 %v11412_v9 }
0x1586   :  { %v10315_v10 = vpop.eup %10314 }
0x1587   :  { %2619 = vrot.lane.b32.xlu0 %v10315_v10, %s12758_s14 }
0x158e   :  { %v10317_v19 = vpop.eup %10316 }
0x158f   :  { %2827 = vrot.lane.b32.xlu1 %v10317_v19, %s12758_s14 }
0x15e9   :  { %v2412_v32 = vpop.permute.xlu1 %2411 }
0x15ea   :  { %v11417_v43 = vmul.f32 %v10305_v36, %v2412_v32  ;;  %v424_v36 = vld [vmem:[%s12706_s15 + $0x38] sm:$0xff] }
0x15eb   :  { %v11485_v3 = vpack.c.bf16 %v424_v36, %v423_v29 }
0x15ec   :  { %2627 = vrot.lane.b32.xlu1 %v11417_v43, %s10583_s8 }
0x15f9   :  { %v2620_v22 = vpop.permute.xlu0 %2619 }
0x15fa   :  { %v2622_v37 = vmul.f32 %v10309_v17, %v2620_v22 }
0x15fc   :  { %2624 = vrot.lane.b32.xlu0 %v2622_v37, %s10582_s13  ;;  %2835 = vrot.lane.b32.xlu1 %v2622_v37, %s10583_s8 }
0x1600   :  { %3049 = vrot.lane.b32.xlu1 %v516_v62, %s12758_s14 }
0x1601   :  { %v2828_v54 = vpop.permute.xlu1 %2827 }
0x1602   :  { %v2830_v55 = vmul.f32 %v10311_v53, %v2828_v54 }
0x1604   :  { %2832 = vrot.lane.b32.xlu0 %v2830_v55, %s10582_s13  ;;  %v521_v55 = vld [vmem:[%s12707_s5] sm:$0xff] }
0x1608   :  { %851 = vrot.lane.b32.xlu0 %v11087_v11, %s10582_s13 }
0x165e   :  { %v2628_v48 = vpop.permute.xlu1 %2627 }
0x166e   :  { %v2625_v24 = vpop.permute.xlu0 %2624  ;;  %v2836_v61 = vpop.permute.xlu1 %2835 }
0x166f   :  { %v2630_v4 = vsel %vm104_vm1, %v2625_v24, %v2628_v48 }
0x1670   :  { %8577 = vmatmul.mubr.msk.f32.vlgmr.msra.gmra.mrb[28].mxu0 %vm638_vm3, %v2630_v4 }
0x1671   :  { %9642 = vmatpush3.bf16.msra.mxu0 %v10867_v5  ;;  %8606 = vmatprep.mubr.msk.f32.mxu0 %vm10579_vm2, %v10580_v26  ;;  %v417_v5 = vld [vmem:[%s12706_s15] sm:$0xff] }
0x1672   :  { %9643 = vmatprep.subr.bf16.mxu0 %v10578_v14  ;;  %v3050_v27 = vpop.permute.xlu1 %3049 }
0x1675   :  { %9645 = vmatpush3.bf16.msra.mxu0 %v10878_v8  ;;  %v11450_v8 = vpack.c.bf16 %v418_v59, %v417_v5 }
0x1676   :  { %v11437_v57 = vpop.permute.xlu0 %2832  ;;  %9646 = vmatprep.subr.bf16.mxu0 %v10578_v14 }
0x1677   :  { %v2838_v63 = vsel %vm104_vm1, %v11437_v57, %v2836_v61 }
0x1679   :  { %9648 = vmatpush3.bf16.msra.mxu0 %v10896_v15  ;;  %v419_v15 = vld [vmem:[%s12706_s15 + $0x10] sm:$0xff] }
0x167a   :  { %v852_v11 = vpop.permute.xlu0 %851  ;;  %9649 = vmatprep.subr.bf16.mxu0 %v10578_v14 }
0x167b   :  { %854 = vst.msk [vmem:[#allocation4] sm:$0xff] %vm104_vm1, %v852_v11 }
0x167d   :  { %9651 = vmatpush3.bf16.msra.mxu0 %v10913_v21  ;;  %v11463_v21 = vpack.c.bf16 %v420_v12, %v419_v15 }
0x167e   :  { %9664 = vmatprep.subr.bf16.mxu0 %v10578_v14 }
0x1680   :  { %8607 = vmatmul.mubr.msk.f32.vlgmr.msra.gmra.mrb[30].mxu0 %vm638_vm3, %v2838_v63 }
0x1681   :  { %9666 = vmatpush3.bf16.msra.mxu0 %v11450_v8  ;;  %8644 = vmatprep.mubr.msk.f32.mxu0 %vm10579_vm2, %v10580_v26 }
0x1682   :  { %9667 = vmatprep.subr.bf16.mxu0 %v10578_v14  ;;  %v11488_v6 = vld [vmem:[#allocation4] sm:$0xff] }
0x1683   :  { %v3052_v13 = vsel %vm104_vm1, %v11488_v6, %v3050_v27 }
0x1685   :  { %9669 = vmatpush3.bf16.msra.mxu0 %v11463_v21 }
0x1686   :  { %9670 = vmatprep.subr.bf16.mxu0 %v10578_v14 }
0x1689   :  { %9672 = vmatpush3.bf16.msra.mxu0 %v11475_v2 }
0x168a   :  { %9673 = vmatprep.subr.bf16.mxu0 %v10578_v14 }
0x168d   :  { %9675 = vmatpush3.bf16.msra.mxu0 %v11485_v3 }
0x168e   :  { %9688 = vmatprep.subr.bf16.mxu0 %v10578_v14 }
0x1690   :  { %8645 = vmatmul.mubr.msk.f32.vlgmr.msra.gmra.mrb[32].mxu0 %vm638_vm3, %v3052_v13 }
0x1691   :  { %8682 = vmatprep.mubr.msk.f32.mxu0 %vm10579_vm2, %v10580_v26 }
0x1743   :  { %v2700_v16 = vpop.f32.mrb[28].mxu0 }
0x1744   :  { %v2701_v17 = vadd.f32 %v11390_v20, %v2700_v16  ;;  %v8578_v25 = vpop.f32.mrb[29].mxu0 }
0x1746   :  { %10318 = vtanh.f32 %v2701_v17  ;;  %v7547_v52 = vmul.f32 -1.442695, %v2701_v17 }
0x1750   :  { %v10319_v51 = vpop.eup %10318 }
0x1751   :  { %2713 = vrot.lane.b32.xlu0 %v10319_v51, %s12758_s14 }
0x1753   :  { %v2908_v53 = vpop.f32.mrb[30].mxu0 }
0x1754   :  { %v2909_v23 = vadd.f32 %v11324_v18, %v2908_v53  ;;  %v8608_v58 = vpop.f32.mrb[31].mxu0 }
0x1756   :  { %10320 = vtanh.f32 %v2909_v23  ;;  %v7551_v10 = vmul.f32 -1.442695, %v2909_v23  ;;  %v7502_v23 = vld [vmem:[%s12705_s4 + $0x8] sm:$0xff] }
0x1760   :  { %v10321_v34 = vpop.eup %10320 }
0x1761   :  { %2921 = vrot.lane.b32.xlu1 %v10321_v34, %s12758_s14 }
0x1763   :  { %v3122_v20 = vpop.f32.mrb[32].mxu0 }
0x1764   :  { %v3126_v46 = vadd.f32 %v3122_v20, %v351_v45  ;;  %v8646_v49 = vpop.f32.mrb[33].mxu0 }
0x1765   :  { %v426_v49 = vld [vmem:[%s12708_s16 + $0x8] sm:$0xff] }
0x1766   :  { %10322 = vtanh.f32 %v3126_v46  ;;  %v7555_v62 = vmul.f32 -1.442695, %v3126_v46  ;;  %v425_v46 = vld [vmem:[%s12708_s16] sm:$0xff] }
0x1767   :  { %10324 = vpow2.f32 %v7547_v52 }
0x1768   :  { %10326 = vpow2.f32 %v7551_v10  ;;  %v427_v10 = vld [vmem:[%s12708_s16 + $0x10] sm:$0xff] }
0x1770   :  { %v10323_v28 = vpop.eup %10322 }
0x1771   :  { %3140 = vrot.lane.b32.xlu0 %v10323_v28, %s12758_s14  ;;  %v10325_v18 = vpop.eup %10324  ;;  %v11550_v28 = vpack.c.bf16 %v426_v49, %v425_v46  ;;  %v436_v49 = vld [vmem:[%s12710_s18 + $0x18] sm:$0xff] }
0x1772   :  { %v2707_v19 = vadd.f32 1.0, %v10325_v18  ;;  %v10327_v32 = vpop.eup %10326 }
0x1773   :  { %v2915_v31 = vadd.f32 1.0, %v10327_v32 }
0x1774   :  { %10328 = vrcp.f32 %v2707_v19  ;;  %v428_v19 = vld [vmem:[%s12708_s16 + $0x18] sm:$0xff] }
0x1775   :  { %10330 = vpow2.f32 %v7555_v62  ;;  %v430_v62 = vld [vmem:[%s12708_s16 + $0x28] sm:$0xff] }
0x1776   :  { %10332 = vrcp.f32 %v2915_v31  ;;  %v431_v31 = vld [vmem:[%s12708_s16 + $0x30] sm:$0xff] }
0x177e   :  { %v10329_v22 = vpop.eup %10328 }
0x177f   :  { %v10331_v48 = vpop.eup %10330  ;;  %v2711_v12 = vmul.f32 %v10329_v22, %v11403_v38 }
0x1780   :  { %v10333_v24 = vpop.eup %10332  ;;  %v3130_v5 = vadd.f32 1.0, %v10331_v48 }
0x1781   :  { %v2919_v29 = vmul.f32 %v10333_v24, %v11408_v42 }
0x1782   :  { %10334 = vrcp.f32 %v3130_v5 }
0x178c   :  { %v10335_v59 = vpop.eup %10334 }
0x17c3   :  { %v2714_v37 = vpop.permute.xlu0 %2713 }
0x17c4   :  { %v2716_v54 = vmul.f32 %v10329_v22, %v2714_v37  ;;  %v429_v37 = vld [vmem:[%s12708_s16 + $0x20] sm:$0xff] }
0x17c6   :  { %2718 = vrot.lane.b32.xlu1 %v2716_v54, %s12758_s14  ;;  %v11576_v54 = vpack.c.bf16 %v430_v62, %v429_v37  ;;  %v439_v37 = vld [vmem:[%s12710_s18 + $0x30] sm:$0xff]  ;;  %v440_v62 = vld [vmem:[%s12710_s18 + $0x38] sm:$0xff] }
0x17ca   :  { %3135 = vrot.lane.b32.xlu1 %v521_v55, %s12758_s14  ;;  %v432_v55 = vld [vmem:[%s12708_s16 + $0x38] sm:$0xff] }
0x17cb   :  { %v11586_v48 = vpack.c.bf16 %v432_v55, %v431_v31  ;;  %v7503_v55 = vld [vmem:[%s12705_s4 + $0x10] sm:$0xff] }
0x17d3   :  { %v2922_v4 = vpop.permute.xlu1 %2921 }
0x17d4   :  { %v2924_v11 = vmul.f32 %v10333_v24, %v2922_v4 }
0x17d6   :  { %2926 = vrot.lane.b32.xlu0 %v2924_v11, %s12758_s14 }
0x17e3   :  { %v3141_v61 = vpop.permute.xlu0 %3140 }
0x17e4   :  { %v3143_v15 = vmul.f32 %v10335_v59, %v3141_v61  ;;  %v11600_v61 = vld [vmem:[%s12709_s17] ss:$0 sm:$0xff] }
0x17e6   :  { %3145 = vrot.lane.b32.xlu0 %v3143_v15, %s12758_s14 }
0x1838   :  { %v2719_v63 = vpop.permute.xlu1 %2718 }
0x1839   :  { %v11514_v1 = vadd.f32 %v2719_v63, %v2711_v12 }
0x183b   :  { %10336 = vtanh.f32 %v11514_v1 }
0x183c   :  { %v3136_v13 = vpop.permute.xlu1 %3135 }
0x183d   :  { %v3138_v38 = vmul.f32 %v10335_v59, %v3136_v13 }
0x1845   :  { %v10337_v40 = vpop.eup %10336 }
0x1846   :  { %2724 = vrot.lane.b32.xlu1 %v10337_v40, %s12758_s14 }
0x1848   :  { %v2927_v36 = vpop.permute.xlu0 %2926 }
0x1849   :  { %v11519_v27 = vadd.f32 %v2927_v36, %v2919_v29 }
0x184b   :  { %10338 = vtanh.f32 %v11519_v27 }
0x1855   :  { %v10339_v16 = vpop.eup %10338 }
0x1856   :  { %2932 = vrot.lane.b32.xlu0 %v10339_v16, %s12758_s14 }
0x1858   :  { %v3146_v17 = vpop.permute.xlu0 %3145 }
0x1859   :  { %v11523_v25 = vadd.f32 %v3146_v17, %v3138_v38 }
0x185b   :  { %10340 = vtanh.f32 %v11523_v25 }
0x1865   :  { %v10341_v51 = vpop.eup %10340 }
0x1866   :  { %3151 = vrot.lane.b32.xlu1 %v10341_v51, %s12758_s14 }
0x18b8   :  { %v2725_v53 = vpop.permute.xlu1 %2724 }
0x18b9   :  { %v11527_v42 = vmul.f32 %v10329_v22, %v2725_v53  ;;  %v11564_v22 = vpack.c.bf16 %v428_v19, %v427_v10  ;;  %v437_v10 = vld [vmem:[%s12710_s18 + $0x20] sm:$0xff]  ;;  %v438_v19 = vld [vmem:[%s12710_s18 + $0x28] sm:$0xff] }
0x18bb   :  { %2940 = vrot.lane.b32.xlu1 %v11527_v42, %s10583_s8 }
0x18bf   :  { %3160 = vrot.lane.b32.xlu1 %v7502_v23, %s12758_s14 }
0x18c3   :  { %3245 = vrot.lane.b32.xlu1 %v7504_v56, %s12758_s14  ;;  %v434_v56 = vld [vmem:[%s12710_s18 + $0x8] sm:$0xff] }
0x18c8   :  { %v2933_v58 = vpop.permute.xlu0 %2932 }
0x18c9   :  { %v2935_v34 = vmul.f32 %v10333_v24, %v2933_v58 }
0x18cb   :  { %2937 = vrot.lane.b32.xlu0 %v2935_v34, %s10582_s13  ;;  %v433_v34 = vld [vmem:[%s12710_s18] sm:$0xff] }
0x18cc   :  { %v11617_v46 = vpack.c.bf16 %v434_v56, %v433_v34 }
0x18ce   :  { %9690 = vmatpush3.bf16.msra.mxu0 %v11617_v46 }
0x18cf   :  { %9691 = vmatprep.subr.bf16.mxu0 %v10578_v14 }
0x18d8   :  { %v3152_v45 = vpop.permute.xlu1 %3151 }
0x18d9   :  { %v11540_v20 = vmul.f32 %v10335_v59, %v3152_v45  ;;  %v435_v45 = vld [vmem:[%s12710_s18 + $0x10] sm:$0xff] }
0x18db   :  { %3156 = vrot.lane.b32.xlu0 %v11540_v20, %s10582_s13 }
0x192d   :  { %v2941_v52 = vpop.permute.xlu1 %2940 }
0x1931   :  { %v3161_v24 = vpop.permute.xlu1 %3160 }
0x1935   :  { %v3246_v51 = vpop.permute.xlu1 %3245 }
0x193d   :  { %v11552_v18 = vpop.permute.xlu0 %2937 }
0x193e   :  { %v2943_v32 = vsel %vm104_vm1, %v11552_v18, %v2941_v52  ;;  %v11623_v52 = vpack.c.bf16 %v436_v49, %v435_v45 }
0x193f   :  { %8626 = vmatmul.mubr.msk.f32.vlgmr.msra.gmra.mrb[30].mxu1 %vm638_vm3, %v2943_v32  ;;  %v11633_v32 = vpack.c.bf16 %v438_v19, %v437_v10  ;;  %v441_v19 = vld [vmem:[%s12712_s20] sm:$0xff] }
0x1940   :  { %9678 = vmatpush3.bf16.msra.mxu1 %v11550_v28  ;;  %8663 = vmatprep.mubr.msk.f32.mxu1 %vm10579_vm2, %v10580_v26 }
0x1941   :  { %9679 = vmatprep.subr.bf16.mxu1 %v10578_v14  ;;  %9693 = vmatpush3.bf16.msra.mxu0 %v11623_v52 }
0x1942   :  { %9694 = vmatprep.subr.bf16.mxu0 %v10578_v14 }
0x1944   :  { %9681 = vmatpush3.bf16.msra.mxu1 %v11564_v22 }
0x1945   :  { %9682 = vmatprep.subr.bf16.mxu1 %v10578_v14  ;;  %9696 = vmatpush3.bf16.msra.mxu0 %v11633_v32 }
0x1946   :  { %9697 = vmatprep.subr.bf16.mxu0 %v10578_v14 }
0x1948   :  { %9684 = vmatpush3.bf16.msra.mxu1 %v11576_v54 }
0x1949   :  { %9685 = vmatprep.subr.bf16.mxu1 %v10578_v14 }
0x194c   :  { %9687 = vmatpush3.bf16.msra.mxu1 %v11586_v48 }
0x194d   :  { %v3157_v4 = vpop.permute.xlu0 %3156  ;;  %9700 = vmatprep.subr.bf16.mxu1 %v10578_v14 }
0x194e   :  { %v3163_v11 = vsel %vm104_vm1, %v3157_v4, %v3161_v24  ;;  %v11647_v24 = vpack.c.bf16 %v440_v62, %v439_v37  ;;  %v7505_v4 = vld [vmem:[%s12707_s5 + $0x10] sm:$0xff]  ;;  %v442_v37 = vld [vmem:[%s12712_s20 + $0x8] sm:$0xff] }
0x194f   :  { %8664 = vmatmul.mubr.msk.f32.vlgmr.msra.gmra.mrb[32].mxu1 %vm638_vm3, %v3163_v11  ;;  %v443_v62 = vld [vmem:[%s12712_s20 + $0x10] sm:$0xff] }
0x1950   :  { %8701 = vmatprep.mubr.msk.f32.mxu1 %vm10579_vm2, %v10580_v26  ;;  %9699 = vmatpush3.bf16.msra.mxu0 %v11647_v24 }
0x1951   :  { %9712 = vmatprep.subr.bf16.mxu0 %v10578_v14 }
0x1a12   :  { %v11595_v5 = vpop.f32.mrb[30].mxu1 }
0x1a13   :  { %v8627_v59 = vpop.f32.mrb[31].mxu1 }
0x1a22   :  { %v3233_v15 = vpop.f32.mrb[32].mxu1 }
0x1a23   :  { %v3234_v12 = vadd.f32 %v11600_v61, %v3233_v15  ;;  %v8665_v63 = vpop.f32.mrb[33].mxu1 }
0x1a25   :  { %10342 = vtanh.f32 %v3234_v12  ;;  %v7557_v29 = vmul.f32 -1.442695, %v3234_v12 }
0x1a27   :  { %10344 = vpow2.f32 %v7557_v29 }
0x1a2f   :  { %v10343_v40 = vpop.eup %10342 }
0x1a30   :  { %3250 = vrot.lane.b32.xlu0 %v10343_v40, %s12758_s14  ;;  %v11668_v40 = vld [vmem:[%s12711_s19] ss:$0 sm:$0xff] }
0x1a31   :  { %v10345_v36 = vpop.eup %10344 }
0x1a32   :  { %v3240_v13 = vadd.f32 1.0, %v10345_v36 }
0x1a34   :  { %10346 = vrcp.f32 %v3240_v13 }
0x1a3e   :  { %v10347_v16 = vpop.eup %10346 }
0x1a3f   :  { %v3248_v53 = vmul.f32 %v10347_v16, %v3246_v51 }
0x1aa2   :  { %v3251_v38 = vpop.permute.xlu0 %3250 }
0x1aa3   :  { %v3253_v17 = vmul.f32 %v10347_v16, %v3251_v38 }
0x1aa5   :  { %3255 = vrot.lane.b32.xlu0 %v3253_v17, %s12758_s14 }
0x1b17   :  { %v3256_v23 = vpop.permute.xlu0 %3255 }
0x1b18   :  { %v11605_v58 = vadd.f32 %v3256_v23, %v3248_v53 }
0x1b1a   :  { %10348 = vtanh.f32 %v11605_v58 }
0x1b24   :  { %v10349_v31 = vpop.eup %10348 }
0x1b25   :  { %3261 = vrot.lane.b32.xlu1 %v10349_v31, %s12758_s14  ;;  %v11685_v31 = vpack.c.bf16 %v442_v37, %v441_v19  ;;  %v11764_v37 = vld [vmem:[%s12715_s21] ss:$0 sm:$0xff] }
0x1b27   :  { %9702 = vmatpush3.bf16.msra.mxu1 %v11685_v31 }
0x1b28   :  { %9703 = vmatprep.subr.bf16.mxu1 %v10578_v14 }
0x1b29   :  { %3270 = vrot.lane.b32.xlu1 %v7503_v55, %s12758_s14  ;;  %v444_v55 = vld [vmem:[%s12712_s20 + $0x18] sm:$0xff] }
0x1b2d   :  { %3355 = vrot.lane.b32.xlu1 %v7505_v4, %s12758_s14  ;;  %v11691_v4 = vpack.c.bf16 %v444_v55, %v443_v62 }
0x1b2f   :  { %9705 = vmatpush3.bf16.msra.mxu1 %v11691_v4 }
0x1b30   :  { %9706 = vmatprep.subr.bf16.mxu1 %v10578_v14 }
0x1b97   :  { %v3262_v11 = vpop.permute.xlu1 %3261 }
0x1b98   :  { %v11657_v59 = vmul.f32 %v10347_v16, %v3262_v11  ;;  %v445_v11 = vld [vmem:[%s12712_s20 + $0x20] sm:$0xff] }
0x1b9a   :  { %3266 = vrot.lane.b32.xlu0 %v11657_v59, %s10582_s13 }
0x1b9b   :  { %v3271_v15 = vpop.permute.xlu1 %3270 }
0x1b9f   :  { %v3356_v56 = vpop.permute.xlu1 %3355 }
0x1c0c   :  { %v3267_v12 = vpop.permute.xlu0 %3266 }
0x1c0d   :  { %v3273_v63 = vsel %vm104_vm1, %v3267_v12, %v3271_v15  ;;  %v446_v15 = vld [vmem:[%s12712_s20 + $0x28] sm:$0xff] }
0x1c0e   :  { %8683 = vmatmul.mubr.msk.f32.vlgmr.msra.gmra.mrb[34].mxu0 %vm638_vm3, %v3273_v63  ;;  %v11702_v63 = vpack.c.bf16 %v446_v15, %v445_v11 }
0x1c0f   :  { %8712 = vmatprep.mubr.msk.f32.mxu0 %vm10579_vm2, %v10580_v26 }
0x1c10   :  { %9708 = vmatpush3.bf16.msra.mxu1 %v11702_v63 }
0x1c11   :  { %9709 = vmatprep.subr.bf16.mxu1 %v10578_v14 }
0x1ce1   :  { %v3343_v29 = vpop.f32.mrb[34].mxu0 }
0x1ce2   :  { %v3344_v36 = vadd.f32 %v11668_v40, %v3343_v29  ;;  %v8684_v13 = vpop.f32.mrb[35].mxu0  ;;  %v447_v29 = vld [vmem:[%s12712_s20 + $0x30] sm:$0xff] }
0x1ce4   :  { %10350 = vtanh.f32 %v3344_v36  ;;  %v7559_v38 = vmul.f32 -1.442695, %v3344_v36  ;;  %v448_v36 = vld [vmem:[%s12712_s20 + $0x38] sm:$0xff] }
0x1ce5   :  { %v11714_v13 = vpack.c.bf16 %v448_v36, %v447_v29 }
0x1ce6   :  { %10352 = vpow2.f32 %v7559_v38  ;;  %v450_v38 = vld [vmem:[%s12713_s22 + $0x8] sm:$0xff] }
0x1ce7   :  { %9711 = vmatpush3.bf16.msra.mxu1 %v11714_v13 }
0x1ce8   :  { %9718 = vmatprep.subr.bf16.mxu1 %v10578_v14 }
0x1cee   :  { %v10351_v16 = vpop.eup %10350 }
0x1cef   :  { %3360 = vrot.lane.b32.xlu0 %v10351_v16, %s12758_s14  ;;  %v449_v16 = vld [vmem:[%s12713_s22] sm:$0xff] }
0x1cf0   :  { %v10353_v17 = vpop.eup %10352 }
0x1cf1   :  { %v3350_v51 = vadd.f32 1.0, %v10353_v17  ;;  %v11725_v17 = vpack.c.bf16 %v450_v38, %v449_v16  ;;  %v455_v16 = vld [vmem:[%s12714_s24 + $0x10] sm:$0xff]  ;;  %v456_v38 = vld [vmem:[%s12714_s24 + $0x18] sm:$0xff] }
0x1cf3   :  { %10354 = vrcp.f32 %v3350_v51  ;;  %9714 = vmatpush3.bf16.msra.mxu0 %v11725_v17 }
0x1cf4   :  { %9715 = vmatprep.subr.bf16.mxu0 %v10578_v14 }
0x1cfd   :  { %v10355_v53 = vpop.eup %10354 }
0x1cfe   :  { %v3358_v45 = vmul.f32 %v10355_v53, %v3356_v56 }
0x1d61   :  { %v3361_v23 = vpop.permute.xlu0 %3360 }
0x1d62   :  { %v3363_v34 = vmul.f32 %v10355_v53, %v3361_v23 }
0x1d64   :  { %3365 = vrot.lane.b32.xlu0 %v3363_v34, %s12758_s14 }
0x1dd6   :  { %v3366_v49 = vpop.permute.xlu0 %3365 }
0x1dd7   :  { %v11673_v10 = vadd.f32 %v3366_v49, %v3358_v45  ;;  %v452_v45 = vld [vmem:[%s12713_s22 + $0x18] sm:$0xff]  ;;  %v454_v49 = vld [vmem:[%s12714_s24 + $0x8] sm:$0xff] }
0x1dd9   :  { %10356 = vtanh.f32 %v11673_v10 }
0x1de3   :  { %v10357_v12 = vpop.eup %10356 }
0x1de4   :  { %3371 = vrot.lane.b32.xlu1 %v10357_v12, %s12758_s14 }
0x1de8   :  { %1164 = vrot.lane.b32.xlu1 %v11150_v0, %s10582_s13 }
0x1e56   :  { %v3372_v0 = vpop.permute.xlu1 %3371 }
0x1e57   :  { %v3374_v51 = vmul.f32 %v10355_v53, %v3372_v0  ;;  %v451_v53 = vld [vmem:[%s12713_s22 + $0x10] sm:$0xff]  ;;  %v11799_v0 = vpack.c.bf16 %v456_v38, %v455_v16 }
0x1e59   :  { %3376 = vrot.lane.b32.xlu0 %v3374_v51, %s10583_s8  ;;  %v11806_v51 = vld [vmem:[%s12716_s23] ss:$0 sm:$0xff] }
0x1e5a   :  { %v1165_v23 = vpop.permute.xlu1 %1164 }
0x1e5b   :  { %1167 = vst.msk [vmem:[#allocation4 + $0x8] sm:$0xff] %vm104_vm1, %v1165_v23 }
0x1e5d   :  { %3613 = vrot.lane.b32.xlu0 %v11540_v20, %s10583_s8  ;;  %v11747_v20 = vpack.c.bf16 %v452_v45, %v451_v53 }
0x1e5f   :  { %9717 = vmatpush3.bf16.msra.mxu0 %v11747_v20 }
0x1e60   :  { %9724 = vmatprep.subr.bf16.mxu0 %v10578_v14 }
0x1e62   :  { %v11777_v29 = vld [vmem:[#allocation4 + $0x8] sm:$0xff] }
0x1ecb   :  { %v11733_v34 = vpop.permute.xlu0 %3376 }
0x1ecc   :  { %v3379_v56 = vsel %vm104_vm1, %v11488_v6, %v11733_v34  ;;  %v453_v6 = vld [vmem:[%s12714_s24] sm:$0xff]  ;;  %s12761_s24 = sld [smem:[#allocation17_spill]] }
0x1ecd   :  { %8702 = vmatmul.mubr.msk.f32.vlgmr.msra.gmra.mrb[34].mxu1 %vm638_vm3, %v3379_v56  ;;  %v11757_v19 = vpack.c.bf16 %v454_v49, %v453_v6 }
0x1ece   :  { %8723 = vmatprep.mubr.msk.f32.mxu1 %vm10579_vm2, %v10580_v26 }
0x1ecf   :  { %9720 = vmatpush3.bf16.msra.mxu1 %v11757_v19  ;;  %v3614_v12 = vpop.permute.xlu0 %3613 }
0x1ed0   :  { %9721 = vmatprep.subr.bf16.mxu1 %v10578_v14  ;;  %v3616_v36 = vsel %vm104_vm1, %v11777_v29, %v3614_v12 }
0x1ed3   :  { %9723 = vmatpush3.bf16.msra.mxu1 %v11799_v0 }
0x1ed4   :  { %9736 = vmatprep.subr.bf16.mxu1 %v10578_v14 }
0x1fa0   :  { %v3449_v62 = vpop.f32.mrb[34].mxu1 }
0x1fa1   :  { %v3450_v55 = vadd.f32 %v11764_v37, %v3449_v62  ;;  %v8703_v11 = vpop.f32.mrb[35].mxu1 }
0x1fa3   :  { %v3453_v15 = vmax.f32 %v3450_v55, 0.0 }
0x1fa5   :  { %8713 = vmatmul.mubr.msk.f32.vlgmr.msra.gmra.mrb[36].mxu0 %vm104_vm1, %v3453_v15 }
0x1fa6   :  { %9726 = vmatpush3.bf16.msra.mxu0 %v11450_v8  ;;  %8742 = vmatprep.mubr.msk.f32.mxu0 %vm10579_vm2, %v10580_v26 }
0x1fa7   :  { %9727 = vmatprep.subr.bf16.mxu0 %v10578_v14 }
0x1faa   :  { %9729 = vmatpush3.bf16.msra.mxu0 %v11463_v21 }
0x1fab   :  { %9730 = vmatprep.subr.bf16.mxu0 %v10578_v14 }
0x1fae   :  { %9732 = vmatpush3.bf16.msra.mxu0 %v11475_v2 }
0x1faf   :  { %9733 = vmatprep.subr.bf16.mxu0 %v10578_v14 }
0x1fb2   :  { %9735 = vmatpush3.bf16.msra.mxu0 %v11485_v3 }
0x1fb3   :  { %9748 = vmatprep.subr.bf16.mxu0 %v10578_v14 }
0x1fb5   :  { %8743 = vmatmul.mubr.msk.f32.vlgmr.msra.gmra.mrb[38].mxu0 %vm638_vm3, %v3616_v36 }
0x1fb6   :  { %9750 = vmatpush3.bf16.msra.mxu0 %v11617_v46  ;;  %8780 = vmatprep.mubr.msk.f32.mxu0 %vm10579_vm2, %v10580_v26 }
0x1fb7   :  { %9751 = vmatprep.subr.bf16.mxu0 %v10578_v14 }
0x1fba   :  { %9753 = vmatpush3.bf16.msra.mxu0 %v11623_v52 }
0x1fbb   :  { %9754 = vmatprep.subr.bf16.mxu0 %v10578_v14 }
0x1fbe   :  { %9756 = vmatpush3.bf16.msra.mxu0 %v11633_v32 }
0x1fbf   :  { %9757 = vmatprep.subr.bf16.mxu0 %v10578_v14 }
0x1fc2   :  { %9759 = vmatpush3.bf16.msra.mxu0 %v11647_v24 }
0x1fc3   :  { %9772 = vmatprep.subr.bf16.mxu0 %v10578_v14 }
0x2078   :  { %v3523_v23 = vpop.f32.mrb[36].mxu0 }
0x2079   :  { %v3524_v56 = vadd.f32 %v11806_v51, %v3523_v23  ;;  %v8714_v53 = vpop.f32.mrb[37].mxu0 }
0x207b   :  { %v3527_v45 = vmax.f32 %v3524_v56, 0.0 }
0x207d   :  { %8724 = vmatmul.mubr.msk.f32.vlgmr.msra.gmra.mrb[36].mxu1 %vm104_vm1, %v3527_v45 }
0x207e   :  { %9738 = vmatpush3.bf16.msra.mxu1 %v11550_v28  ;;  %8761 = vmatprep.mubr.msk.f32.mxu1 %vm10579_vm2, %v10580_v26 }
0x207f   :  { %9739 = vmatprep.subr.bf16.mxu1 %v10578_v14 }
0x2082   :  { %9741 = vmatpush3.bf16.msra.mxu1 %v11564_v22 }
0x2083   :  { %9742 = vmatprep.subr.bf16.mxu1 %v10578_v14 }
0x2086   :  { %9744 = vmatpush3.bf16.msra.mxu1 %v11576_v54 }
0x2087   :  { %9745 = vmatprep.subr.bf16.mxu1 %v10578_v14 }
0x2088   :  { %v3686_v6 = vpop.f32.mrb[38].mxu0 }
0x2089   :  { %v3690_v49 = vadd.f32 %v3686_v6, %v10815_v30  ;;  %v8744_v62 = vpop.f32.mrb[39].mxu0 }
0x208a   :  { %9747 = vmatpush3.bf16.msra.mxu1 %v11586_v48 }
0x208b   :  { %10358 = vtanh.f32 %v3690_v49  ;;  %9760 = vmatprep.subr.bf16.mxu1 %v10578_v14  ;;  %v7564_v11 = vmul.f32 -1.442695, %v3690_v49 }
0x208d   :  { %10360 = vpow2.f32 %v7564_v11 }
0x2095   :  { %v10359_v55 = vpop.eup %10358 }
0x2096   :  { %3700 = vrot.lane.b32.xlu1 %v10359_v55, %s12758_s14 }
0x2097   :  { %v10361_v15 = vpop.eup %10360 }
0x2098   :  { %v3694_v12 = vadd.f32 1.0, %v10361_v15 }
0x209a   :  { %10362 = vrcp.f32 %v3694_v12 }
0x20a4   :  { %v10363_v36 = vpop.eup %10362 }
0x20a5   :  { %v3698_v56 = vmul.f32 %v10363_v36, %v11523_v25 }
0x2108   :  { %v3701_v16 = vpop.permute.xlu1 %3700 }
0x2109   :  { %v3703_v38 = vmul.f32 %v10363_v36, %v3701_v16 }
0x210b   :  { %3705 = vrot.lane.b32.xlu0 %v3703_v38, %s12758_s14 }
0x2150   :  { %v11823_v30 = vpop.f32.mrb[36].mxu1 }
0x2151   :  { %v8725_v23 = vpop.f32.mrb[37].mxu1 }
0x217d   :  { %v3706_v53 = vpop.permute.xlu0 %3705 }
0x217e   :  { %v11826_v45 = vadd.f32 %v3706_v53, %v3698_v56 }
0x2180   :  { %10364 = vtanh.f32 %v11826_v45 }
0x218a   :  { %v10365_v6 = vpop.eup %10364 }
0x218b   :  { %3711 = vrot.lane.b32.xlu1 %v10365_v6, %s12758_s14 }
0x218f   :  { %3719 = vrot.lane.b32.xlu1 %v11657_v59, %s10583_s8 }
0x21fd   :  { %v3712_v49 = vpop.permute.xlu1 %3711 }
0x21fe   :  { %v11832_v62 = vmul.f32 %v10363_v36, %v3712_v49 }
0x2200   :  { %3716 = vrot.lane.b32.xlu0 %v11832_v62, %s10582_s13 }
0x2201   :  { %v3720_v55 = vpop.permute.xlu1 %3719 }
0x2272   :  { %v3717_v11 = vpop.permute.xlu0 %3716 }
0x2273   :  { %v3722_v25 = vsel %vm104_vm1, %v3717_v11, %v3720_v55 }
0x2274   :  { %8762 = vmatmul.mubr.msk.f32.vlgmr.msra.gmra.mrb[38].mxu1 %vm638_vm3, %v3722_v25 }
0x2275   :  { %9762 = vmatpush3.bf16.msra.mxu1 %v11685_v31  ;;  %8799 = vmatprep.mubr.msk.f32.mxu1 %vm10579_vm2, %v10580_v26 }
0x2276   :  { %9763 = vmatprep.subr.bf16.mxu1 %v10578_v14 }
0x2279   :  { %9765 = vmatpush3.bf16.msra.mxu1 %v11691_v4 }
0x227a   :  { %9766 = vmatprep.subr.bf16.mxu1 %v10578_v14 }
0x227d   :  { %9768 = vmatpush3.bf16.msra.mxu1 %v11702_v63 }
0x227e   :  { %9769 = vmatprep.subr.bf16.mxu1 %v10578_v14 }
0x2281   :  { %9771 = vmatpush3.bf16.msra.mxu1 %v11714_v13 }
0x2282   :  { %9778 = vmatprep.subr.bf16.mxu1 %v10578_v14 }
0x2347   :  { %v3792_v59 = vpop.f32.mrb[38].mxu1 }
0x2348   :  { %v3793_v15 = vadd.f32 %v11600_v61, %v3792_v59  ;;  %v8763_v12 = vpop.f32.mrb[39].mxu1 }
0x234a   :  { %10366 = vtanh.f32 %v3793_v15  ;;  %v7566_v16 = vmul.f32 -1.442695, %v3793_v15 }
0x234c   :  { %10368 = vpow2.f32 %v7566_v16 }
0x2354   :  { %v10367_v36 = vpop.eup %10366 }
0x2355   :  { %3805 = vrot.lane.b32.xlu0 %v10367_v36, %s12758_s14 }
0x2356   :  { %v10369_v38 = vpop.eup %10368 }
0x2357   :  { %v3799_v23 = vadd.f32 1.0, %v10369_v38 }
0x2359   :  { %10370 = vrcp.f32 %v3799_v23 }
0x2363   :  { %v10371_v56 = vpop.eup %10370 }
0x2364   :  { %v3803_v49 = vmul.f32 %v10371_v56, %v11605_v58 }
0x23c7   :  { %v3806_v53 = vpop.permute.xlu0 %3805 }
0x23c8   :  { %v3808_v6 = vmul.f32 %v10371_v56, %v3806_v53 }
0x23ca   :  { %3810 = vrot.lane.b32.xlu1 %v3808_v6, %s12758_s14 }
0x243c   :  { %v3811_v55 = vpop.permute.xlu1 %3810 }
0x243d   :  { %v11852_v11 = vadd.f32 %v3811_v55, %v3803_v49 }
0x243f   :  { %10372 = vtanh.f32 %v11852_v11 }
0x2449   :  { %v10373_v25 = vpop.eup %10372 }
0x244a   :  { %3816 = vrot.lane.b32.xlu0 %v10373_v25, %s12758_s14 }
0x24bc   :  { %v3817_v59 = vpop.permute.xlu0 %3816 }
0x24bd   :  { %v11856_v15 = vmul.f32 %v10371_v56, %v3817_v59 }
0x24bf   :  { %3821 = vrot.lane.b32.xlu1 %v11856_v15, %s10582_s13 }
0x2531   :  { %v3822_v12 = vpop.permute.xlu1 %3821 }
0x2532   :  { %v3824_v36 = vsel %vm104_vm1, %v3822_v12, %v11733_v34 }
0x2533   :  { %8781 = vmatmul.mubr.msk.f32.vlgmr.msra.gmra.mrb[40].mxu0 %vm638_vm3, %v3824_v36 }
0x2534   :  { %9774 = vmatpush3.bf16.msra.mxu0 %v11725_v17  ;;  %8810 = vmatprep.mubr.msk.f32.mxu0 %vm10579_vm2, %v10580_v26 }
0x2535   :  { %9775 = vmatprep.subr.bf16.mxu0 %v10578_v14 }
0x2538   :  { %9777 = vmatpush3.bf16.msra.mxu0 %v11747_v20 }
0x2539   :  { %9784 = vmatprep.subr.bf16.mxu0 %v10578_v14 }
0x2606   :  { %v3894_v58 = vpop.f32.mrb[40].mxu0 }
0x2607   :  { %v3895_v16 = vadd.f32 %v11668_v40, %v3894_v58  ;;  %v8782_v38 = vpop.f32.mrb[41].mxu0 }
0x2609   :  { %10374 = vtanh.f32 %v3895_v16  ;;  %v7568_v34 = vmul.f32 -1.442695, %v3895_v16 }
0x260b   :  { %10376 = vpow2.f32 %v7568_v34 }
0x2613   :  { %v10375_v23 = vpop.eup %10374 }
0x2614   :  { %3907 = vrot.lane.b32.xlu0 %v10375_v23, %s12758_s14 }
0x2615   :  { %v10377_v56 = vpop.eup %10376 }
0x2616   :  { %v3901_v53 = vadd.f32 1.0, %v10377_v56 }
0x2618   :  { %10378 = vrcp.f32 %v3901_v53 }
0x2622   :  { %v10379_v6 = vpop.eup %10378 }
0x2623   :  { %v3905_v25 = vmul.f32 %v10379_v6, %v11673_v10 }
0x2686   :  { %v3908_v49 = vpop.permute.xlu0 %3907 }
0x2687   :  { %v3910_v55 = vmul.f32 %v10379_v6, %v3908_v49 }
0x2689   :  { %3912 = vrot.lane.b32.xlu1 %v3910_v55, %s12758_s14 }
0x26fb   :  { %v3913_v59 = vpop.permute.xlu1 %3912 }
0x26fc   :  { %v11873_v12 = vadd.f32 %v3913_v59, %v3905_v25 }
0x26fe   :  { %10380 = vtanh.f32 %v11873_v12 }
0x2708   :  { %v10381_v36 = vpop.eup %10380 }
0x2709   :  { %3918 = vrot.lane.b32.xlu0 %v10381_v36, %s12758_s14 }
0x270d   :  { %1477 = vrot.lane.b32.xlu0 %v11213_v50, %s10582_s13 }
0x277b   :  { %v3919_v58 = vpop.permute.xlu0 %3918 }
0x277c   :  { %v3921_v16 = vmul.f32 %v10379_v6, %v3919_v58 }
0x277e   :  { %3923 = vrot.lane.b32.xlu1 %v3921_v16, %s10583_s8 }
0x277f   :  { %v1478_v38 = vpop.permute.xlu0 %1477 }
0x2780   :  { %1480 = vst.msk [vmem:[#allocation4 + $0x10] sm:$0xff] %vm104_vm1, %v1478_v38 }
0x2782   :  { %4160 = vrot.lane.b32.xlu1 %v11832_v62, %s10583_s8 }
0x2787   :  { %v11906_v53 = vld [vmem:[#allocation4 + $0x10] sm:$0xff] }
0x27f0   :  { %v11883_v10 = vpop.permute.xlu1 %3923 }
0x27f1   :  { %v3926_v23 = vsel %vm104_vm1, %v11777_v29, %v11883_v10 }
0x27f2   :  { %8800 = vmatmul.mubr.msk.f32.vlgmr.msra.gmra.mrb[40].mxu1 %vm638_vm3, %v3926_v23 }
0x27f3   :  { %9780 = vmatpush3.bf16.msra.mxu1 %v11757_v19  ;;  %8821 = vmatprep.mubr.msk.f32.mxu1 %vm10579_vm2, %v10580_v26 }
0x27f4   :  { %9781 = vmatprep.subr.bf16.mxu1 %v10578_v14  ;;  %v4161_v29 = vpop.permute.xlu1 %4160 }
0x27f5   :  { %v4163_v6 = vsel %vm104_vm1, %v11906_v53, %v4161_v29 }
0x27f7   :  { %9783 = vmatpush3.bf16.msra.mxu1 %v11799_v0 }
0x27f8   :  { %9796 = vmatprep.subr.bf16.mxu1 %v10578_v14 }
0x28c5   :  { %v3996_v50 = vpop.f32.mrb[40].mxu1 }
0x28c6   :  { %v3997_v62 = vadd.f32 %v11764_v37, %v3996_v50  ;;  %v8801_v34 = vpop.f32.mrb[41].mxu1 }
0x28c8   :  { %v4000_v56 = vmax.f32 %v3997_v62, 0.0 }
0x28ca   :  { %8811 = vmatmul.mubr.msk.f32.vlgmr.msra.gmra.mrb[42].mxu0 %vm104_vm1, %v4000_v56 }
0x28cb   :  { %9786 = vmatpush3.bf16.msra.mxu0 %v11450_v8  ;;  %8840 = vmatprep.mubr.msk.f32.mxu0 %vm10579_vm2, %v10580_v26 }
0x28cc   :  { %9787 = vmatprep.subr.bf16.mxu0 %v10578_v14 }
0x28cf   :  { %9789 = vmatpush3.bf16.msra.mxu0 %v11463_v21 }
0x28d0   :  { %9790 = vmatprep.subr.bf16.mxu0 %v10578_v14 }
0x28d3   :  { %9792 = vmatpush3.bf16.msra.mxu0 %v11475_v2 }
0x28d4   :  { %9793 = vmatprep.subr.bf16.mxu0 %v10578_v14 }
0x28d7   :  { %9795 = vmatpush3.bf16.msra.mxu0 %v11485_v3 }
0x28d8   :  { %9808 = vmatprep.subr.bf16.mxu0 %v10578_v14 }
0x28da   :  { %8841 = vmatmul.mubr.msk.f32.vlgmr.msra.gmra.mrb[44].mxu0 %vm638_vm3, %v4163_v6 }
0x28db   :  { %9810 = vmatpush3.bf16.msra.mxu0 %v11617_v46  ;;  %8878 = vmatprep.mubr.msk.f32.mxu0 %vm10579_vm2, %v10580_v26 }
0x28dc   :  { %9811 = vmatprep.subr.bf16.mxu0 %v10578_v14 }
0x28df   :  { %9813 = vmatpush3.bf16.msra.mxu0 %v11623_v52 }
0x28e0   :  { %9814 = vmatprep.subr.bf16.mxu0 %v10578_v14 }
0x28e3   :  { %9816 = vmatpush3.bf16.msra.mxu0 %v11633_v32 }
0x28e4   :  { %9817 = vmatprep.subr.bf16.mxu0 %v10578_v14 }
0x28e7   :  { %9819 = vmatpush3.bf16.msra.mxu0 %v11647_v24 }
0x28e8   :  { %9832 = vmatprep.subr.bf16.mxu0 %v10578_v14 }
0x299d   :  { %v4070_v49 = vpop.f32.mrb[42].mxu0 }
0x299e   :  { %v4071_v55 = vadd.f32 %v11806_v51, %v4070_v49  ;;  %v8812_v25 = vpop.f32.mrb[43].mxu0 }
0x29a0   :  { %v4074_v59 = vmax.f32 %v4071_v55, 0.0 }
0x29a2   :  { %8822 = vmatmul.mubr.msk.f32.vlgmr.msra.gmra.mrb[42].mxu1 %vm104_vm1, %v4074_v59 }
0x29a3   :  { %9798 = vmatpush3.bf16.msra.mxu1 %v11550_v28  ;;  %8859 = vmatprep.mubr.msk.f32.mxu1 %vm10579_vm2, %v10580_v26 }
0x29a4   :  { %9799 = vmatprep.subr.bf16.mxu1 %v10578_v14 }
0x29a7   :  { %9801 = vmatpush3.bf16.msra.mxu1 %v11564_v22 }
0x29a8   :  { %9802 = vmatprep.subr.bf16.mxu1 %v10578_v14 }
0x29ab   :  { %9804 = vmatpush3.bf16.msra.mxu1 %v11576_v54 }
0x29ac   :  { %9805 = vmatprep.subr.bf16.mxu1 %v10578_v14 }
0x29ad   :  { %v4233_v36 = vpop.f32.mrb[44].mxu0 }
0x29ae   :  { %v4237_v58 = vadd.f32 %v4233_v36, %v10821_v35  ;;  %v8842_v16 = vpop.f32.mrb[45].mxu0 }
0x29af   :  { %9807 = vmatpush3.bf16.msra.mxu1 %v11586_v48 }
0x29b0   :  { %10382 = vtanh.f32 %v4237_v58  ;;  %9820 = vmatprep.subr.bf16.mxu1 %v10578_v14  ;;  %v7573_v23 = vmul.f32 -1.442695, %v4237_v58 }
0x29b2   :  { %10384 = vpow2.f32 %v7573_v23 }
0x29ba   :  { %v10383_v38 = vpop.eup %10382 }
0x29bb   :  { %4247 = vrot.lane.b32.xlu0 %v10383_v38, %s12758_s14 }
0x29bc   :  { %v10385_v50 = vpop.eup %10384 }
0x29bd   :  { %v4241_v62 = vadd.f32 1.0, %v10385_v50 }
0x29bf   :  { %10386 = vrcp.f32 %v4241_v62 }
0x29c9   :  { %v10387_v34 = vpop.eup %10386 }
0x29ca   :  { %v4245_v49 = vmul.f32 %v10387_v34, %v11826_v45 }
0x2a2d   :  { %v4248_v56 = vpop.permute.xlu0 %4247 }
0x2a2e   :  { %v4250_v29 = vmul.f32 %v10387_v34, %v4248_v56 }
0x2a30   :  { %4252 = vrot.lane.b32.xlu1 %v4250_v29, %s12758_s14 }
0x2a75   :  { %v11937_v35 = vpop.f32.mrb[42].mxu1 }
0x2a76   :  { %v8823_v6 = vpop.f32.mrb[43].mxu1 }
0x2aa2   :  { %v4253_v55 = vpop.permute.xlu1 %4252 }
0x2aa3   :  { %v11940_v25 = vadd.f32 %v4253_v55, %v4245_v49 }
0x2aa5   :  { %10388 = vtanh.f32 %v11940_v25 }
0x2aaf   :  { %v10389_v59 = vpop.eup %10388 }
0x2ab0   :  { %4258 = vrot.lane.b32.xlu0 %v10389_v59, %s12758_s14 }
0x2ab4   :  { %4266 = vrot.lane.b32.xlu0 %v11856_v15, %s10583_s8 }
0x2b22   :  { %v4259_v36 = vpop.permute.xlu0 %4258 }
0x2b23   :  { %v11946_v58 = vmul.f32 %v10387_v34, %v4259_v36 }
0x2b25   :  { %4263 = vrot.lane.b32.xlu1 %v11946_v58, %s10582_s13 }
0x2b26   :  { %v4267_v16 = vpop.permute.xlu0 %4266 }
0x2b97   :  { %v4264_v38 = vpop.permute.xlu1 %4263 }
0x2b98   :  { %v4269_v45 = vsel %vm104_vm1, %v4264_v38, %v4267_v16 }
0x2b99   :  { %8860 = vmatmul.mubr.msk.f32.vlgmr.msra.gmra.mrb[44].mxu1 %vm638_vm3, %v4269_v45 }
0x2b9a   :  { %9822 = vmatpush3.bf16.msra.mxu1 %v11685_v31  ;;  %8897 = vmatprep.mubr.msk.f32.mxu1 %vm10579_vm2, %v10580_v26 }
0x2b9b   :  { %9823 = vmatprep.subr.bf16.mxu1 %v10578_v14 }
0x2b9e   :  { %9825 = vmatpush3.bf16.msra.mxu1 %v11691_v4 }
0x2b9f   :  { %9826 = vmatprep.subr.bf16.mxu1 %v10578_v14 }
0x2ba2   :  { %9828 = vmatpush3.bf16.msra.mxu1 %v11702_v63 }
0x2ba3   :  { %9829 = vmatprep.subr.bf16.mxu1 %v10578_v14 }
0x2ba6   :  { %9831 = vmatpush3.bf16.msra.mxu1 %v11714_v13 }
0x2ba7   :  { %9838 = vmatprep.subr.bf16.mxu1 %v10578_v14 }
0x2c6c   :  { %v4339_v15 = vpop.f32.mrb[44].mxu1 }
0x2c6d   :  { %v4340_v23 = vadd.f32 %v11600_v61, %v4339_v15  ;;  %v8861_v50 = vpop.f32.mrb[45].mxu1 }
0x2c6f   :  { %10390 = vtanh.f32 %v4340_v23  ;;  %v7575_v34 = vmul.f32 -1.442695, %v4340_v23 }
0x2c71   :  { %10392 = vpow2.f32 %v7575_v34 }
0x2c79   :  { %v10391_v62 = vpop.eup %10390 }
0x2c7a   :  { %4352 = vrot.lane.b32.xlu1 %v10391_v62, %s12758_s14 }
0x2c7b   :  { %v10393_v56 = vpop.eup %10392 }
0x2c7c   :  { %v4346_v29 = vadd.f32 1.0, %v10393_v56 }
0x2c7e   :  { %10394 = vrcp.f32 %v4346_v29 }
0x2c88   :  { %v10395_v6 = vpop.eup %10394 }
0x2c89   :  { %v4350_v59 = vmul.f32 %v10395_v6, %v11852_v11 }
0x2cec   :  { %v4353_v49 = vpop.permute.xlu1 %4352 }
0x2ced   :  { %v4355_v55 = vmul.f32 %v10395_v6, %v4353_v49 }
0x2cef   :  { %4357 = vrot.lane.b32.xlu0 %v4355_v55, %s12758_s14 }
0x2d61   :  { %v4358_v36 = vpop.permute.xlu0 %4357 }
0x2d62   :  { %v11966_v16 = vadd.f32 %v4358_v36, %v4350_v59 }
0x2d64   :  { %10396 = vtanh.f32 %v11966_v16 }
0x2d6e   :  { %v10397_v61 = vpop.eup %10396 }
0x2d6f   :  { %4363 = vrot.lane.b32.xlu1 %v10397_v61, %s12758_s14 }
0x2de1   :  { %v4364_v38 = vpop.permute.xlu1 %4363 }
0x2de2   :  { %v11970_v45 = vmul.f32 %v10395_v6, %v4364_v38 }
0x2de4   :  { %4368 = vrot.lane.b32.xlu0 %v11970_v45, %s10582_s13 }
0x2e56   :  { %v4369_v15 = vpop.permute.xlu0 %4368 }
0x2e57   :  { %v4371_v23 = vsel %vm104_vm1, %v4369_v15, %v11883_v10 }
0x2e58   :  { %8879 = vmatmul.mubr.msk.f32.vlgmr.msra.gmra.mrb[46].mxu0 %vm638_vm3, %v4371_v23 }
0x2e59   :  { %9834 = vmatpush3.bf16.msra.mxu0 %v11725_v17  ;;  %8908 = vmatprep.mubr.msk.f32.mxu0 %vm10579_vm2, %v10580_v26 }
0x2e5a   :  { %9835 = vmatprep.subr.bf16.mxu0 %v10578_v14 }
0x2e5d   :  { %9837 = vmatpush3.bf16.msra.mxu0 %v11747_v20 }
0x2e5e   :  { %9844 = vmatprep.subr.bf16.mxu0 %v10578_v14 }
0x2f2b   :  { %v4441_v11 = vpop.f32.mrb[46].mxu0 }
0x2f2c   :  { %v4442_v50 = vadd.f32 %v11668_v40, %v4441_v11  ;;  %v8880_v62 = vpop.f32.mrb[47].mxu0 }
0x2f2e   :  { %10398 = vtanh.f32 %v4442_v50  ;;  %v7577_v10 = vmul.f32 -1.442695, %v4442_v50 }
0x2f30   :  { %10400 = vpow2.f32 %v7577_v10 }
0x2f38   :  { %v10399_v34 = vpop.eup %10398 }
0x2f39   :  { %4454 = vrot.lane.b32.xlu1 %v10399_v34, %s12758_s14 }
0x2f3a   :  { %v10401_v56 = vpop.eup %10400 }
0x2f3b   :  { %v4448_v29 = vadd.f32 1.0, %v10401_v56 }
0x2f3d   :  { %10402 = vrcp.f32 %v4448_v29 }
0x2f47   :  { %v10403_v6 = vpop.eup %10402 }
0x2f48   :  { %v4452_v59 = vmul.f32 %v10403_v6, %v11873_v12 }
0x2fab   :  { %v4455_v49 = vpop.permute.xlu1 %4454 }
0x2fac   :  { %v4457_v55 = vmul.f32 %v10403_v6, %v4455_v49 }
0x2fae   :  { %4459 = vrot.lane.b32.xlu0 %v4457_v55, %s12758_s14 }
0x3020   :  { %v4460_v36 = vpop.permute.xlu0 %4459 }
0x3021   :  { %v11987_v61 = vadd.f32 %v4460_v36, %v4452_v59 }
0x3023   :  { %10404 = vtanh.f32 %v11987_v61 }
0x302d   :  { %v10405_v38 = vpop.eup %10404 }
0x302e   :  { %4465 = vrot.lane.b32.xlu1 %v10405_v38, %s12758_s14 }
0x3032   :  { %1790 = vrot.lane.b32.xlu1 %v11281_v7, %s10582_s13 }
0x30a0   :  { %v4466_v15 = vpop.permute.xlu1 %4465 }
0x30a1   :  { %v4468_v23 = vmul.f32 %v10403_v6, %v4466_v15 }
0x30a3   :  { %4470 = vrot.lane.b32.xlu0 %v4468_v23, %s10583_s8 }
0x30a4   :  { %v1791_v11 = vpop.permute.xlu1 %1790 }
0x30a5   :  { %1793 = vst.msk [vmem:[#allocation4 + $0x18] sm:$0xff] %vm104_vm1, %v1791_v11 }
0x30a7   :  { %4707 = vrot.lane.b32.xlu0 %v11946_v58, %s10583_s8 }
0x30ac   :  { %v12020_v10 = vld [vmem:[#allocation4 + $0x18] sm:$0xff] }
0x3115   :  { %v11997_v12 = vpop.permute.xlu0 %4470 }
0x3116   :  { %v4473_v50 = vsel %vm104_vm1, %v11906_v53, %v11997_v12 }
0x3117   :  { %8898 = vmatmul.mubr.msk.f32.vlgmr.msra.gmra.mrb[46].mxu1 %vm638_vm3, %v4473_v50 }
0x3118   :  { %9840 = vmatpush3.bf16.msra.mxu1 %v11757_v19  ;;  %8919 = vmatprep.mubr.msk.f32.mxu1 %vm10579_vm2, %v10580_v26 }
0x3119   :  { %9841 = vmatprep.subr.bf16.mxu1 %v10578_v14  ;;  %v4708_v53 = vpop.permute.xlu0 %4707 }
0x311a   :  { %v4710_v56 = vsel %vm104_vm1, %v12020_v10, %v4708_v53 }
0x311c   :  { %9843 = vmatpush3.bf16.msra.mxu1 %v11799_v0 }
0x311d   :  { %9856 = vmatprep.subr.bf16.mxu1 %v10578_v14 }
0x31ea   :  { %v4543_v7 = vpop.f32.mrb[46].mxu1 }
0x31eb   :  { %v4544_v58 = vadd.f32 %v11764_v37, %v4543_v7  ;;  %v8899_v62 = vpop.f32.mrb[47].mxu1 }
0x31ed   :  { %v4547_v34 = vmax.f32 %v4544_v58, 0.0 }
0x31ef   :  { %8909 = vmatmul.mubr.msk.f32.vlgmr.msra.gmra.mrb[48].mxu0 %vm104_vm1, %v4547_v34 }
0x31f0   :  { %9846 = vmatpush3.bf16.msra.mxu0 %v11450_v8  ;;  %8938 = vmatprep.mubr.msk.f32.mxu0 %vm10579_vm2, %v10580_v26 }
0x31f1   :  { %9847 = vmatprep.subr.bf16.mxu0 %v10578_v14 }
0x31f4   :  { %9849 = vmatpush3.bf16.msra.mxu0 %v11463_v21 }
0x31f5   :  { %9850 = vmatprep.subr.bf16.mxu0 %v10578_v14 }
0x31f8   :  { %9852 = vmatpush3.bf16.msra.mxu0 %v11475_v2 }
0x31f9   :  { %9853 = vmatprep.subr.bf16.mxu0 %v10578_v14 }
0x31fc   :  { %9855 = vmatpush3.bf16.msra.mxu0 %v11485_v3 }
0x31fd   :  { %9868 = vmatprep.subr.bf16.mxu0 %v10578_v14 }
0x31ff   :  { %8939 = vmatmul.mubr.msk.f32.vlgmr.msra.gmra.mrb[50].mxu0 %vm638_vm3, %v4710_v56 }
0x3200   :  { %9870 = vmatpush3.bf16.msra.mxu0 %v11617_v46  ;;  %8976 = vmatprep.mubr.msk.f32.mxu0 %vm10579_vm2, %v10580_v26 }
0x3201   :  { %9871 = vmatprep.subr.bf16.mxu0 %v10578_v14 }
0x3204   :  { %9873 = vmatpush3.bf16.msra.mxu0 %v11623_v52 }
0x3205   :  { %9874 = vmatprep.subr.bf16.mxu0 %v10578_v14 }
0x3208   :  { %9876 = vmatpush3.bf16.msra.mxu0 %v11633_v32 }
0x3209   :  { %9877 = vmatprep.subr.bf16.mxu0 %v10578_v14 }
0x320c   :  { %9879 = vmatpush3.bf16.msra.mxu0 %v11647_v24 }
0x320d   :  { %9892 = vmatprep.subr.bf16.mxu0 %v10578_v14 }
0x32c2   :  { %v4617_v29 = vpop.f32.mrb[48].mxu0 }
0x32c3   :  { %v4618_v6 = vadd.f32 %v11806_v51, %v4617_v29  ;;  %v8910_v49 = vpop.f32.mrb[49].mxu0 }
0x32c5   :  { %v4621_v55 = vmax.f32 %v4618_v6, 0.0 }
0x32c7   :  { %8920 = vmatmul.mubr.msk.f32.vlgmr.msra.gmra.mrb[48].mxu1 %vm104_vm1, %v4621_v55 }
0x32c8   :  { %9858 = vmatpush3.bf16.msra.mxu1 %v11550_v28  ;;  %8957 = vmatprep.mubr.msk.f32.mxu1 %vm10579_vm2, %v10580_v26 }
0x32c9   :  { %9859 = vmatprep.subr.bf16.mxu1 %v10578_v14 }
0x32cc   :  { %9861 = vmatpush3.bf16.msra.mxu1 %v11564_v22 }
0x32cd   :  { %9862 = vmatprep.subr.bf16.mxu1 %v10578_v14 }
0x32d0   :  { %9864 = vmatpush3.bf16.msra.mxu1 %v11576_v54 }
0x32d1   :  { %9865 = vmatprep.subr.bf16.mxu1 %v10578_v14 }
0x32d2   :  { %v4780_v59 = vpop.f32.mrb[50].mxu0 }
0x32d3   :  { %v4784_v36 = vadd.f32 %v4780_v59, %v10819_v33  ;;  %v8940_v38 = vpop.f32.mrb[51].mxu0 }
0x32d4   :  { %9867 = vmatpush3.bf16.msra.mxu1 %v11586_v48  ;;  %v12079_v38 = vld [vmem:[%s12709_s17] ss:$0 sm:$0xff] }
0x32d5   :  { %10406 = vtanh.f32 %v4784_v36  ;;  %9880 = vmatprep.subr.bf16.mxu1 %v10578_v14  ;;  %v7582_v23 = vmul.f32 -1.442695, %v4784_v36 }
0x32d7   :  { %10408 = vpow2.f32 %v7582_v23 }
0x32df   :  { %v10407_v15 = vpop.eup %10406 }
0x32e0   :  { %4794 = vrot.lane.b32.xlu1 %v10407_v15, %s12758_s14 }
0x32e1   :  { %v10409_v11 = vpop.eup %10408 }
0x32e2   :  { %v4788_v50 = vadd.f32 1.0, %v10409_v11 }
0x32e4   :  { %10410 = vrcp.f32 %v4788_v50 }
0x32ee   :  { %v10411_v7 = vpop.eup %10410 }
0x32ef   :  { %v4792_v53 = vmul.f32 %v10411_v7, %v11940_v25 }
0x3352   :  { %v4795_v58 = vpop.permute.xlu1 %4794 }
0x3353   :  { %v4797_v62 = vmul.f32 %v10411_v7, %v4795_v58 }
0x3355   :  { %4799 = vrot.lane.b32.xlu0 %v4797_v62, %s12758_s14 }
0x339a   :  { %v12051_v33 = vpop.f32.mrb[48].mxu1 }
0x339b   :  { %v8921_v34 = vpop.f32.mrb[49].mxu1 }
0x33c7   :  { %v4800_v56 = vpop.permute.xlu0 %4799 }
0x33c8   :  { %v12054_v29 = vadd.f32 %v4800_v56, %v4792_v53 }
0x33ca   :  { %10412 = vtanh.f32 %v12054_v29 }
0x33d4   :  { %v10413_v6 = vpop.eup %10412 }
0x33d5   :  { %4805 = vrot.lane.b32.xlu1 %v10413_v6, %s12758_s14 }
0x33d9   :  { %4813 = vrot.lane.b32.xlu1 %v11970_v45, %s10583_s8 }
0x3447   :  { %v4806_v49 = vpop.permute.xlu1 %4805 }
0x3448   :  { %v12060_v55 = vmul.f32 %v10411_v7, %v4806_v49 }
0x344a   :  { %4810 = vrot.lane.b32.xlu0 %v12060_v55, %s10582_s13 }
0x344b   :  { %v4814_v59 = vpop.permute.xlu1 %4813 }
0x34bc   :  { %v4811_v36 = vpop.permute.xlu0 %4810 }
0x34bd   :  { %v4816_v25 = vsel %vm104_vm1, %v4811_v36, %v4814_v59 }
0x34be   :  { %8958 = vmatmul.mubr.msk.f32.vlgmr.msra.gmra.mrb[50].mxu1 %vm638_vm3, %v4816_v25 }
0x34bf   :  { %9882 = vmatpush3.bf16.msra.mxu1 %v11685_v31  ;;  %8995 = vmatprep.mubr.msk.f32.mxu1 %vm10579_vm2, %v10580_v26 }
0x34c0   :  { %9883 = vmatprep.subr.bf16.mxu1 %v10578_v14 }
0x34c3   :  { %9885 = vmatpush3.bf16.msra.mxu1 %v11691_v4 }
0x34c4   :  { %9886 = vmatprep.subr.bf16.mxu1 %v10578_v14 }
0x34c7   :  { %9888 = vmatpush3.bf16.msra.mxu1 %v11702_v63 }
0x34c8   :  { %9889 = vmatprep.subr.bf16.mxu1 %v10578_v14 }
0x34cb   :  { %9891 = vmatpush3.bf16.msra.mxu1 %v11714_v13 }
0x34cc   :  { %9898 = vmatprep.subr.bf16.mxu1 %v10578_v14 }
0x3591   :  { %v4886_v45 = vpop.f32.mrb[50].mxu1 }
0x3592   :  { %v4887_v15 = vadd.f32 %v12079_v38, %v4886_v45  ;;  %v8959_v23 = vpop.f32.mrb[51].mxu1 }
0x3594   :  { %10414 = vtanh.f32 %v4887_v15  ;;  %v7584_v50 = vmul.f32 -1.442695, %v4887_v15 }
0x3596   :  { %10416 = vpow2.f32 %v7584_v50 }
0x359e   :  { %v10415_v11 = vpop.eup %10414 }
0x359f   :  { %4899 = vrot.lane.b32.xlu0 %v10415_v11, %s12758_s14 }
0x35a0   :  { %v10417_v7 = vpop.eup %10416 }
0x35a1   :  { %v4893_v58 = vadd.f32 1.0, %v10417_v7 }
0x35a3   :  { %10418 = vrcp.f32 %v4893_v58 }
0x35ad   :  { %v10419_v62 = vpop.eup %10418 }
0x35ae   :  { %v4897_v56 = vmul.f32 %v10419_v62, %v11966_v16 }
0x3611   :  { %v4900_v34 = vpop.permute.xlu0 %4899 }
0x3612   :  { %v4902_v53 = vmul.f32 %v10419_v62, %v4900_v34 }
0x3614   :  { %4904 = vrot.lane.b32.xlu1 %v4902_v53, %s12758_s14 }
0x3686   :  { %v4905_v6 = vpop.permute.xlu1 %4904 }
0x3687   :  { %v12085_v49 = vadd.f32 %v4905_v6, %v4897_v56 }
0x3689   :  { %10420 = vtanh.f32 %v12085_v49 }
0x3693   :  { %v10421_v59 = vpop.eup %10420 }
0x3694   :  { %4910 = vrot.lane.b32.xlu0 %v10421_v59, %s12758_s14 }
0x3706   :  { %v4911_v36 = vpop.permute.xlu0 %4910 }
0x3707   :  { %v12089_v25 = vmul.f32 %v10419_v62, %v4911_v36 }
0x3709   :  { %4915 = vrot.lane.b32.xlu1 %v12089_v25, %s10582_s13 }
0x377b   :  { %v4916_v45 = vpop.permute.xlu1 %4915 }
0x377c   :  { %v4918_v15 = vsel %vm104_vm1, %v4916_v45, %v11997_v12 }
0x377d   :  { %8977 = vmatmul.mubr.msk.f32.vlgmr.msra.gmra.mrb[52].mxu0 %vm638_vm3, %v4918_v15 }
0x377e   :  { %9894 = vmatpush3.bf16.msra.mxu0 %v11725_v17  ;;  %9006 = vmatprep.mubr.msk.f32.mxu0 %vm10579_vm2, %v10580_v26 }
0x377f   :  { %9895 = vmatprep.subr.bf16.mxu0 %v10578_v14 }
0x3782   :  { %9897 = vmatpush3.bf16.msra.mxu0 %v11747_v20 }
0x3783   :  { %9904 = vmatprep.subr.bf16.mxu0 %v10578_v14 }
0x3850   :  { %v4988_v16 = vpop.f32.mrb[52].mxu0 }
0x3851   :  { %v4989_v23 = vadd.f32 %v11668_v40, %v4988_v16  ;;  %v8978_v11 = vpop.f32.mrb[53].mxu0 }
0x3853   :  { %10422 = vtanh.f32 %v4989_v23  ;;  %v7586_v12 = vmul.f32 -1.442695, %v4989_v23 }
0x3855   :  { %10424 = vpow2.f32 %v7586_v12 }
0x385d   :  { %v10423_v50 = vpop.eup %10422 }
0x385e   :  { %5001 = vrot.lane.b32.xlu0 %v10423_v50, %s12758_s14 }
0x385f   :  { %v10425_v7 = vpop.eup %10424 }
0x3860   :  { %v4995_v58 = vadd.f32 1.0, %v10425_v7 }
0x3862   :  { %10426 = vrcp.f32 %v4995_v58 }
0x386c   :  { %v10427_v62 = vpop.eup %10426 }
0x386d   :  { %v4999_v56 = vmul.f32 %v10427_v62, %v11987_v61 }
0x38d0   :  { %v5002_v34 = vpop.permute.xlu0 %5001 }
0x38d1   :  { %v5004_v53 = vmul.f32 %v10427_v62, %v5002_v34 }
0x38d3   :  { %5006 = vrot.lane.b32.xlu1 %v5004_v53, %s12758_s14 }
0x3945   :  { %v5007_v6 = vpop.permute.xlu1 %5006 }
0x3946   :  { %v12106_v59 = vadd.f32 %v5007_v6, %v4999_v56 }
0x3948   :  { %10428 = vtanh.f32 %v12106_v59 }
0x3952   :  { %v10429_v40 = vpop.eup %10428 }
0x3953   :  { %5012 = vrot.lane.b32.xlu0 %v10429_v40, %s12758_s14 }
0x3957   :  { %2103 = vrot.lane.b32.xlu0 %v11349_v60, %s10582_s13 }
0x39c5   :  { %v5013_v36 = vpop.permute.xlu0 %5012 }
0x39c6   :  { %v5015_v45 = vmul.f32 %v10427_v62, %v5013_v36 }
0x39c8   :  { %5017 = vrot.lane.b32.xlu1 %v5015_v45, %s10583_s8 }
0x39c9   :  { %v2104_v15 = vpop.permute.xlu0 %2103 }
0x39ca   :  { %2106 = vst.msk [vmem:[#allocation4 + $0x20] sm:$0xff] %vm104_vm1, %v2104_v15 }
0x39cc   :  { %5254 = vrot.lane.b32.xlu1 %v12060_v55, %s10583_s8 }
0x3a3a   :  { %v12116_v61 = vpop.permute.xlu1 %5017 }
0x3a3b   :  { %v5020_v16 = vsel %vm104_vm1, %v12020_v10, %v12116_v61  ;;  %v12139_v10 = vld [vmem:[#allocation4 + $0x20] sm:$0xff] }
0x3a3c   :  { %8996 = vmatmul.mubr.msk.f32.vlgmr.msra.gmra.mrb[52].mxu1 %vm638_vm3, %v5020_v16 }
0x3a3d   :  { %9900 = vmatpush3.bf16.msra.mxu1 %v11757_v19  ;;  %9017 = vmatprep.mubr.msk.f32.mxu1 %vm10579_vm2, %v10580_v26 }
0x3a3e   :  { %9901 = vmatprep.subr.bf16.mxu1 %v10578_v14 }
0x3a41   :  { %9903 = vmatpush3.bf16.msra.mxu1 %v11799_v0 }
0x3a42   :  { %9916 = vmatprep.subr.bf16.mxu1 %v10578_v14 }
0x3b0f   :  { %v5090_v60 = vpop.f32.mrb[52].mxu1 }
0x3b10   :  { %v5091_v55 = vadd.f32 %v11764_v37, %v5090_v60  ;;  %v8997_v23 = vpop.f32.mrb[53].mxu1  ;;  %v5255_v37 = vpop.permute.xlu1 %5254 }
0x3b11   :  { %v5257_v50 = vsel %vm104_vm1, %v12139_v10, %v5255_v37 }
0x3b12   :  { %v5094_v11 = vmax.f32 %v5091_v55, 0.0 }
0x3b14   :  { %9007 = vmatmul.mubr.msk.f32.vlgmr.msra.gmra.mrb[54].mxu0 %vm104_vm1, %v5094_v11 }
0x3b15   :  { %9906 = vmatpush3.bf16.msra.mxu0 %v11450_v8  ;;  %9036 = vmatprep.mubr.msk.f32.mxu0 %vm10579_vm2, %v10580_v26 }
0x3b16   :  { %9907 = vmatprep.subr.bf16.mxu0 %v10578_v14 }
0x3b19   :  { %9909 = vmatpush3.bf16.msra.mxu0 %v11463_v21 }
0x3b1a   :  { %9910 = vmatprep.subr.bf16.mxu0 %v10578_v14 }
0x3b1d   :  { %9912 = vmatpush3.bf16.msra.mxu0 %v11475_v2 }
0x3b1e   :  { %9913 = vmatprep.subr.bf16.mxu0 %v10578_v14 }
0x3b21   :  { %9915 = vmatpush3.bf16.msra.mxu0 %v11485_v3 }
0x3b22   :  { %9928 = vmatprep.subr.bf16.mxu0 %v10578_v14 }
0x3b24   :  { %9037 = vmatmul.mubr.msk.f32.vlgmr.msra.gmra.mrb[56].mxu0 %vm638_vm3, %v5257_v50 }
0x3b25   :  { %9930 = vmatpush3.bf16.msra.mxu0 %v11617_v46  ;;  %9074 = vmatprep.mubr.msk.f32.mxu0 %vm10579_vm2, %v10580_v26 }
0x3b26   :  { %9931 = vmatprep.subr.bf16.mxu0 %v10578_v14 }
0x3b29   :  { %9933 = vmatpush3.bf16.msra.mxu0 %v11623_v52 }
0x3b2a   :  { %9934 = vmatprep.subr.bf16.mxu0 %v10578_v14 }
0x3b2d   :  { %9936 = vmatpush3.bf16.msra.mxu0 %v11633_v32 }
0x3b2e   :  { %9937 = vmatprep.subr.bf16.mxu0 %v10578_v14 }
0x3b31   :  { %9939 = vmatpush3.bf16.msra.mxu0 %v11647_v24 }
0x3b32   :  { %9952 = vmatprep.subr.bf16.mxu0 %v10578_v14 }
0x3be7   :  { %v5164_v12 = vpop.f32.mrb[54].mxu0 }
0x3be8   :  { %v5165_v7 = vadd.f32 %v11806_v51, %v5164_v12  ;;  %v9008_v58 = vpop.f32.mrb[55].mxu0 }
0x3bea   :  { %v5168_v62 = vmax.f32 %v5165_v7, 0.0 }
0x3bec   :  { %9018 = vmatmul.mubr.msk.f32.vlgmr.msra.gmra.mrb[54].mxu1 %vm104_vm1, %v5168_v62 }
0x3bed   :  { %9918 = vmatpush3.bf16.msra.mxu1 %v11550_v28  ;;  %9055 = vmatprep.mubr.msk.f32.mxu1 %vm10579_vm2, %v10580_v26 }
0x3bee   :  { %9919 = vmatprep.subr.bf16.mxu1 %v10578_v14 }
0x3bf1   :  { %9921 = vmatpush3.bf16.msra.mxu1 %v11564_v22 }
0x3bf2   :  { %9922 = vmatprep.subr.bf16.mxu1 %v10578_v14 }
0x3bf5   :  { %9924 = vmatpush3.bf16.msra.mxu1 %v11576_v54 }
0x3bf6   :  { %9925 = vmatprep.subr.bf16.mxu1 %v10578_v14 }
0x3bf7   :  { %v5327_v51 = vpop.f32.mrb[56].mxu0 }
0x3bf8   :  { %v5331_v34 = vadd.f32 %v5327_v51, %v10827_v41  ;;  %v9038_v53 = vpop.f32.mrb[57].mxu0 }
0x3bf9   :  { %9927 = vmatpush3.bf16.msra.mxu1 %v11586_v48 }
0x3bfa   :  { %10430 = vtanh.f32 %v5331_v34  ;;  %9940 = vmatprep.subr.bf16.mxu1 %v10578_v14  ;;  %v7591_v6 = vmul.f32 -1.442695, %v5331_v34 }
0x3bfc   :  { %10432 = vpow2.f32 %v7591_v6 }
0x3c04   :  { %v10431_v56 = vpop.eup %10430 }
0x3c05   :  { %5341 = vrot.lane.b32.xlu0 %v10431_v56, %s12758_s14 }
0x3c06   :  { %v10433_v40 = vpop.eup %10432 }
0x3c07   :  { %v5335_v36 = vadd.f32 1.0, %v10433_v40 }
0x3c09   :  { %10434 = vrcp.f32 %v5335_v36 }
0x3c13   :  { %v10435_v45 = vpop.eup %10434 }
0x3c14   :  { %v5339_v55 = vmul.f32 %v10435_v45, %v12054_v29 }
0x3c77   :  { %v5342_v15 = vpop.permute.xlu0 %5341 }
0x3c78   :  { %v5344_v16 = vmul.f32 %v10435_v45, %v5342_v15 }
0x3c7a   :  { %5346 = vrot.lane.b32.xlu1 %v5344_v16, %s12758_s14 }
0x3cbf   :  { %v12170_v41 = vpop.f32.mrb[54].mxu1 }
0x3cc0   :  { %v9019_v60 = vpop.f32.mrb[55].mxu1 }
0x3cec   :  { %v5347_v23 = vpop.permute.xlu1 %5346 }
0x3ced   :  { %v12173_v11 = vadd.f32 %v5347_v23, %v5339_v55 }
0x3cef   :  { %10436 = vtanh.f32 %v12173_v11 }
0x3cf9   :  { %v10437_v37 = vpop.eup %10436 }
0x3cfa   :  { %5352 = vrot.lane.b32.xlu0 %v10437_v37, %s12758_s14 }
0x3cfe   :  { %5360 = vrot.lane.b32.xlu0 %v12089_v25, %s10583_s8 }
0x3d6c   :  { %v5353_v50 = vpop.permute.xlu0 %5352 }
0x3d6d   :  { %v12179_v12 = vmul.f32 %v10435_v45, %v5353_v50 }
0x3d6f   :  { %5357 = vrot.lane.b32.xlu1 %v12179_v12, %s10582_s13 }
0x3d70   :  { %v5361_v7 = vpop.permute.xlu0 %5360 }
0x3de1   :  { %v5358_v58 = vpop.permute.xlu1 %5357 }
0x3de2   :  { %v5363_v29 = vsel %vm104_vm1, %v5358_v58, %v5361_v7  ;;  %v12219_v58 = vld [vmem:[%s12711_s19] ss:$0 sm:$0xff] }
0x3de3   :  { %9056 = vmatmul.mubr.msk.f32.vlgmr.msra.gmra.mrb[56].mxu1 %vm638_vm3, %v5363_v29 }
0x3de4   :  { %9942 = vmatpush3.bf16.msra.mxu1 %v11685_v31  ;;  %9093 = vmatprep.mubr.msk.f32.mxu1 %vm10579_vm2, %v10580_v26 }
0x3de5   :  { %9943 = vmatprep.subr.bf16.mxu1 %v10578_v14 }
0x3de8   :  { %9945 = vmatpush3.bf16.msra.mxu1 %v11691_v4 }
0x3de9   :  { %9946 = vmatprep.subr.bf16.mxu1 %v10578_v14 }
0x3dec   :  { %9948 = vmatpush3.bf16.msra.mxu1 %v11702_v63 }
0x3ded   :  { %9949 = vmatprep.subr.bf16.mxu1 %v10578_v14 }
0x3df0   :  { %9951 = vmatpush3.bf16.msra.mxu1 %v11714_v13 }
0x3df1   :  { %9958 = vmatprep.subr.bf16.mxu1 %v10578_v14 }
0x3eb6   :  { %v5433_v25 = vpop.f32.mrb[56].mxu1 }
0x3eb7   :  { %v5434_v62 = vadd.f32 %v12079_v38, %v5433_v25  ;;  %v9057_v51 = vpop.f32.mrb[57].mxu1 }
0x3eb9   :  { %10438 = vtanh.f32 %v5434_v62  ;;  %v7593_v53 = vmul.f32 -1.442695, %v5434_v62 }
0x3ebb   :  { %10440 = vpow2.f32 %v7593_v53 }
0x3ec3   :  { %v10439_v34 = vpop.eup %10438 }
0x3ec4   :  { %5446 = vrot.lane.b32.xlu1 %v10439_v34, %s12758_s14 }
0x3ec5   :  { %v10441_v56 = vpop.eup %10440 }
0x3ec6   :  { %v5440_v6 = vadd.f32 1.0, %v10441_v56 }
0x3ec8   :  { %10442 = vrcp.f32 %v5440_v6 }
0x3ed2   :  { %v10443_v40 = vpop.eup %10442 }
0x3ed3   :  { %v5444_v15 = vmul.f32 %v10443_v40, %v12085_v49 }
0x3f36   :  { %v5447_v36 = vpop.permute.xlu1 %5446 }
0x3f37   :  { %v5449_v45 = vmul.f32 %v10443_v40, %v5447_v36 }
0x3f39   :  { %5451 = vrot.lane.b32.xlu0 %v5449_v45, %s12758_s14 }
0x3fab   :  { %v5452_v16 = vpop.permute.xlu0 %5451 }
0x3fac   :  { %v12199_v60 = vadd.f32 %v5452_v16, %v5444_v15 }
0x3fae   :  { %10444 = vtanh.f32 %v12199_v60 }
0x3fb8   :  { %v10445_v55 = vpop.eup %10444 }
0x3fb9   :  { %5457 = vrot.lane.b32.xlu1 %v10445_v55, %s12758_s14 }
0x402b   :  { %v5458_v23 = vpop.permute.xlu1 %5457 }
0x402c   :  { %v12203_v37 = vmul.f32 %v10443_v40, %v5458_v23 }
0x402e   :  { %5462 = vrot.lane.b32.xlu0 %v12203_v37, %s10582_s13 }
0x40a0   :  { %v5463_v50 = vpop.permute.xlu0 %5462 }
0x40a1   :  { %v5465_v7 = vsel %vm104_vm1, %v5463_v50, %v12116_v61 }
0x40a2   :  { %9075 = vmatmul.mubr.msk.f32.vlgmr.msra.gmra.mrb[58].mxu0 %vm638_vm3, %v5465_v7 }
0x40a3   :  { %9954 = vmatpush3.bf16.msra.mxu0 %v11725_v17  ;;  %9104 = vmatprep.mubr.msk.f32.mxu0 %vm10579_vm2, %v10580_v26 }
0x40a4   :  { %9955 = vmatprep.subr.bf16.mxu0 %v10578_v14 }
0x40a7   :  { %9957 = vmatpush3.bf16.msra.mxu0 %v11747_v20 }
0x40a8   :  { %9964 = vmatprep.subr.bf16.mxu0 %v10578_v14 }
0x4175   :  { %v5535_v49 = vpop.f32.mrb[58].mxu0 }
0x4176   :  { %v5536_v61 = vadd.f32 %v12219_v58, %v5535_v49  ;;  %v9076_v29 = vpop.f32.mrb[59].mxu0 }
0x4178   :  { %10446 = vtanh.f32 %v5536_v61  ;;  %v7595_v62 = vmul.f32 -1.442695, %v5536_v61 }
0x417a   :  { %10448 = vpow2.f32 %v7595_v62 }
0x4182   :  { %v10447_v25 = vpop.eup %10446 }
0x4183   :  { %5548 = vrot.lane.b32.xlu1 %v10447_v25, %s12758_s14 }
0x4184   :  { %v10449_v51 = vpop.eup %10448 }
0x4185   :  { %v5542_v34 = vadd.f32 1.0, %v10449_v51  ;;  %v12282_v51 = vld [vmem:[%s12716_s23] ss:$0 sm:$0xff] }
0x4187   :  { %10450 = vrcp.f32 %v5542_v34 }
0x4191   :  { %v10451_v53 = vpop.eup %10450 }
0x4192   :  { %v5546_v40 = vmul.f32 %v10451_v53, %v12106_v59 }
0x41f5   :  { %v5549_v56 = vpop.permute.xlu1 %5548 }
0x41f6   :  { %v5551_v6 = vmul.f32 %v10451_v53, %v5549_v56 }
0x41f8   :  { %5553 = vrot.lane.b32.xlu0 %v5551_v6, %s12758_s14 }
0x426a   :  { %v5554_v36 = vpop.permute.xlu0 %5553 }
0x426b   :  { %v12225_v45 = vadd.f32 %v5554_v36, %v5546_v40 }
0x426d   :  { %10452 = vtanh.f32 %v12225_v45 }
0x4277   :  { %v10453_v15 = vpop.eup %10452 }
0x4278   :  { %5559 = vrot.lane.b32.xlu1 %v10453_v15, %s12758_s14 }
0x427c   :  { %2416 = vrot.lane.b32.xlu1 %v11417_v43, %s10582_s13 }
0x42ea   :  { %v5560_v16 = vpop.permute.xlu1 %5559 }
0x42eb   :  { %v5562_v55 = vmul.f32 %v10451_v53, %v5560_v16 }
0x42ed   :  { %5564 = vrot.lane.b32.xlu0 %v5562_v55, %s10583_s8 }
0x42ee   :  { %v2417_v23 = vpop.permute.xlu1 %2416 }
0x42ef   :  { %2419 = vst.msk [vmem:[#allocation4 + $0x28] sm:$0xff] %vm104_vm1, %v2417_v23 }
0x42f1   :  { %5801 = vrot.lane.b32.xlu0 %v12179_v12, %s10583_s8  ;;  %v12250_v12 = vld [vmem:[%s12715_s21] ss:$0 sm:$0xff] }
0x42f6   :  { %v12263_v29 = vld [vmem:[#allocation4 + $0x28] sm:$0xff] }
0x435f   :  { %v12235_v59 = vpop.permute.xlu0 %5564 }
0x4360   :  { %v5567_v50 = vsel %vm104_vm1, %v12139_v10, %v12235_v59 }
0x4361   :  { %9094 = vmatmul.mubr.msk.f32.vlgmr.msra.gmra.mrb[58].mxu1 %vm638_vm3, %v5567_v50 }
0x4362   :  { %9960 = vmatpush3.bf16.msra.mxu1 %v11757_v19  ;;  %9115 = vmatprep.mubr.msk.f32.mxu1 %vm10579_vm2, %v10580_v26 }
0x4363   :  { %9961 = vmatprep.subr.bf16.mxu1 %v10578_v14  ;;  %v5802_v61 = vpop.permute.xlu0 %5801 }
0x4364   :  { %v5804_v25 = vsel %vm104_vm1, %v12263_v29, %v5802_v61 }
0x4366   :  { %9963 = vmatpush3.bf16.msra.mxu1 %v11799_v0 }
0x4367   :  { %9976 = vmatprep.subr.bf16.mxu1 %v10578_v14 }
0x4434   :  { %v5637_v43 = vpop.f32.mrb[58].mxu1 }
0x4435   :  { %v5638_v10 = vadd.f32 %v12250_v12, %v5637_v43  ;;  %v9095_v7 = vpop.f32.mrb[59].mxu1 }
0x4437   :  { %v5641_v49 = vmax.f32 %v5638_v10, 0.0 }
0x4439   :  { %9105 = vmatmul.mubr.msk.f32.vlgmr.msra.gmra.mrb[60].mxu0 %vm104_vm1, %v5641_v49 }
0x443a   :  { %9966 = vmatpush3.bf16.msra.mxu0 %v11450_v8  ;;  %9134 = vmatprep.mubr.msk.f32.mxu0 %vm10579_vm2, %v10580_v26 }
0x443b   :  { %9967 = vmatprep.subr.bf16.mxu0 %v10578_v14 }
0x443e   :  { %9969 = vmatpush3.bf16.msra.mxu0 %v11463_v21 }
0x443f   :  { %9970 = vmatprep.subr.bf16.mxu0 %v10578_v14 }
0x4442   :  { %9972 = vmatpush3.bf16.msra.mxu0 %v11475_v2 }
0x4443   :  { %9973 = vmatprep.subr.bf16.mxu0 %v10578_v14 }
0x4446   :  { %9975 = vmatpush3.bf16.msra.mxu0 %v11485_v3 }
0x4447   :  { %9988 = vmatprep.subr.bf16.mxu0 %v10578_v14 }
0x4449   :  { %9135 = vmatmul.mubr.msk.f32.vlgmr.msra.gmra.mrb[62].mxu0 %vm638_vm3, %v5804_v25 }
0x444a   :  { %9990 = vmatpush3.bf16.msra.mxu0 %v11617_v46  ;;  %9172 = vmatprep.mubr.msk.f32.mxu0 %vm10579_vm2, %v10580_v26 }
0x444b   :  { %9991 = vmatprep.subr.bf16.mxu0 %v10578_v14 }
0x444e   :  { %9993 = vmatpush3.bf16.msra.mxu0 %v11623_v52 }
0x444f   :  { %9994 = vmatprep.subr.bf16.mxu0 %v10578_v14 }
0x4452   :  { %9996 = vmatpush3.bf16.msra.mxu0 %v11633_v32 }
0x4453   :  { %9997 = vmatprep.subr.bf16.mxu0 %v10578_v14 }
0x4456   :  { %9999 = vmatpush3.bf16.msra.mxu0 %v11647_v24 }
0x4457   :  { %10012 = vmatprep.subr.bf16.mxu0 %v10578_v14 }
0x450c   :  { %v5711_v62 = vpop.f32.mrb[60].mxu0 }
0x450d   :  { %v5712_v34 = vadd.f32 %v12282_v51, %v5711_v62  ;;  %v9106_v53 = vpop.f32.mrb[61].mxu0 }
0x450f   :  { %v5715_v56 = vmax.f32 %v5712_v34, 0.0 }
0x4511   :  { %9116 = vmatmul.mubr.msk.f32.vlgmr.msra.gmra.mrb[60].mxu1 %vm104_vm1, %v5715_v56 }
0x4512   :  { %9978 = vmatpush3.bf16.msra.mxu1 %v11550_v28  ;;  %9153 = vmatprep.mubr.msk.f32.mxu1 %vm10579_vm2, %v10580_v26 }
0x4513   :  { %9979 = vmatprep.subr.bf16.mxu1 %v10578_v14 }
0x4516   :  { %9981 = vmatpush3.bf16.msra.mxu1 %v11564_v22 }
0x4517   :  { %9982 = vmatprep.subr.bf16.mxu1 %v10578_v14 }
0x451a   :  { %9984 = vmatpush3.bf16.msra.mxu1 %v11576_v54 }
0x451b   :  { %9985 = vmatprep.subr.bf16.mxu1 %v10578_v14 }
0x451c   :  { %v5874_v6 = vpop.f32.mrb[62].mxu0 }
0x451d   :  { %v5878_v40 = vadd.f32 %v5874_v6, %v10825_v39  ;;  %v9136_v36 = vpop.f32.mrb[63].mxu0 }
0x451e   :  { %9987 = vmatpush3.bf16.msra.mxu1 %v11586_v48 }
0x451f   :  { %10454 = vtanh.f32 %v5878_v40  ;;  %10000 = vmatprep.subr.bf16.mxu1 %v10578_v14  ;;  %v7600_v16 = vmul.f32 -1.442695, %v5878_v40 }
0x4521   :  { %10456 = vpow2.f32 %v7600_v16 }
0x4529   :  { %v10455_v15 = vpop.eup %10454 }
0x452a   :  { %5888 = vrot.lane.b32.xlu1 %v10455_v15, %s12758_s14 }
0x452b   :  { %v10457_v55 = vpop.eup %10456 }
0x452c   :  { %v5882_v23 = vadd.f32 1.0, %v10457_v55 }
0x452e   :  { %10458 = vrcp.f32 %v5882_v23 }
0x4538   :  { %v10459_v50 = vpop.eup %10458 }
0x4539   :  { %v5886_v49 = vmul.f32 %v10459_v50, %v12173_v11 }
0x459c   :  { %v5889_v43 = vpop.permute.xlu1 %5888 }
0x459d   :  { %v5891_v10 = vmul.f32 %v10459_v50, %v5889_v43 }
0x459f   :  { %5893 = vrot.lane.b32.xlu0 %v5891_v10, %s12758_s14 }
0x45e4   :  { %v12299_v39 = vpop.f32.mrb[60].mxu1 }
0x45e5   :  { %v9117_v7 = vpop.f32.mrb[61].mxu1 }
0x4611   :  { %v5894_v61 = vpop.permute.xlu0 %5893 }
0x4612   :  { %v12302_v25 = vadd.f32 %v5894_v61, %v5886_v49 }
0x4614   :  { %10460 = vtanh.f32 %v12302_v25 }
0x461e   :  { %v10461_v62 = vpop.eup %10460 }
0x461f   :  { %5899 = vrot.lane.b32.xlu1 %v10461_v62, %s12758_s14 }
0x4623   :  { %5907 = vrot.lane.b32.xlu1 %v12203_v37, %s10583_s8 }
0x4691   :  { %v5900_v34 = vpop.permute.xlu1 %5899 }
0x4692   :  { %v12308_v53 = vmul.f32 %v10459_v50, %v5900_v34 }
0x4694   :  { %5904 = vrot.lane.b32.xlu0 %v12308_v53, %s10582_s13 }
0x4695   :  { %v5908_v56 = vpop.permute.xlu1 %5907 }
0x4706   :  { %v5905_v6 = vpop.permute.xlu0 %5904 }
0x4707   :  { %v5910_v11 = vsel %vm104_vm1, %v5905_v6, %v5908_v56 }
0x4708   :  { %9154 = vmatmul.mubr.msk.f32.vlgmr.msra.gmra.mrb[62].mxu1 %vm638_vm3, %v5910_v11 }
0x4709   :  { %10002 = vmatpush3.bf16.msra.mxu1 %v11685_v31  ;;  %9191 = vmatprep.mubr.msk.f32.mxu1 %vm10579_vm2, %v10580_v26 }
0x470a   :  { %10003 = vmatprep.subr.bf16.mxu1 %v10578_v14 }
0x470d   :  { %10005 = vmatpush3.bf16.msra.mxu1 %v11691_v4 }
0x470e   :  { %10006 = vmatprep.subr.bf16.mxu1 %v10578_v14 }
0x4711   :  { %10008 = vmatpush3.bf16.msra.mxu1 %v11702_v63 }
0x4712   :  { %10009 = vmatprep.subr.bf16.mxu1 %v10578_v14 }
0x4715   :  { %10011 = vmatpush3.bf16.msra.mxu1 %v11714_v13 }
0x4716   :  { %10018 = vmatprep.subr.bf16.mxu1 %v10578_v14 }
0x47db   :  { %v5980_v37 = vpop.f32.mrb[62].mxu1 }
0x47dc   :  { %v5981_v40 = vadd.f32 %v12079_v38, %v5980_v37  ;;  %v9155_v36 = vpop.f32.mrb[63].mxu1 }
0x47de   :  { %10462 = vtanh.f32 %v5981_v40  ;;  %v7602_v16 = vmul.f32 -1.442695, %v5981_v40 }
0x47e0   :  { %10464 = vpow2.f32 %v7602_v16 }
0x47e8   :  { %v10463_v15 = vpop.eup %10462 }
0x47e9   :  { %5993 = vrot.lane.b32.xlu0 %v10463_v15, %s12758_s14 }
0x47ea   :  { %v10465_v55 = vpop.eup %10464 }
0x47eb   :  { %v5987_v23 = vadd.f32 1.0, %v10465_v55 }
0x47ed   :  { %10466 = vrcp.f32 %v5987_v23 }
0x47f7   :  { %v10467_v50 = vpop.eup %10466 }
0x47f8   :  { %v5991_v7 = vmul.f32 %v10467_v50, %v12199_v60 }
0x485b   :  { %v5994_v43 = vpop.permute.xlu0 %5993 }
0x485c   :  { %v5996_v10 = vmul.f32 %v10467_v50, %v5994_v43 }
0x485e   :  { %5998 = vrot.lane.b32.xlu1 %v5996_v10, %s12758_s14 }
0x48d0   :  { %v5999_v49 = vpop.permute.xlu1 %5998 }
0x48d1   :  { %v12328_v61 = vadd.f32 %v5999_v49, %v5991_v7 }
0x48d3   :  { %10468 = vtanh.f32 %v12328_v61 }
0x48dd   :  { %v10469_v62 = vpop.eup %10468 }
0x48de   :  { %6004 = vrot.lane.b32.xlu0 %v10469_v62, %s12758_s14 }
0x4950   :  { %v6005_v34 = vpop.permute.xlu0 %6004 }
0x4951   :  { %v12332_v56 = vmul.f32 %v10467_v50, %v6005_v34 }
0x4953   :  { %6009 = vrot.lane.b32.xlu1 %v12332_v56, %s10582_s13 }
0x49c5   :  { %v6010_v6 = vpop.permute.xlu1 %6009 }
0x49c6   :  { %v6012_v11 = vsel %vm104_vm1, %v6010_v6, %v12235_v59 }
0x49c7   :  { %9173 = vmatmul.mubr.msk.f32.vlgmr.msra.gmra.mrb[64].mxu0 %vm638_vm3, %v6012_v11 }
0x49c8   :  { %10014 = vmatpush3.bf16.msra.mxu0 %v11725_v17  ;;  %9202 = vmatprep.mubr.msk.f32.mxu0 %vm10579_vm2, %v10580_v26 }
0x49c9   :  { %10015 = vmatprep.subr.bf16.mxu0 %v10578_v14 }
0x49cc   :  { %10017 = vmatpush3.bf16.msra.mxu0 %v11747_v20 }
0x49cd   :  { %10024 = vmatprep.subr.bf16.mxu0 %v10578_v14 }
0x4a9a   :  { %v6082_v60 = vpop.f32.mrb[64].mxu0 }
0x4a9b   :  { %v6083_v37 = vadd.f32 %v12219_v58, %v6082_v60  ;;  %v9174_v40 = vpop.f32.mrb[65].mxu0 }
0x4a9d   :  { %10470 = vtanh.f32 %v6083_v37  ;;  %v7604_v59 = vmul.f32 -1.442695, %v6083_v37 }
0x4a9f   :  { %10472 = vpow2.f32 %v7604_v59 }
0x4aa7   :  { %v10471_v36 = vpop.eup %10470 }
0x4aa8   :  { %6095 = vrot.lane.b32.xlu0 %v10471_v36, %s12758_s14 }
0x4aa9   :  { %v10473_v15 = vpop.eup %10472 }
0x4aaa   :  { %v6089_v16 = vadd.f32 1.0, %v10473_v15 }
0x4aac   :  { %10474 = vrcp.f32 %v6089_v16 }
0x4ab6   :  { %v10475_v55 = vpop.eup %10474 }
0x4ab7   :  { %v6093_v43 = vmul.f32 %v10475_v55, %v12225_v45 }
0x4b1a   :  { %v6096_v23 = vpop.permute.xlu0 %6095 }
0x4b1b   :  { %v6098_v50 = vmul.f32 %v10475_v55, %v6096_v23 }
0x4b1d   :  { %6100 = vrot.lane.b32.xlu1 %v6098_v50, %s12758_s14 }
0x4b8f   :  { %v6101_v10 = vpop.permute.xlu1 %6100 }
0x4b90   :  { %v12349_v7 = vadd.f32 %v6101_v10, %v6093_v43 }
0x4b92   :  { %10476 = vtanh.f32 %v12349_v7 }
0x4b9c   :  { %v10477_v49 = vpop.eup %10476 }
0x4b9d   :  { %6106 = vrot.lane.b32.xlu0 %v10477_v49, %s12758_s14 }
0x4ba1   :  { %2729 = vrot.lane.b32.xlu0 %v11527_v42, %s10582_s13 }
0x4c0f   :  { %v6107_v62 = vpop.permute.xlu0 %6106 }
0x4c10   :  { %v6109_v34 = vmul.f32 %v10475_v55, %v6107_v62 }
0x4c12   :  { %6111 = vrot.lane.b32.xlu1 %v6109_v34, %s10583_s8 }
0x4c13   :  { %v2730_v6 = vpop.permute.xlu0 %2729 }
0x4c14   :  { %2732 = vst.msk [vmem:[#allocation4 + $0x30] sm:$0xff] %vm104_vm1, %v2730_v6 }
0x4c16   :  { %6348 = vrot.lane.b32.xlu1 %v12308_v53, %s10583_s8 }
0x4c1b   :  { %v12382_v40 = vld [vmem:[#allocation4 + $0x30] sm:$0xff] }
0x4c84   :  { %v12359_v45 = vpop.permute.xlu1 %6111 }
0x4c85   :  { %v6114_v11 = vsel %vm104_vm1, %v12263_v29, %v12359_v45 }
0x4c86   :  { %9192 = vmatmul.mubr.msk.f32.vlgmr.msra.gmra.mrb[64].mxu1 %vm638_vm3, %v6114_v11 }
0x4c87   :  { %10020 = vmatpush3.bf16.msra.mxu1 %v11757_v19  ;;  %9213 = vmatprep.mubr.msk.f32.mxu1 %vm10579_vm2, %v10580_v26 }
0x4c88   :  { %10021 = vmatprep.subr.bf16.mxu1 %v10578_v14  ;;  %v6349_v29 = vpop.permute.xlu1 %6348 }
0x4c89   :  { %v6351_v36 = vsel %vm104_vm1, %v12382_v40, %v6349_v29 }
0x4c8b   :  { %10023 = vmatpush3.bf16.msra.mxu1 %v11799_v0 }
0x4c8c   :  { %10036 = vmatprep.subr.bf16.mxu1 %v10578_v14 }
0x4d59   :  { %v6184_v42 = vpop.f32.mrb[64].mxu1 }
0x4d5a   :  { %v6185_v53 = vadd.f32 %v12250_v12, %v6184_v42  ;;  %v9193_v60 = vpop.f32.mrb[65].mxu1 }
0x4d5c   :  { %v6188_v37 = vmax.f32 %v6185_v53, 0.0 }
0x4d5e   :  { %9203 = vmatmul.mubr.msk.f32.vlgmr.msra.gmra.mrb[66].mxu0 %vm104_vm1, %v6188_v37 }
0x4d5f   :  { %10026 = vmatpush3.bf16.msra.mxu0 %v11450_v8  ;;  %9232 = vmatprep.mubr.msk.f32.mxu0 %vm10579_vm2, %v10580_v26 }
0x4d60   :  { %10027 = vmatprep.subr.bf16.mxu0 %v10578_v14 }
0x4d63   :  { %10029 = vmatpush3.bf16.msra.mxu0 %v11463_v21 }
0x4d64   :  { %10030 = vmatprep.subr.bf16.mxu0 %v10578_v14 }
0x4d67   :  { %10032 = vmatpush3.bf16.msra.mxu0 %v11475_v2 }
0x4d68   :  { %10033 = vmatprep.subr.bf16.mxu0 %v10578_v14 }
0x4d6b   :  { %10035 = vmatpush3.bf16.msra.mxu0 %v11485_v3 }
0x4d6c   :  { %10048 = vmatprep.subr.bf16.mxu0 %v10578_v14 }
0x4d6e   :  { %9233 = vmatmul.mubr.msk.f32.vlgmr.msra.gmra.mrb[68].mxu0 %vm638_vm3, %v6351_v36 }
0x4d6f   :  { %10050 = vmatpush3.bf16.msra.mxu0 %v11617_v46  ;;  %9270 = vmatprep.mubr.msk.f32.mxu0 %vm10579_vm2, %v10580_v26 }
0x4d70   :  { %10051 = vmatprep.subr.bf16.mxu0 %v10578_v14 }
0x4d73   :  { %10053 = vmatpush3.bf16.msra.mxu0 %v11623_v52 }
0x4d74   :  { %10054 = vmatprep.subr.bf16.mxu0 %v10578_v14 }
0x4d77   :  { %10056 = vmatpush3.bf16.msra.mxu0 %v11633_v32 }
0x4d78   :  { %10057 = vmatprep.subr.bf16.mxu0 %v10578_v14 }
0x4d7b   :  { %10059 = vmatpush3.bf16.msra.mxu0 %v11647_v24 }
0x4d7c   :  { %10072 = vmatprep.subr.bf16.mxu0 %v10578_v14 }
0x4e31   :  { %v6258_v59 = vpop.f32.mrb[66].mxu0 }
0x4e32   :  { %v6259_v15 = vadd.f32 %v12282_v51, %v6258_v59  ;;  %v9204_v16 = vpop.f32.mrb[67].mxu0 }
0x4e34   :  { %v6262_v55 = vmax.f32 %v6259_v15, 0.0 }
0x4e36   :  { %9214 = vmatmul.mubr.msk.f32.vlgmr.msra.gmra.mrb[66].mxu1 %vm104_vm1, %v6262_v55 }
0x4e37   :  { %10038 = vmatpush3.bf16.msra.mxu1 %v11550_v28  ;;  %9251 = vmatprep.mubr.msk.f32.mxu1 %vm10579_vm2, %v10580_v26 }
0x4e38   :  { %10039 = vmatprep.subr.bf16.mxu1 %v10578_v14 }
0x4e3b   :  { %10041 = vmatpush3.bf16.msra.mxu1 %v11564_v22 }
0x4e3c   :  { %10042 = vmatprep.subr.bf16.mxu1 %v10578_v14 }
0x4e3f   :  { %10044 = vmatpush3.bf16.msra.mxu1 %v11576_v54 }
0x4e40   :  { %10045 = vmatprep.subr.bf16.mxu1 %v10578_v14 }
0x4e41   :  { %v6421_v23 = vpop.f32.mrb[68].mxu0 }
0x4e42   :  { %v6425_v50 = vadd.f32 %v6421_v23, %v10837_v47  ;;  %v9234_v43 = vpop.f32.mrb[69].mxu0 }
0x4e43   :  { %10047 = vmatpush3.bf16.msra.mxu1 %v11586_v48 }
0x4e44   :  { %10478 = vtanh.f32 %v6425_v50  ;;  %10060 = vmatprep.subr.bf16.mxu1 %v10578_v14  ;;  %v7609_v49 = vmul.f32 -1.442695, %v6425_v50 }
0x4e46   :  { %10480 = vpow2.f32 %v7609_v49 }
0x4e4e   :  { %v10479_v10 = vpop.eup %10478 }
0x4e4f   :  { %6435 = vrot.lane.b32.xlu0 %v10479_v10, %s12758_s14 }
0x4e50   :  { %v10481_v62 = vpop.eup %10480 }
0x4e51   :  { %v6429_v34 = vadd.f32 1.0, %v10481_v62 }
0x4e53   :  { %10482 = vrcp.f32 %v6429_v34 }
0x4e5d   :  { %v10483_v6 = vpop.eup %10482 }
0x4e5e   :  { %v6433_v60 = vmul.f32 %v10483_v6, %v12302_v25 }
0x4ec1   :  { %v6436_v11 = vpop.permute.xlu0 %6435 }
0x4ec2   :  { %v6438_v42 = vmul.f32 %v10483_v6, %v6436_v11 }
0x4ec4   :  { %6440 = vrot.lane.b32.xlu1 %v6438_v42, %s12758_s14 }
0x4f09   :  { %v12413_v47 = vpop.f32.mrb[66].mxu1 }
0x4f0a   :  { %v9215_v53 = vpop.f32.mrb[67].mxu1 }
0x4f36   :  { %v6441_v37 = vpop.permute.xlu1 %6440 }
0x4f37   :  { %v12416_v29 = vadd.f32 %v6441_v37, %v6433_v60 }
0x4f39   :  { %10484 = vtanh.f32 %v12416_v29 }
0x4f43   :  { %v10485_v36 = vpop.eup %10484 }
0x4f44   :  { %6446 = vrot.lane.b32.xlu0 %v10485_v36, %s12758_s14 }
0x4f48   :  { %6454 = vrot.lane.b32.xlu0 %v12332_v56, %s10583_s8 }
0x4fb6   :  { %v6447_v59 = vpop.permute.xlu0 %6446 }
0x4fb7   :  { %v12422_v15 = vmul.f32 %v10483_v6, %v6447_v59 }
0x4fb9   :  { %6451 = vrot.lane.b32.xlu1 %v12422_v15, %s10582_s13 }
0x4fba   :  { %v6455_v16 = vpop.permute.xlu0 %6454 }
0x502b   :  { %v6452_v55 = vpop.permute.xlu1 %6451 }
0x502c   :  { %v6457_v25 = vsel %vm104_vm1, %v6452_v55, %v6455_v16 }
0x502d   :  { %9252 = vmatmul.mubr.msk.f32.vlgmr.msra.gmra.mrb[68].mxu1 %vm638_vm3, %v6457_v25 }
0x502e   :  { %10062 = vmatpush3.bf16.msra.mxu1 %v11685_v31  ;;  %9289 = vmatprep.mubr.msk.f32.mxu1 %vm10579_vm2, %v10580_v26 }
0x502f   :  { %10063 = vmatprep.subr.bf16.mxu1 %v10578_v14 }
0x5032   :  { %10065 = vmatpush3.bf16.msra.mxu1 %v11691_v4 }
0x5033   :  { %10066 = vmatprep.subr.bf16.mxu1 %v10578_v14 }
0x5036   :  { %10068 = vmatpush3.bf16.msra.mxu1 %v11702_v63 }
0x5037   :  { %10069 = vmatprep.subr.bf16.mxu1 %v10578_v14 }
0x503a   :  { %10071 = vmatpush3.bf16.msra.mxu1 %v11714_v13 }
0x503b   :  { %10078 = vmatprep.subr.bf16.mxu1 %v10578_v14 }
0x5100   :  { %v6527_v56 = vpop.f32.mrb[68].mxu1 }
0x5101   :  { %v6528_v23 = vadd.f32 %v12079_v38, %v6527_v56  ;;  %v9253_v50 = vpop.f32.mrb[69].mxu1 }
0x5103   :  { %10486 = vtanh.f32 %v6528_v23  ;;  %v7611_v10 = vmul.f32 -1.442695, %v6528_v23 }
0x5105   :  { %10488 = vpow2.f32 %v7611_v10 }
0x510d   :  { %v10487_v43 = vpop.eup %10486 }
0x510e   :  { %6540 = vrot.lane.b32.xlu1 %v10487_v43, %s12758_s14 }
0x510f   :  { %v10489_v49 = vpop.eup %10488 }
0x5110   :  { %v6534_v62 = vadd.f32 1.0, %v10489_v49 }
0x5112   :  { %10490 = vrcp.f32 %v6534_v62 }
0x511c   :  { %v10491_v34 = vpop.eup %10490 }
0x511d   :  { %v6538_v42 = vmul.f32 %v10491_v34, %v12328_v61 }
0x5180   :  { %v6541_v6 = vpop.permute.xlu1 %6540 }
0x5181   :  { %v6543_v11 = vmul.f32 %v10491_v34, %v6541_v6 }
0x5183   :  { %6545 = vrot.lane.b32.xlu0 %v6543_v11, %s12758_s14  ;;  %v10574_v11 = vld [vmem:[%s12704_s12] ss:$0 sm:$0xff] }
0x51f5   :  { %v6546_v53 = vpop.permute.xlu0 %6545 }
0x51f6   :  { %v12442_v60 = vadd.f32 %v6546_v53, %v6538_v42  ;;  %v3014_v42 = vadd.f32 %v10574_v11, %v11595_v5 }
0x51f8   :  { %10492 = vtanh.f32 %v12442_v60 }
0x5202   :  { %v10493_v38 = vpop.eup %10492 }
0x5203   :  { %6551 = vrot.lane.b32.xlu1 %v10493_v38, %s12758_s14 }
0x5275   :  { %v6552_v37 = vpop.permute.xlu1 %6551 }
0x5276   :  { %v12446_v36 = vmul.f32 %v10491_v34, %v6552_v37  ;;  %v7553_v37 = vmul.f32 -1.442695, %v3014_v42 }
0x5278   :  { %6556 = vrot.lane.b32.xlu0 %v12446_v36, %s10582_s13 }
0x52ea   :  { %v6557_v59 = vpop.permute.xlu0 %6556 }
0x52eb   :  { %v6559_v16 = vsel %vm104_vm1, %v6557_v59, %v12359_v45 }
0x52ec   :  { %9271 = vmatmul.mubr.msk.f32.vlgmr.msra.gmra.mrb[70].mxu0 %vm638_vm3, %v6559_v16 }
0x52ed   :  { %10074 = vmatpush3.bf16.msra.mxu0 %v11725_v17  ;;  %9300 = vmatprep.mubr.msk.f32.mxu0 %vm10579_vm2, %v10580_v26 }
0x52ee   :  { %10075 = vmatprep.subr.bf16.mxu0 %v10578_v14 }
0x52f1   :  { %10077 = vmatpush3.bf16.msra.mxu0 %v11747_v20 }
0x52f2   :  { %10084 = vmatprep.subr.bf16.mxu0 %v10578_v14 }
0x53bf   :  { %v6629_v61 = vpop.f32.mrb[70].mxu0 }
0x53c0   :  { %v6630_v55 = vadd.f32 %v12219_v58, %v6629_v61  ;;  %v9272_v25 = vpop.f32.mrb[71].mxu0 }
0x53c2   :  { %10494 = vtanh.f32 %v6630_v55  ;;  %v7613_v45 = vmul.f32 -1.442695, %v6630_v55 }
0x53c4   :  { %10496 = vpow2.f32 %v7613_v45 }
0x53cc   :  { %v10495_v56 = vpop.eup %10494 }
0x53cd   :  { %6642 = vrot.lane.b32.xlu1 %v10495_v56, %s12758_s14 }
0x53ce   :  { %v10497_v23 = vpop.eup %10496 }
0x53cf   :  { %v6636_v50 = vadd.f32 1.0, %v10497_v23 }
0x53d1   :  { %10498 = vrcp.f32 %v6636_v50 }
0x53db   :  { %v10499_v43 = vpop.eup %10498 }
0x53dc   :  { %v6640_v62 = vmul.f32 %v10499_v43, %v12349_v7 }
0x543f   :  { %v6643_v10 = vpop.permute.xlu1 %6642 }
0x5440   :  { %v6645_v49 = vmul.f32 %v10499_v43, %v6643_v10 }
0x5442   :  { %6647 = vrot.lane.b32.xlu0 %v6645_v49, %s12758_s14 }
0x54b4   :  { %v6648_v34 = vpop.permute.xlu0 %6647 }
0x54b5   :  { %v12463_v6 = vadd.f32 %v6648_v34, %v6640_v62 }
0x54b7   :  { %10500 = vtanh.f32 %v12463_v6 }
0x54b8   :  { %10502 = vtanh.f32 %v3014_v42 }
0x54b9   :  { %10504 = vpow2.f32 %v7553_v37 }
0x54c1   :  { %v10501_v53 = vpop.eup %10500 }
0x54c2   :  { %6653 = vrot.lane.b32.xlu1 %v10501_v53, %s12758_s14  ;;  %v10503_v38 = vpop.eup %10502 }
0x54c3   :  { %v10505_v7 = vpop.eup %10504 }
0x54c4   :  { %v3020_v59 = vadd.f32 1.0, %v10505_v7 }
0x54c6   :  { %3026 = vrot.lane.b32.xlu1 %v10503_v38, %s12758_s14  ;;  %10506 = vrcp.f32 %v3020_v59 }
0x54d0   :  { %v10507_v55 = vpop.eup %10506 }
0x54d1   :  { %v3024_v23 = vmul.f32 %v10507_v55, %v11514_v1 }
0x5534   :  { %v6654_v16 = vpop.permute.xlu1 %6653 }
0x5535   :  { %v6656_v61 = vmul.f32 %v10499_v43, %v6654_v16 }
0x5537   :  { %6658 = vrot.lane.b32.xlu0 %v6656_v61, %s10583_s8 }
0x5538   :  { %v3027_v5 = vpop.permute.xlu1 %3026 }
0x5539   :  { %v3029_v25 = vmul.f32 %v10507_v55, %v3027_v5 }
0x553b   :  { %3031 = vrot.lane.b32.xlu0 %v3029_v25, %s12758_s14 }
0x55a9   :  { %v12474_v56 = vpop.permute.xlu0 %6658 }
0x55aa   :  { %v6661_v45 = vsel %vm104_vm1, %v12382_v40, %v12474_v56 }
0x55ab   :  { %9290 = vmatmul.mubr.msk.f32.vlgmr.msra.gmra.mrb[70].mxu1 %vm638_vm3, %v6661_v45 }
0x55ac   :  { %10080 = vmatpush3.bf16.msra.mxu1 %v11757_v19  ;;  %9311 = vmatprep.mubr.msk.f32.mxu1 %vm10579_vm2, %v10580_v26 }
0x55ad   :  { %v3032_v50 = vpop.permute.xlu0 %3031  ;;  %10081 = vmatprep.subr.bf16.mxu1 %v10578_v14 }
0x55ae   :  { %v12485_v43 = vadd.f32 %v3032_v50, %v3024_v23 }
0x55b0   :  { %10508 = vtanh.f32 %v12485_v43  ;;  %10083 = vmatpush3.bf16.msra.mxu1 %v11799_v0 }
0x55b1   :  { %10096 = vmatprep.subr.bf16.mxu1 %v10578_v14 }
0x55ba   :  { %v10509_v40 = vpop.eup %10508 }
0x55bb   :  { %3037 = vrot.lane.b32.xlu1 %v10509_v40, %s12758_s14 }
0x55bf   :  { %6895 = vrot.lane.b32.xlu1 %v12422_v15, %s10583_s8 }
0x562d   :  { %v3038_v1 = vpop.permute.xlu1 %3037 }
0x562e   :  { %v3040_v10 = vmul.f32 %v10507_v55, %v3038_v1 }
0x5630   :  { %3042 = vrot.lane.b32.xlu0 %v3040_v10, %s10582_s13 }
0x567e   :  { %v6731_v49 = vpop.f32.mrb[70].mxu1 }
0x567f   :  { %v6732_v62 = vadd.f32 %v12250_v12, %v6731_v49  ;;  %v9291_v34 = vpop.f32.mrb[71].mxu1 }
0x5681   :  { %v6735_v11 = vmax.f32 %v6732_v62, 0.0 }
0x5683   :  { %9301 = vmatmul.mubr.msk.f32.vlgmr.msra.gmra.mrb[72].mxu0 %vm104_vm1, %v6735_v11 }
0x5684   :  { %10086 = vmatpush3.bf16.msra.mxu0 %v11450_v8  ;;  %9330 = vmatprep.mubr.msk.f32.mxu0 %vm10579_vm2, %v10580_v26  ;;  %v6896_v8 = vpop.permute.xlu1 %6895 }
0x5685   :  { %10087 = vmatprep.subr.bf16.mxu0 %v10578_v14 }
0x5688   :  { %10089 = vmatpush3.bf16.msra.mxu0 %v11463_v21 }
0x5689   :  { %10090 = vmatprep.subr.bf16.mxu0 %v10578_v14 }
0x568c   :  { %10092 = vmatpush3.bf16.msra.mxu0 %v11475_v2 }
0x568d   :  { %10093 = vmatprep.subr.bf16.mxu0 %v10578_v14 }
0x5690   :  { %10095 = vmatpush3.bf16.msra.mxu0 %v11485_v3 }
0x5691   :  { %10108 = vmatprep.subr.bf16.mxu0 %v10578_v14 }
0x56a2   :  { %v12506_v12 = vpop.permute.xlu0 %3042 }
0x56a3   :  { %3045 = vst.msk [vmem:[#allocation4 + $0x38] sm:$0xff] %vm104_vm1, %v12506_v12 }
0x56aa   :  { %v12510_v15 = vld [vmem:[#allocation4 + $0x38] sm:$0xff] }
0x56ab   :  { %v6898_v21 = vsel %vm104_vm1, %v12510_v15, %v6896_v8 }
0x56ac   :  { %9331 = vmatmul.mubr.msk.f32.vlgmr.msra.gmra.mrb[74].mxu0 %vm638_vm3, %v6898_v21 }
0x56ad   :  { %10110 = vmatpush3.bf16.msra.mxu0 %v11617_v46  ;;  %9368 = vmatprep.mubr.msk.f32.mxu0 %vm10579_vm2, %v10580_v26 }
0x56ae   :  { %10111 = vmatprep.subr.bf16.mxu0 %v10578_v14 }
0x56b1   :  { %10113 = vmatpush3.bf16.msra.mxu0 %v11623_v52 }
0x56b2   :  { %10114 = vmatprep.subr.bf16.mxu0 %v10578_v14 }
0x56b5   :  { %10116 = vmatpush3.bf16.msra.mxu0 %v11633_v32 }
0x56b6   :  { %10117 = vmatprep.subr.bf16.mxu0 %v10578_v14 }
0x56b9   :  { %10119 = vmatpush3.bf16.msra.mxu0 %v11647_v24 }
0x56ba   :  { %10132 = vmatprep.subr.bf16.mxu0 %v10578_v14 }
0x5756   :  { %v6805_v2 = vpop.f32.mrb[72].mxu0 }
0x5757   :  { %v6806_v3 = vadd.f32 %v12282_v51, %v6805_v2  ;;  %v9302_v46 = vpop.f32.mrb[73].mxu0 }
0x5759   :  { %v6809_v42 = vmax.f32 %v6806_v3, 0.0 }
0x575b   :  { %9312 = vmatmul.mubr.msk.f32.vlgmr.msra.gmra.mrb[72].mxu1 %vm104_vm1, %v6809_v42 }
0x575c   :  { %10098 = vmatpush3.bf16.msra.mxu1 %v11550_v28  ;;  %9349 = vmatprep.mubr.msk.f32.mxu1 %vm10579_vm2, %v10580_v26 }
0x575d   :  { %10099 = vmatprep.subr.bf16.mxu1 %v10578_v14 }
0x5760   :  { %10101 = vmatpush3.bf16.msra.mxu1 %v11564_v22 }
0x5761   :  { %10102 = vmatprep.subr.bf16.mxu1 %v10578_v14 }
0x5764   :  { %10104 = vmatpush3.bf16.msra.mxu1 %v11576_v54 }
0x5765   :  { %10105 = vmatprep.subr.bf16.mxu1 %v10578_v14 }
0x5768   :  { %10107 = vmatpush3.bf16.msra.mxu1 %v11586_v48 }
0x5769   :  { %10120 = vmatprep.subr.bf16.mxu1 %v10578_v14 }
0x577f   :  { %v6968_v52 = vpop.f32.mrb[74].mxu0 }
0x5780   :  { %v6972_v28 = vadd.f32 %v6968_v52, %v10834_v44  ;;  %v9332_v32 = vpop.f32.mrb[75].mxu0 }
0x5782   :  { %10510 = vtanh.f32 %v6972_v28  ;;  %v7618_v51 = vmul.f32 -1.442695, %v6972_v28 }
0x5784   :  { %10512 = vpow2.f32 %v7618_v51 }
0x578c   :  { %v10511_v24 = vpop.eup %10510 }
0x578d   :  { %6982 = vrot.lane.b32.xlu0 %v10511_v24, %s12758_s14 }
0x578e   :  { %v10513_v22 = vpop.eup %10512 }
0x578f   :  { %v6976_v53 = vadd.f32 1.0, %v10513_v22 }
0x5791   :  { %10514 = vrcp.f32 %v6976_v53 }
0x579b   :  { %v10515_v54 = vpop.eup %10514 }
0x579c   :  { %v6980_v44 = vmul.f32 %v10515_v54, %v12416_v29 }
0x57ff   :  { %v6983_v38 = vpop.permute.xlu0 %6982 }
0x5800   :  { %v6985_v37 = vmul.f32 %v10515_v54, %v6983_v38  ;;  %v12598_v38 = vld [vmem:[%s12717_s25] ss:$0 sm:$0xff] }
0x5802   :  { %6987 = vrot.lane.b32.xlu1 %v6985_v37, %s12758_s14  ;;  %v3598_v37 = vadd.f32 %v12598_v38, %v11823_v30  ;;  %v4692_v30 = vadd.f32 %v12598_v38, %v12051_v33 }
0x582e   :  { %v12540_v48 = vpop.f32.mrb[72].mxu1 }
0x582f   :  { %v9313_v7 = vpop.f32.mrb[73].mxu1 }
0x5874   :  { %v6988_v59 = vpop.permute.xlu1 %6987 }
0x5875   :  { %v12543_v16 = vadd.f32 %v6988_v59, %v6980_v44 }
0x5877   :  { %10516 = vtanh.f32 %v12543_v16 }
0x5881   :  { %v10517_v61 = vpop.eup %10516 }
0x5882   :  { %6993 = vrot.lane.b32.xlu0 %v10517_v61, %s12758_s14 }
0x5886   :  { %7001 = vrot.lane.b32.xlu0 %v12446_v36, %s10583_s8 }
0x58f4   :  { %v6994_v55 = vpop.permute.xlu0 %6993 }
0x58f5   :  { %v12549_v5 = vmul.f32 %v10515_v54, %v6994_v55 }
0x58f7   :  { %6998 = vrot.lane.b32.xlu1 %v12549_v5, %s10582_s13 }
0x58f8   :  { %v7002_v25 = vpop.permute.xlu0 %7001 }
0x5969   :  { %v6999_v45 = vpop.permute.xlu1 %6998 }
0x596a   :  { %v7004_v29 = vsel %vm104_vm1, %v6999_v45, %v7002_v25  ;;  %v4145_v25 = vadd.f32 %v12598_v38, %v11937_v35  ;;  %v5239_v45 = vadd.f32 %v12598_v38, %v12170_v41  ;;  %v6880_v35 = vadd.f32 %v12598_v38, %v12540_v48 }
0x596b   :  { %9350 = vmatmul.mubr.msk.f32.vlgmr.msra.gmra.mrb[74].mxu1 %vm638_vm3, %v7004_v29  ;;  %v5786_v29 = vadd.f32 %v12598_v38, %v12299_v39 }
0x596c   :  { %10122 = vmatpush3.bf16.msra.mxu1 %v11685_v31  ;;  %9387 = vmatprep.mubr.msk.f32.mxu1 %vm10579_vm2, %v10580_v26  ;;  %v10575_v31 = vld [vmem:[%s12709_s17] ss:$0 sm:$0xff] }
0x596d   :  { %10123 = vmatprep.subr.bf16.mxu1 %v10578_v14 }
0x5970   :  { %10125 = vmatpush3.bf16.msra.mxu1 %v11691_v4 }
0x5971   :  { %10126 = vmatprep.subr.bf16.mxu1 %v10578_v14 }
0x5974   :  { %10128 = vmatpush3.bf16.msra.mxu1 %v11702_v63 }
0x5975   :  { %10129 = vmatprep.subr.bf16.mxu1 %v10578_v14 }
0x5978   :  { %10131 = vmatpush3.bf16.msra.mxu1 %v11714_v13 }
0x5979   :  { %10138 = vmatprep.subr.bf16.mxu1 %v10578_v14 }
0x5a3e   :  { %v7074_v36 = vpop.f32.mrb[74].mxu1 }
0x5a3f   :  { %v7075_v23 = vadd.f32 %v10575_v31, %v7074_v36  ;;  %v9351_v50 = vpop.f32.mrb[75].mxu1  ;;  %v6333_v36 = vadd.f32 %v12598_v38, %v12413_v47 }
0x5a41   :  { %10518 = vtanh.f32 %v7075_v23  ;;  %v7620_v4 = vmul.f32 -1.442695, %v7075_v23 }
0x5a43   :  { %10520 = vpow2.f32 %v7620_v4 }
0x5a4b   :  { %v10519_v40 = vpop.eup %10518 }
0x5a4c   :  { %7087 = vrot.lane.b32.xlu1 %v10519_v40, %s12758_s14 }
0x5a4d   :  { %v10521_v63 = vpop.eup %10520 }
0x5a4e   :  { %v7081_v1 = vadd.f32 1.0, %v10521_v63 }
0x5a50   :  { %10522 = vrcp.f32 %v7081_v1 }
0x5a5a   :  { %v10523_v10 = vpop.eup %10522 }
0x5a5b   :  { %v7085_v62 = vmul.f32 %v10523_v10, %v12442_v60 }
0x5abe   :  { %v7088_v13 = vpop.permute.xlu1 %7087 }
0x5abf   :  { %v7090_v49 = vmul.f32 %v10523_v10, %v7088_v13 }
0x5ac1   :  { %7092 = vrot.lane.b32.xlu0 %v7090_v49, %s12758_s14 }
0x5b33   :  { %v7093_v34 = vpop.permute.xlu0 %7092 }
0x5b34   :  { %v12571_v11 = vadd.f32 %v7093_v34, %v7085_v62 }
0x5b36   :  { %10524 = vtanh.f32 %v12571_v11 }
0x5b40   :  { %v10525_v8 = vpop.eup %10524 }
0x5b41   :  { %7098 = vrot.lane.b32.xlu1 %v10525_v8, %s12758_s14 }
0x5bb3   :  { %v7099_v21 = vpop.permute.xlu1 %7098 }
0x5bb4   :  { %v12575_v2 = vmul.f32 %v10523_v10, %v7099_v21 }
0x5bb6   :  { %7103 = vrot.lane.b32.xlu0 %v12575_v2, %s10582_s13 }
0x5c28   :  { %v7104_v3 = vpop.permute.xlu0 %7103 }
0x5c29   :  { %v7106_v46 = vsel %vm104_vm1, %v7104_v3, %v12474_v56 }
0x5c2a   :  { %9369 = vmatmul.mubr.msk.f32.vlgmr.msra.gmra.mrb[76].mxu0 %vm638_vm3, %v7106_v46 }
0x5c2b   :  { %10134 = vmatpush3.bf16.msra.mxu0 %v11725_v17  ;;  %9398 = vmatprep.mubr.msk.f32.mxu0 %vm10579_vm2, %v10580_v26 }
0x5c2c   :  { %10135 = vmatprep.subr.bf16.mxu0 %v10578_v14 }
0x5c2f   :  { %10137 = vmatpush3.bf16.msra.mxu0 %v11747_v20 }
0x5cfd   :  { %v7176_v60 = vpop.f32.mrb[76].mxu0 }
0x5cfe   :  { %v7177_v42 = vadd.f32 %v12219_v58, %v7176_v60  ;;  %v9370_v52 = vpop.f32.mrb[77].mxu0 }
0x5d00   :  { %10526 = vtanh.f32 %v7177_v42  ;;  %v7622_v56 = vmul.f32 -1.442695, %v7177_v42 }
0x5d02   :  { %10528 = vpow2.f32 %v7622_v56  ;;  %v10576_v56 = vld [vmem:[%s12715_s21] ss:$0 sm:$0xff] }
0x5d0a   :  { %v10527_v28 = vpop.eup %10526 }
0x5d0b   :  { %7189 = vrot.lane.b32.xlu1 %v10527_v28, %s12758_s14 }
0x5d0c   :  { %v10529_v32 = vpop.eup %10528 }
0x5d0d   :  { %v7183_v24 = vadd.f32 1.0, %v10529_v32 }
0x5d0f   :  { %10530 = vrcp.f32 %v7183_v24 }
0x5d19   :  { %v10531_v17 = vpop.eup %10530 }
0x5d1a   :  { %v7187_v20 = vmul.f32 %v10531_v17, %v12463_v6 }
0x5d7d   :  { %v7190_v51 = vpop.permute.xlu1 %7189 }
0x5d7e   :  { %v7192_v22 = vmul.f32 %v10531_v17, %v7190_v51 }
0x5d80   :  { %7194 = vrot.lane.b32.xlu0 %v7192_v22, %s12758_s14 }
0x5df2   :  { %v7195_v53 = vpop.permute.xlu0 %7194 }
0x5df3   :  { %v12591_v54 = vadd.f32 %v7195_v53, %v7187_v20 }
0x5df5   :  { %10532 = vtanh.f32 %v12591_v54 }
0x5dff   :  { %v10533_v58 = vpop.eup %10532 }
0x5e00   :  { %7200 = vrot.lane.b32.xlu1 %v10533_v58, %s12758_s14 }
0x5e24   :  { %3601 = vmax.xlane.f32.xlu1 %v3598_v37 }
0x5e72   :  { %v7201_v7 = vpop.permute.xlu1 %7200 }
0x5e73   :  { %v12602_v44 = vmul.f32 %v10531_v17, %v7201_v7 }
0x5e75   :  { %7205 = vrot.lane.b32.xlu0 %v12602_v44, %s10583_s8 }
0x5eb1   :  { %v3602_v6 = vpop.xlane.xlu1 %3601 }
0x5eb2   :  { %v3603_v59 = vsub.f32 %v3598_v37, %v3602_v6 }
0x5eb4   :  { %v3604_v61 = vmul.f32 1.442695, %v3603_v59 }
0x5eb6   :  { %10534 = vpow2.f32 %v3604_v61 }
0x5ec0   :  { %v10535_v55 = vpop.eup %10534 }
0x5ec1   :  { %3606 = vadd.xlane.f32.xlu0 %v10535_v55 }
0x5ec5   :  { %4148 = vmax.xlane.f32.xlu0 %v4145_v25 }
0x5ec9   :  { %4695 = vmax.xlane.f32.xlu0 %v4692_v30 }
0x5ecd   :  { %5242 = vmax.xlane.f32.xlu0 %v5239_v45 }
0x5ed1   :  { %5789 = vmax.xlane.f32.xlu0 %v5786_v29 }
0x5ed5   :  { %6336 = vmax.xlane.f32.xlu0 %v6333_v36 }
0x5ed9   :  { %6883 = vmax.xlane.f32.xlu0 %v6880_v35 }
0x5ee7   :  { %v7206_v31 = vpop.permute.xlu0 %7205 }
0x5ee8   :  { %v7208_v33 = vsel %vm104_vm1, %v12510_v15, %v7206_v31 }
0x5ee9   :  { %9388 = vmatmul.mubr.msk.f32.vlgmr.msra.gmra.mrb[76].mxu1 %vm638_vm3, %v7208_v33 }
0x5eea   :  { %10140 = vmatpush3.bf16.msra.mxu1 %v11757_v19  ;;  %9409 = vmatprep.mubr.msk.f32.mxu1 %vm10579_vm2, %v10580_v26 }
0x5eeb   :  { %10141 = vmatprep.subr.bf16.mxu1 %v10578_v14 }
0x5eee   :  { %10143 = vmatpush3.bf16.msra.mxu1 %v11799_v0 }
0x5f4e   :  { %v3607_v41 = vpop.xlane.xlu0 %3606 }
0x5f4f   :  { %10536 = vrcp.f32 %v3607_v41  ;;  %v10577_v41 = vld [vmem:[%s12716_s23] ss:$0 sm:$0xff] }
0x5f52   :  { %v4149_v39 = vpop.xlane.xlu0 %4148 }
0x5f53   :  { %v4150_v47 = vsub.f32 %v4145_v25, %v4149_v39 }
0x5f55   :  { %v4151_v48 = vmul.f32 1.442695, %v4150_v47 }
0x5f56   :  { %v4696_v23 = vpop.xlane.xlu0 %4695 }
0x5f57   :  { %10538 = vpow2.f32 %v4151_v48  ;;  %v4697_v50 = vsub.f32 %v4692_v30, %v4696_v23  ;;  %v7453_v30 = vsel %vm104_vm1, %v11552_v18, %v11519_v27 }
0x5f59   :  { %v10537_v15 = vpop.eup %10536  ;;  %v4698_v40 = vmul.f32 1.442695, %v4697_v50 }
0x5f5a   :  { %v3609_v4 = vmul.f32 %v10537_v15, %v10535_v55  ;;  %v5243_v63 = vpop.xlane.xlu0 %5242 }
0x5f5b   :  { %10540 = vpow2.f32 %v4698_v40  ;;  %v5244_v19 = vsub.f32 %v5239_v45, %v5243_v63  ;;  %v7444_v63 = vsel %vm104_vm1, %v11437_v57, %v11412_v9  ;;  %v7461_v9 = vsel %vm104_vm1, %v12506_v12, %v12485_v43 }
0x5f5c   :  { %3610 = vst [vmem:[%s12718_s26] sm:$0xff] %v3609_v4  ;;  %v7462_v57 = vsel %vm638_vm3, %v7461_v9, %v12602_v44 }
0x5f5d   :  { %v5245_v14 = vmul.f32 1.442695, %v5244_v19 }
0x5f5e   :  { %v5790_v26 = vpop.xlane.xlu0 %5789 }
0x5f5f   :  { %10542 = vpow2.f32 %v5245_v14  ;;  %v5791_v0 = vsub.f32 %v5786_v29, %v5790_v26  ;;  %v7454_v29 = vsel %vm638_vm3, %v7453_v30, %v12575_v2  ;;  %v7445_v14 = vsel %vm638_vm3, %v7444_v63, %v12549_v5 }
0x5f61   :  { %v10539_v1 = vpop.eup %10538  ;;  %v5792_v10 = vmul.f32 1.442695, %v5791_v0 }
0x5f62   :  { %4153 = vadd.xlane.f32.xlu1 %v10539_v1  ;;  %v6337_v13 = vpop.xlane.xlu0 %6336 }
0x5f63   :  { %10544 = vpow2.f32 %v5792_v10  ;;  %v6338_v49 = vsub.f32 %v6333_v36, %v6337_v13 }
0x5f65   :  { %v10541_v62 = vpop.eup %10540  ;;  %v6339_v34 = vmul.f32 1.442695, %v6338_v49 }
0x5f66   :  { %4700 = vadd.xlane.f32.xlu1 %v10541_v62  ;;  %v6884_v8 = vpop.xlane.xlu0 %6883 }
0x5f67   :  { %10546 = vpow2.f32 %v6339_v34  ;;  %v6885_v21 = vsub.f32 %v6880_v35, %v6884_v8 }
0x5f69   :  { %v10543_v3 = vpop.eup %10542  ;;  %v6886_v46 = vmul.f32 1.442695, %v6885_v21 }
0x5f6a   :  { %5247 = vadd.xlane.f32.xlu1 %v10543_v3 }
0x5f6b   :  { %10548 = vpow2.f32 %v6886_v46 }
0x5f6d   :  { %v10545_v60 = vpop.eup %10544 }
0x5f6e   :  { %5794 = vadd.xlane.f32.xlu1 %v10545_v60 }
0x5f71   :  { %v10547_v42 = vpop.eup %10546 }
0x5f72   :  { %6341 = vadd.xlane.f32.xlu1 %v10547_v42 }
0x5f75   :  { %v10549_v52 = vpop.eup %10548 }
0x5f76   :  { %6888 = vadd.xlane.f32.xlu1 %v10549_v52 }
0x5f87   :  { %7450 = vrot.lane.b32.xlu1 %v12571_v11, %s10582_s13 }
0x5fbc   :  { %v7278_v28 = vpop.f32.mrb[76].mxu1 }
0x5fbd   :  { %v7279_v32 = vadd.f32 %v10576_v56, %v7278_v28  ;;  %v9389_v24 = vpop.f32.mrb[77].mxu1 }
0x5fbf   :  { %v7282_v17 = vmax.f32 %v7279_v32, 0.0 }
0x5fc1   :  { %9399 = vmatmul.mubr.msk.f32.vlgmr.msra.gmra.mrb[78].mxu0 %vm104_vm1, %v7282_v17 }
0x5fef   :  { %v4154_v51 = vpop.xlane.xlu1 %4153 }
0x5ff0   :  { %10550 = vrcp.f32 %v4154_v51 }
0x5ff3   :  { %v4701_v22 = vpop.xlane.xlu1 %4700 }
0x5ff4   :  { %10552 = vrcp.f32 %v4701_v22 }
0x5ff7   :  { %v5248_v20 = vpop.xlane.xlu1 %5247 }
0x5ff8   :  { %10554 = vrcp.f32 %v5248_v20 }
0x5ffa   :  { %v10551_v53 = vpop.eup %10550 }
0x5ffb   :  { %v4156_v58 = vmul.f32 %v10551_v53, %v10539_v1  ;;  %v5795_v37 = vpop.xlane.xlu1 %5794 }
0x5ffc   :  { %10556 = vrcp.f32 %v5795_v37 }
0x5ffd   :  { %4157 = vst [vmem:[%s12718_s26 + $0x8] sm:$0xff] %v4156_v58 }
0x5ffe   :  { %v10553_v11 = vpop.eup %10552 }
0x5fff   :  { %v4703_v7 = vmul.f32 %v10553_v11, %v10541_v62  ;;  %v6342_v6 = vpop.xlane.xlu1 %6341 }
0x6000   :  { %10558 = vrcp.f32 %v6342_v6 }
0x6001   :  { %4704 = vst [vmem:[%s12718_s26 + $0x10] sm:$0xff] %v4703_v7 }
0x6002   :  { %v10555_v59 = vpop.eup %10554 }
0x6003   :  { %v5250_v61 = vmul.f32 %v10555_v59, %v10543_v3  ;;  %v6889_v55 = vpop.xlane.xlu1 %6888 }
0x6004   :  { %10560 = vrcp.f32 %v6889_v55 }
0x6005   :  { %5251 = vst [vmem:[%s12718_s26 + $0x18] sm:$0xff] %v5250_v61 }
0x6006   :  { %v10557_v25 = vpop.eup %10556 }
0x6007   :  { %v5797_v45 = vmul.f32 %v10557_v25, %v10545_v60  ;;  %v7451_v36 = vpop.permute.xlu1 %7450 }
0x6008   :  { %v7455_v35 = vsel %vm7446_vm4, %v7454_v29, %v7451_v36 }
0x6009   :  { %5798 = vst [vmem:[%s12718_s26 + $0x20] sm:$0xff] %v5797_v45  ;;  %7456 = vst [vmem:[%s12761_s24 + $0x8] sm:$0xff] %v7455_v35 }
0x600a   :  { %v10559_v31 = vpop.eup %10558 }
0x600b   :  { %v6344_v33 = vmul.f32 %v10559_v31, %v10547_v42 }
0x600d   :  { %6345 = vst [vmem:[%s12718_s26 + $0x28] sm:$0xff] %v6344_v33 }
0x600e   :  { %v10561_v27 = vpop.eup %10560 }
0x600f   :  { %v6891_v18 = vmul.f32 %v10561_v27, %v10549_v52 }
0x6011   :  { %6892 = vst [vmem:[%s12718_s26 + $0x30] sm:$0xff] %v6891_v18 }
0x6094   :  { %v7352_v2 = vpop.f32.mrb[78].mxu0 }
0x6095   :  { %v7353_v39 = vadd.f32 %v10577_v41, %v7352_v2  ;;  %v9400_v47 = vpop.f32.mrb[79].mxu0 }
0x6097   :  { %v7356_v48 = vmax.f32 %v7353_v39, 0.0 }
0x6099   :  { %9410 = vmatmul.mubr.msk.f32.vlgmr.msra.gmra.mrb[78].mxu1 %vm104_vm1, %v7356_v48 }
0x616c   :  { %v7426_v23 = vpop.f32.mrb[78].mxu1 }
0x616d   :  { %v7427_v50 = vadd.f32 %v12598_v38, %v7426_v23  ;;  %v9411_v15 = vpop.f32.mrb[79].mxu1 }
0x616f   :  { %7430 = vmax.xlane.f32.xlu0 %v7427_v50 }
0x6185   :  { %7441 = vrot.lane.b32.xlu0 %v12543_v16, %s10582_s13 }
0x61fc   :  { %v7431_v40 = vpop.xlane.xlu0 %7430 }
0x61fd   :  { %v7432_v4 = vsub.f32 %v7427_v50, %v7431_v40 }
0x61ff   :  { %v7433_v19 = vmul.f32 1.442695, %v7432_v4 }
0x6200   :  { %v7442_v26 = vpop.permute.xlu0 %7441 }
0x6201   :  { %10562 = vpow2.f32 %v7433_v19  ;;  %v7447_v0 = vsel %vm7446_vm4, %v7445_v14, %v7442_v26 }
0x6202   :  { %7448 = vst [vmem:[%s12761_s24] sm:$0xff] %v7447_v0 }
0x620b   :  { %v10563_v38 = vpop.eup %10562 }
0x620c   :  { %7435 = vadd.xlane.f32.xlu1 %v10563_v38 }
0x621d   :  { %7458 = vrot.lane.b32.xlu1 %v12591_v54, %s10582_s13 }
0x6299   :  { %v7436_v16 = vpop.xlane.xlu1 %7435 }
0x629a   :  { %10564 = vrcp.f32 %v7436_v16 }
0x629d   :  { %v7459_v5 = vpop.permute.xlu1 %7458 }
0x629e   :  { %v7463_v1 = vsel %vm7446_vm4, %v7462_v57, %v7459_v5 }
0x629f   :  { %7464 = vst [vmem:[%s12761_s24 + $0x10] sm:$0xff] %v7463_v1 }
0x62a4   :  { %v10565_v10 = vpop.eup %10564 }
0x62a5   :  { %v7438_v13 = vmul.f32 %v10565_v10, %v10563_v38 }
0x62a7   :  { %7439 = vst [vmem:[%s12718_s26 + $0x38] sm:$0xff] %v7438_v13 }

</bundles_post_ra>
